<compile_context>
chip_gen: v6e
topology: v6e:2x2x1
jax: 0.10.0
libtpu: 0.0.40
codegen_flags: <defaults>
</compile_context>

<pallas_src>
import functools

import jax
import jax.numpy as jnp
import numpy as np
from jax import lax
from jax.experimental import pallas as pl
from jax.experimental.pallas import tpu as pltpu


def _round_up(v, m):
    return ((v + m - 1) // m) * m


# ----------------------------------------------------------------------------
# Constant geometry matrices (built once in numpy, passed as kernel inputs)
# ----------------------------------------------------------------------------

@functools.lru_cache(maxsize=None)
def _conv_tap_matrices(h, w, m_pad):
    """T[t] is (m_pad, m_pad) 0/1 so that (x @ T[t])[:, i*w+j] equals
    x[:, (i+kh-1)*w + (j+kw-1)] (zero when the source pixel is outside the
    image), with tap index t = kh*3 + kw.  Rows/cols >= h*w stay zero."""
    t_mats = np.zeros((9, m_pad, m_pad), np.float32)
    for kh in range(3):
        for kw in range(3):
            t = kh * 3 + kw
            for i in range(h):
                for j in range(w):
                    si, sj = i + kh - 1, j + kw - 1
                    if 0 <= si < h and 0 <= sj < w:
                        t_mats[t, si * w + sj, i * w + j] = 1.0
    return t_mats


@functools.lru_cache(maxsize=None)
def _pool_select_matrix(h, w, m_pad, m_out_pad):
    """(m_pad, 4*m_out_pad): column k*m_out_pad + p selects the k-th candidate
    of 2x2 pool window p.  Columns for p >= pooled size are all-zero, so pad
    lanes of the pooled map are exact zeros."""
    hh, wh = h // 2, w // 2
    s = np.zeros((m_pad, 4 * m_out_pad), np.float32)
    for k, (oy, ox) in enumerate(((0, 0), (0, 1), (1, 0), (1, 1))):
        for p in range(hh * wh):
            i, j = p // wh, p % wh
            s[(2 * i + oy) * w + (2 * j + ox), k * m_out_pad + p] = 1.0
    return s


# ----------------------------------------------------------------------------
# Fused Pallas kernel: B samples per grid step, everything resident in VMEM
# ----------------------------------------------------------------------------

def _fused_kernel(x_ref,
                  w1_ref, b1_ref, t1_ref, s1_ref,
                  w2_ref, b2_ref, t2_ref, s2_ref,
                  w3_ref, b3_ref, t3_ref, s3_ref,
                  fcw_ref, fcb_ref,
                  out_ref,
                  col1_ref, col2_ref, col3_ref):

    def conv_bn_lrelu_pool(x_bf, w_ref, bias_ref, tap_ref, pool_ref, col_ref):
        bc = col_ref.shape[0] // 9          # rows per tap block = B * Cin_pad
        m_out = pool_ref.shape[1] // 4      # pooled lane width (>=128)
        # 1) im2col: 9 zero-filled shifts written at static sublane offsets.
        for t in range(9):                  # static unroll
            shifted = jnp.dot(x_bf, tap_ref[t],
                              preferred_element_type=jnp.float32)
            col_ref[pl.ds(t * bc, bc), :] = shifted.astype(col_ref.dtype)
        # 2) single big conv matmul (BN scale pre-folded into the weights).
        y = jnp.dot(w_ref[...], col_ref[...],
                    preferred_element_type=jnp.float32)     # (B*Cout, M)
        y = y + bias_ref[...]                                # conv bias + BN shift
        y = jnp.maximum(y, 0.01 * y)                         # LeakyReLU(0.01)
        # TODO(synk): nn.Dropout has no inference-time effect; identity here.
        # 3) merged 2x2 max-pool: one select matmul + maximum tree.
        cand = jnp.dot(y.astype(jnp.bfloat16), pool_ref[...],
                       preferred_element_type=jnp.float32)   # (B*Cout, 4*m_out)
        pooled = jnp.maximum(
            jnp.maximum(cand[:, 0:m_out], cand[:, m_out:2 * m_out]),
            jnp.maximum(cand[:, 2 * m_out:3 * m_out], cand[:, 3 * m_out:4 * m_out]))
        return pooled.astype(jnp.bfloat16)   # (B*Cout, m_out), pad lanes exact 0

    h = conv_bn_lrelu_pool(x_ref[0], w1_ref, b1_ref, t1_ref, s1_ref, col1_ref)
    h = conv_bn_lrelu_pool(h, w2_ref, b2_ref, t2_ref, s2_ref, col2_ref)
    h = conv_bn_lrelu_pool(h, w3_ref, b3_ref, t3_ref, s3_ref, col3_ref)

    # Global average pool (1/#pixels folded into the FC weight) + block-diag FC.
    gap = jnp.sum(h.astype(jnp.float32), axis=1, keepdims=True)   # (B*64, 1)
    logits = jnp.dot(fcw_ref[...], gap,
                     preferred_element_type=jnp.float32) + fcb_ref[...]
    out_ref[0] = jnp.broadcast_to(logits, out_ref.shape[1:]).astype(out_ref.dtype)


def _const_spec(shape):
    zeros = (0,) * len(shape)
    return pl.BlockSpec(shape, lambda n: zeros)


def _fold_bn(p, eps=1e-5):
    scale = p["gamma"] / jnp.sqrt(p["var"] + eps)
    bias = (p["b"] - p["mean"]) * scale + p["beta"]
    return scale, bias


# ----------------------------------------------------------------------------
# Wrapper: parameter folding, block-diagonal batching, single pallas_call
# ----------------------------------------------------------------------------

def emotion_cnn_forward(x_nchw, params, batch_tile=4):
    N, cin0, H, W = x_nchw.shape
    assert H % 8 == 0 and W % 8 == 0, "three exact 2x2 pools need H, W % 8 == 0"
    num_classes = params["fc_w"].shape[0]
    nc_pad = _round_up(max(num_classes, 1), 8)

    # Samples per grid step (B*Cout_max = 256 rows fills the v6e/v7x MXU).
    B = max(1, min(batch_tile, N))
    n_pad = _round_up(N, B)
    steps = n_pad // B

    # Per-layer geometry: flattened spatial map on the lane axis.
    hs = [H, H // 2, H // 4]
    ws = [W, W // 2, W // 4]
    m_pads = [max(128, _round_up(hs[l] * ws[l], 128)) for l in range(3)]
    m_outs = [m_pads[1], m_pads[2],
              max(128, _round_up((hs[2] // 2) * (ws[2] // 2), 128))]

    # Layer-1 input: (N,1,H,W) -> (steps, B*8, M1) bf16 (channels padded to 8).
    cin_pad0 = _round_up(max(cin0, 8), 8)
    m0 = H * W
    x = x_nchw.astype(jnp.float32).reshape(N, cin0, m0)
    x = jnp.pad(x, ((0, n_pad - N), (0, cin_pad0 - cin0), (0, m_pads[0] - m0)))
    x = x.reshape(steps, B * cin_pad0, m_pads[0]).astype(jnp.bfloat16)

    inputs = [x]
    in_specs = [pl.BlockSpec((1, B * cin_pad0, m_pads[0]), lambda n: (n, 0, 0))]

    eye_b = jnp.eye(B, dtype=jnp.float32)
    cin_pads = [cin_pad0]
    col_shapes = []
    for li, name in enumerate(("b1", "b2", "b3")):
        p = params[name]
        cout, cin = p["w"].shape[0], p["w"].shape[1]
        cin_pad = cin_pads[li]
        scale, bias = _fold_bn(p)
        # Fold BN scale into the weights; (Cout,Cin,3,3) -> (9, Cout, Cin_pad).
        w9 = p["w"].astype(jnp.float32) * scale[:, None, None, None]
        w9 = jnp.transpose(w9, (2, 3, 0, 1)).reshape(9, cout, cin)
        if cin < cin_pad:
            w9 = jnp.pad(w9, ((0, 0), (0, 0), (0, cin_pad - cin)))
        # Block-diagonal over the B batched samples, taps concatenated on K.
        w_cat = jnp.concatenate([jnp.kron(eye_b, w9[t]) for t in range(9)],
                                axis=1).astype(jnp.bfloat16)   # (B*Cout, 9*B*Cin)
        bias_b = jnp.tile(bias.astype(jnp.float32), B)[:, None]  # (B*Cout, 1)
        t9 = jnp.asarray(_conv_tap_matrices(hs[li], ws[li], m_pads[li]),
                         dtype=jnp.bfloat16)                      # (9, M, M)
        s_cat = jnp.asarray(_pool_select_matrix(hs[li], ws[li],
                                                m_pads[li], m_outs[li]),
                            dtype=jnp.bfloat16)                   # (M, 4*m_out)
        layer_inputs = [w_cat, bias_b, t9, s_cat]
        inputs += layer_inputs
        in_specs += [_const_spec(a.shape) for a in layer_inputs]
        col_shapes.append((9 * B * cin_pad, m_pads[li]))           # im2col scratch
        cin_pads.append(cout)                                      # next Cin

    gap_pixels = (hs[2] // 2) * (ws[2] // 2)
    fc_w = params["fc_w"].astype(jnp.float32) / float(gap_pixels)  # fold GAP mean
    fc_w = jnp.pad(fc_w, ((0, nc_pad - num_classes), (0, 0)))
    fc_w = jnp.kron(eye_b, fc_w)                                   # (B*ncp, B*64)
    fc_b = jnp.pad(params["fc_b"].astype(jnp.float32), (0, nc_pad - num_classes))
    fc_b = jnp.tile(fc_b, B)[:, None]                              # (B*ncp, 1)
    inputs += [fc_w, fc_b]
    in_specs += [_const_spec(fc_w.shape), _const_spec(fc_b.shape)]

    out = pl.pallas_call(
        _fused_kernel,
        out_shape=jax.ShapeDtypeStruct((steps, B * nc_pad, 128), jnp.float32),
        grid_spec=pltpu.PrefetchScalarGridSpec(
            num_scalar_prefetch=0,
            grid=(steps,),
            in_specs=in_specs,
            out_specs=pl.BlockSpec((1, B * nc_pad, 128), lambda n: (n, 0, 0)),
            scratch_shapes=[pltpu.VMEM(s, jnp.bfloat16) for s in col_shapes],
        ),
        compiler_params=pltpu.CompilerParams(
            dimension_semantics=("parallel",),
            vmem_limit_bytes=32 * 1024 * 1024,
        ),
    )(*inputs)

    logits = out[:, :, 0].reshape(n_pad, nc_pad)
    return logits[:N, :num_classes]


# ----------------------------------------------------------------------------
# Reference (plain JAX / XLA, f32) for correctness check
# ----------------------------------------------------------------------------

def _ref_block(x, p, eps=1e-5):
    y = lax.conv_general_dilated(
        x, p["w"], window_strides=(1, 1), padding=((1, 1), (1, 1)),
        dimension_numbers=("NCHW", "OIHW", "NCHW"))
    y = y + p["b"][None, :, None, None]
    inv = (p["gamma"] / jnp.sqrt(p["var"] + eps))
    y = (y - p["mean"][None, :, None, None]) * inv[None, :, None, None] \
        + p["beta"][None, :, None, None]
    y = jnp.where(y > 0, y, 0.01 * y)
    n, c, h, w = y.shape
    return y.reshape(n, c, h // 2, 2, w // 2, 2).max(axis=(3, 5))


def ref_forward(x, params):
    y = x
    for blk in ("b1", "b2", "b3"):
        y = _ref_block(y, params[blk])
    feats = y.mean(axis=(2, 3))
    return feats @ params["fc_w"].T + params["fc_b"]


# ----------------------------------------------------------------------------
# Deterministic parameter init
# ----------------------------------------------------------------------------

def init_params(key, num_classes=7):
    def conv_p(k, cin, cout):
        k1, k2, k3, k4, k5, k6 = jax.random.split(k, 6)
        return {
            "w": 0.1 * jax.random.normal(k1, (cout, cin, 3, 3), jnp.float32),
            "b": 0.1 * jax.random.normal(k2, (cout,), jnp.float32),
            "gamma": 1.0 + 0.1 * jax.random.normal(k3, (cout,), jnp.float32),
            "beta": 0.1 * jax.random.normal(k4, (cout,), jnp.float32),
            "mean": 0.1 * jax.random.normal(k5, (cout,), jnp.float32),
            "var": jax.random.uniform(k6, (cout,), jnp.float32, minval=0.5, maxval=1.5),
        }

    kb1, kb2, kb3, kw, kb = jax.random.split(key, 5)
    return {
        "b1": conv_p(kb1, 1, 16),
        "b2": conv_p(kb2, 16, 32),
        "b3": conv_p(kb3, 32, 64),
        "fc_w": 0.1 * jax.random.normal(kw, (num_classes, 64), jnp.float32),
        "fc_b": 0.1 * jax.random.normal(kb, (num_classes,), jnp.float32),
    }


if __name__ == "__main__":
    key = jax.random.PRNGKey(0)
    kx, kp = jax.random.split(key)

    # N=8 -> 2 grid steps of B=4 samples (even grid so v7x can use both TCs).
    N, C, H, W = 8, 1, 16, 16
    x = jax.random.normal(kx, (N, C, H, W), jnp.float32)
    params = init_params(kp, num_classes=7)

    fwd = jax.jit(emotion_cnn_forward)
    out = jax.block_until_ready(fwd(x, params))
    assert out.shape == (N, 7), out.shape

    ref = jax.block_until_ready(ref_forward(x, params))
    err = float(jnp.max(jnp.abs(out - ref) / (1.0 + jnp.abs(ref))))
    assert err < 5e-2, f"mismatch vs reference, max rel err = {err}"

    print("KERNEL_OK")
</pallas_src>

<mosaic_0001>
module attributes {stable_mosaic.version = 11 : i64} {
  func.func @_fused_kernel(%arg0: i32, %arg1: memref<1x32x256xbf16, #tpu.memory_space<vmem>>, %arg2: memref<64x288xbf16, #tpu.memory_space<vmem>>, %arg3: memref<64x1xf32, #tpu.memory_space<vmem>>, %arg4: memref<9x256x256xbf16, #tpu.memory_space<vmem>>, %arg5: memref<256x512xbf16, #tpu.memory_space<vmem>>, %arg6: memref<128x576xbf16, #tpu.memory_space<vmem>>, %arg7: memref<128x1xf32, #tpu.memory_space<vmem>>, %arg8: memref<9x128x128xbf16, #tpu.memory_space<vmem>>, %arg9: memref<128x512xbf16, #tpu.memory_space<vmem>>, %arg10: memref<256x1152xbf16, #tpu.memory_space<vmem>>, %arg11: memref<256x1xf32, #tpu.memory_space<vmem>>, %arg12: memref<9x128x128xbf16, #tpu.memory_space<vmem>>, %arg13: memref<128x512xbf16, #tpu.memory_space<vmem>>, %arg14: memref<32x256xf32, #tpu.memory_space<vmem>>, %arg15: memref<32x1xf32, #tpu.memory_space<vmem>>, %arg16: memref<1x32x128xf32, #tpu.memory_space<vmem>>, %arg17: memref<288x256xbf16, #tpu.memory_space<vmem>>, %arg18: memref<576x128xbf16, #tpu.memory_space<vmem>>, %arg19: memref<1152x128xbf16, #tpu.memory_space<vmem>>) attributes {dimension_semantics = [#tpu.dimension_semantics<parallel>], iteration_bounds = array<i64: 2>, scalar_prefetch = 0 : i64, scratch_operands = 3 : i64, tpu.core_type = #tpu.core_type<tc>, window_params = [{transform_indices = @transform_0, window_bounds = array<i64: 1, 32, 256>}, {pipeline_mode = #tpu.pipeline_mode<synchronous>, transform_indices = @transform_1, window_bounds = array<i64: 64, 288>}, {pipeline_mode = #tpu.pipeline_mode<synchronous>, transform_indices = @transform_2, window_bounds = array<i64: 64, 1>}, {pipeline_mode = #tpu.pipeline_mode<synchronous>, transform_indices = @transform_3, window_bounds = array<i64: 9, 256, 256>}, {pipeline_mode = #tpu.pipeline_mode<synchronous>, transform_indices = @transform_4, window_bounds = array<i64: 256, 512>}, {pipeline_mode = #tpu.pipeline_mode<synchronous>, transform_indices = @transform_5, window_bounds = array<i64: 128, 576>}, {pipeline_mode = #tpu.pipeline_mode<synchronous>, transform_indices = @transform_6, window_bounds = array<i64: 128, 1>}, {pipeline_mode = #tpu.pipeline_mode<synchronous>, transform_indices = @transform_7, window_bounds = array<i64: 9, 128, 128>}, {pipeline_mode = #tpu.pipeline_mode<synchronous>, transform_indices = @transform_8, window_bounds = array<i64: 128, 512>}, {pipeline_mode = #tpu.pipeline_mode<synchronous>, transform_indices = @transform_9, window_bounds = array<i64: 256, 1152>}, {pipeline_mode = #tpu.pipeline_mode<synchronous>, transform_indices = @transform_10, window_bounds = array<i64: 256, 1>}, {pipeline_mode = #tpu.pipeline_mode<synchronous>, transform_indices = @transform_11, window_bounds = array<i64: 9, 128, 128>}, {pipeline_mode = #tpu.pipeline_mode<synchronous>, transform_indices = @transform_12, window_bounds = array<i64: 128, 512>}, {pipeline_mode = #tpu.pipeline_mode<synchronous>, transform_indices = @transform_13, window_bounds = array<i64: 32, 256>}, {pipeline_mode = #tpu.pipeline_mode<synchronous>, transform_indices = @transform_14, window_bounds = array<i64: 32, 1>}, {transform_indices = @transform_15, window_bounds = array<i64: 1, 32, 128>}]} {
    %c0 = arith.constant 0 : index
    %c0_0 = arith.constant 0 : index
    %c0_1 = arith.constant 0 : index
    %0 = vector.load %arg1[%c0, %c0_0, %c0_1] : memref<1x32x256xbf16, #tpu.memory_space<vmem>>, vector<1x32x256xbf16>
    %1 = vector.shape_cast %0 : vector<1x32x256xbf16> to vector<32x256xbf16>
    %c0_2 = arith.constant 0 : index
    %c0_3 = arith.constant 0 : index
    %c0_4 = arith.constant 0 : index
    %2 = vector.load %arg4[%c0_2, %c0_3, %c0_4] : memref<9x256x256xbf16, #tpu.memory_space<vmem>>, vector<1x256x256xbf16>
    %3 = vector.shape_cast %2 : vector<1x256x256xbf16> to vector<256x256xbf16>
    %cst = arith.constant dense<0.000000e+00> : vector<32x256xf32>
    %4 = tpu.matmul %1, %3, %cst {dimension_numbers = #tpu.dot_dimension_numbers<[1], [0], [0], [1], [0, 0, 1, 1], [], []>} : vector<32x256xbf16>, vector<256x256xbf16>, vector<32x256xf32> -> vector<32x256xf32>
    %5 = arith.truncf %4 : vector<32x256xf32> to vector<32x256xbf16>
    %c0_5 = arith.constant 0 : index
    %c0_6 = arith.constant 0 : index
    %6 = vector.load %arg17[%c0_5, %c0_6] : memref<288x256xbf16, #tpu.memory_space<vmem>>, vector<32x256xbf16>
    tpu.vector_store %arg17[%c0_5, %c0_6], %5 {strides = array<i32>} : memref<288x256xbf16, #tpu.memory_space<vmem>>, vector<32x256xbf16>,
    %c1 = arith.constant 1 : index
    %c0_7 = arith.constant 0 : index
    %c0_8 = arith.constant 0 : index
    %7 = vector.load %arg4[%c1, %c0_7, %c0_8] : memref<9x256x256xbf16, #tpu.memory_space<vmem>>, vector<1x256x256xbf16>
    %8 = vector.shape_cast %7 : vector<1x256x256xbf16> to vector<256x256xbf16>
    %cst_9 = arith.constant dense<0.000000e+00> : vector<32x256xf32>
    %9 = tpu.matmul %1, %8, %cst_9 {dimension_numbers = #tpu.dot_dimension_numbers<[1], [0], [0], [1], [0, 0, 1, 1], [], []>} : vector<32x256xbf16>, vector<256x256xbf16>, vector<32x256xf32> -> vector<32x256xf32>
    %10 = arith.truncf %9 : vector<32x256xf32> to vector<32x256xbf16>
    %c32 = arith.constant 32 : index
    %c0_10 = arith.constant 0 : index
    %11 = vector.load %arg17[%c32, %c0_10] : memref<288x256xbf16, #tpu.memory_space<vmem>>, vector<32x256xbf16>
    tpu.vector_store %arg17[%c32, %c0_10], %10 {strides = array<i32>} : memref<288x256xbf16, #tpu.memory_space<vmem>>, vector<32x256xbf16>,
    %c2 = arith.constant 2 : index
    %c0_11 = arith.constant 0 : index
    %c0_12 = arith.constant 0 : index
    %12 = vector.load %arg4[%c2, %c0_11, %c0_12] : memref<9x256x256xbf16, #tpu.memory_space<vmem>>, vector<1x256x256xbf16>
    %13 = vector.shape_cast %12 : vector<1x256x256xbf16> to vector<256x256xbf16>
    %cst_13 = arith.constant dense<0.000000e+00> : vector<32x256xf32>
    %14 = tpu.matmul %1, %13, %cst_13 {dimension_numbers = #tpu.dot_dimension_numbers<[1], [0], [0], [1], [0, 0, 1, 1], [], []>} : vector<32x256xbf16>, vector<256x256xbf16>, vector<32x256xf32> -> vector<32x256xf32>
    %15 = arith.truncf %14 : vector<32x256xf32> to vector<32x256xbf16>
    %c64 = arith.constant 64 : index
    %c0_14 = arith.constant 0 : index
    %16 = vector.load %arg17[%c64, %c0_14] : memref<288x256xbf16, #tpu.memory_space<vmem>>, vector<32x256xbf16>
    tpu.vector_store %arg17[%c64, %c0_14], %15 {strides = array<i32>} : memref<288x256xbf16, #tpu.memory_space<vmem>>, vector<32x256xbf16>,
    %c3 = arith.constant 3 : index
    %c0_15 = arith.constant 0 : index
    %c0_16 = arith.constant 0 : index
    %17 = vector.load %arg4[%c3, %c0_15, %c0_16] : memref<9x256x256xbf16, #tpu.memory_space<vmem>>, vector<1x256x256xbf16>
    %18 = vector.shape_cast %17 : vector<1x256x256xbf16> to vector<256x256xbf16>
    %cst_17 = arith.constant dense<0.000000e+00> : vector<32x256xf32>
    %19 = tpu.matmul %1, %18, %cst_17 {dimension_numbers = #tpu.dot_dimension_numbers<[1], [0], [0], [1], [0, 0, 1, 1], [], []>} : vector<32x256xbf16>, vector<256x256xbf16>, vector<32x256xf32> -> vector<32x256xf32>
    %20 = arith.truncf %19 : vector<32x256xf32> to vector<32x256xbf16>
    %c96 = arith.constant 96 : index
    %c0_18 = arith.constant 0 : index
    %21 = vector.load %arg17[%c96, %c0_18] : memref<288x256xbf16, #tpu.memory_space<vmem>>, vector<32x256xbf16>
    tpu.vector_store %arg17[%c96, %c0_18], %20 {strides = array<i32>} : memref<288x256xbf16, #tpu.memory_space<vmem>>, vector<32x256xbf16>,
    %c4 = arith.constant 4 : index
    %c0_19 = arith.constant 0 : index
    %c0_20 = arith.constant 0 : index
    %22 = vector.load %arg4[%c4, %c0_19, %c0_20] : memref<9x256x256xbf16, #tpu.memory_space<vmem>>, vector<1x256x256xbf16>
    %23 = vector.shape_cast %22 : vector<1x256x256xbf16> to vector<256x256xbf16>
    %cst_21 = arith.constant dense<0.000000e+00> : vector<32x256xf32>
    %24 = tpu.matmul %1, %23, %cst_21 {dimension_numbers = #tpu.dot_dimension_numbers<[1], [0], [0], [1], [0, 0, 1, 1], [], []>} : vector<32x256xbf16>, vector<256x256xbf16>, vector<32x256xf32> -> vector<32x256xf32>
    %25 = arith.truncf %24 : vector<32x256xf32> to vector<32x256xbf16>
    %c128 = arith.constant 128 : index
    %c0_22 = arith.constant 0 : index
    %26 = vector.load %arg17[%c128, %c0_22] : memref<288x256xbf16, #tpu.memory_space<vmem>>, vector<32x256xbf16>
    tpu.vector_store %arg17[%c128, %c0_22], %25 {strides = array<i32>} : memref<288x256xbf16, #tpu.memory_space<vmem>>, vector<32x256xbf16>,
    %c5 = arith.constant 5 : index
    %c0_23 = arith.constant 0 : index
    %c0_24 = arith.constant 0 : index
    %27 = vector.load %arg4[%c5, %c0_23, %c0_24] : memref<9x256x256xbf16, #tpu.memory_space<vmem>>, vector<1x256x256xbf16>
    %28 = vector.shape_cast %27 : vector<1x256x256xbf16> to vector<256x256xbf16>
    %cst_25 = arith.constant dense<0.000000e+00> : vector<32x256xf32>
    %29 = tpu.matmul %1, %28, %cst_25 {dimension_numbers = #tpu.dot_dimension_numbers<[1], [0], [0], [1], [0, 0, 1, 1], [], []>} : vector<32x256xbf16>, vector<256x256xbf16>, vector<32x256xf32> -> vector<32x256xf32>
    %30 = arith.truncf %29 : vector<32x256xf32> to vector<32x256xbf16>
    %c160 = arith.constant 160 : index
    %c0_26 = arith.constant 0 : index
    %31 = vector.load %arg17[%c160, %c0_26] : memref<288x256xbf16, #tpu.memory_space<vmem>>, vector<32x256xbf16>
    tpu.vector_store %arg17[%c160, %c0_26], %30 {strides = array<i32>} : memref<288x256xbf16, #tpu.memory_space<vmem>>, vector<32x256xbf16>,
    %c6 = arith.constant 6 : index
    %c0_27 = arith.constant 0 : index
    %c0_28 = arith.constant 0 : index
    %32 = vector.load %arg4[%c6, %c0_27, %c0_28] : memref<9x256x256xbf16, #tpu.memory_space<vmem>>, vector<1x256x256xbf16>
    %33 = vector.shape_cast %32 : vector<1x256x256xbf16> to vector<256x256xbf16>
    %cst_29 = arith.constant dense<0.000000e+00> : vector<32x256xf32>
    %34 = tpu.matmul %1, %33, %cst_29 {dimension_numbers = #tpu.dot_dimension_numbers<[1], [0], [0], [1], [0, 0, 1, 1], [], []>} : vector<32x256xbf16>, vector<256x256xbf16>, vector<32x256xf32> -> vector<32x256xf32>
    %35 = arith.truncf %34 : vector<32x256xf32> to vector<32x256xbf16>
    %c192 = arith.constant 192 : index
    %c0_30 = arith.constant 0 : index
    %36 = vector.load %arg17[%c192, %c0_30] : memref<288x256xbf16, #tpu.memory_space<vmem>>, vector<32x256xbf16>
    tpu.vector_store %arg17[%c192, %c0_30], %35 {strides = array<i32>} : memref<288x256xbf16, #tpu.memory_space<vmem>>, vector<32x256xbf16>,
    %c7 = arith.constant 7 : index
    %c0_31 = arith.constant 0 : index
    %c0_32 = arith.constant 0 : index
    %37 = vector.load %arg4[%c7, %c0_31, %c0_32] : memref<9x256x256xbf16, #tpu.memory_space<vmem>>, vector<1x256x256xbf16>
    %38 = vector.shape_cast %37 : vector<1x256x256xbf16> to vector<256x256xbf16>
    %cst_33 = arith.constant dense<0.000000e+00> : vector<32x256xf32>
    %39 = tpu.matmul %1, %38, %cst_33 {dimension_numbers = #tpu.dot_dimension_numbers<[1], [0], [0], [1], [0, 0, 1, 1], [], []>} : vector<32x256xbf16>, vector<256x256xbf16>, vector<32x256xf32> -> vector<32x256xf32>
    %40 = arith.truncf %39 : vector<32x256xf32> to vector<32x256xbf16>
    %c224 = arith.constant 224 : index
    %c0_34 = arith.constant 0 : index
    %41 = vector.load %arg17[%c224, %c0_34] : memref<288x256xbf16, #tpu.memory_space<vmem>>, vector<32x256xbf16>
    tpu.vector_store %arg17[%c224, %c0_34], %40 {strides = array<i32>} : memref<288x256xbf16, #tpu.memory_space<vmem>>, vector<32x256xbf16>,
    %c8 = arith.constant 8 : index
    %c0_35 = arith.constant 0 : index
    %c0_36 = arith.constant 0 : index
    %42 = vector.load %arg4[%c8, %c0_35, %c0_36] : memref<9x256x256xbf16, #tpu.memory_space<vmem>>, vector<1x256x256xbf16>
    %43 = vector.shape_cast %42 : vector<1x256x256xbf16> to vector<256x256xbf16>
    %cst_37 = arith.constant dense<0.000000e+00> : vector<32x256xf32>
    %44 = tpu.matmul %1, %43, %cst_37 {dimension_numbers = #tpu.dot_dimension_numbers<[1], [0], [0], [1], [0, 0, 1, 1], [], []>} : vector<32x256xbf16>, vector<256x256xbf16>, vector<32x256xf32> -> vector<32x256xf32>
    %45 = arith.truncf %44 : vector<32x256xf32> to vector<32x256xbf16>
    %c256 = arith.constant 256 : index
    %c0_38 = arith.constant 0 : index
    %46 = vector.load %arg17[%c256, %c0_38] : memref<288x256xbf16, #tpu.memory_space<vmem>>, vector<32x256xbf16>
    tpu.vector_store %arg17[%c256, %c0_38], %45 {strides = array<i32>} : memref<288x256xbf16, #tpu.memory_space<vmem>>, vector<32x256xbf16>,
    %c0_39 = arith.constant 0 : index
    %c0_40 = arith.constant 0 : index
    %47 = vector.load %arg2[%c0_39, %c0_40] : memref<64x288xbf16, #tpu.memory_space<vmem>>, vector<64x288xbf16>
    %c0_41 = arith.constant 0 : index
    %c0_42 = arith.constant 0 : index
    %48 = vector.load %arg17[%c0_41, %c0_42] : memref<288x256xbf16, #tpu.memory_space<vmem>>, vector<288x256xbf16>
    %cst_43 = arith.constant dense<0.000000e+00> : vector<64x256xf32>
    %49 = tpu.matmul %47, %48, %cst_43 {dimension_numbers = #tpu.dot_dimension_numbers<[1], [0], [0], [1], [0, 0, 1, 1], [], []>} : vector<64x288xbf16>, vector<288x256xbf16>, vector<64x256xf32> -> vector<64x256xf32>
    %c0_44 = arith.constant 0 : index
    %c0_45 = arith.constant 0 : index
    %50 = vector.load %arg3[%c0_44, %c0_45] : memref<64x1xf32, #tpu.memory_space<vmem>>, vector<64x1xf32>
    %51 = vector.broadcast %50 : vector<64x1xf32> to vector<64x256xf32>
    %52 = arith.addf %49, %51 : vector<64x256xf32>
    %cst_46 = arith.constant 0.00999999977 : f32
    %53 = vector.broadcast %cst_46 : f32 to vector<64x256xf32>
    %54 = arith.mulf %53, %52 : vector<64x256xf32>
    %55 = arith.maximumf %52, %54 : vector<64x256xf32>
    %56 = arith.truncf %55 : vector<64x256xf32> to vector<64x256xbf16>
    %c0_47 = arith.constant 0 : index
    %c0_48 = arith.constant 0 : index
    %57 = vector.load %arg5[%c0_47, %c0_48] : memref<256x512xbf16, #tpu.memory_space<vmem>>, vector<256x512xbf16>
    %cst_49 = arith.constant dense<0.000000e+00> : vector<64x512xf32>
    %58 = tpu.matmul %56, %57, %cst_49 {dimension_numbers = #tpu.dot_dimension_numbers<[1], [0], [0], [1], [0, 0, 1, 1], [], []>} : vector<64x256xbf16>, vector<256x512xbf16>, vector<64x512xf32> -> vector<64x512xf32>
    %59 = vector.extract_strided_slice %58 {offsets = [0, 0], sizes = [64, 128], strides = [1, 1]} : vector<64x512xf32> to vector<64x128xf32>
    %60 = vector.extract_strided_slice %58 {offsets = [0, 128], sizes = [64, 128], strides = [1, 1]} : vector<64x512xf32> to vector<64x128xf32>
    %61 = arith.maximumf %59, %60 : vector<64x128xf32>
    %62 = vector.extract_strided_slice %58 {offsets = [0, 256], sizes = [64, 128], strides = [1, 1]} : vector<64x512xf32> to vector<64x128xf32>
    %63 = vector.extract_strided_slice %58 {offsets = [0, 384], sizes = [64, 128], strides = [1, 1]} : vector<64x512xf32> to vector<64x128xf32>
    %64 = arith.maximumf %62, %63 : vector<64x128xf32>
    %65 = arith.maximumf %61, %64 : vector<64x128xf32>
    %66 = arith.truncf %65 : vector<64x128xf32> to vector<64x128xbf16>
    %c0_50 = arith.constant 0 : index
    %c0_51 = arith.constant 0 : index
    %c0_52 = arith.constant 0 : index
    %67 = vector.load %arg8[%c0_50, %c0_51, %c0_52] : memref<9x128x128xbf16, #tpu.memory_space<vmem>>, vector<1x128x128xbf16>
    %68 = vector.shape_cast %67 : vector<1x128x128xbf16> to vector<128x128xbf16>
    %cst_53 = arith.constant dense<0.000000e+00> : vector<64x128xf32>
    %69 = tpu.matmul %66, %68, %cst_53 {dimension_numbers = #tpu.dot_dimension_numbers<[1], [0], [0], [1], [0, 0, 1, 1], [], []>} : vector<64x128xbf16>, vector<128x128xbf16>, vector<64x128xf32> -> vector<64x128xf32>
    %70 = arith.truncf %69 : vector<64x128xf32> to vector<64x128xbf16>
    %c0_54 = arith.constant 0 : index
    %c0_55 = arith.constant 0 : index
    %71 = vector.load %arg18[%c0_54, %c0_55] : memref<576x128xbf16, #tpu.memory_space<vmem>>, vector<64x128xbf16>
    tpu.vector_store %arg18[%c0_54, %c0_55], %70 {strides = array<i32>} : memref<576x128xbf16, #tpu.memory_space<vmem>>, vector<64x128xbf16>,
    %c1_56 = arith.constant 1 : index
    %c0_57 = arith.constant 0 : index
    %c0_58 = arith.constant 0 : index
    %72 = vector.load %arg8[%c1_56, %c0_57, %c0_58] : memref<9x128x128xbf16, #tpu.memory_space<vmem>>, vector<1x128x128xbf16>
    %73 = vector.shape_cast %72 : vector<1x128x128xbf16> to vector<128x128xbf16>
    %cst_59 = arith.constant dense<0.000000e+00> : vector<64x128xf32>
    %74 = tpu.matmul %66, %73, %cst_59 {dimension_numbers = #tpu.dot_dimension_numbers<[1], [0], [0], [1], [0, 0, 1, 1], [], []>} : vector<64x128xbf16>, vector<128x128xbf16>, vector<64x128xf32> -> vector<64x128xf32>
    %75 = arith.truncf %74 : vector<64x128xf32> to vector<64x128xbf16>
    %c64_60 = arith.constant 64 : index
    %c0_61 = arith.constant 0 : index
    %76 = vector.load %arg18[%c64_60, %c0_61] : memref<576x128xbf16, #tpu.memory_space<vmem>>, vector<64x128xbf16>
    tpu.vector_store %arg18[%c64_60, %c0_61], %75 {strides = array<i32>} : memref<576x128xbf16, #tpu.memory_space<vmem>>, vector<64x128xbf16>,
    %c2_62 = arith.constant 2 : index
    %c0_63 = arith.constant 0 : index
    %c0_64 = arith.constant 0 : index
    %77 = vector.load %arg8[%c2_62, %c0_63, %c0_64] : memref<9x128x128xbf16, #tpu.memory_space<vmem>>, vector<1x128x128xbf16>
    %78 = vector.shape_cast %77 : vector<1x128x128xbf16> to vector<128x128xbf16>
    %cst_65 = arith.constant dense<0.000000e+00> : vector<64x128xf32>
    %79 = tpu.matmul %66, %78, %cst_65 {dimension_numbers = #tpu.dot_dimension_numbers<[1], [0], [0], [1], [0, 0, 1, 1], [], []>} : vector<64x128xbf16>, vector<128x128xbf16>, vector<64x128xf32> -> vector<64x128xf32>
    %80 = arith.truncf %79 : vector<64x128xf32> to vector<64x128xbf16>
    %c128_66 = arith.constant 128 : index
    %c0_67 = arith.constant 0 : index
    %81 = vector.load %arg18[%c128_66, %c0_67] : memref<576x128xbf16, #tpu.memory_space<vmem>>, vector<64x128xbf16>
    tpu.vector_store %arg18[%c128_66, %c0_67], %80 {strides = array<i32>} : memref<576x128xbf16, #tpu.memory_space<vmem>>, vector<64x128xbf16>,
    %c3_68 = arith.constant 3 : index
    %c0_69 = arith.constant 0 : index
    %c0_70 = arith.constant 0 : index
    %82 = vector.load %arg8[%c3_68, %c0_69, %c0_70] : memref<9x128x128xbf16, #tpu.memory_space<vmem>>, vector<1x128x128xbf16>
    %83 = vector.shape_cast %82 : vector<1x128x128xbf16> to vector<128x128xbf16>
    %cst_71 = arith.constant dense<0.000000e+00> : vector<64x128xf32>
    %84 = tpu.matmul %66, %83, %cst_71 {dimension_numbers = #tpu.dot_dimension_numbers<[1], [0], [0], [1], [0, 0, 1, 1], [], []>} : vector<64x128xbf16>, vector<128x128xbf16>, vector<64x128xf32> -> vector<64x128xf32>
    %85 = arith.truncf %84 : vector<64x128xf32> to vector<64x128xbf16>
    %c192_72 = arith.constant 192 : index
    %c0_73 = arith.constant 0 : index
    %86 = vector.load %arg18[%c192_72, %c0_73] : memref<576x128xbf16, #tpu.memory_space<vmem>>, vector<64x128xbf16>
    tpu.vector_store %arg18[%c192_72, %c0_73], %85 {strides = array<i32>} : memref<576x128xbf16, #tpu.memory_space<vmem>>, vector<64x128xbf16>,
    %c4_74 = arith.constant 4 : index
    %c0_75 = arith.constant 0 : index
    %c0_76 = arith.constant 0 : index
    %87 = vector.load %arg8[%c4_74, %c0_75, %c0_76] : memref<9x128x128xbf16, #tpu.memory_space<vmem>>, vector<1x128x128xbf16>
    %88 = vector.shape_cast %87 : vector<1x128x128xbf16> to vector<128x128xbf16>
    %cst_77 = arith.constant dense<0.000000e+00> : vector<64x128xf32>
    %89 = tpu.matmul %66, %88, %cst_77 {dimension_numbers = #tpu.dot_dimension_numbers<[1], [0], [0], [1], [0, 0, 1, 1], [], []>} : vector<64x128xbf16>, vector<128x128xbf16>, vector<64x128xf32> -> vector<64x128xf32>
    %90 = arith.truncf %89 : vector<64x128xf32> to vector<64x128xbf16>
    %c256_78 = arith.constant 256 : index
    %c0_79 = arith.constant 0 : index
    %91 = vector.load %arg18[%c256_78, %c0_79] : memref<576x128xbf16, #tpu.memory_space<vmem>>, vector<64x128xbf16>
    tpu.vector_store %arg18[%c256_78, %c0_79], %90 {strides = array<i32>} : memref<576x128xbf16, #tpu.memory_space<vmem>>, vector<64x128xbf16>,
    %c5_80 = arith.constant 5 : index
    %c0_81 = arith.constant 0 : index
    %c0_82 = arith.constant 0 : index
    %92 = vector.load %arg8[%c5_80, %c0_81, %c0_82] : memref<9x128x128xbf16, #tpu.memory_space<vmem>>, vector<1x128x128xbf16>
    %93 = vector.shape_cast %92 : vector<1x128x128xbf16> to vector<128x128xbf16>
    %cst_83 = arith.constant dense<0.000000e+00> : vector<64x128xf32>
    %94 = tpu.matmul %66, %93, %cst_83 {dimension_numbers = #tpu.dot_dimension_numbers<[1], [0], [0], [1], [0, 0, 1, 1], [], []>} : vector<64x128xbf16>, vector<128x128xbf16>, vector<64x128xf32> -> vector<64x128xf32>
    %95 = arith.truncf %94 : vector<64x128xf32> to vector<64x128xbf16>
    %c320 = arith.constant 320 : index
    %c0_84 = arith.constant 0 : index
    %96 = vector.load %arg18[%c320, %c0_84] : memref<576x128xbf16, #tpu.memory_space<vmem>>, vector<64x128xbf16>
    tpu.vector_store %arg18[%c320, %c0_84], %95 {strides = array<i32>} : memref<576x128xbf16, #tpu.memory_space<vmem>>, vector<64x128xbf16>,
    %c6_85 = arith.constant 6 : index
    %c0_86 = arith.constant 0 : index
    %c0_87 = arith.constant 0 : index
    %97 = vector.load %arg8[%c6_85, %c0_86, %c0_87] : memref<9x128x128xbf16, #tpu.memory_space<vmem>>, vector<1x128x128xbf16>
    %98 = vector.shape_cast %97 : vector<1x128x128xbf16> to vector<128x128xbf16>
    %cst_88 = arith.constant dense<0.000000e+00> : vector<64x128xf32>
    %99 = tpu.matmul %66, %98, %cst_88 {dimension_numbers = #tpu.dot_dimension_numbers<[1], [0], [0], [1], [0, 0, 1, 1], [], []>} : vector<64x128xbf16>, vector<128x128xbf16>, vector<64x128xf32> -> vector<64x128xf32>
    %100 = arith.truncf %99 : vector<64x128xf32> to vector<64x128xbf16>
    %c384 = arith.constant 384 : index
    %c0_89 = arith.constant 0 : index
    %101 = vector.load %arg18[%c384, %c0_89] : memref<576x128xbf16, #tpu.memory_space<vmem>>, vector<64x128xbf16>
    tpu.vector_store %arg18[%c384, %c0_89], %100 {strides = array<i32>} : memref<576x128xbf16, #tpu.memory_space<vmem>>, vector<64x128xbf16>,
    %c7_90 = arith.constant 7 : index
    %c0_91 = arith.constant 0 : index
    %c0_92 = arith.constant 0 : index
    %102 = vector.load %arg8[%c7_90, %c0_91, %c0_92] : memref<9x128x128xbf16, #tpu.memory_space<vmem>>, vector<1x128x128xbf16>
    %103 = vector.shape_cast %102 : vector<1x128x128xbf16> to vector<128x128xbf16>
    %cst_93 = arith.constant dense<0.000000e+00> : vector<64x128xf32>
    %104 = tpu.matmul %66, %103, %cst_93 {dimension_numbers = #tpu.dot_dimension_numbers<[1], [0], [0], [1], [0, 0, 1, 1], [], []>} : vector<64x128xbf16>, vector<128x128xbf16>, vector<64x128xf32> -> vector<64x128xf32>
    %105 = arith.truncf %104 : vector<64x128xf32> to vector<64x128xbf16>
    %c448 = arith.constant 448 : index
    %c0_94 = arith.constant 0 : index
    %106 = vector.load %arg18[%c448, %c0_94] : memref<576x128xbf16, #tpu.memory_space<vmem>>, vector<64x128xbf16>
    tpu.vector_store %arg18[%c448, %c0_94], %105 {strides = array<i32>} : memref<576x128xbf16, #tpu.memory_space<vmem>>, vector<64x128xbf16>,
    %c8_95 = arith.constant 8 : index
    %c0_96 = arith.constant 0 : index
    %c0_97 = arith.constant 0 : index
    %107 = vector.load %arg8[%c8_95, %c0_96, %c0_97] : memref<9x128x128xbf16, #tpu.memory_space<vmem>>, vector<1x128x128xbf16>
    %108 = vector.shape_cast %107 : vector<1x128x128xbf16> to vector<128x128xbf16>
    %cst_98 = arith.constant dense<0.000000e+00> : vector<64x128xf32>
    %109 = tpu.matmul %66, %108, %cst_98 {dimension_numbers = #tpu.dot_dimension_numbers<[1], [0], [0], [1], [0, 0, 1, 1], [], []>} : vector<64x128xbf16>, vector<128x128xbf16>, vector<64x128xf32> -> vector<64x128xf32>
    %110 = arith.truncf %109 : vector<64x128xf32> to vector<64x128xbf16>
    %c512 = arith.constant 512 : index
    %c0_99 = arith.constant 0 : index
    %111 = vector.load %arg18[%c512, %c0_99] : memref<576x128xbf16, #tpu.memory_space<vmem>>, vector<64x128xbf16>
    tpu.vector_store %arg18[%c512, %c0_99], %110 {strides = array<i32>} : memref<576x128xbf16, #tpu.memory_space<vmem>>, vector<64x128xbf16>,
    %c0_100 = arith.constant 0 : index
    %c0_101 = arith.constant 0 : index
    %112 = vector.load %arg6[%c0_100, %c0_101] : memref<128x576xbf16, #tpu.memory_space<vmem>>, vector<128x576xbf16>
    %c0_102 = arith.constant 0 : index
    %c0_103 = arith.constant 0 : index
    %113 = vector.load %arg18[%c0_102, %c0_103] : memref<576x128xbf16, #tpu.memory_space<vmem>>, vector<576x128xbf16>
    %cst_104 = arith.constant dense<0.000000e+00> : vector<128x128xf32>
    %114 = tpu.matmul %112, %113, %cst_104 {dimension_numbers = #tpu.dot_dimension_numbers<[1], [0], [0], [1], [0, 0, 1, 1], [], []>} : vector<128x576xbf16>, vector<576x128xbf16>, vector<128x128xf32> -> vector<128x128xf32>
    %c0_105 = arith.constant 0 : index
    %c0_106 = arith.constant 0 : index
    %115 = vector.load %arg7[%c0_105, %c0_106] : memref<128x1xf32, #tpu.memory_space<vmem>>, vector<128x1xf32>
    %116 = vector.broadcast %115 : vector<128x1xf32> to vector<128x128xf32>
    %117 = arith.addf %114, %116 : vector<128x128xf32>
    %cst_107 = arith.constant 0.00999999977 : f32
    %118 = vector.broadcast %cst_107 : f32 to vector<128x128xf32>
    %119 = arith.mulf %118, %117 : vector<128x128xf32>
    %120 = arith.maximumf %117, %119 : vector<128x128xf32>
    %121 = arith.truncf %120 : vector<128x128xf32> to vector<128x128xbf16>
    %c0_108 = arith.constant 0 : index
    %c0_109 = arith.constant 0 : index
    %122 = vector.load %arg9[%c0_108, %c0_109] : memref<128x512xbf16, #tpu.memory_space<vmem>>, vector<128x512xbf16>
    %cst_110 = arith.constant dense<0.000000e+00> : vector<128x512xf32>
    %123 = tpu.matmul %121, %122, %cst_110 {dimension_numbers = #tpu.dot_dimension_numbers<[1], [0], [0], [1], [0, 0, 1, 1], [], []>} : vector<128x128xbf16>, vector<128x512xbf16>, vector<128x512xf32> -> vector<128x512xf32>
    %124 = vector.extract_strided_slice %123 {offsets = [0, 0], sizes = [128, 128], strides = [1, 1]} : vector<128x512xf32> to vector<128x128xf32>
    %125 = vector.extract_strided_slice %123 {offsets = [0, 128], sizes = [128, 128], strides = [1, 1]} : vector<128x512xf32> to vector<128x128xf32>
    %126 = arith.maximumf %124, %125 : vector<128x128xf32>
    %127 = vector.extract_strided_slice %123 {offsets = [0, 256], sizes = [128, 128], strides = [1, 1]} : vector<128x512xf32> to vector<128x128xf32>
    %128 = vector.extract_strided_slice %123 {offsets = [0, 384], sizes = [128, 128], strides = [1, 1]} : vector<128x512xf32> to vector<128x128xf32>
    %129 = arith.maximumf %127, %128 : vector<128x128xf32>
    %130 = arith.maximumf %126, %129 : vector<128x128xf32>
    %131 = arith.truncf %130 : vector<128x128xf32> to vector<128x128xbf16>
    %c0_111 = arith.constant 0 : index
    %c0_112 = arith.constant 0 : index
    %c0_113 = arith.constant 0 : index
    %132 = vector.load %arg12[%c0_111, %c0_112, %c0_113] : memref<9x128x128xbf16, #tpu.memory_space<vmem>>, vector<1x128x128xbf16>
    %133 = vector.shape_cast %132 : vector<1x128x128xbf16> to vector<128x128xbf16>
    %cst_114 = arith.constant dense<0.000000e+00> : vector<128x128xf32>
    %134 = tpu.matmul %131, %133, %cst_114 {dimension_numbers = #tpu.dot_dimension_numbers<[1], [0], [0], [1], [0, 0, 1, 1], [], []>} : vector<128x128xbf16>, vector<128x128xbf16>, vector<128x128xf32> -> vector<128x128xf32>
    %135 = arith.truncf %134 : vector<128x128xf32> to vector<128x128xbf16>
    %c0_115 = arith.constant 0 : index
    %c0_116 = arith.constant 0 : index
    %136 = vector.load %arg19[%c0_115, %c0_116] : memref<1152x128xbf16, #tpu.memory_space<vmem>>, vector<128x128xbf16>
    tpu.vector_store %arg19[%c0_115, %c0_116], %135 {strides = array<i32>} : memref<1152x128xbf16, #tpu.memory_space<vmem>>, vector<128x128xbf16>,
    %c1_117 = arith.constant 1 : index
    %c0_118 = arith.constant 0 : index
    %c0_119 = arith.constant 0 : index
    %137 = vector.load %arg12[%c1_117, %c0_118, %c0_119] : memref<9x128x128xbf16, #tpu.memory_space<vmem>>, vector<1x128x128xbf16>
    %138 = vector.shape_cast %137 : vector<1x128x128xbf16> to vector<128x128xbf16>
    %cst_120 = arith.constant dense<0.000000e+00> : vector<128x128xf32>
    %139 = tpu.matmul %131, %138, %cst_120 {dimension_numbers = #tpu.dot_dimension_numbers<[1], [0], [0], [1], [0, 0, 1, 1], [], []>} : vector<128x128xbf16>, vector<128x128xbf16>, vector<128x128xf32> -> vector<128x128xf32>
    %140 = arith.truncf %139 : vector<128x128xf32> to vector<128x128xbf16>
    %c128_121 = arith.constant 128 : index
    %c0_122 = arith.constant 0 : index
    %141 = vector.load %arg19[%c128_121, %c0_122] : memref<1152x128xbf16, #tpu.memory_space<vmem>>, vector<128x128xbf16>
    tpu.vector_store %arg19[%c128_121, %c0_122], %140 {strides = array<i32>} : memref<1152x128xbf16, #tpu.memory_space<vmem>>, vector<128x128xbf16>,
    %c2_123 = arith.constant 2 : index
    %c0_124 = arith.constant 0 : index
    %c0_125 = arith.constant 0 : index
    %142 = vector.load %arg12[%c2_123, %c0_124, %c0_125] : memref<9x128x128xbf16, #tpu.memory_space<vmem>>, vector<1x128x128xbf16>
    %143 = vector.shape_cast %142 : vector<1x128x128xbf16> to vector<128x128xbf16>
    %cst_126 = arith.constant dense<0.000000e+00> : vector<128x128xf32>
    %144 = tpu.matmul %131, %143, %cst_126 {dimension_numbers = #tpu.dot_dimension_numbers<[1], [0], [0], [1], [0, 0, 1, 1], [], []>} : vector<128x128xbf16>, vector<128x128xbf16>, vector<128x128xf32> -> vector<128x128xf32>
    %145 = arith.truncf %144 : vector<128x128xf32> to vector<128x128xbf16>
    %c256_127 = arith.constant 256 : index
    %c0_128 = arith.constant 0 : index
    %146 = vector.load %arg19[%c256_127, %c0_128] : memref<1152x128xbf16, #tpu.memory_space<vmem>>, vector<128x128xbf16>
    tpu.vector_store %arg19[%c256_127, %c0_128], %145 {strides = array<i32>} : memref<1152x128xbf16, #tpu.memory_space<vmem>>, vector<128x128xbf16>,
    %c3_129 = arith.constant 3 : index
    %c0_130 = arith.constant 0 : index
    %c0_131 = arith.constant 0 : index
    %147 = vector.load %arg12[%c3_129, %c0_130, %c0_131] : memref<9x128x128xbf16, #tpu.memory_space<vmem>>, vector<1x128x128xbf16>
    %148 = vector.shape_cast %147 : vector<1x128x128xbf16> to vector<128x128xbf16>
    %cst_132 = arith.constant dense<0.000000e+00> : vector<128x128xf32>
    %149 = tpu.matmul %131, %148, %cst_132 {dimension_numbers = #tpu.dot_dimension_numbers<[1], [0], [0], [1], [0, 0, 1, 1], [], []>} : vector<128x128xbf16>, vector<128x128xbf16>, vector<128x128xf32> -> vector<128x128xf32>
    %150 = arith.truncf %149 : vector<128x128xf32> to vector<128x128xbf16>
    %c384_133 = arith.constant 384 : index
    %c0_134 = arith.constant 0 : index
    %151 = vector.load %arg19[%c384_133, %c0_134] : memref<1152x128xbf16, #tpu.memory_space<vmem>>, vector<128x128xbf16>
    tpu.vector_store %arg19[%c384_133, %c0_134], %150 {strides = array<i32>} : memref<1152x128xbf16, #tpu.memory_space<vmem>>, vector<128x128xbf16>,
    %c4_135 = arith.constant 4 : index
    %c0_136 = arith.constant 0 : index
    %c0_137 = arith.constant 0 : index
    %152 = vector.load %arg12[%c4_135, %c0_136, %c0_137] : memref<9x128x128xbf16, #tpu.memory_space<vmem>>, vector<1x128x128xbf16>
    %153 = vector.shape_cast %152 : vector<1x128x128xbf16> to vector<128x128xbf16>
    %cst_138 = arith.constant dense<0.000000e+00> : vector<128x128xf32>
    %154 = tpu.matmul %131, %153, %cst_138 {dimension_numbers = #tpu.dot_dimension_numbers<[1], [0], [0], [1], [0, 0, 1, 1], [], []>} : vector<128x128xbf16>, vector<128x128xbf16>, vector<128x128xf32> -> vector<128x128xf32>
    %155 = arith.truncf %154 : vector<128x128xf32> to vector<128x128xbf16>
    %c512_139 = arith.constant 512 : index
    %c0_140 = arith.constant 0 : index
    %156 = vector.load %arg19[%c512_139, %c0_140] : memref<1152x128xbf16, #tpu.memory_space<vmem>>, vector<128x128xbf16>
    tpu.vector_store %arg19[%c512_139, %c0_140], %155 {strides = array<i32>} : memref<1152x128xbf16, #tpu.memory_space<vmem>>, vector<128x128xbf16>,
    %c5_141 = arith.constant 5 : index
    %c0_142 = arith.constant 0 : index
    %c0_143 = arith.constant 0 : index
    %157 = vector.load %arg12[%c5_141, %c0_142, %c0_143] : memref<9x128x128xbf16, #tpu.memory_space<vmem>>, vector<1x128x128xbf16>
    %158 = vector.shape_cast %157 : vector<1x128x128xbf16> to vector<128x128xbf16>
    %cst_144 = arith.constant dense<0.000000e+00> : vector<128x128xf32>
    %159 = tpu.matmul %131, %158, %cst_144 {dimension_numbers = #tpu.dot_dimension_numbers<[1], [0], [0], [1], [0, 0, 1, 1], [], []>} : vector<128x128xbf16>, vector<128x128xbf16>, vector<128x128xf32> -> vector<128x128xf32>
    %160 = arith.truncf %159 : vector<128x128xf32> to vector<128x128xbf16>
    %c640 = arith.constant 640 : index
    %c0_145 = arith.constant 0 : index
    %161 = vector.load %arg19[%c640, %c0_145] : memref<1152x128xbf16, #tpu.memory_space<vmem>>, vector<128x128xbf16>
    tpu.vector_store %arg19[%c640, %c0_145], %160 {strides = array<i32>} : memref<1152x128xbf16, #tpu.memory_space<vmem>>, vector<128x128xbf16>,
    %c6_146 = arith.constant 6 : index
    %c0_147 = arith.constant 0 : index
    %c0_148 = arith.constant 0 : index
    %162 = vector.load %arg12[%c6_146, %c0_147, %c0_148] : memref<9x128x128xbf16, #tpu.memory_space<vmem>>, vector<1x128x128xbf16>
    %163 = vector.shape_cast %162 : vector<1x128x128xbf16> to vector<128x128xbf16>
    %cst_149 = arith.constant dense<0.000000e+00> : vector<128x128xf32>
    %164 = tpu.matmul %131, %163, %cst_149 {dimension_numbers = #tpu.dot_dimension_numbers<[1], [0], [0], [1], [0, 0, 1, 1], [], []>} : vector<128x128xbf16>, vector<128x128xbf16>, vector<128x128xf32> -> vector<128x128xf32>
    %165 = arith.truncf %164 : vector<128x128xf32> to vector<128x128xbf16>
    %c768 = arith.constant 768 : index
    %c0_150 = arith.constant 0 : index
    %166 = vector.load %arg19[%c768, %c0_150] : memref<1152x128xbf16, #tpu.memory_space<vmem>>, vector<128x128xbf16>
    tpu.vector_store %arg19[%c768, %c0_150], %165 {strides = array<i32>} : memref<1152x128xbf16, #tpu.memory_space<vmem>>, vector<128x128xbf16>,
    %c7_151 = arith.constant 7 : index
    %c0_152 = arith.constant 0 : index
    %c0_153 = arith.constant 0 : index
    %167 = vector.load %arg12[%c7_151, %c0_152, %c0_153] : memref<9x128x128xbf16, #tpu.memory_space<vmem>>, vector<1x128x128xbf16>
    %168 = vector.shape_cast %167 : vector<1x128x128xbf16> to vector<128x128xbf16>
    %cst_154 = arith.constant dense<0.000000e+00> : vector<128x128xf32>
    %169 = tpu.matmul %131, %168, %cst_154 {dimension_numbers = #tpu.dot_dimension_numbers<[1], [0], [0], [1], [0, 0, 1, 1], [], []>} : vector<128x128xbf16>, vector<128x128xbf16>, vector<128x128xf32> -> vector<128x128xf32>
    %170 = arith.truncf %169 : vector<128x128xf32> to vector<128x128xbf16>
    %c896 = arith.constant 896 : index
    %c0_155 = arith.constant 0 : index
    %171 = vector.load %arg19[%c896, %c0_155] : memref<1152x128xbf16, #tpu.memory_space<vmem>>, vector<128x128xbf16>
    tpu.vector_store %arg19[%c896, %c0_155], %170 {strides = array<i32>} : memref<1152x128xbf16, #tpu.memory_space<vmem>>, vector<128x128xbf16>,
    %c8_156 = arith.constant 8 : index
    %c0_157 = arith.constant 0 : index
    %c0_158 = arith.constant 0 : index
    %172 = vector.load %arg12[%c8_156, %c0_157, %c0_158] : memref<9x128x128xbf16, #tpu.memory_space<vmem>>, vector<1x128x128xbf16>
    %173 = vector.shape_cast %172 : vector<1x128x128xbf16> to vector<128x128xbf16>
    %cst_159 = arith.constant dense<0.000000e+00> : vector<128x128xf32>
    %174 = tpu.matmul %131, %173, %cst_159 {dimension_numbers = #tpu.dot_dimension_numbers<[1], [0], [0], [1], [0, 0, 1, 1], [], []>} : vector<128x128xbf16>, vector<128x128xbf16>, vector<128x128xf32> -> vector<128x128xf32>
    %175 = arith.truncf %174 : vector<128x128xf32> to vector<128x128xbf16>
    %c1024 = arith.constant 1024 : index
    %c0_160 = arith.constant 0 : index
    %176 = vector.load %arg19[%c1024, %c0_160] : memref<1152x128xbf16, #tpu.memory_space<vmem>>, vector<128x128xbf16>
    tpu.vector_store %arg19[%c1024, %c0_160], %175 {strides = array<i32>} : memref<1152x128xbf16, #tpu.memory_space<vmem>>, vector<128x128xbf16>,
    %c0_161 = arith.constant 0 : index
    %c0_162 = arith.constant 0 : index
    %177 = vector.load %arg10[%c0_161, %c0_162] : memref<256x1152xbf16, #tpu.memory_space<vmem>>, vector<256x1152xbf16>
    %c0_163 = arith.constant 0 : index
    %c0_164 = arith.constant 0 : index
    %178 = vector.load %arg19[%c0_163, %c0_164] : memref<1152x128xbf16, #tpu.memory_space<vmem>>, vector<1152x128xbf16>
    %cst_165 = arith.constant dense<0.000000e+00> : vector<256x128xf32>
    %179 = tpu.matmul %177, %178, %cst_165 {dimension_numbers = #tpu.dot_dimension_numbers<[1], [0], [0], [1], [0, 0, 1, 1], [], []>} : vector<256x1152xbf16>, vector<1152x128xbf16>, vector<256x128xf32> -> vector<256x128xf32>
    %c0_166 = arith.constant 0 : index
    %c0_167 = arith.constant 0 : index
    %180 = vector.load %arg11[%c0_166, %c0_167] : memref<256x1xf32, #tpu.memory_space<vmem>>, vector<256x1xf32>
    %181 = vector.broadcast %180 : vector<256x1xf32> to vector<256x128xf32>
    %182 = arith.addf %179, %181 : vector<256x128xf32>
    %cst_168 = arith.constant 0.00999999977 : f32
    %183 = vector.broadcast %cst_168 : f32 to vector<256x128xf32>
    %184 = arith.mulf %183, %182 : vector<256x128xf32>
    %185 = arith.maximumf %182, %184 : vector<256x128xf32>
    %186 = arith.truncf %185 : vector<256x128xf32> to vector<256x128xbf16>
    %c0_169 = arith.constant 0 : index
    %c0_170 = arith.constant 0 : index
    %187 = vector.load %arg13[%c0_169, %c0_170] : memref<128x512xbf16, #tpu.memory_space<vmem>>, vector<128x512xbf16>
    %cst_171 = arith.constant dense<0.000000e+00> : vector<256x512xf32>
    %188 = tpu.matmul %186, %187, %cst_171 {dimension_numbers = #tpu.dot_dimension_numbers<[1], [0], [0], [1], [0, 0, 1, 1], [], []>} : vector<256x128xbf16>, vector<128x512xbf16>, vector<256x512xf32> -> vector<256x512xf32>
    %189 = vector.extract_strided_slice %188 {offsets = [0, 0], sizes = [256, 128], strides = [1, 1]} : vector<256x512xf32> to vector<256x128xf32>
    %190 = vector.extract_strided_slice %188 {offsets = [0, 128], sizes = [256, 128], strides = [1, 1]} : vector<256x512xf32> to vector<256x128xf32>
    %191 = arith.maximumf %189, %190 : vector<256x128xf32>
    %192 = vector.extract_strided_slice %188 {offsets = [0, 256], sizes = [256, 128], strides = [1, 1]} : vector<256x512xf32> to vector<256x128xf32>
    %193 = vector.extract_strided_slice %188 {offsets = [0, 384], sizes = [256, 128], strides = [1, 1]} : vector<256x512xf32> to vector<256x128xf32>
    %194 = arith.maximumf %192, %193 : vector<256x128xf32>
    %195 = arith.maximumf %191, %194 : vector<256x128xf32>
    %196 = arith.truncf %195 : vector<256x128xf32> to vector<256x128xbf16>
    %197 = arith.extf %196 : vector<256x128xbf16> to vector<256x128xf32>
    %cst_172 = arith.constant dense<0.000000e+00> : vector<256xf32>
    %198 = vector.multi_reduction <add>, %197, %cst_172 [1] : vector<256x128xf32> to vector<256xf32>
    %199 = vector.shape_cast %198 : vector<256xf32> to vector<256x1xf32>
    %c0_173 = arith.constant 0 : index
    %c0_174 = arith.constant 0 : index
    %200 = vector.load %arg14[%c0_173, %c0_174] : memref<32x256xf32, #tpu.memory_space<vmem>>, vector<32x256xf32>
    %cst_175 = arith.constant dense<0.000000e+00> : vector<32x1xf32>
    %201 = tpu.matmul %200, %199, %cst_175 {dimension_numbers = #tpu.dot_dimension_numbers<[1], [0], [0], [1], [0, 0, 1, 1], [], []>} : vector<32x256xf32>, vector<256x1xf32>, vector<32x1xf32> -> vector<32x1xf32>
    %c0_176 = arith.constant 0 : index
    %c0_177 = arith.constant 0 : index
    %202 = vector.load %arg15[%c0_176, %c0_177] : memref<32x1xf32, #tpu.memory_space<vmem>>, vector<32x1xf32>
    %203 = arith.addf %201, %202 : vector<32x1xf32>
    %204 = vector.shape_cast %203 : vector<32x1xf32> to vector<32x1xf32>
    %205 = vector.broadcast %204 : vector<32x1xf32> to vector<32x128xf32>
    %c0_178 = arith.constant 0 : index
    %c0_179 = arith.constant 0 : index
    %c0_180 = arith.constant 0 : index
    %206 = vector.load %arg16[%c0_178, %c0_179, %c0_180] : memref<1x32x128xf32, #tpu.memory_space<vmem>>, vector<1x32x128xf32>
    %207 = vector.shape_cast %206 : vector<1x32x128xf32> to vector<32x128xf32>
    %208 = vector.shape_cast %205 : vector<32x128xf32> to vector<1x32x128xf32>
    tpu.vector_store %arg16[%c0_178, %c0_179, %c0_180], %208 {strides = array<i32>} : memref<1x32x128xf32, #tpu.memory_space<vmem>>, vector<1x32x128xf32>,
    return
  }
  func.func @transform_0(%arg0: i32) -> (i32, i32, i32) {
    %c0_i32 = arith.constant 0 : i32
    %c0_i32_0 = arith.constant 0 : i32
    %c0_i32_1 = arith.constant 0 : i32
    return %arg0, %c0_i32, %c0_i32_0 : i32, i32, i32
  }
  func.func @transform_1(%arg0: i32) -> (i32, i32) {
    %c0_i32 = arith.constant 0 : i32
    %c0_i32_0 = arith.constant 0 : i32
    %c0_i32_1 = arith.constant 0 : i32
    return %c0_i32, %c0_i32_0 : i32, i32
  }
  func.func @transform_2(%arg0: i32) -> (i32, i32) {
    %c0_i32 = arith.constant 0 : i32
    %c0_i32_0 = arith.constant 0 : i32
    %c0_i32_1 = arith.constant 0 : i32
    return %c0_i32, %c0_i32_0 : i32, i32
  }
  func.func @transform_3(%arg0: i32) -> (i32, i32, i32) {
    %c0_i32 = arith.constant 0 : i32
    %c0_i32_0 = arith.constant 0 : i32
    %c0_i32_1 = arith.constant 0 : i32
    %c0_i32_2 = arith.constant 0 : i32
    return %c0_i32, %c0_i32_0, %c0_i32_1 : i32, i32, i32
  }
  func.func @transform_4(%arg0: i32) -> (i32, i32) {
    %c0_i32 = arith.constant 0 : i32
    %c0_i32_0 = arith.constant 0 : i32
    %c0_i32_1 = arith.constant 0 : i32
    return %c0_i32, %c0_i32_0 : i32, i32
  }
  func.func @transform_5(%arg0: i32) -> (i32, i32) {
    %c0_i32 = arith.constant 0 : i32
    %c0_i32_0 = arith.constant 0 : i32
    %c0_i32_1 = arith.constant 0 : i32
    return %c0_i32, %c0_i32_0 : i32, i32
  }
  func.func @transform_6(%arg0: i32) -> (i32, i32) {
    %c0_i32 = arith.constant 0 : i32
    %c0_i32_0 = arith.constant 0 : i32
    %c0_i32_1 = arith.constant 0 : i32
    return %c0_i32, %c0_i32_0 : i32, i32
  }
  func.func @transform_7(%arg0: i32) -> (i32, i32, i32) {
    %c0_i32 = arith.constant 0 : i32
    %c0_i32_0 = arith.constant 0 : i32
    %c0_i32_1 = arith.constant 0 : i32
    %c0_i32_2 = arith.constant 0 : i32
    return %c0_i32, %c0_i32_0, %c0_i32_1 : i32, i32, i32
  }
  func.func @transform_8(%arg0: i32) -> (i32, i32) {
    %c0_i32 = arith.constant 0 : i32
    %c0_i32_0 = arith.constant 0 : i32
    %c0_i32_1 = arith.constant 0 : i32
    return %c0_i32, %c0_i32_0 : i32, i32
  }
  func.func @transform_9(%arg0: i32) -> (i32, i32) {
    %c0_i32 = arith.constant 0 : i32
    %c0_i32_0 = arith.constant 0 : i32
    %c0_i32_1 = arith.constant 0 : i32
    return %c0_i32, %c0_i32_0 : i32, i32
  }
  func.func @transform_10(%arg0: i32) -> (i32, i32) {
    %c0_i32 = arith.constant 0 : i32
    %c0_i32_0 = arith.constant 0 : i32
    %c0_i32_1 = arith.constant 0 : i32
    return %c0_i32, %c0_i32_0 : i32, i32
  }
  func.func @transform_11(%arg0: i32) -> (i32, i32, i32) {
    %c0_i32 = arith.constant 0 : i32
    %c0_i32_0 = arith.constant 0 : i32
    %c0_i32_1 = arith.constant 0 : i32
    %c0_i32_2 = arith.constant 0 : i32
    return %c0_i32, %c0_i32_0, %c0_i32_1 : i32, i32, i32
  }
  func.func @transform_12(%arg0: i32) -> (i32, i32) {
    %c0_i32 = arith.constant 0 : i32
    %c0_i32_0 = arith.constant 0 : i32
    %c0_i32_1 = arith.constant 0 : i32
    return %c0_i32, %c0_i32_0 : i32, i32
  }
  func.func @transform_13(%arg0: i32) -> (i32, i32) {
    %c0_i32 = arith.constant 0 : i32
    %c0_i32_0 = arith.constant 0 : i32
    %c0_i32_1 = arith.constant 0 : i32
    return %c0_i32, %c0_i32_0 : i32, i32
  }
  func.func @transform_14(%arg0: i32) -> (i32, i32) {
    %c0_i32 = arith.constant 0 : i32
    %c0_i32_0 = arith.constant 0 : i32
    %c0_i32_1 = arith.constant 0 : i32
    return %c0_i32, %c0_i32_0 : i32, i32
  }
  func.func @transform_15(%arg0: i32) -> (i32, i32, i32) {
    %c0_i32 = arith.constant 0 : i32
    %c0_i32_0 = arith.constant 0 : i32
    %c0_i32_1 = arith.constant 0 : i32
    return %arg0, %c0_i32, %c0_i32_0 : i32, i32, i32
  }
}

</mosaic_0001>

<bundles_post_ra>
// kernel: tile.33
= control target key start
LH: loop header
LB: loop body
LE: loop exit
PB: predicated region body
PF: predicated region fallthrough
CT: control target
= control target key end

     0   :  { %s22_s0 = inlined_call_operand.vmem [shape: f32[64], index: 0, kind: input, shape index: {}]   ;;  %s23_s1 = inlined_call_operand.vmem [shape: f32[4,64], index: 1, kind: output, shape index: {}]  }
   0x1   :  { %v4_v0 = vld [vmem:[%s22_s0] ss:$0 sm:$0xff] }
   0x2   :  { %5 = vst [vmem:[%s23_s1] sm:$0xf] %v4_v0 }

// kernel: tile.2
= control target key start
LH: loop header
LB: loop body
LE: loop exit
PB: predicated region body
PF: predicated region fallthrough
CT: control target
= control target key end

     0   :  { %s1091_s8 = smov 125   ;;  %s1092_s9 = smov 126   ;;  %vm8_vm0 = vcmask 7168   ;;  %s2190_s0 = inlined_call_operand.vmem [shape: f32[4,64], index: 0, kind: input, shape index: {}]   ;;  %s2191_s1 = inlined_call_operand.vmem [shape: f32[256,1], index: 1, kind: output, shape index: {}]  }
   0x1   :  { %v5_v0 = vld [vmem:[%s2190_s0] sm:$0xf]  ;;  %s1090_s0 = smov 127   ;;  %s1093_s10 = smov 124  }
   0x2   :  { %6 = vst [vmem:[#allocation0] sm:$0xf] %v5_v0  ;;  %s1094_s11 = smov 123   ;;  %s1095_s12 = smov 122  }
   0x3   :  { %s1096_s13 = smov 121   ;;  %s1097_s14 = smov 120  }
   0x4   :  { %s1098_s15 = smov 119   ;;  %s1099_s16 = smov 118  }
   0x5   :  { %s1100_s17 = smov 117   ;;  %s1101_s18 = smov 116  }
   0x6   :  { %s1102_s19 = smov 115   ;;  %s1103_s20 = smov 114  }
   0x7   :  { %s1104_s21 = smov 113   ;;  %s1105_s22 = smov 112  }
   0x8   :  { %s1106_s23 = smov 111   ;;  %s1107_s24 = smov 110  }
   0x9   :  { %v16_v1 = vld [vmem:[#allocation0] sm:$0xf]   ;;  %s1108_s25 = smov 109   ;;  %s1109_s26 = smov 108  }
   0xa   :  { %v40_v2 = vld [vmem:[#allocation0] sm:$0xf]   ;;  %17 = vrot.lane.b32.xlu0 %v16_v1, %s1090_s0  ;;  %s1110_s27 = smov 107   ;;  %s1111_s28 = smov 106  }
   0xb   :  { %41 = vrot.lane.b32.xlu1 %v40_v2, %s1091_s8  ;;  %v28_v3 = vld [vmem:[#allocation0] sm:$0xf]   ;;  %s1112_s29 = smov 105   ;;  %s1113_s30 = smov 104  }
   0xc   :  { %v52_v4 = vld [vmem:[#allocation0] sm:$0xf]   ;;  %s1114_s2 = smov 103   ;;  %s1115_s3 = smov 102  }
   0xd   :  { %v64_v5 = vld [vmem:[#allocation0] sm:$0xf]   ;;  %s1116_s4 = smov 101   ;;  %s1117_s5 = smov 100  }
   0xe   :  { %29 = vrot.lane.b32.xlu0 %v28_v3, %s1092_s9  ;;  %v76_v6 = vld [vmem:[#allocation0] sm:$0xf]   ;;  %s1118_s6 = smov 99   ;;  %s1119_s7 = smov 98  }
   0xf   :  { %53 = vrot.lane.b32.xlu1 %v52_v4, %s1093_s10  ;;  %v88_v7 = vld [vmem:[#allocation0] sm:$0xf]   ;;  %s1120_s0 = smov 97   ;;  %s1121_s8 = smov 96  }
  0x10   :  { %v100_v8 = vld [vmem:[#allocation0] sm:$0xf]   ;;  %s1122_s9 = smov 95   ;;  %s1123_s10 = smov 94  }
  0x11   :  { %v112_v9 = vld [vmem:[#allocation0] sm:$0xf]  }
  0x12   :  { %65 = vrot.lane.b32.xlu0 %v64_v5, %s1094_s11  ;;  %v124_v10 = vld [vmem:[#allocation0] sm:$0xf]   ;;  %s1124_s11 = smov 93  }
  0x13   :  { %77 = vrot.lane.b32.xlu1 %v76_v6, %s1095_s12  ;;  %v136_v11 = vld [vmem:[#allocation0] sm:$0xf]   ;;  %s1125_s12 = smov 92  }
  0x14   :  { %v148_v12 = vld [vmem:[#allocation0] sm:$0xf]  }
  0x15   :  { %v160_v13 = vld [vmem:[#allocation0] sm:$0xf]  }
  0x16   :  { %89 = vrot.lane.b32.xlu0 %v88_v7, %s1096_s13  ;;  %v172_v14 = vld [vmem:[#allocation0] sm:$0xf]   ;;  %s1126_s13 = smov 91  }
  0x17   :  { %101 = vrot.lane.b32.xlu1 %v100_v8, %s1097_s14  ;;  %v184_v15 = vld [vmem:[#allocation0] sm:$0xf]   ;;  %s1127_s14 = smov 90  }
  0x18   :  { %v196_v16 = vld [vmem:[#allocation0] sm:$0xf]  }
  0x19   :  { %v208_v17 = vld [vmem:[#allocation0] sm:$0xf]  }
  0x1a   :  { %113 = vrot.lane.b32.xlu0 %v112_v9, %s1098_s15  ;;  %v220_v18 = vld [vmem:[#allocation0] sm:$0xf]   ;;  %s1128_s15 = smov 89  }
  0x1b   :  { %125 = vrot.lane.b32.xlu1 %v124_v10, %s1099_s16  ;;  %v232_v19 = vld [vmem:[#allocation0] sm:$0xf]   ;;  %s1129_s16 = smov 88  }
  0x1c   :  { %v244_v20 = vld [vmem:[#allocation0] sm:$0xf]  }
  0x1d   :  { %v256_v21 = vld [vmem:[#allocation0] sm:$0xf]  }
  0x1e   :  { %137 = vrot.lane.b32.xlu0 %v136_v11, %s1100_s17  ;;  %v268_v22 = vld [vmem:[#allocation0] sm:$0xf]   ;;  %s1130_s17 = smov 87  }
  0x1f   :  { %149 = vrot.lane.b32.xlu1 %v148_v12, %s1101_s18  ;;  %v280_v23 = vld [vmem:[#allocation0] sm:$0xf]   ;;  %s1131_s18 = smov 86  }
  0x20   :  { %v292_v24 = vld [vmem:[#allocation0] sm:$0xf]  }
  0x21   :  { %v304_v25 = vld [vmem:[#allocation0] sm:$0xf]  }
  0x22   :  { %161 = vrot.lane.b32.xlu0 %v160_v13, %s1102_s19  ;;  %v316_v26 = vld [vmem:[#allocation0] sm:$0xf]   ;;  %s1132_s19 = smov 85  }
  0x23   :  { %173 = vrot.lane.b32.xlu1 %v172_v14, %s1103_s20  ;;  %v328_v27 = vld [vmem:[#allocation0] sm:$0xf]   ;;  %s1133_s20 = smov 84  }
  0x24   :  { %v340_v28 = vld [vmem:[#allocation0] sm:$0xf]  }
  0x25   :  { %v352_v29 = vld [vmem:[#allocation0] sm:$0xf]  }
  0x26   :  { %185 = vrot.lane.b32.xlu0 %v184_v15, %s1104_s21  ;;  %v364_v30 = vld [vmem:[#allocation0] sm:$0xf]   ;;  %s1134_s21 = smov 83  }
  0x27   :  { %197 = vrot.lane.b32.xlu1 %v196_v16, %s1105_s22  ;;  %v376_v31 = vld [vmem:[#allocation0] sm:$0xf]   ;;  %s1135_s22 = smov 82  }
  0x28   :  { %v388_v32 = vld [vmem:[#allocation0] sm:$0xf]  }
  0x29   :  { %v400_v33 = vld [vmem:[#allocation0] sm:$0xf]  }
  0x2a   :  { %209 = vrot.lane.b32.xlu0 %v208_v17, %s1106_s23  ;;  %v412_v34 = vld [vmem:[#allocation0] sm:$0xf]   ;;  %s1136_s23 = smov 81  }
  0x2b   :  { %221 = vrot.lane.b32.xlu1 %v220_v18, %s1107_s24  ;;  %v424_v35 = vld [vmem:[#allocation0] sm:$0xf]   ;;  %s1137_s24 = smov 80  }
  0x2c   :  { %v436_v36 = vld [vmem:[#allocation0] sm:$0xf]  }
  0x2d   :  { %v448_v37 = vld [vmem:[#allocation0] sm:$0xf]  }
  0x2e   :  { %233 = vrot.lane.b32.xlu0 %v232_v19, %s1108_s25  ;;  %v460_v38 = vld [vmem:[#allocation0] sm:$0xf]   ;;  %s1138_s25 = smov 79  }
  0x2f   :  { %245 = vrot.lane.b32.xlu1 %v244_v20, %s1109_s26  ;;  %v472_v39 = vld [vmem:[#allocation0] sm:$0xf]   ;;  %s1139_s26 = smov 78  }
  0x30   :  { %v484_v40 = vld [vmem:[#allocation0] sm:$0xf]  }
  0x31   :  { %v496_v41 = vld [vmem:[#allocation0] sm:$0xf]  }
  0x32   :  { %257 = vrot.lane.b32.xlu0 %v256_v21, %s1110_s27  ;;  %v508_v42 = vld [vmem:[#allocation0] sm:$0xf]   ;;  %s1140_s27 = smov 77  }
  0x33   :  { %269 = vrot.lane.b32.xlu1 %v268_v22, %s1111_s28  ;;  %v520_v43 = vld [vmem:[#allocation0] sm:$0xf]   ;;  %s1141_s28 = smov 76  }
  0x34   :  { %v532_v44 = vld [vmem:[#allocation0] sm:$0xf]  }
  0x35   :  { %v544_v45 = vld [vmem:[#allocation0] sm:$0xf]  }
  0x36   :  { %281 = vrot.lane.b32.xlu0 %v280_v23, %s1112_s29  ;;  %v556_v46 = vld [vmem:[#allocation0] sm:$0xf]   ;;  %s1142_s29 = smov 75  }
  0x37   :  { %293 = vrot.lane.b32.xlu1 %v292_v24, %s1113_s30  ;;  %v568_v47 = vld [vmem:[#allocation0] sm:$0xf]   ;;  %s1143_s30 = smov 74  }
  0x38   :  { %v580_v48 = vld [vmem:[#allocation0] sm:$0xf]  }
  0x39   :  { %v592_v49 = vld [vmem:[#allocation0] sm:$0xf]  }
  0x3a   :  { %305 = vrot.lane.b32.xlu0 %v304_v25, %s1114_s2  ;;  %v604_v50 = vld [vmem:[#allocation0] sm:$0xf]   ;;  %s1144_s2 = smov 73  }
  0x3b   :  { %317 = vrot.lane.b32.xlu1 %v316_v26, %s1115_s3  ;;  %v616_v51 = vld [vmem:[#allocation0] sm:$0xf]   ;;  %s1145_s3 = smov 72  }
  0x3c   :  { %v628_v52 = vld [vmem:[#allocation0] sm:$0xf]  }
  0x3d   :  { %v640_v53 = vld [vmem:[#allocation0] sm:$0xf]  }
  0x3e   :  { %329 = vrot.lane.b32.xlu0 %v328_v27, %s1116_s4  ;;  %v652_v54 = vld [vmem:[#allocation0] sm:$0xf]  }
  0x3f   :  { %341 = vrot.lane.b32.xlu1 %v340_v28, %s1117_s5  ;;  %v664_v55 = vld [vmem:[#allocation0] sm:$0xf]  }
  0x40   :  { %v676_v56 = vld [vmem:[#allocation0] sm:$0xf]  }
  0x41   :  { %v688_v57 = vld [vmem:[#allocation0] sm:$0xf]  }
  0x42   :  { %353 = vrot.lane.b32.xlu0 %v352_v29, %s1118_s6  ;;  %v700_v58 = vld [vmem:[#allocation0] sm:$0xf]   ;;  %s1152_s6 = smov 65  }
  0x43   :  { %365 = vrot.lane.b32.xlu1 %v364_v30, %s1119_s7  ;;  %v7_v59 = vld [vmem:[#allocation0] sm:$0xf]  }
  0x44   :  { %9 = vst.msk [vmem:[%s2191_s1] sm:$0x1] %vm8_vm0, %v7_v59   ;;  %772 = vst.msk [vmem:[%s2191_s1 + $0x3f] sm:$0x2] %vm8_vm0, %v7_v59   ;;  %v712_v60 = vld [vmem:[#allocation0] sm:$0xf]  }
  0x45   :  { %773 = vst.msk [vmem:[%s2191_s1 + $0x7e] sm:$0x4] %vm8_vm0, %v7_v59   ;;  %774 = vst.msk [vmem:[%s2191_s1 + $0xbd] sm:$0x8] %vm8_vm0, %v7_v59   ;;  %v724_v61 = vld [vmem:[#allocation0] sm:$0xf]  }
  0x46   :  { %377 = vrot.lane.b32.xlu0 %v376_v31, %s1120_s0  ;;  %v736_v0 = vld [vmem:[#allocation0] sm:$0xf]  }
  0x47   :  { %389 = vrot.lane.b32.xlu1 %v388_v32, %s1121_s8  ;;  %v748_v1 = vld [vmem:[#allocation0] sm:$0xf]  }
  0x48   :  { %v760_v4 = vld [vmem:[#allocation0] sm:$0xf]  }
  0x4a   :  { %401 = vrot.lane.b32.xlu0 %v400_v33, %s1122_s9 }
  0x4b   :  { %413 = vrot.lane.b32.xlu1 %v412_v34, %s1123_s10 }
  0x4e   :  { %425 = vrot.lane.b32.xlu0 %v424_v35, %s1124_s11  ;;  %s1146_s11 = smov 71  }
  0x4f   :  { %437 = vrot.lane.b32.xlu1 %v436_v36, %s1125_s12  ;;  %s1147_s12 = smov 70  }
  0x52   :  { %449 = vrot.lane.b32.xlu0 %v448_v37, %s1126_s13 }
  0x53   :  { %461 = vrot.lane.b32.xlu1 %v460_v38, %s1127_s14 }
  0x56   :  { %473 = vrot.lane.b32.xlu0 %v472_v39, %s1128_s15 }
  0x57   :  { %485 = vrot.lane.b32.xlu1 %v484_v40, %s1129_s16 }
  0x5a   :  { %497 = vrot.lane.b32.xlu0 %v496_v41, %s1130_s17  ;;  %s1150_s17 = smov 67  }
  0x5b   :  { %509 = vrot.lane.b32.xlu1 %v508_v42, %s1131_s18  ;;  %s1151_s18 = smov 66  }
  0x5e   :  { %521 = vrot.lane.b32.xlu0 %v520_v43, %s1132_s19 }
  0x5f   :  { %533 = vrot.lane.b32.xlu1 %v532_v44, %s1133_s20 }
  0x62   :  { %545 = vrot.lane.b32.xlu0 %v544_v45, %s1134_s21 }
  0x63   :  { %557 = vrot.lane.b32.xlu1 %v556_v46, %s1135_s22 }
  0x66   :  { %569 = vrot.lane.b32.xlu0 %v568_v47, %s1136_s23 }
  0x67   :  { %581 = vrot.lane.b32.xlu1 %v580_v48, %s1137_s24 }
  0x6a   :  { %593 = vrot.lane.b32.xlu0 %v592_v49, %s1138_s25 }
  0x6b   :  { %605 = vrot.lane.b32.xlu1 %v604_v50, %s1139_s26 }
  0x6e   :  { %617 = vrot.lane.b32.xlu0 %v616_v51, %s1140_s27 }
  0x6f   :  { %629 = vrot.lane.b32.xlu1 %v628_v52, %s1141_s28 }
  0x72   :  { %641 = vrot.lane.b32.xlu0 %v640_v53, %s1142_s29  ;;  %s1148_s29 = smov 69  }
  0x73   :  { %653 = vrot.lane.b32.xlu1 %v652_v54, %s1143_s30  ;;  %s1149_s30 = smov 68  }
  0x76   :  { %665 = vrot.lane.b32.xlu0 %v664_v55, %s1144_s2 }
  0x77   :  { %677 = vrot.lane.b32.xlu1 %v676_v56, %s1145_s3 }
  0x7a   :  { %689 = vrot.lane.b32.xlu0 %v688_v57, %s1146_s11 }
  0x7b   :  { %701 = vrot.lane.b32.xlu1 %v700_v58, %s1147_s12 }
  0x7c   :  { %v18_v62 = vpop.permute.xlu0 %17  }
  0x7d   :  { %v42_v63 = vpop.permute.xlu1 %41   ;;  %775 = vst.msk [vmem:[%s2191_s1 + $0x1] sm:$0x1] %vm8_vm0, %v18_v62   ;;  %776 = vst.msk [vmem:[%s2191_s1 + $0x40] sm:$0x2] %vm8_vm0, %v18_v62  }
  0x7e   :  { %777 = vst.msk [vmem:[%s2191_s1 + $0x7f] sm:$0x4] %vm8_vm0, %v18_v62   ;;  %778 = vst.msk [vmem:[%s2191_s1 + $0xbe] sm:$0x8] %vm8_vm0, %v18_v62   ;;  %713 = vrot.lane.b32.xlu0 %v712_v60, %s1148_s29 }
  0x7f   :  { %783 = vst.msk [vmem:[%s2191_s1 + $0x3] sm:$0x1] %vm8_vm0, %v42_v63   ;;  %784 = vst.msk [vmem:[%s2191_s1 + $0x42] sm:$0x2] %vm8_vm0, %v42_v63   ;;  %725 = vrot.lane.b32.xlu1 %v724_v61, %s1149_s30 }
  0x80   :  { %785 = vst.msk [vmem:[%s2191_s1 + $0x81] sm:$0x4] %vm8_vm0, %v42_v63   ;;  %786 = vst.msk [vmem:[%s2191_s1 + $0xc0] sm:$0x8] %vm8_vm0, %v42_v63   ;;  %v30_v2 = vpop.permute.xlu0 %29  }
  0x81   :  { %v54_v3 = vpop.permute.xlu1 %53   ;;  %779 = vst.msk [vmem:[%s2191_s1 + $0x2] sm:$0x1] %vm8_vm0, %v30_v2   ;;  %780 = vst.msk [vmem:[%s2191_s1 + $0x41] sm:$0x2] %vm8_vm0, %v30_v2  }
  0x82   :  { %781 = vst.msk [vmem:[%s2191_s1 + $0x80] sm:$0x4] %vm8_vm0, %v30_v2   ;;  %782 = vst.msk [vmem:[%s2191_s1 + $0xbf] sm:$0x8] %vm8_vm0, %v30_v2   ;;  %737 = vrot.lane.b32.xlu0 %v736_v0, %s1150_s17 }
  0x83   :  { %787 = vst.msk [vmem:[%s2191_s1 + $0x4] sm:$0x1] %vm8_vm0, %v54_v3   ;;  %788 = vst.msk [vmem:[%s2191_s1 + $0x43] sm:$0x2] %vm8_vm0, %v54_v3   ;;  %749 = vrot.lane.b32.xlu1 %v748_v1, %s1151_s18 }
  0x84   :  { %789 = vst.msk [vmem:[%s2191_s1 + $0x82] sm:$0x4] %vm8_vm0, %v54_v3   ;;  %790 = vst.msk [vmem:[%s2191_s1 + $0xc1] sm:$0x8] %vm8_vm0, %v54_v3   ;;  %v66_v5 = vpop.permute.xlu0 %65  }
  0x85   :  { %v78_v6 = vpop.permute.xlu1 %77   ;;  %791 = vst.msk [vmem:[%s2191_s1 + $0x5] sm:$0x1] %vm8_vm0, %v66_v5   ;;  %792 = vst.msk [vmem:[%s2191_s1 + $0x44] sm:$0x2] %vm8_vm0, %v66_v5  }
  0x86   :  { %793 = vst.msk [vmem:[%s2191_s1 + $0x83] sm:$0x4] %vm8_vm0, %v66_v5   ;;  %794 = vst.msk [vmem:[%s2191_s1 + $0xc2] sm:$0x8] %vm8_vm0, %v66_v5   ;;  %761 = vrot.lane.b32.xlu0 %v760_v4, %s1152_s6 }
  0x87   :  { %795 = vst.msk [vmem:[%s2191_s1 + $0x6] sm:$0x1] %vm8_vm0, %v78_v6   ;;  %796 = vst.msk [vmem:[%s2191_s1 + $0x45] sm:$0x2] %vm8_vm0, %v78_v6  }
  0x88   :  { %797 = vst.msk [vmem:[%s2191_s1 + $0x84] sm:$0x4] %vm8_vm0, %v78_v6   ;;  %798 = vst.msk [vmem:[%s2191_s1 + $0xc3] sm:$0x8] %vm8_vm0, %v78_v6   ;;  %v90_v7 = vpop.permute.xlu0 %89  }
  0x89   :  { %v102_v8 = vpop.permute.xlu1 %101   ;;  %799 = vst.msk [vmem:[%s2191_s1 + $0x7] sm:$0x1] %vm8_vm0, %v90_v7   ;;  %800 = vst.msk [vmem:[%s2191_s1 + $0x46] sm:$0x2] %vm8_vm0, %v90_v7  }
  0x8a   :  { %801 = vst.msk [vmem:[%s2191_s1 + $0x85] sm:$0x4] %vm8_vm0, %v90_v7   ;;  %802 = vst.msk [vmem:[%s2191_s1 + $0xc4] sm:$0x8] %vm8_vm0, %v90_v7  }
  0x8b   :  { %803 = vst.msk [vmem:[%s2191_s1 + $0x8] sm:$0x1] %vm8_vm0, %v102_v8   ;;  %804 = vst.msk [vmem:[%s2191_s1 + $0x47] sm:$0x2] %vm8_vm0, %v102_v8  }
  0x8c   :  { %805 = vst.msk [vmem:[%s2191_s1 + $0x86] sm:$0x4] %vm8_vm0, %v102_v8   ;;  %806 = vst.msk [vmem:[%s2191_s1 + $0xc5] sm:$0x8] %vm8_vm0, %v102_v8   ;;  %v114_v9 = vpop.permute.xlu0 %113  }
  0x8d   :  { %v126_v10 = vpop.permute.xlu1 %125   ;;  %807 = vst.msk [vmem:[%s2191_s1 + $0x9] sm:$0x1] %vm8_vm0, %v114_v9   ;;  %808 = vst.msk [vmem:[%s2191_s1 + $0x48] sm:$0x2] %vm8_vm0, %v114_v9  }
  0x8e   :  { %809 = vst.msk [vmem:[%s2191_s1 + $0x87] sm:$0x4] %vm8_vm0, %v114_v9   ;;  %810 = vst.msk [vmem:[%s2191_s1 + $0xc6] sm:$0x8] %vm8_vm0, %v114_v9  }
  0x8f   :  { %811 = vst.msk [vmem:[%s2191_s1 + $0xa] sm:$0x1] %vm8_vm0, %v126_v10   ;;  %812 = vst.msk [vmem:[%s2191_s1 + $0x49] sm:$0x2] %vm8_vm0, %v126_v10  }
  0x90   :  { %813 = vst.msk [vmem:[%s2191_s1 + $0x88] sm:$0x4] %vm8_vm0, %v126_v10   ;;  %814 = vst.msk [vmem:[%s2191_s1 + $0xc7] sm:$0x8] %vm8_vm0, %v126_v10   ;;  %v138_v11 = vpop.permute.xlu0 %137  }
  0x91   :  { %v150_v12 = vpop.permute.xlu1 %149   ;;  %815 = vst.msk [vmem:[%s2191_s1 + $0xb] sm:$0x1] %vm8_vm0, %v138_v11   ;;  %816 = vst.msk [vmem:[%s2191_s1 + $0x4a] sm:$0x2] %vm8_vm0, %v138_v11  }
  0x92   :  { %817 = vst.msk [vmem:[%s2191_s1 + $0x89] sm:$0x4] %vm8_vm0, %v138_v11   ;;  %818 = vst.msk [vmem:[%s2191_s1 + $0xc8] sm:$0x8] %vm8_vm0, %v138_v11  }
  0x93   :  { %819 = vst.msk [vmem:[%s2191_s1 + $0xc] sm:$0x1] %vm8_vm0, %v150_v12   ;;  %820 = vst.msk [vmem:[%s2191_s1 + $0x4b] sm:$0x2] %vm8_vm0, %v150_v12  }
  0x94   :  { %821 = vst.msk [vmem:[%s2191_s1 + $0x8a] sm:$0x4] %vm8_vm0, %v150_v12   ;;  %822 = vst.msk [vmem:[%s2191_s1 + $0xc9] sm:$0x8] %vm8_vm0, %v150_v12   ;;  %v162_v13 = vpop.permute.xlu0 %161  }
  0x95   :  { %v174_v14 = vpop.permute.xlu1 %173   ;;  %823 = vst.msk [vmem:[%s2191_s1 + $0xd] sm:$0x1] %vm8_vm0, %v162_v13   ;;  %824 = vst.msk [vmem:[%s2191_s1 + $0x4c] sm:$0x2] %vm8_vm0, %v162_v13  }
  0x96   :  { %825 = vst.msk [vmem:[%s2191_s1 + $0x8b] sm:$0x4] %vm8_vm0, %v162_v13   ;;  %826 = vst.msk [vmem:[%s2191_s1 + $0xca] sm:$0x8] %vm8_vm0, %v162_v13  }
  0x97   :  { %827 = vst.msk [vmem:[%s2191_s1 + $0xe] sm:$0x1] %vm8_vm0, %v174_v14   ;;  %828 = vst.msk [vmem:[%s2191_s1 + $0x4d] sm:$0x2] %vm8_vm0, %v174_v14  }
  0x98   :  { %829 = vst.msk [vmem:[%s2191_s1 + $0x8c] sm:$0x4] %vm8_vm0, %v174_v14   ;;  %830 = vst.msk [vmem:[%s2191_s1 + $0xcb] sm:$0x8] %vm8_vm0, %v174_v14   ;;  %v186_v15 = vpop.permute.xlu0 %185  }
  0x99   :  { %v198_v16 = vpop.permute.xlu1 %197   ;;  %831 = vst.msk [vmem:[%s2191_s1 + $0xf] sm:$0x1] %vm8_vm0, %v186_v15   ;;  %832 = vst.msk [vmem:[%s2191_s1 + $0x4e] sm:$0x2] %vm8_vm0, %v186_v15  }
  0x9a   :  { %833 = vst.msk [vmem:[%s2191_s1 + $0x8d] sm:$0x4] %vm8_vm0, %v186_v15   ;;  %834 = vst.msk [vmem:[%s2191_s1 + $0xcc] sm:$0x8] %vm8_vm0, %v186_v15  }
  0x9b   :  { %835 = vst.msk [vmem:[%s2191_s1 + $0x10] sm:$0x1] %vm8_vm0, %v198_v16   ;;  %836 = vst.msk [vmem:[%s2191_s1 + $0x4f] sm:$0x2] %vm8_vm0, %v198_v16  }
  0x9c   :  { %837 = vst.msk [vmem:[%s2191_s1 + $0x8e] sm:$0x4] %vm8_vm0, %v198_v16   ;;  %838 = vst.msk [vmem:[%s2191_s1 + $0xcd] sm:$0x8] %vm8_vm0, %v198_v16   ;;  %v210_v17 = vpop.permute.xlu0 %209  }
  0x9d   :  { %v222_v18 = vpop.permute.xlu1 %221   ;;  %839 = vst.msk [vmem:[%s2191_s1 + $0x11] sm:$0x1] %vm8_vm0, %v210_v17   ;;  %840 = vst.msk [vmem:[%s2191_s1 + $0x50] sm:$0x2] %vm8_vm0, %v210_v17  }
  0x9e   :  { %841 = vst.msk [vmem:[%s2191_s1 + $0x8f] sm:$0x4] %vm8_vm0, %v210_v17   ;;  %842 = vst.msk [vmem:[%s2191_s1 + $0xce] sm:$0x8] %vm8_vm0, %v210_v17  }
  0x9f   :  { %843 = vst.msk [vmem:[%s2191_s1 + $0x12] sm:$0x1] %vm8_vm0, %v222_v18   ;;  %844 = vst.msk [vmem:[%s2191_s1 + $0x51] sm:$0x2] %vm8_vm0, %v222_v18  }
  0xa0   :  { %845 = vst.msk [vmem:[%s2191_s1 + $0x90] sm:$0x4] %vm8_vm0, %v222_v18   ;;  %846 = vst.msk [vmem:[%s2191_s1 + $0xcf] sm:$0x8] %vm8_vm0, %v222_v18   ;;  %v234_v19 = vpop.permute.xlu0 %233  }
  0xa1   :  { %v246_v20 = vpop.permute.xlu1 %245   ;;  %847 = vst.msk [vmem:[%s2191_s1 + $0x13] sm:$0x1] %vm8_vm0, %v234_v19   ;;  %848 = vst.msk [vmem:[%s2191_s1 + $0x52] sm:$0x2] %vm8_vm0, %v234_v19  }
  0xa2   :  { %849 = vst.msk [vmem:[%s2191_s1 + $0x91] sm:$0x4] %vm8_vm0, %v234_v19   ;;  %850 = vst.msk [vmem:[%s2191_s1 + $0xd0] sm:$0x8] %vm8_vm0, %v234_v19  }
  0xa3   :  { %851 = vst.msk [vmem:[%s2191_s1 + $0x14] sm:$0x1] %vm8_vm0, %v246_v20   ;;  %852 = vst.msk [vmem:[%s2191_s1 + $0x53] sm:$0x2] %vm8_vm0, %v246_v20  }
  0xa4   :  { %853 = vst.msk [vmem:[%s2191_s1 + $0x92] sm:$0x4] %vm8_vm0, %v246_v20   ;;  %854 = vst.msk [vmem:[%s2191_s1 + $0xd1] sm:$0x8] %vm8_vm0, %v246_v20   ;;  %v258_v21 = vpop.permute.xlu0 %257  }
  0xa5   :  { %v270_v22 = vpop.permute.xlu1 %269   ;;  %855 = vst.msk [vmem:[%s2191_s1 + $0x15] sm:$0x1] %vm8_vm0, %v258_v21   ;;  %856 = vst.msk [vmem:[%s2191_s1 + $0x54] sm:$0x2] %vm8_vm0, %v258_v21  }
  0xa6   :  { %857 = vst.msk [vmem:[%s2191_s1 + $0x93] sm:$0x4] %vm8_vm0, %v258_v21   ;;  %858 = vst.msk [vmem:[%s2191_s1 + $0xd2] sm:$0x8] %vm8_vm0, %v258_v21  }
  0xa7   :  { %859 = vst.msk [vmem:[%s2191_s1 + $0x16] sm:$0x1] %vm8_vm0, %v270_v22   ;;  %860 = vst.msk [vmem:[%s2191_s1 + $0x55] sm:$0x2] %vm8_vm0, %v270_v22  }
  0xa8   :  { %861 = vst.msk [vmem:[%s2191_s1 + $0x94] sm:$0x4] %vm8_vm0, %v270_v22   ;;  %862 = vst.msk [vmem:[%s2191_s1 + $0xd3] sm:$0x8] %vm8_vm0, %v270_v22   ;;  %v282_v23 = vpop.permute.xlu0 %281  }
  0xa9   :  { %v294_v24 = vpop.permute.xlu1 %293   ;;  %863 = vst.msk [vmem:[%s2191_s1 + $0x17] sm:$0x1] %vm8_vm0, %v282_v23   ;;  %864 = vst.msk [vmem:[%s2191_s1 + $0x56] sm:$0x2] %vm8_vm0, %v282_v23  }
  0xaa   :  { %865 = vst.msk [vmem:[%s2191_s1 + $0x95] sm:$0x4] %vm8_vm0, %v282_v23   ;;  %866 = vst.msk [vmem:[%s2191_s1 + $0xd4] sm:$0x8] %vm8_vm0, %v282_v23  }
  0xab   :  { %867 = vst.msk [vmem:[%s2191_s1 + $0x18] sm:$0x1] %vm8_vm0, %v294_v24   ;;  %868 = vst.msk [vmem:[%s2191_s1 + $0x57] sm:$0x2] %vm8_vm0, %v294_v24  }
  0xac   :  { %869 = vst.msk [vmem:[%s2191_s1 + $0x96] sm:$0x4] %vm8_vm0, %v294_v24   ;;  %870 = vst.msk [vmem:[%s2191_s1 + $0xd5] sm:$0x8] %vm8_vm0, %v294_v24   ;;  %v306_v25 = vpop.permute.xlu0 %305  }
  0xad   :  { %v318_v26 = vpop.permute.xlu1 %317   ;;  %871 = vst.msk [vmem:[%s2191_s1 + $0x19] sm:$0x1] %vm8_vm0, %v306_v25   ;;  %872 = vst.msk [vmem:[%s2191_s1 + $0x58] sm:$0x2] %vm8_vm0, %v306_v25  }
  0xae   :  { %873 = vst.msk [vmem:[%s2191_s1 + $0x97] sm:$0x4] %vm8_vm0, %v306_v25   ;;  %874 = vst.msk [vmem:[%s2191_s1 + $0xd6] sm:$0x8] %vm8_vm0, %v306_v25  }
  0xaf   :  { %875 = vst.msk [vmem:[%s2191_s1 + $0x1a] sm:$0x1] %vm8_vm0, %v318_v26   ;;  %876 = vst.msk [vmem:[%s2191_s1 + $0x59] sm:$0x2] %vm8_vm0, %v318_v26  }
  0xb0   :  { %877 = vst.msk [vmem:[%s2191_s1 + $0x98] sm:$0x4] %vm8_vm0, %v318_v26   ;;  %878 = vst.msk [vmem:[%s2191_s1 + $0xd7] sm:$0x8] %vm8_vm0, %v318_v26   ;;  %v330_v27 = vpop.permute.xlu0 %329  }
  0xb1   :  { %v342_v28 = vpop.permute.xlu1 %341   ;;  %879 = vst.msk [vmem:[%s2191_s1 + $0x1b] sm:$0x1] %vm8_vm0, %v330_v27   ;;  %880 = vst.msk [vmem:[%s2191_s1 + $0x5a] sm:$0x2] %vm8_vm0, %v330_v27  }
  0xb2   :  { %881 = vst.msk [vmem:[%s2191_s1 + $0x99] sm:$0x4] %vm8_vm0, %v330_v27   ;;  %882 = vst.msk [vmem:[%s2191_s1 + $0xd8] sm:$0x8] %vm8_vm0, %v330_v27  }
  0xb3   :  { %883 = vst.msk [vmem:[%s2191_s1 + $0x1c] sm:$0x1] %vm8_vm0, %v342_v28   ;;  %884 = vst.msk [vmem:[%s2191_s1 + $0x5b] sm:$0x2] %vm8_vm0, %v342_v28  }
  0xb4   :  { %885 = vst.msk [vmem:[%s2191_s1 + $0x9a] sm:$0x4] %vm8_vm0, %v342_v28   ;;  %886 = vst.msk [vmem:[%s2191_s1 + $0xd9] sm:$0x8] %vm8_vm0, %v342_v28   ;;  %v354_v29 = vpop.permute.xlu0 %353  }
  0xb5   :  { %v366_v30 = vpop.permute.xlu1 %365   ;;  %887 = vst.msk [vmem:[%s2191_s1 + $0x1d] sm:$0x1] %vm8_vm0, %v354_v29   ;;  %888 = vst.msk [vmem:[%s2191_s1 + $0x5c] sm:$0x2] %vm8_vm0, %v354_v29  }
  0xb6   :  { %889 = vst.msk [vmem:[%s2191_s1 + $0x9b] sm:$0x4] %vm8_vm0, %v354_v29   ;;  %890 = vst.msk [vmem:[%s2191_s1 + $0xda] sm:$0x8] %vm8_vm0, %v354_v29  }
  0xb7   :  { %891 = vst.msk [vmem:[%s2191_s1 + $0x1e] sm:$0x1] %vm8_vm0, %v366_v30   ;;  %892 = vst.msk [vmem:[%s2191_s1 + $0x5d] sm:$0x2] %vm8_vm0, %v366_v30  }
  0xb8   :  { %893 = vst.msk [vmem:[%s2191_s1 + $0x9c] sm:$0x4] %vm8_vm0, %v366_v30   ;;  %894 = vst.msk [vmem:[%s2191_s1 + $0xdb] sm:$0x8] %vm8_vm0, %v366_v30   ;;  %v378_v31 = vpop.permute.xlu0 %377  }
  0xb9   :  { %v390_v32 = vpop.permute.xlu1 %389   ;;  %895 = vst.msk [vmem:[%s2191_s1 + $0x1f] sm:$0x1] %vm8_vm0, %v378_v31   ;;  %896 = vst.msk [vmem:[%s2191_s1 + $0x5e] sm:$0x2] %vm8_vm0, %v378_v31  }
  0xba   :  { %897 = vst.msk [vmem:[%s2191_s1 + $0x9d] sm:$0x4] %vm8_vm0, %v378_v31   ;;  %898 = vst.msk [vmem:[%s2191_s1 + $0xdc] sm:$0x8] %vm8_vm0, %v378_v31  }
  0xbb   :  { %899 = vst.msk [vmem:[%s2191_s1 + $0x20] sm:$0x1] %vm8_vm0, %v390_v32   ;;  %900 = vst.msk [vmem:[%s2191_s1 + $0x5f] sm:$0x2] %vm8_vm0, %v390_v32  }
  0xbc   :  { %901 = vst.msk [vmem:[%s2191_s1 + $0x9e] sm:$0x4] %vm8_vm0, %v390_v32   ;;  %902 = vst.msk [vmem:[%s2191_s1 + $0xdd] sm:$0x8] %vm8_vm0, %v390_v32   ;;  %v402_v33 = vpop.permute.xlu0 %401  }
  0xbd   :  { %v414_v34 = vpop.permute.xlu1 %413   ;;  %903 = vst.msk [vmem:[%s2191_s1 + $0x21] sm:$0x1] %vm8_vm0, %v402_v33   ;;  %904 = vst.msk [vmem:[%s2191_s1 + $0x60] sm:$0x2] %vm8_vm0, %v402_v33  }
  0xbe   :  { %905 = vst.msk [vmem:[%s2191_s1 + $0x9f] sm:$0x4] %vm8_vm0, %v402_v33   ;;  %906 = vst.msk [vmem:[%s2191_s1 + $0xde] sm:$0x8] %vm8_vm0, %v402_v33  }
  0xbf   :  { %907 = vst.msk [vmem:[%s2191_s1 + $0x22] sm:$0x1] %vm8_vm0, %v414_v34   ;;  %908 = vst.msk [vmem:[%s2191_s1 + $0x61] sm:$0x2] %vm8_vm0, %v414_v34  }
  0xc0   :  { %909 = vst.msk [vmem:[%s2191_s1 + $0xa0] sm:$0x4] %vm8_vm0, %v414_v34   ;;  %910 = vst.msk [vmem:[%s2191_s1 + $0xdf] sm:$0x8] %vm8_vm0, %v414_v34   ;;  %v426_v35 = vpop.permute.xlu0 %425  }
  0xc1   :  { %v438_v36 = vpop.permute.xlu1 %437   ;;  %911 = vst.msk [vmem:[%s2191_s1 + $0x23] sm:$0x1] %vm8_vm0, %v426_v35   ;;  %912 = vst.msk [vmem:[%s2191_s1 + $0x62] sm:$0x2] %vm8_vm0, %v426_v35  }
  0xc2   :  { %913 = vst.msk [vmem:[%s2191_s1 + $0xa1] sm:$0x4] %vm8_vm0, %v426_v35   ;;  %914 = vst.msk [vmem:[%s2191_s1 + $0xe0] sm:$0x8] %vm8_vm0, %v426_v35  }
  0xc3   :  { %915 = vst.msk [vmem:[%s2191_s1 + $0x24] sm:$0x1] %vm8_vm0, %v438_v36   ;;  %916 = vst.msk [vmem:[%s2191_s1 + $0x63] sm:$0x2] %vm8_vm0, %v438_v36  }
  0xc4   :  { %917 = vst.msk [vmem:[%s2191_s1 + $0xa2] sm:$0x4] %vm8_vm0, %v438_v36   ;;  %918 = vst.msk [vmem:[%s2191_s1 + $0xe1] sm:$0x8] %vm8_vm0, %v438_v36   ;;  %v450_v37 = vpop.permute.xlu0 %449  }
  0xc5   :  { %v462_v38 = vpop.permute.xlu1 %461   ;;  %919 = vst.msk [vmem:[%s2191_s1 + $0x25] sm:$0x1] %vm8_vm0, %v450_v37   ;;  %920 = vst.msk [vmem:[%s2191_s1 + $0x64] sm:$0x2] %vm8_vm0, %v450_v37  }
  0xc6   :  { %921 = vst.msk [vmem:[%s2191_s1 + $0xa3] sm:$0x4] %vm8_vm0, %v450_v37   ;;  %922 = vst.msk [vmem:[%s2191_s1 + $0xe2] sm:$0x8] %vm8_vm0, %v450_v37  }
  0xc7   :  { %923 = vst.msk [vmem:[%s2191_s1 + $0x26] sm:$0x1] %vm8_vm0, %v462_v38   ;;  %924 = vst.msk [vmem:[%s2191_s1 + $0x65] sm:$0x2] %vm8_vm0, %v462_v38  }
  0xc8   :  { %925 = vst.msk [vmem:[%s2191_s1 + $0xa4] sm:$0x4] %vm8_vm0, %v462_v38   ;;  %926 = vst.msk [vmem:[%s2191_s1 + $0xe3] sm:$0x8] %vm8_vm0, %v462_v38   ;;  %v474_v39 = vpop.permute.xlu0 %473  }
  0xc9   :  { %v486_v40 = vpop.permute.xlu1 %485   ;;  %927 = vst.msk [vmem:[%s2191_s1 + $0x27] sm:$0x1] %vm8_vm0, %v474_v39   ;;  %928 = vst.msk [vmem:[%s2191_s1 + $0x66] sm:$0x2] %vm8_vm0, %v474_v39  }
  0xca   :  { %929 = vst.msk [vmem:[%s2191_s1 + $0xa5] sm:$0x4] %vm8_vm0, %v474_v39   ;;  %930 = vst.msk [vmem:[%s2191_s1 + $0xe4] sm:$0x8] %vm8_vm0, %v474_v39  }
  0xcb   :  { %931 = vst.msk [vmem:[%s2191_s1 + $0x28] sm:$0x1] %vm8_vm0, %v486_v40   ;;  %932 = vst.msk [vmem:[%s2191_s1 + $0x67] sm:$0x2] %vm8_vm0, %v486_v40  }
  0xcc   :  { %933 = vst.msk [vmem:[%s2191_s1 + $0xa6] sm:$0x4] %vm8_vm0, %v486_v40   ;;  %934 = vst.msk [vmem:[%s2191_s1 + $0xe5] sm:$0x8] %vm8_vm0, %v486_v40   ;;  %v498_v41 = vpop.permute.xlu0 %497  }
  0xcd   :  { %v510_v42 = vpop.permute.xlu1 %509   ;;  %935 = vst.msk [vmem:[%s2191_s1 + $0x29] sm:$0x1] %vm8_vm0, %v498_v41   ;;  %936 = vst.msk [vmem:[%s2191_s1 + $0x68] sm:$0x2] %vm8_vm0, %v498_v41  }
  0xce   :  { %937 = vst.msk [vmem:[%s2191_s1 + $0xa7] sm:$0x4] %vm8_vm0, %v498_v41   ;;  %938 = vst.msk [vmem:[%s2191_s1 + $0xe6] sm:$0x8] %vm8_vm0, %v498_v41  }
  0xcf   :  { %939 = vst.msk [vmem:[%s2191_s1 + $0x2a] sm:$0x1] %vm8_vm0, %v510_v42   ;;  %940 = vst.msk [vmem:[%s2191_s1 + $0x69] sm:$0x2] %vm8_vm0, %v510_v42  }
  0xd0   :  { %941 = vst.msk [vmem:[%s2191_s1 + $0xa8] sm:$0x4] %vm8_vm0, %v510_v42   ;;  %942 = vst.msk [vmem:[%s2191_s1 + $0xe7] sm:$0x8] %vm8_vm0, %v510_v42   ;;  %v522_v43 = vpop.permute.xlu0 %521  }
  0xd1   :  { %v534_v44 = vpop.permute.xlu1 %533   ;;  %943 = vst.msk [vmem:[%s2191_s1 + $0x2b] sm:$0x1] %vm8_vm0, %v522_v43   ;;  %944 = vst.msk [vmem:[%s2191_s1 + $0x6a] sm:$0x2] %vm8_vm0, %v522_v43  }
  0xd2   :  { %945 = vst.msk [vmem:[%s2191_s1 + $0xa9] sm:$0x4] %vm8_vm0, %v522_v43   ;;  %946 = vst.msk [vmem:[%s2191_s1 + $0xe8] sm:$0x8] %vm8_vm0, %v522_v43  }
  0xd3   :  { %947 = vst.msk [vmem:[%s2191_s1 + $0x2c] sm:$0x1] %vm8_vm0, %v534_v44   ;;  %948 = vst.msk [vmem:[%s2191_s1 + $0x6b] sm:$0x2] %vm8_vm0, %v534_v44  }
  0xd4   :  { %949 = vst.msk [vmem:[%s2191_s1 + $0xaa] sm:$0x4] %vm8_vm0, %v534_v44   ;;  %950 = vst.msk [vmem:[%s2191_s1 + $0xe9] sm:$0x8] %vm8_vm0, %v534_v44   ;;  %v546_v45 = vpop.permute.xlu0 %545  }
  0xd5   :  { %v558_v46 = vpop.permute.xlu1 %557   ;;  %951 = vst.msk [vmem:[%s2191_s1 + $0x2d] sm:$0x1] %vm8_vm0, %v546_v45   ;;  %952 = vst.msk [vmem:[%s2191_s1 + $0x6c] sm:$0x2] %vm8_vm0, %v546_v45  }
  0xd6   :  { %953 = vst.msk [vmem:[%s2191_s1 + $0xab] sm:$0x4] %vm8_vm0, %v546_v45   ;;  %954 = vst.msk [vmem:[%s2191_s1 + $0xea] sm:$0x8] %vm8_vm0, %v546_v45  }
  0xd7   :  { %955 = vst.msk [vmem:[%s2191_s1 + $0x2e] sm:$0x1] %vm8_vm0, %v558_v46   ;;  %956 = vst.msk [vmem:[%s2191_s1 + $0x6d] sm:$0x2] %vm8_vm0, %v558_v46  }
  0xd8   :  { %957 = vst.msk [vmem:[%s2191_s1 + $0xac] sm:$0x4] %vm8_vm0, %v558_v46   ;;  %958 = vst.msk [vmem:[%s2191_s1 + $0xeb] sm:$0x8] %vm8_vm0, %v558_v46   ;;  %v570_v47 = vpop.permute.xlu0 %569  }
  0xd9   :  { %v582_v48 = vpop.permute.xlu1 %581   ;;  %959 = vst.msk [vmem:[%s2191_s1 + $0x2f] sm:$0x1] %vm8_vm0, %v570_v47   ;;  %960 = vst.msk [vmem:[%s2191_s1 + $0x6e] sm:$0x2] %vm8_vm0, %v570_v47  }
  0xda   :  { %961 = vst.msk [vmem:[%s2191_s1 + $0xad] sm:$0x4] %vm8_vm0, %v570_v47   ;;  %962 = vst.msk [vmem:[%s2191_s1 + $0xec] sm:$0x8] %vm8_vm0, %v570_v47  }
  0xdb   :  { %963 = vst.msk [vmem:[%s2191_s1 + $0x30] sm:$0x1] %vm8_vm0, %v582_v48   ;;  %964 = vst.msk [vmem:[%s2191_s1 + $0x6f] sm:$0x2] %vm8_vm0, %v582_v48  }
  0xdc   :  { %965 = vst.msk [vmem:[%s2191_s1 + $0xae] sm:$0x4] %vm8_vm0, %v582_v48   ;;  %966 = vst.msk [vmem:[%s2191_s1 + $0xed] sm:$0x8] %vm8_vm0, %v582_v48   ;;  %v594_v49 = vpop.permute.xlu0 %593  }
  0xdd   :  { %v606_v50 = vpop.permute.xlu1 %605   ;;  %967 = vst.msk [vmem:[%s2191_s1 + $0x31] sm:$0x1] %vm8_vm0, %v594_v49   ;;  %968 = vst.msk [vmem:[%s2191_s1 + $0x70] sm:$0x2] %vm8_vm0, %v594_v49  }
  0xde   :  { %969 = vst.msk [vmem:[%s2191_s1 + $0xaf] sm:$0x4] %vm8_vm0, %v594_v49   ;;  %970 = vst.msk [vmem:[%s2191_s1 + $0xee] sm:$0x8] %vm8_vm0, %v594_v49  }
  0xdf   :  { %971 = vst.msk [vmem:[%s2191_s1 + $0x32] sm:$0x1] %vm8_vm0, %v606_v50   ;;  %972 = vst.msk [vmem:[%s2191_s1 + $0x71] sm:$0x2] %vm8_vm0, %v606_v50  }
  0xe0   :  { %973 = vst.msk [vmem:[%s2191_s1 + $0xb0] sm:$0x4] %vm8_vm0, %v606_v50   ;;  %974 = vst.msk [vmem:[%s2191_s1 + $0xef] sm:$0x8] %vm8_vm0, %v606_v50   ;;  %v618_v51 = vpop.permute.xlu0 %617  }
  0xe1   :  { %v630_v52 = vpop.permute.xlu1 %629   ;;  %975 = vst.msk [vmem:[%s2191_s1 + $0x33] sm:$0x1] %vm8_vm0, %v618_v51   ;;  %976 = vst.msk [vmem:[%s2191_s1 + $0x72] sm:$0x2] %vm8_vm0, %v618_v51  }
  0xe2   :  { %977 = vst.msk [vmem:[%s2191_s1 + $0xb1] sm:$0x4] %vm8_vm0, %v618_v51   ;;  %978 = vst.msk [vmem:[%s2191_s1 + $0xf0] sm:$0x8] %vm8_vm0, %v618_v51  }
  0xe3   :  { %979 = vst.msk [vmem:[%s2191_s1 + $0x34] sm:$0x1] %vm8_vm0, %v630_v52   ;;  %980 = vst.msk [vmem:[%s2191_s1 + $0x73] sm:$0x2] %vm8_vm0, %v630_v52  }
  0xe4   :  { %981 = vst.msk [vmem:[%s2191_s1 + $0xb2] sm:$0x4] %vm8_vm0, %v630_v52   ;;  %982 = vst.msk [vmem:[%s2191_s1 + $0xf1] sm:$0x8] %vm8_vm0, %v630_v52   ;;  %v642_v53 = vpop.permute.xlu0 %641  }
  0xe5   :  { %v654_v54 = vpop.permute.xlu1 %653   ;;  %983 = vst.msk [vmem:[%s2191_s1 + $0x35] sm:$0x1] %vm8_vm0, %v642_v53   ;;  %984 = vst.msk [vmem:[%s2191_s1 + $0x74] sm:$0x2] %vm8_vm0, %v642_v53  }
  0xe6   :  { %985 = vst.msk [vmem:[%s2191_s1 + $0xb3] sm:$0x4] %vm8_vm0, %v642_v53   ;;  %986 = vst.msk [vmem:[%s2191_s1 + $0xf2] sm:$0x8] %vm8_vm0, %v642_v53  }
  0xe7   :  { %987 = vst.msk [vmem:[%s2191_s1 + $0x36] sm:$0x1] %vm8_vm0, %v654_v54   ;;  %988 = vst.msk [vmem:[%s2191_s1 + $0x75] sm:$0x2] %vm8_vm0, %v654_v54  }
  0xe8   :  { %989 = vst.msk [vmem:[%s2191_s1 + $0xb4] sm:$0x4] %vm8_vm0, %v654_v54   ;;  %990 = vst.msk [vmem:[%s2191_s1 + $0xf3] sm:$0x8] %vm8_vm0, %v654_v54   ;;  %v666_v55 = vpop.permute.xlu0 %665  }
  0xe9   :  { %v678_v56 = vpop.permute.xlu1 %677   ;;  %991 = vst.msk [vmem:[%s2191_s1 + $0x37] sm:$0x1] %vm8_vm0, %v666_v55   ;;  %992 = vst.msk [vmem:[%s2191_s1 + $0x76] sm:$0x2] %vm8_vm0, %v666_v55  }
  0xea   :  { %993 = vst.msk [vmem:[%s2191_s1 + $0xb5] sm:$0x4] %vm8_vm0, %v666_v55   ;;  %994 = vst.msk [vmem:[%s2191_s1 + $0xf4] sm:$0x8] %vm8_vm0, %v666_v55  }
  0xeb   :  { %995 = vst.msk [vmem:[%s2191_s1 + $0x38] sm:$0x1] %vm8_vm0, %v678_v56   ;;  %996 = vst.msk [vmem:[%s2191_s1 + $0x77] sm:$0x2] %vm8_vm0, %v678_v56  }
  0xec   :  { %997 = vst.msk [vmem:[%s2191_s1 + $0xb6] sm:$0x4] %vm8_vm0, %v678_v56   ;;  %998 = vst.msk [vmem:[%s2191_s1 + $0xf5] sm:$0x8] %vm8_vm0, %v678_v56   ;;  %v690_v57 = vpop.permute.xlu0 %689  }
  0xed   :  { %v702_v58 = vpop.permute.xlu1 %701   ;;  %999 = vst.msk [vmem:[%s2191_s1 + $0x39] sm:$0x1] %vm8_vm0, %v690_v57   ;;  %1000 = vst.msk [vmem:[%s2191_s1 + $0x78] sm:$0x2] %vm8_vm0, %v690_v57  }
  0xee   :  { %1001 = vst.msk [vmem:[%s2191_s1 + $0xb7] sm:$0x4] %vm8_vm0, %v690_v57   ;;  %1002 = vst.msk [vmem:[%s2191_s1 + $0xf6] sm:$0x8] %vm8_vm0, %v690_v57  }
  0xef   :  { %1003 = vst.msk [vmem:[%s2191_s1 + $0x3a] sm:$0x1] %vm8_vm0, %v702_v58   ;;  %1004 = vst.msk [vmem:[%s2191_s1 + $0x79] sm:$0x2] %vm8_vm0, %v702_v58  }
  0xf0   :  { %1005 = vst.msk [vmem:[%s2191_s1 + $0xb8] sm:$0x4] %vm8_vm0, %v702_v58   ;;  %1006 = vst.msk [vmem:[%s2191_s1 + $0xf7] sm:$0x8] %vm8_vm0, %v702_v58   ;;  %v714_v59 = vpop.permute.xlu0 %713  }
  0xf1   :  { %v726_v60 = vpop.permute.xlu1 %725   ;;  %1007 = vst.msk [vmem:[%s2191_s1 + $0x3b] sm:$0x1] %vm8_vm0, %v714_v59   ;;  %1008 = vst.msk [vmem:[%s2191_s1 + $0x7a] sm:$0x2] %vm8_vm0, %v714_v59  }
  0xf2   :  { %1009 = vst.msk [vmem:[%s2191_s1 + $0xb9] sm:$0x4] %vm8_vm0, %v714_v59   ;;  %1010 = vst.msk [vmem:[%s2191_s1 + $0xf8] sm:$0x8] %vm8_vm0, %v714_v59  }
  0xf3   :  { %1011 = vst.msk [vmem:[%s2191_s1 + $0x3c] sm:$0x1] %vm8_vm0, %v726_v60   ;;  %1012 = vst.msk [vmem:[%s2191_s1 + $0x7b] sm:$0x2] %vm8_vm0, %v726_v60  }
  0xf4   :  { %1013 = vst.msk [vmem:[%s2191_s1 + $0xba] sm:$0x4] %vm8_vm0, %v726_v60   ;;  %1014 = vst.msk [vmem:[%s2191_s1 + $0xf9] sm:$0x8] %vm8_vm0, %v726_v60   ;;  %v738_v61 = vpop.permute.xlu0 %737  }
  0xf5   :  { %v750_v62 = vpop.permute.xlu1 %749   ;;  %1015 = vst.msk [vmem:[%s2191_s1 + $0x3d] sm:$0x1] %vm8_vm0, %v738_v61   ;;  %1016 = vst.msk [vmem:[%s2191_s1 + $0x7c] sm:$0x2] %vm8_vm0, %v738_v61  }
  0xf6   :  { %1017 = vst.msk [vmem:[%s2191_s1 + $0xbb] sm:$0x4] %vm8_vm0, %v738_v61   ;;  %1018 = vst.msk [vmem:[%s2191_s1 + $0xfa] sm:$0x8] %vm8_vm0, %v738_v61  }
  0xf7   :  { %1019 = vst.msk [vmem:[%s2191_s1 + $0x3e] sm:$0x1] %vm8_vm0, %v750_v62   ;;  %1020 = vst.msk [vmem:[%s2191_s1 + $0x7d] sm:$0x2] %vm8_vm0, %v750_v62  }
  0xf8   :  { %1021 = vst.msk [vmem:[%s2191_s1 + $0xbc] sm:$0x4] %vm8_vm0, %v750_v62   ;;  %1022 = vst.msk [vmem:[%s2191_s1 + $0xfb] sm:$0x8] %vm8_vm0, %v750_v62   ;;  %v762_v63 = vpop.permute.xlu0 %761  }
  0xf9   :  { %1023 = vst.msk [vmem:[%s2191_s1 + $0x3f] sm:$0x1] %vm8_vm0, %v762_v63   ;;  %1024 = vst.msk [vmem:[%s2191_s1 + $0x7e] sm:$0x2] %vm8_vm0, %v762_v63  }
  0xfa   :  { %1025 = vst.msk [vmem:[%s2191_s1 + $0xbd] sm:$0x4] %vm8_vm0, %v762_v63   ;;  %1026 = vst.msk [vmem:[%s2191_s1 + $0xfc] sm:$0x8] %vm8_vm0, %v762_v63  }

// kernel: tile.28
= control target key start
LH: loop header
LB: loop body
LE: loop exit
PB: predicated region body
PF: predicated region fallthrough
CT: control target
= control target key end

     0   :  { %s22_s0 = inlined_call_operand.vmem [shape: f32[32], index: 0, kind: input, shape index: {}]   ;;  %s23_s1 = inlined_call_operand.vmem [shape: f32[4,32], index: 1, kind: output, shape index: {}]  }
   0x1   :  { %v4_v0 = vld [vmem:[%s22_s0] ss:$0 sm:$0xff] }
   0x2   :  { %5 = vst [vmem:[%s23_s1] sm:$0xf] %v4_v0 }

// kernel: tile.1
= control target key start
LH: loop header
LB: loop body
LE: loop exit
PB: predicated region body
PF: predicated region fallthrough
CT: control target
= control target key end

     0   :  { %s547_s8 = smov 125   ;;  %s548_s9 = smov 126   ;;  %vm8_vm0 = vcmask 7168   ;;  %s1102_s0 = inlined_call_operand.vmem [shape: f32[4,32], index: 0, kind: input, shape index: {}]   ;;  %s1103_s1 = inlined_call_operand.vmem [shape: f32[128,1], index: 1, kind: output, shape index: {}]  }
   0x1   :  { %v5_v0 = vld [vmem:[%s1102_s0] sm:$0xf]  ;;  %s546_s0 = smov 127   ;;  %s549_s10 = smov 124  }
   0x2   :  { %6 = vst [vmem:[#allocation0] sm:$0xf] %v5_v0  ;;  %s550_s11 = smov 123   ;;  %s551_s12 = smov 122  }
   0x3   :  { %s552_s13 = smov 121   ;;  %s553_s14 = smov 120  }
   0x4   :  { %s554_s15 = smov 119   ;;  %s555_s16 = smov 118  }
   0x5   :  { %s556_s17 = smov 117   ;;  %s557_s18 = smov 116  }
   0x6   :  { %s558_s19 = smov 115   ;;  %s559_s20 = smov 114  }
   0x7   :  { %s560_s21 = smov 113   ;;  %s561_s22 = smov 112  }
   0x8   :  { %s562_s23 = smov 111   ;;  %s563_s24 = smov 110  }
   0x9   :  { %v16_v1 = vld [vmem:[#allocation0] sm:$0xf]   ;;  %s564_s25 = smov 109   ;;  %s565_s26 = smov 108  }
   0xa   :  { %v40_v2 = vld [vmem:[#allocation0] sm:$0xf]   ;;  %17 = vrot.lane.b32.xlu0 %v16_v1, %s546_s0  ;;  %s566_s27 = smov 107   ;;  %s567_s28 = smov 106  }
   0xb   :  { %41 = vrot.lane.b32.xlu1 %v40_v2, %s547_s8  ;;  %v28_v3 = vld [vmem:[#allocation0] sm:$0xf]   ;;  %s568_s29 = smov 105   ;;  %s569_s30 = smov 104  }
   0xc   :  { %v52_v4 = vld [vmem:[#allocation0] sm:$0xf]  }
   0xd   :  { %v64_v5 = vld [vmem:[#allocation0] sm:$0xf]  }
   0xe   :  { %29 = vrot.lane.b32.xlu0 %v28_v3, %s548_s9  ;;  %v76_v6 = vld [vmem:[#allocation0] sm:$0xf]   ;;  %s570_s9 = smov 103  }
   0xf   :  { %53 = vrot.lane.b32.xlu1 %v52_v4, %s549_s10  ;;  %v88_v7 = vld [vmem:[#allocation0] sm:$0xf]   ;;  %s571_s10 = smov 102  }
  0x10   :  { %v100_v8 = vld [vmem:[#allocation0] sm:$0xf]  }
  0x11   :  { %v112_v9 = vld [vmem:[#allocation0] sm:$0xf]  }
  0x12   :  { %65 = vrot.lane.b32.xlu0 %v64_v5, %s550_s11  ;;  %v124_v10 = vld [vmem:[#allocation0] sm:$0xf]   ;;  %s572_s11 = smov 101  }
  0x13   :  { %77 = vrot.lane.b32.xlu1 %v76_v6, %s551_s12  ;;  %v136_v11 = vld [vmem:[#allocation0] sm:$0xf]   ;;  %s573_s12 = smov 100  }
  0x14   :  { %v148_v12 = vld [vmem:[#allocation0] sm:$0xf]  }
  0x15   :  { %v160_v13 = vld [vmem:[#allocation0] sm:$0xf]  }
  0x16   :  { %89 = vrot.lane.b32.xlu0 %v88_v7, %s552_s13  ;;  %v172_v14 = vld [vmem:[#allocation0] sm:$0xf]   ;;  %s574_s13 = smov 99  }
  0x17   :  { %101 = vrot.lane.b32.xlu1 %v100_v8, %s553_s14  ;;  %v184_v15 = vld [vmem:[#allocation0] sm:$0xf]   ;;  %s575_s14 = smov 98  }
  0x18   :  { %v196_v16 = vld [vmem:[#allocation0] sm:$0xf]  }
  0x19   :  { %v208_v17 = vld [vmem:[#allocation0] sm:$0xf]  }
  0x1a   :  { %113 = vrot.lane.b32.xlu0 %v112_v9, %s554_s15  ;;  %v220_v18 = vld [vmem:[#allocation0] sm:$0xf]   ;;  %s576_s15 = smov 97  }
  0x1b   :  { %125 = vrot.lane.b32.xlu1 %v124_v10, %s555_s16  ;;  %v232_v19 = vld [vmem:[#allocation0] sm:$0xf]  }
  0x1c   :  { %v244_v20 = vld [vmem:[#allocation0] sm:$0xf]  }
  0x1d   :  { %v256_v21 = vld [vmem:[#allocation0] sm:$0xf]  }
  0x1e   :  { %137 = vrot.lane.b32.xlu0 %v136_v11, %s556_s17  ;;  %v268_v22 = vld [vmem:[#allocation0] sm:$0xf]  }
  0x1f   :  { %149 = vrot.lane.b32.xlu1 %v148_v12, %s557_s18  ;;  %v280_v23 = vld [vmem:[#allocation0] sm:$0xf]  }
  0x20   :  { %v292_v24 = vld [vmem:[#allocation0] sm:$0xf]  }
  0x21   :  { %v304_v25 = vld [vmem:[#allocation0] sm:$0xf]  }
  0x22   :  { %161 = vrot.lane.b32.xlu0 %v160_v13, %s558_s19  ;;  %v316_v26 = vld [vmem:[#allocation0] sm:$0xf]  }
  0x23   :  { %173 = vrot.lane.b32.xlu1 %v172_v14, %s559_s20  ;;  %v7_v27 = vld [vmem:[#allocation0] sm:$0xf]  }
  0x24   :  { %9 = vst.msk [vmem:[%s1103_s1] sm:$0x1] %vm8_vm0, %v7_v27   ;;  %388 = vst.msk [vmem:[%s1103_s1 + $0x1f] sm:$0x2] %vm8_vm0, %v7_v27   ;;  %v328_v28 = vld [vmem:[#allocation0] sm:$0xf]  }
  0x25   :  { %389 = vst.msk [vmem:[%s1103_s1 + $0x3e] sm:$0x4] %vm8_vm0, %v7_v27   ;;  %390 = vst.msk [vmem:[%s1103_s1 + $0x5d] sm:$0x8] %vm8_vm0, %v7_v27   ;;  %v340_v29 = vld [vmem:[#allocation0] sm:$0xf]  }
  0x26   :  { %185 = vrot.lane.b32.xlu0 %v184_v15, %s560_s21  ;;  %v352_v30 = vld [vmem:[#allocation0] sm:$0xf]  }
  0x27   :  { %197 = vrot.lane.b32.xlu1 %v196_v16, %s561_s22  ;;  %v364_v31 = vld [vmem:[#allocation0] sm:$0xf]  }
  0x28   :  { %v376_v32 = vld [vmem:[#allocation0] sm:$0xf]  }
  0x2a   :  { %209 = vrot.lane.b32.xlu0 %v208_v17, %s562_s23 }
  0x2b   :  { %221 = vrot.lane.b32.xlu1 %v220_v18, %s563_s24 }
  0x2e   :  { %233 = vrot.lane.b32.xlu0 %v232_v19, %s564_s25 }
  0x2f   :  { %245 = vrot.lane.b32.xlu1 %v244_v20, %s565_s26 }
  0x32   :  { %257 = vrot.lane.b32.xlu0 %v256_v21, %s566_s27 }
  0x33   :  { %269 = vrot.lane.b32.xlu1 %v268_v22, %s567_s28 }
  0x36   :  { %281 = vrot.lane.b32.xlu0 %v280_v23, %s568_s29 }
  0x37   :  { %293 = vrot.lane.b32.xlu1 %v292_v24, %s569_s30 }
  0x3a   :  { %305 = vrot.lane.b32.xlu0 %v304_v25, %s570_s9 }
  0x3b   :  { %317 = vrot.lane.b32.xlu1 %v316_v26, %s571_s10 }
  0x3e   :  { %329 = vrot.lane.b32.xlu0 %v328_v28, %s572_s11 }
  0x3f   :  { %341 = vrot.lane.b32.xlu1 %v340_v29, %s573_s12 }
  0x42   :  { %353 = vrot.lane.b32.xlu0 %v352_v30, %s574_s13 }
  0x43   :  { %365 = vrot.lane.b32.xlu1 %v364_v31, %s575_s14 }
  0x46   :  { %377 = vrot.lane.b32.xlu0 %v376_v32, %s576_s15 }
  0x7c   :  { %v18_v33 = vpop.permute.xlu0 %17  }
  0x7d   :  { %v42_v34 = vpop.permute.xlu1 %41   ;;  %391 = vst.msk [vmem:[%s1103_s1 + $0x1] sm:$0x1] %vm8_vm0, %v18_v33   ;;  %392 = vst.msk [vmem:[%s1103_s1 + $0x20] sm:$0x2] %vm8_vm0, %v18_v33  }
  0x7e   :  { %393 = vst.msk [vmem:[%s1103_s1 + $0x3f] sm:$0x4] %vm8_vm0, %v18_v33   ;;  %394 = vst.msk [vmem:[%s1103_s1 + $0x5e] sm:$0x8] %vm8_vm0, %v18_v33  }
  0x7f   :  { %399 = vst.msk [vmem:[%s1103_s1 + $0x3] sm:$0x1] %vm8_vm0, %v42_v34   ;;  %400 = vst.msk [vmem:[%s1103_s1 + $0x22] sm:$0x2] %vm8_vm0, %v42_v34  }
  0x80   :  { %401 = vst.msk [vmem:[%s1103_s1 + $0x41] sm:$0x4] %vm8_vm0, %v42_v34   ;;  %402 = vst.msk [vmem:[%s1103_s1 + $0x60] sm:$0x8] %vm8_vm0, %v42_v34   ;;  %v30_v35 = vpop.permute.xlu0 %29  }
  0x81   :  { %v54_v36 = vpop.permute.xlu1 %53   ;;  %395 = vst.msk [vmem:[%s1103_s1 + $0x2] sm:$0x1] %vm8_vm0, %v30_v35   ;;  %396 = vst.msk [vmem:[%s1103_s1 + $0x21] sm:$0x2] %vm8_vm0, %v30_v35  }
  0x82   :  { %397 = vst.msk [vmem:[%s1103_s1 + $0x40] sm:$0x4] %vm8_vm0, %v30_v35   ;;  %398 = vst.msk [vmem:[%s1103_s1 + $0x5f] sm:$0x8] %vm8_vm0, %v30_v35  }
  0x83   :  { %403 = vst.msk [vmem:[%s1103_s1 + $0x4] sm:$0x1] %vm8_vm0, %v54_v36   ;;  %404 = vst.msk [vmem:[%s1103_s1 + $0x23] sm:$0x2] %vm8_vm0, %v54_v36  }
  0x84   :  { %405 = vst.msk [vmem:[%s1103_s1 + $0x42] sm:$0x4] %vm8_vm0, %v54_v36   ;;  %406 = vst.msk [vmem:[%s1103_s1 + $0x61] sm:$0x8] %vm8_vm0, %v54_v36   ;;  %v66_v37 = vpop.permute.xlu0 %65  }
  0x85   :  { %v78_v38 = vpop.permute.xlu1 %77   ;;  %407 = vst.msk [vmem:[%s1103_s1 + $0x5] sm:$0x1] %vm8_vm0, %v66_v37   ;;  %408 = vst.msk [vmem:[%s1103_s1 + $0x24] sm:$0x2] %vm8_vm0, %v66_v37  }
  0x86   :  { %409 = vst.msk [vmem:[%s1103_s1 + $0x43] sm:$0x4] %vm8_vm0, %v66_v37   ;;  %410 = vst.msk [vmem:[%s1103_s1 + $0x62] sm:$0x8] %vm8_vm0, %v66_v37  }
  0x87   :  { %411 = vst.msk [vmem:[%s1103_s1 + $0x6] sm:$0x1] %vm8_vm0, %v78_v38   ;;  %412 = vst.msk [vmem:[%s1103_s1 + $0x25] sm:$0x2] %vm8_vm0, %v78_v38  }
  0x88   :  { %413 = vst.msk [vmem:[%s1103_s1 + $0x44] sm:$0x4] %vm8_vm0, %v78_v38   ;;  %414 = vst.msk [vmem:[%s1103_s1 + $0x63] sm:$0x8] %vm8_vm0, %v78_v38   ;;  %v90_v39 = vpop.permute.xlu0 %89  }
  0x89   :  { %v102_v40 = vpop.permute.xlu1 %101   ;;  %415 = vst.msk [vmem:[%s1103_s1 + $0x7] sm:$0x1] %vm8_vm0, %v90_v39   ;;  %416 = vst.msk [vmem:[%s1103_s1 + $0x26] sm:$0x2] %vm8_vm0, %v90_v39  }
  0x8a   :  { %417 = vst.msk [vmem:[%s1103_s1 + $0x45] sm:$0x4] %vm8_vm0, %v90_v39   ;;  %418 = vst.msk [vmem:[%s1103_s1 + $0x64] sm:$0x8] %vm8_vm0, %v90_v39  }
  0x8b   :  { %419 = vst.msk [vmem:[%s1103_s1 + $0x8] sm:$0x1] %vm8_vm0, %v102_v40   ;;  %420 = vst.msk [vmem:[%s1103_s1 + $0x27] sm:$0x2] %vm8_vm0, %v102_v40  }
  0x8c   :  { %421 = vst.msk [vmem:[%s1103_s1 + $0x46] sm:$0x4] %vm8_vm0, %v102_v40   ;;  %422 = vst.msk [vmem:[%s1103_s1 + $0x65] sm:$0x8] %vm8_vm0, %v102_v40   ;;  %v114_v41 = vpop.permute.xlu0 %113  }
  0x8d   :  { %v126_v42 = vpop.permute.xlu1 %125   ;;  %423 = vst.msk [vmem:[%s1103_s1 + $0x9] sm:$0x1] %vm8_vm0, %v114_v41   ;;  %424 = vst.msk [vmem:[%s1103_s1 + $0x28] sm:$0x2] %vm8_vm0, %v114_v41  }
  0x8e   :  { %425 = vst.msk [vmem:[%s1103_s1 + $0x47] sm:$0x4] %vm8_vm0, %v114_v41   ;;  %426 = vst.msk [vmem:[%s1103_s1 + $0x66] sm:$0x8] %vm8_vm0, %v114_v41  }
  0x8f   :  { %427 = vst.msk [vmem:[%s1103_s1 + $0xa] sm:$0x1] %vm8_vm0, %v126_v42   ;;  %428 = vst.msk [vmem:[%s1103_s1 + $0x29] sm:$0x2] %vm8_vm0, %v126_v42  }
  0x90   :  { %429 = vst.msk [vmem:[%s1103_s1 + $0x48] sm:$0x4] %vm8_vm0, %v126_v42   ;;  %430 = vst.msk [vmem:[%s1103_s1 + $0x67] sm:$0x8] %vm8_vm0, %v126_v42   ;;  %v138_v43 = vpop.permute.xlu0 %137  }
  0x91   :  { %v150_v44 = vpop.permute.xlu1 %149   ;;  %431 = vst.msk [vmem:[%s1103_s1 + $0xb] sm:$0x1] %vm8_vm0, %v138_v43   ;;  %432 = vst.msk [vmem:[%s1103_s1 + $0x2a] sm:$0x2] %vm8_vm0, %v138_v43  }
  0x92   :  { %433 = vst.msk [vmem:[%s1103_s1 + $0x49] sm:$0x4] %vm8_vm0, %v138_v43   ;;  %434 = vst.msk [vmem:[%s1103_s1 + $0x68] sm:$0x8] %vm8_vm0, %v138_v43  }
  0x93   :  { %435 = vst.msk [vmem:[%s1103_s1 + $0xc] sm:$0x1] %vm8_vm0, %v150_v44   ;;  %436 = vst.msk [vmem:[%s1103_s1 + $0x2b] sm:$0x2] %vm8_vm0, %v150_v44  }
  0x94   :  { %437 = vst.msk [vmem:[%s1103_s1 + $0x4a] sm:$0x4] %vm8_vm0, %v150_v44   ;;  %438 = vst.msk [vmem:[%s1103_s1 + $0x69] sm:$0x8] %vm8_vm0, %v150_v44   ;;  %v162_v45 = vpop.permute.xlu0 %161  }
  0x95   :  { %v174_v46 = vpop.permute.xlu1 %173   ;;  %439 = vst.msk [vmem:[%s1103_s1 + $0xd] sm:$0x1] %vm8_vm0, %v162_v45   ;;  %440 = vst.msk [vmem:[%s1103_s1 + $0x2c] sm:$0x2] %vm8_vm0, %v162_v45  }
  0x96   :  { %441 = vst.msk [vmem:[%s1103_s1 + $0x4b] sm:$0x4] %vm8_vm0, %v162_v45   ;;  %442 = vst.msk [vmem:[%s1103_s1 + $0x6a] sm:$0x8] %vm8_vm0, %v162_v45  }
  0x97   :  { %443 = vst.msk [vmem:[%s1103_s1 + $0xe] sm:$0x1] %vm8_vm0, %v174_v46   ;;  %444 = vst.msk [vmem:[%s1103_s1 + $0x2d] sm:$0x2] %vm8_vm0, %v174_v46  }
  0x98   :  { %445 = vst.msk [vmem:[%s1103_s1 + $0x4c] sm:$0x4] %vm8_vm0, %v174_v46   ;;  %446 = vst.msk [vmem:[%s1103_s1 + $0x6b] sm:$0x8] %vm8_vm0, %v174_v46   ;;  %v186_v47 = vpop.permute.xlu0 %185  }
  0x99   :  { %v198_v48 = vpop.permute.xlu1 %197   ;;  %447 = vst.msk [vmem:[%s1103_s1 + $0xf] sm:$0x1] %vm8_vm0, %v186_v47   ;;  %448 = vst.msk [vmem:[%s1103_s1 + $0x2e] sm:$0x2] %vm8_vm0, %v186_v47  }
  0x9a   :  { %449 = vst.msk [vmem:[%s1103_s1 + $0x4d] sm:$0x4] %vm8_vm0, %v186_v47   ;;  %450 = vst.msk [vmem:[%s1103_s1 + $0x6c] sm:$0x8] %vm8_vm0, %v186_v47  }
  0x9b   :  { %451 = vst.msk [vmem:[%s1103_s1 + $0x10] sm:$0x1] %vm8_vm0, %v198_v48   ;;  %452 = vst.msk [vmem:[%s1103_s1 + $0x2f] sm:$0x2] %vm8_vm0, %v198_v48  }
  0x9c   :  { %453 = vst.msk [vmem:[%s1103_s1 + $0x4e] sm:$0x4] %vm8_vm0, %v198_v48   ;;  %454 = vst.msk [vmem:[%s1103_s1 + $0x6d] sm:$0x8] %vm8_vm0, %v198_v48   ;;  %v210_v49 = vpop.permute.xlu0 %209  }
  0x9d   :  { %v222_v50 = vpop.permute.xlu1 %221   ;;  %455 = vst.msk [vmem:[%s1103_s1 + $0x11] sm:$0x1] %vm8_vm0, %v210_v49   ;;  %456 = vst.msk [vmem:[%s1103_s1 + $0x30] sm:$0x2] %vm8_vm0, %v210_v49  }
  0x9e   :  { %457 = vst.msk [vmem:[%s1103_s1 + $0x4f] sm:$0x4] %vm8_vm0, %v210_v49   ;;  %458 = vst.msk [vmem:[%s1103_s1 + $0x6e] sm:$0x8] %vm8_vm0, %v210_v49  }
  0x9f   :  { %459 = vst.msk [vmem:[%s1103_s1 + $0x12] sm:$0x1] %vm8_vm0, %v222_v50   ;;  %460 = vst.msk [vmem:[%s1103_s1 + $0x31] sm:$0x2] %vm8_vm0, %v222_v50  }
  0xa0   :  { %461 = vst.msk [vmem:[%s1103_s1 + $0x50] sm:$0x4] %vm8_vm0, %v222_v50   ;;  %462 = vst.msk [vmem:[%s1103_s1 + $0x6f] sm:$0x8] %vm8_vm0, %v222_v50   ;;  %v234_v51 = vpop.permute.xlu0 %233  }
  0xa1   :  { %v246_v52 = vpop.permute.xlu1 %245   ;;  %463 = vst.msk [vmem:[%s1103_s1 + $0x13] sm:$0x1] %vm8_vm0, %v234_v51   ;;  %464 = vst.msk [vmem:[%s1103_s1 + $0x32] sm:$0x2] %vm8_vm0, %v234_v51  }
  0xa2   :  { %465 = vst.msk [vmem:[%s1103_s1 + $0x51] sm:$0x4] %vm8_vm0, %v234_v51   ;;  %466 = vst.msk [vmem:[%s1103_s1 + $0x70] sm:$0x8] %vm8_vm0, %v234_v51  }
  0xa3   :  { %467 = vst.msk [vmem:[%s1103_s1 + $0x14] sm:$0x1] %vm8_vm0, %v246_v52   ;;  %468 = vst.msk [vmem:[%s1103_s1 + $0x33] sm:$0x2] %vm8_vm0, %v246_v52  }
  0xa4   :  { %469 = vst.msk [vmem:[%s1103_s1 + $0x52] sm:$0x4] %vm8_vm0, %v246_v52   ;;  %470 = vst.msk [vmem:[%s1103_s1 + $0x71] sm:$0x8] %vm8_vm0, %v246_v52   ;;  %v258_v53 = vpop.permute.xlu0 %257  }
  0xa5   :  { %v270_v54 = vpop.permute.xlu1 %269   ;;  %471 = vst.msk [vmem:[%s1103_s1 + $0x15] sm:$0x1] %vm8_vm0, %v258_v53   ;;  %472 = vst.msk [vmem:[%s1103_s1 + $0x34] sm:$0x2] %vm8_vm0, %v258_v53  }
  0xa6   :  { %473 = vst.msk [vmem:[%s1103_s1 + $0x53] sm:$0x4] %vm8_vm0, %v258_v53   ;;  %474 = vst.msk [vmem:[%s1103_s1 + $0x72] sm:$0x8] %vm8_vm0, %v258_v53  }
  0xa7   :  { %475 = vst.msk [vmem:[%s1103_s1 + $0x16] sm:$0x1] %vm8_vm0, %v270_v54   ;;  %476 = vst.msk [vmem:[%s1103_s1 + $0x35] sm:$0x2] %vm8_vm0, %v270_v54  }
  0xa8   :  { %477 = vst.msk [vmem:[%s1103_s1 + $0x54] sm:$0x4] %vm8_vm0, %v270_v54   ;;  %478 = vst.msk [vmem:[%s1103_s1 + $0x73] sm:$0x8] %vm8_vm0, %v270_v54   ;;  %v282_v55 = vpop.permute.xlu0 %281  }
  0xa9   :  { %v294_v56 = vpop.permute.xlu1 %293   ;;  %479 = vst.msk [vmem:[%s1103_s1 + $0x17] sm:$0x1] %vm8_vm0, %v282_v55   ;;  %480 = vst.msk [vmem:[%s1103_s1 + $0x36] sm:$0x2] %vm8_vm0, %v282_v55  }
  0xaa   :  { %481 = vst.msk [vmem:[%s1103_s1 + $0x55] sm:$0x4] %vm8_vm0, %v282_v55   ;;  %482 = vst.msk [vmem:[%s1103_s1 + $0x74] sm:$0x8] %vm8_vm0, %v282_v55  }
  0xab   :  { %483 = vst.msk [vmem:[%s1103_s1 + $0x18] sm:$0x1] %vm8_vm0, %v294_v56   ;;  %484 = vst.msk [vmem:[%s1103_s1 + $0x37] sm:$0x2] %vm8_vm0, %v294_v56  }
  0xac   :  { %485 = vst.msk [vmem:[%s1103_s1 + $0x56] sm:$0x4] %vm8_vm0, %v294_v56   ;;  %486 = vst.msk [vmem:[%s1103_s1 + $0x75] sm:$0x8] %vm8_vm0, %v294_v56   ;;  %v306_v57 = vpop.permute.xlu0 %305  }
  0xad   :  { %v318_v58 = vpop.permute.xlu1 %317   ;;  %487 = vst.msk [vmem:[%s1103_s1 + $0x19] sm:$0x1] %vm8_vm0, %v306_v57   ;;  %488 = vst.msk [vmem:[%s1103_s1 + $0x38] sm:$0x2] %vm8_vm0, %v306_v57  }
  0xae   :  { %489 = vst.msk [vmem:[%s1103_s1 + $0x57] sm:$0x4] %vm8_vm0, %v306_v57   ;;  %490 = vst.msk [vmem:[%s1103_s1 + $0x76] sm:$0x8] %vm8_vm0, %v306_v57  }
  0xaf   :  { %491 = vst.msk [vmem:[%s1103_s1 + $0x1a] sm:$0x1] %vm8_vm0, %v318_v58   ;;  %492 = vst.msk [vmem:[%s1103_s1 + $0x39] sm:$0x2] %vm8_vm0, %v318_v58  }
  0xb0   :  { %493 = vst.msk [vmem:[%s1103_s1 + $0x58] sm:$0x4] %vm8_vm0, %v318_v58   ;;  %494 = vst.msk [vmem:[%s1103_s1 + $0x77] sm:$0x8] %vm8_vm0, %v318_v58   ;;  %v330_v59 = vpop.permute.xlu0 %329  }
  0xb1   :  { %v342_v60 = vpop.permute.xlu1 %341   ;;  %495 = vst.msk [vmem:[%s1103_s1 + $0x1b] sm:$0x1] %vm8_vm0, %v330_v59   ;;  %496 = vst.msk [vmem:[%s1103_s1 + $0x3a] sm:$0x2] %vm8_vm0, %v330_v59  }
  0xb2   :  { %497 = vst.msk [vmem:[%s1103_s1 + $0x59] sm:$0x4] %vm8_vm0, %v330_v59   ;;  %498 = vst.msk [vmem:[%s1103_s1 + $0x78] sm:$0x8] %vm8_vm0, %v330_v59  }
  0xb3   :  { %499 = vst.msk [vmem:[%s1103_s1 + $0x1c] sm:$0x1] %vm8_vm0, %v342_v60   ;;  %500 = vst.msk [vmem:[%s1103_s1 + $0x3b] sm:$0x2] %vm8_vm0, %v342_v60  }
  0xb4   :  { %501 = vst.msk [vmem:[%s1103_s1 + $0x5a] sm:$0x4] %vm8_vm0, %v342_v60   ;;  %502 = vst.msk [vmem:[%s1103_s1 + $0x79] sm:$0x8] %vm8_vm0, %v342_v60   ;;  %v354_v61 = vpop.permute.xlu0 %353  }
  0xb5   :  { %v366_v62 = vpop.permute.xlu1 %365   ;;  %503 = vst.msk [vmem:[%s1103_s1 + $0x1d] sm:$0x1] %vm8_vm0, %v354_v61   ;;  %504 = vst.msk [vmem:[%s1103_s1 + $0x3c] sm:$0x2] %vm8_vm0, %v354_v61  }
  0xb6   :  { %505 = vst.msk [vmem:[%s1103_s1 + $0x5b] sm:$0x4] %vm8_vm0, %v354_v61   ;;  %506 = vst.msk [vmem:[%s1103_s1 + $0x7a] sm:$0x8] %vm8_vm0, %v354_v61  }
  0xb7   :  { %507 = vst.msk [vmem:[%s1103_s1 + $0x1e] sm:$0x1] %vm8_vm0, %v366_v62   ;;  %508 = vst.msk [vmem:[%s1103_s1 + $0x3d] sm:$0x2] %vm8_vm0, %v366_v62  }
  0xb8   :  { %509 = vst.msk [vmem:[%s1103_s1 + $0x5c] sm:$0x4] %vm8_vm0, %v366_v62   ;;  %510 = vst.msk [vmem:[%s1103_s1 + $0x7b] sm:$0x8] %vm8_vm0, %v366_v62   ;;  %v378_v63 = vpop.permute.xlu0 %377  }
  0xb9   :  { %511 = vst.msk [vmem:[%s1103_s1 + $0x1f] sm:$0x1] %vm8_vm0, %v378_v63   ;;  %512 = vst.msk [vmem:[%s1103_s1 + $0x3e] sm:$0x2] %vm8_vm0, %v378_v63  }
  0xba   :  { %513 = vst.msk [vmem:[%s1103_s1 + $0x5d] sm:$0x4] %vm8_vm0, %v378_v63   ;;  %514 = vst.msk [vmem:[%s1103_s1 + $0x7c] sm:$0x8] %vm8_vm0, %v378_v63  }

// kernel: tile.23
= control target key start
LH: loop header
LB: loop body
LE: loop exit
PB: predicated region body
PF: predicated region fallthrough
CT: control target
= control target key end

     0   :  { %s22_s0 = inlined_call_operand.vmem [shape: f32[16], index: 0, kind: input, shape index: {}]   ;;  %s23_s1 = inlined_call_operand.vmem [shape: f32[4,16], index: 1, kind: output, shape index: {}]  }
   0x1   :  { %v4_v0 = vld [vmem:[%s22_s0] ss:$0 sm:$0xff] }
   0x2   :  { %5 = vst [vmem:[%s23_s1] sm:$0xf] %v4_v0 }

// kernel: tile.0
= control target key start
LH: loop header
LB: loop body
LE: loop exit
PB: predicated region body
PF: predicated region fallthrough
CT: control target
= control target key end

     0   :  { %s177_s8 = smov 125   ;;  %s178_s9 = smov 126   ;;  %vm8_vm0 = vcmask 7168   ;;  %s332_s0 = inlined_call_operand.vmem [shape: f32[4,16], index: 0, kind: input, shape index: {}]   ;;  %s333_s1 = inlined_call_operand.vmem [shape: f32[64,1], index: 1, kind: output, shape index: {}]  }
   0x1   :  { %v5_v0 = vld [vmem:[%s332_s0] sm:$0xf]  ;;  %s176_s0 = smov 127   ;;  %s179_s10 = smov 124  }
   0x2   :  { %6 = vst [vmem:[#allocation0] sm:$0xf] %v5_v0  ;;  %s180_s11 = smov 123   ;;  %s181_s12 = smov 122  }
   0x3   :  { %s182_s13 = smov 121   ;;  %s183_s14 = smov 120  }
   0x4   :  { %s184_s19 = smov 119   ;;  %s185_s20 = smov 118  }
   0x5   :  { %s186_s21 = smov 117   ;;  %s187_s22 = smov 116  }
   0x6   :  { %s188_s23 = smov 115   ;;  %s189_s24 = smov 114  }
   0x7   :  { %s190_s25 = smov 113  }
   0x9   :  { %v11_v1 = vld [vmem:[#allocation0] sm:$0xf]  }
   0xa   :  { %v27_v2 = vld [vmem:[#allocation0] sm:$0xf]   ;;  %12 = vrot.lane.b32.xlu0 %v11_v1, %s176_s0 }
   0xb   :  { %28 = vrot.lane.b32.xlu1 %v27_v2, %s177_s8  ;;  %v19_v3 = vld [vmem:[#allocation0] sm:$0xf]  }
   0xc   :  { %v35_v4 = vld [vmem:[#allocation0] sm:$0xf]  }
   0xd   :  { %v43_v5 = vld [vmem:[#allocation0] sm:$0xf]  }
   0xe   :  { %20 = vrot.lane.b32.xlu0 %v19_v3, %s178_s9  ;;  %v51_v6 = vld [vmem:[#allocation0] sm:$0xf]  }
   0xf   :  { %36 = vrot.lane.b32.xlu1 %v35_v4, %s179_s10  ;;  %v59_v7 = vld [vmem:[#allocation0] sm:$0xf]  }
  0x10   :  { %v67_v8 = vld [vmem:[#allocation0] sm:$0xf]  }
  0x11   :  { %v75_v9 = vld [vmem:[#allocation0] sm:$0xf]  }
  0x12   :  { %44 = vrot.lane.b32.xlu0 %v43_v5, %s180_s11  ;;  %v83_v10 = vld [vmem:[#allocation0] sm:$0xf]  }
  0x13   :  { %52 = vrot.lane.b32.xlu1 %v51_v6, %s181_s12  ;;  %v7_v11 = vld [vmem:[#allocation0] sm:$0xf]  }
  0x14   :  { %9 = vst.msk [vmem:[%s333_s1] ss:$16 sm:$0x3] %vm8_vm0, %v7_v11   ;;  %10 = vst.msk [vmem:[%s333_s1] ss:$16 sm:$0xc] %vm8_vm0, %v7_v11  }
  0x15   :  { %v91_v12 = vld [vmem:[#allocation0] sm:$0xf]  }
  0x16   :  { %60 = vrot.lane.b32.xlu0 %v59_v7, %s182_s13  ;;  %v99_v13 = vld [vmem:[#allocation0] sm:$0xf]  }
  0x17   :  { %68 = vrot.lane.b32.xlu1 %v67_v8, %s183_s14  ;;  %v107_v14 = vld [vmem:[#allocation0] sm:$0xf]  }
  0x18   :  { %v115_v15 = vld [vmem:[#allocation0] sm:$0xf]  }
  0x19   :  { %v123_v16 = vld [vmem:[#allocation0] sm:$0xf]  }
  0x1a   :  { %76 = vrot.lane.b32.xlu0 %v75_v9, %s184_s19 }
  0x1b   :  { %84 = vrot.lane.b32.xlu1 %v83_v10, %s185_s20 }
  0x1e   :  { %92 = vrot.lane.b32.xlu0 %v91_v12, %s186_s21 }
  0x1f   :  { %100 = vrot.lane.b32.xlu1 %v99_v13, %s187_s22 }
  0x22   :  { %108 = vrot.lane.b32.xlu0 %v107_v14, %s188_s23 }
  0x23   :  { %116 = vrot.lane.b32.xlu1 %v115_v15, %s189_s24 }
  0x26   :  { %124 = vrot.lane.b32.xlu0 %v123_v16, %s190_s25 }
  0x7c   :  { %v13_v17 = vpop.permute.xlu0 %12  }
  0x7d   :  { %v29_v18 = vpop.permute.xlu1 %28   ;;  %131 = vst.msk [vmem:[%s333_s1 + $0x1] ss:$16 sm:$0x3] %vm8_vm0, %v13_v17   ;;  %132 = vst.msk [vmem:[%s333_s1 + $0x1] ss:$16 sm:$0xc] %vm8_vm0, %v13_v17  }
  0x7e   :  { %135 = vst.msk [vmem:[%s333_s1 + $0x3] ss:$16 sm:$0x3] %vm8_vm0, %v29_v18   ;;  %136 = vst.msk [vmem:[%s333_s1 + $0x3] ss:$16 sm:$0xc] %vm8_vm0, %v29_v18  }
  0x80   :  { %v21_v19 = vpop.permute.xlu0 %20  }
  0x81   :  { %v37_v20 = vpop.permute.xlu1 %36   ;;  %133 = vst.msk [vmem:[%s333_s1 + $0x2] ss:$16 sm:$0x3] %vm8_vm0, %v21_v19   ;;  %134 = vst.msk [vmem:[%s333_s1 + $0x2] ss:$16 sm:$0xc] %vm8_vm0, %v21_v19  }
  0x82   :  { %137 = vst.msk [vmem:[%s333_s1 + $0x4] ss:$16 sm:$0x3] %vm8_vm0, %v37_v20   ;;  %138 = vst.msk [vmem:[%s333_s1 + $0x4] ss:$16 sm:$0xc] %vm8_vm0, %v37_v20  }
  0x84   :  { %v45_v21 = vpop.permute.xlu0 %44  }
  0x85   :  { %v53_v22 = vpop.permute.xlu1 %52   ;;  %139 = vst.msk [vmem:[%s333_s1 + $0x5] ss:$16 sm:$0x3] %vm8_vm0, %v45_v21   ;;  %140 = vst.msk [vmem:[%s333_s1 + $0x5] ss:$16 sm:$0xc] %vm8_vm0, %v45_v21  }
  0x86   :  { %141 = vst.msk [vmem:[%s333_s1 + $0x6] ss:$16 sm:$0x3] %vm8_vm0, %v53_v22   ;;  %142 = vst.msk [vmem:[%s333_s1 + $0x6] ss:$16 sm:$0xc] %vm8_vm0, %v53_v22  }
  0x88   :  { %v61_v23 = vpop.permute.xlu0 %60  }
  0x89   :  { %v69_v24 = vpop.permute.xlu1 %68   ;;  %143 = vst.msk [vmem:[%s333_s1 + $0x7] ss:$16 sm:$0x3] %vm8_vm0, %v61_v23   ;;  %144 = vst.msk [vmem:[%s333_s1 + $0x7] ss:$16 sm:$0xc] %vm8_vm0, %v61_v23  }
  0x8a   :  { %145 = vst.msk [vmem:[%s333_s1 + $0x8] ss:$16 sm:$0x3] %vm8_vm0, %v69_v24   ;;  %146 = vst.msk [vmem:[%s333_s1 + $0x8] ss:$16 sm:$0xc] %vm8_vm0, %v69_v24  }
  0x8c   :  { %v77_v25 = vpop.permute.xlu0 %76  }
  0x8d   :  { %v85_v26 = vpop.permute.xlu1 %84   ;;  %147 = vst.msk [vmem:[%s333_s1 + $0x9] ss:$16 sm:$0x3] %vm8_vm0, %v77_v25   ;;  %148 = vst.msk [vmem:[%s333_s1 + $0x9] ss:$16 sm:$0xc] %vm8_vm0, %v77_v25  }
  0x8e   :  { %149 = vst.msk [vmem:[%s333_s1 + $0xa] ss:$16 sm:$0x3] %vm8_vm0, %v85_v26   ;;  %150 = vst.msk [vmem:[%s333_s1 + $0xa] ss:$16 sm:$0xc] %vm8_vm0, %v85_v26  }
  0x90   :  { %v93_v27 = vpop.permute.xlu0 %92  }
  0x91   :  { %v101_v28 = vpop.permute.xlu1 %100   ;;  %151 = vst.msk [vmem:[%s333_s1 + $0xb] ss:$16 sm:$0x3] %vm8_vm0, %v93_v27   ;;  %152 = vst.msk [vmem:[%s333_s1 + $0xb] ss:$16 sm:$0xc] %vm8_vm0, %v93_v27  }
  0x92   :  { %153 = vst.msk [vmem:[%s333_s1 + $0xc] ss:$16 sm:$0x3] %vm8_vm0, %v101_v28   ;;  %154 = vst.msk [vmem:[%s333_s1 + $0xc] ss:$16 sm:$0xc] %vm8_vm0, %v101_v28  }
  0x94   :  { %v109_v29 = vpop.permute.xlu0 %108  }
  0x95   :  { %v117_v30 = vpop.permute.xlu1 %116   ;;  %155 = vst.msk [vmem:[%s333_s1 + $0xd] ss:$16 sm:$0x3] %vm8_vm0, %v109_v29   ;;  %156 = vst.msk [vmem:[%s333_s1 + $0xd] ss:$16 sm:$0xc] %vm8_vm0, %v109_v29  }
  0x96   :  { %157 = vst.msk [vmem:[%s333_s1 + $0xe] ss:$16 sm:$0x3] %vm8_vm0, %v117_v30   ;;  %158 = vst.msk [vmem:[%s333_s1 + $0xe] ss:$16 sm:$0xc] %vm8_vm0, %v117_v30  }
  0x98   :  { %v125_v31 = vpop.permute.xlu0 %124  }
  0x99   :  { %159 = vst.msk [vmem:[%s333_s1 + $0xf] ss:$16 sm:$0x3] %vm8_vm0, %v125_v31   ;;  %160 = vst.msk [vmem:[%s333_s1 + $0xf] ss:$16 sm:$0xc] %vm8_vm0, %v125_v31  }

// kernel: tile.38
= control target key start
LH: loop header
LB: loop body
LE: loop exit
PB: predicated region body
PF: predicated region fallthrough
CT: control target
= control target key end

     0   :  { %s22_s0 = inlined_call_operand.vmem [shape: f32[8], index: 0, kind: input, shape index: {}]   ;;  %s23_s1 = inlined_call_operand.vmem [shape: f32[4,8], index: 1, kind: output, shape index: {}]  }
   0x1   :  { %v4_v0 = vld [vmem:[%s22_s0] ss:$0 sm:$0xff] }
   0x2   :  { %5 = vst [vmem:[%s23_s1] sm:$0xf] %v4_v0 }

// kernel: tile.3
= control target key start
LH: loop header
LB: loop body
LE: loop exit
PB: predicated region body
PF: predicated region fallthrough
CT: control target
= control target key end

     0   :  { %s67_s8 = smov 125   ;;  %vm8_vm0 = vcmask 7168   ;;  %s68_s11 = smov 126   ;;  %s118_s0 = inlined_call_operand.vmem [shape: f32[4,8], index: 0, kind: input, shape index: {}]   ;;  %s119_s1 = inlined_call_operand.vmem [shape: f32[32,1], index: 1, kind: output, shape index: {}]  }
   0x1   :  { %v5_v0 = vld [vmem:[%s118_s0] sm:$0xf]  ;;  %s66_s0 = smov 127   ;;  %s69_s12 = smov 124  }
   0x2   :  { %6 = vst [vmem:[#allocation0] sm:$0xf] %v5_v0  ;;  %s70_s13 = smov 123   ;;  %s71_s14 = smov 122  }
   0x3   :  { %s72_s15 = smov 121  }
   0x9   :  { %v10_v1 = vld [vmem:[#allocation0] sm:$0xf]  }
   0xa   :  { %v22_v2 = vld [vmem:[#allocation0] sm:$0xf]   ;;  %11 = vrot.lane.b32.xlu0 %v10_v1, %s66_s0 }
   0xb   :  { %23 = vrot.lane.b32.xlu1 %v22_v2, %s67_s8  ;;  %v16_v3 = vld [vmem:[#allocation0] sm:$0xf]  }
   0xc   :  { %v28_v4 = vld [vmem:[#allocation0] sm:$0xf]  }
   0xd   :  { %v7_v5 = vld [vmem:[#allocation0] sm:$0xf]  }
   0xe   :  { %9 = vst.msk [vmem:[%s119_s1] ss:$8 sm:$0xf] %vm8_vm0, %v7_v5   ;;  %17 = vrot.lane.b32.xlu0 %v16_v3, %s68_s11  ;;  %v34_v6 = vld [vmem:[#allocation0] sm:$0xf]  }
   0xf   :  { %29 = vrot.lane.b32.xlu1 %v28_v4, %s69_s12  ;;  %v40_v7 = vld [vmem:[#allocation0] sm:$0xf]  }
  0x10   :  { %v46_v8 = vld [vmem:[#allocation0] sm:$0xf]  }
  0x12   :  { %35 = vrot.lane.b32.xlu0 %v34_v6, %s70_s13 }
  0x13   :  { %41 = vrot.lane.b32.xlu1 %v40_v7, %s71_s14 }
  0x16   :  { %47 = vrot.lane.b32.xlu0 %v46_v8, %s72_s15 }
  0x7c   :  { %v12_v9 = vpop.permute.xlu0 %11  }
  0x7d   :  { %v24_v10 = vpop.permute.xlu1 %23   ;;  %52 = vst.msk [vmem:[%s119_s1 + $0x1] ss:$8 sm:$0xf] %vm8_vm0, %v12_v9  }
  0x7e   :  { %54 = vst.msk [vmem:[%s119_s1 + $0x3] ss:$8 sm:$0xf] %vm8_vm0, %v24_v10  }
  0x80   :  { %v18_v11 = vpop.permute.xlu0 %17  }
  0x81   :  { %v30_v12 = vpop.permute.xlu1 %29   ;;  %53 = vst.msk [vmem:[%s119_s1 + $0x2] ss:$8 sm:$0xf] %vm8_vm0, %v18_v11  }
  0x82   :  { %55 = vst.msk [vmem:[%s119_s1 + $0x4] ss:$8 sm:$0xf] %vm8_vm0, %v30_v12  }
  0x84   :  { %v36_v13 = vpop.permute.xlu0 %35  }
  0x85   :  { %v42_v14 = vpop.permute.xlu1 %41   ;;  %56 = vst.msk [vmem:[%s119_s1 + $0x5] ss:$8 sm:$0xf] %vm8_vm0, %v36_v13  }
  0x86   :  { %57 = vst.msk [vmem:[%s119_s1 + $0x6] ss:$8 sm:$0xf] %vm8_vm0, %v42_v14  }
  0x88   :  { %v48_v15 = vpop.permute.xlu0 %47  }
  0x89   :  { %58 = vst.msk [vmem:[%s119_s1 + $0x7] ss:$8 sm:$0xf] %vm8_vm0, %v48_v15  }

// kernel: squeeze.55
= control target key start
LH: loop header
LB: loop body
LE: loop exit
PB: predicated region body
PF: predicated region fallthrough
CT: control target
= control target key end

     0   :  { %s85_s0 = inlined_call_operand.vmem [shape: f32[2,32], index: 0, kind: input, shape index: {}]   ;;  %s86_s1 = inlined_call_operand.hbm [shape: f32[8,8], index: 1, kind: output, shape index: {}]  }
   0x1   :  { %v6_v0 = vld [vmem:[%s85_s0] sm:$0x3] }
   0x2   :  { %7 = vst [vmem:[#allocation2] sm:$0x3] %v6_v0 }
   0x3   :  { %2 = vsyncpa [#allocation1], 0  ;;  %s65_s0 = smov 120   ;;  %s66_s8 = smov 104   ;;  %vm9_vm0 = vcmask 64512  }
   0x4   :  { %s67_s9 = smov 112   ;;  %s68_s10 = smov [#allocation0]  }
   0x5   :  { %s33_s11 = sshll.u32 %s68_s10, 4  ;;  %s34_s11 = int_to_ptr.vmem [resolvable:$true] %s33_s11 }
   0x6   :  { %s43_s12 = scalar_lea.vmem %s34_s11, 128  ;;  %p48_p1 = scmp.lt.s32.totalorder %s34_s11, %s34_s11 }
   0x7   :  { %p44_p0 = scmp.ne.s32.totalorder %s34_s11, %s43_s12  ;;  %p49_p2 = scmp.lt.s32.totalorder %s43_s12, %s43_s12 }
   0x9   :  { %v11_v1 = vld [vmem:[#allocation2] sm:$0x3]   ;;  %p50_p3 = por %p49_p2, %p48_p1 }
   0xa   :  { %v23_v2 = vld [vmem:[#allocation2] sm:$0x3]   ;;  %12 = vrot.lane.b32.xlu0 %v11_v1, %s65_s0 }
   0xb   :  { %24 = vrot.lane.b32.xlu1 %v23_v2, %s66_s8  ;;  %v8_v3 = vld [vmem:[#allocation2] sm:$0x3]   ;;  %p51_p4 = pnand %p50_p3, %p44_p0 }
   0xc   :  { %v17_v4 = vld [vmem:[#allocation2] sm:$0x3]   ;;  %10 = vst.msk [vmem:[#allocation0] ss:$4 sm:$0x3] %vm9_vm0, %v8_v3  }
   0xe   :  { %18 = vrot.lane.b32.xlu0 %v17_v4, %s67_s9 }
  0x7c   :  { %v13_v5 = vpop.permute.xlu0 %12  }
  0x7d   :  { %v25_v6 = vpop.permute.xlu1 %24   ;;  %16 = vst.msk [vmem:[#allocation0 + $0x1] ss:$4 sm:$0x3] %vm9_vm0, %v13_v5  }
  0x7e   :  { %28 = vst.msk [vmem:[#allocation0 + $0x3] ss:$4 sm:$0x3] %vm9_vm0, %v25_v6  }
  0x80   :  { %v19_v7 = vpop.permute.xlu0 %18  }
  0x81   :  { %22 = vst.msk [vmem:[#allocation0 + $0x2] ss:$4 sm:$0x3] %vm9_vm0, %v19_v7  }
  0x82   :  { %54 = shalt.err (!%p51_p4)
}
  0x83   :  { %36 = dma.vmem_to_hbm [thread:$0]  %s34_s11, 128, %s86_s1, [#allocation1]  }
  0x84   :  { %63 = dma.done.wait [#allocation1], 128  }
  0x85   :  { %64 = vsyncadd [#allocation1], 4294967168 }
  0x86   :  { %38 = vsyncpa [#allocation1], 1 }

// kernel: emotion_cnn_forward.1
= control target key start
LH: loop header
LB: loop body
LE: loop exit
PB: predicated region body
PF: predicated region fallthrough
CT: control target
= control target key end

     0   :  { %s18138_s18 = smov 0   ;;  %s21642_s0 = inlined_call_operand.vmem [shape: bf16[2,32,256], index: 0, kind: input, shape index: {}]   ;;  %s21643_s1 = inlined_call_operand.vmem [shape: bf16[64,288], index: 1, kind: input, shape index: {}]   ;;  %s21644_s2 = inlined_call_operand.vmem [shape: f32[64,1], index: 2, kind: input, shape index: {}]   ;;  %s21645_s3 = inlined_call_operand.vmem [shape: bf16[9,256,256], index: 3, kind: input, shape index: {}]   ;;  %s21646_s4 = inlined_call_operand.vmem [shape: bf16[256,512], index: 4, kind: input, shape index: {}]   ;;  %s21647_s5 = inlined_call_operand.vmem [shape: bf16[128,576], index: 5, kind: input, shape index: {}]   ;;  %s21648_s6 = inlined_call_operand.vmem [shape: f32[128,1], index: 6, kind: input, shape index: {}]   ;;  %s21649_s7 = inlined_call_operand.vmem [shape: bf16[9,128,128], index: 7, kind: input, shape index: {}]   ;;  %s21650_s8 = inlined_call_operand.vmem [shape: bf16[128,512], index: 8, kind: input, shape index: {}]   ;;  %s21651_s9 = inlined_call_operand.vmem [shape: bf16[256,1152], index: 9, kind: input, shape index: {}]   ;;  %s21652_s10 = inlined_call_operand.vmem [shape: f32[256,1], index: 10, kind: input, shape index: {}]   ;;  %s21653_s11 = inlined_call_operand.vmem [shape: bf16[9,128,128], index: 11, kind: input, shape index: {}]   ;;  %s21654_s12 = inlined_call_operand.vmem [shape: bf16[128,512], index: 12, kind: input, shape index: {}]   ;;  %s21655_s13 = inlined_call_operand.vmem [shape: f32[32,256], index: 13, kind: input, shape index: {}]   ;;  %s21656_s14 = inlined_call_operand.vmem [shape: f32[32,1], index: 14, kind: input, shape index: {}]   ;;  %s21657_s15 = inlined_call_operand.vmem [shape: f32[2,32,128], index: 15, kind: output, shape index: {}]  }
   0x1 LB: > { %s12761_s19 = sadd.s32 4294967295, %s18055_s18   ;;  %p12765_p0 = scmp.ge.s32.totalorder %s18055_s18, 1  ;;  %s18055_s18 = sphi %s18138_s18, %s25_s18  }
   0x2   : > { %p437_p1 = scmp.lt.s32.totalorder %s18055_s18, 3 }
   0x4   : > { %p438_p2 = pnand %p12765_p0, %p437_p1 }
   0x6   : > { %441 = sbr.rel (%p438_p2) target bundleno = 3340 (0xd0c), region = 80 }
   0xb   : > { %v16883_v0 = vld [vmem:[%s21645_s3 + $0x74] ss:$8 sps:$4 sm:$0xff]   ;;  %v16887_v2 = vld [vmem:[%s21645_s3 + $0x70] ss:$8 sps:$4 sm:$0xff]   ;;  %v16889_v4 = vld [vmem:[%s21645_s3 + $0x64] ss:$8 sps:$4 sm:$0xff]  }
   0xc   : > { %v16885_v1 = vld [vmem:[%s21645_s3 + $0x174] ss:$8 sps:$4 sm:$0xff]   ;;  %712 = vmatprep.subr.bf16.mxu0 %v16883_v0  ;;  %v16888_v3 = vld [vmem:[%s21645_s3 + $0x170] ss:$8 sps:$4 sm:$0xff]   ;;  %v16891_v5 = vld [vmem:[%s21645_s3 + $0x164] ss:$8 sps:$4 sm:$0xff]  }
   0xd   : > { %986 = vmatprep.subr.bf16.mxu1 %v16885_v1  ;;  %713 = vmatpush1.bf16.msra.mxu0 %v16887_v2  ;;  %v16893_v6 = vld [vmem:[%s21645_s3 + $0x60] ss:$8 sps:$4 sm:$0xff]   ;;  %v16895_v8 = vld [vmem:[%s21645_s3 + $0x54] ss:$8 sps:$4 sm:$0xff]   ;;  %v16899_v10 = vld [vmem:[%s21645_s3 + $0x50] ss:$8 sps:$4 sm:$0xff]  }
   0xe   : > { %987 = vmatpush1.bf16.msra.mxu1 %v16888_v3  ;;  %714 = vmatprep.subr.bf16.mxu0 %v16889_v4  ;;  %v16894_v7 = vld [vmem:[%s21645_s3 + $0x160] ss:$8 sps:$4 sm:$0xff]   ;;  %v16897_v9 = vld [vmem:[%s21645_s3 + $0x154] ss:$8 sps:$4 sm:$0xff]   ;;  %v16900_v11 = vld [vmem:[%s21645_s3 + $0x150] ss:$8 sps:$4 sm:$0xff]  }
   0xf   : > { %988 = vmatprep.subr.bf16.mxu1 %v16891_v5  ;;  %v16901_v12 = vld [vmem:[%s21645_s3 + $0x44] ss:$8 sps:$4 sm:$0xff]   ;;  %v16905_v14 = vld [vmem:[%s21645_s3 + $0x40] ss:$8 sps:$4 sm:$0xff]   ;;  %v16907_v16 = vld [vmem:[%s21645_s3 + $0x34] ss:$8 sps:$4 sm:$0xff]  }
  0x10   : > { %v16903_v13 = vld [vmem:[%s21645_s3 + $0x144] ss:$8 sps:$4 sm:$0xff]   ;;  %v16906_v15 = vld [vmem:[%s21645_s3 + $0x140] ss:$8 sps:$4 sm:$0xff]   ;;  %v16909_v17 = vld [vmem:[%s21645_s3 + $0x134] ss:$8 sps:$4 sm:$0xff]  }
  0x11   : > { %715 = vmatpush1.bf16.msra.mxu0 %v16893_v6  ;;  %v16911_v18 = vld [vmem:[%s21645_s3 + $0x30] ss:$8 sps:$4 sm:$0xff]   ;;  %v16913_v20 = vld [vmem:[%s21645_s3 + $0x24] ss:$8 sps:$4 sm:$0xff]   ;;  %v16917_v22 = vld [vmem:[%s21645_s3 + $0x20] ss:$8 sps:$4 sm:$0xff]  }
  0x12   : > { %989 = vmatpush1.bf16.msra.mxu1 %v16894_v7  ;;  %716 = vmatprep.subr.bf16.mxu0 %v16895_v8  ;;  %v16912_v19 = vld [vmem:[%s21645_s3 + $0x130] ss:$8 sps:$4 sm:$0xff]   ;;  %v16915_v21 = vld [vmem:[%s21645_s3 + $0x124] ss:$8 sps:$4 sm:$0xff]   ;;  %v16918_v23 = vld [vmem:[%s21645_s3 + $0x120] ss:$8 sps:$4 sm:$0xff]  }
  0x13   : > { %990 = vmatprep.subr.bf16.mxu1 %v16897_v9  ;;  %v16919_v24 = vld [vmem:[%s21645_s3 + $0x14] ss:$8 sps:$4 sm:$0xff]   ;;  %v16923_v26 = vld [vmem:[%s21645_s3 + $0x10] ss:$8 sps:$4 sm:$0xff]   ;;  %v16925_v28 = vld [vmem:[%s21645_s3 + $0x4] ss:$8 sps:$4 sm:$0xff]  }
  0x14   : > { %v16921_v25 = vld [vmem:[%s21645_s3 + $0x114] ss:$8 sps:$4 sm:$0xff]   ;;  %v16924_v27 = vld [vmem:[%s21645_s3 + $0x110] ss:$8 sps:$4 sm:$0xff]   ;;  %v16927_v29 = vld [vmem:[%s21645_s3 + $0x104] ss:$8 sps:$4 sm:$0xff]  }
  0x15   : > { %717 = vmatpush1.bf16.msra.mxu0 %v16899_v10  ;;  %v16929_v30 = vld [vmem:[%s21645_s3] ss:$8 sps:$4 sm:$0xff]   ;;  %v16931_v32 = vld [vmem:[%s21645_s3 + $0xf4] ss:$8 sps:$4 sm:$0xff]   ;;  %p485_p3 = scmp.lt.s32.totalorder %s12761_s19, 1  ;;  %vm3325_vm0 = vcmask 261120  }
  0x16   : > { %991 = vmatpush1.bf16.msra.mxu1 %v16900_v11  ;;  %718 = vmatprep.subr.bf16.mxu0 %v16901_v12  ;;  %v16930_v31 = vld [vmem:[%s21645_s3 + $0x100] ss:$8 sps:$4 sm:$0xff]   ;;  %v16933_v33 = vld [vmem:[%s21645_s3 + $0x1f4] ss:$8 sps:$4 sm:$0xff]   ;;  %v16935_v34 = vld [vmem:[%s21645_s3 + $0xf0] ss:$8 sps:$4 sm:$0xff]  }
  0x17   : > { %992 = vmatprep.subr.bf16.mxu1 %v16903_v13  ;;  %v16936_v35 = vld [vmem:[%s21645_s3 + $0x1f0] ss:$8 sps:$4 sm:$0xff]   ;;  %v16937_v36 = vld [vmem:[%s21645_s3 + $0xe4] ss:$8 sps:$4 sm:$0xff]   ;;  %s21714_s19 = smov (!%p485_p3, %s12761_s19), 1  ;;  %vm6243_vm1 = vcmask 523264  }
  0x18   : > { %v16939_v37 = vld [vmem:[%s21645_s3 + $0x1e4] ss:$8 sps:$4 sm:$0xff]   ;;  %v16941_v38 = vld [vmem:[%s21645_s3 + $0xe0] ss:$8 sps:$4 sm:$0xff]   ;;  %v16943_v40 = vld [vmem:[%s21645_s3 + $0xd4] ss:$8 sps:$4 sm:$0xff]  }
  0x19   : > { %719 = vmatpush1.bf16.msra.mxu0 %v16905_v14  ;;  %v16942_v39 = vld [vmem:[%s21645_s3 + $0x1e0] ss:$8 sps:$4 sm:$0xff]   ;;  %v16945_v41 = vld [vmem:[%s21645_s3 + $0x1d4] ss:$8 sps:$4 sm:$0xff]   ;;  %s14452_s26 = sshll.u32 %s21714_s19, 5 }
  0x1a   : > { %993 = vmatpush1.bf16.msra.mxu1 %v16906_v15  ;;  %720 = vmatprep.subr.bf16.mxu0 %v16907_v16  ;;  %v16947_v42 = vld [vmem:[%s21645_s3 + $0xd0] ss:$8 sps:$4 sm:$0xff]   ;;  %v16949_v44 = vld [vmem:[%s21645_s3 + $0xc4] ss:$8 sps:$4 sm:$0xff]   ;;  %s18293_s22 = scalar_lea.vmem %s21642_s0, %s14452_s26  ;;  %v16953_v46 = vld [vmem:[%s21645_s3 + $0xc0] ss:$8 sps:$4 sm:$0xff]  }
  0x1b   : > { %994 = vmatprep.subr.bf16.mxu1 %v16909_v17  ;;  %v16948_v43 = vld [vmem:[%s21645_s3 + $0x1d0] ss:$8 sps:$4 sm:$0xff]   ;;  %v16951_v45 = vld [vmem:[%s21645_s3 + $0x1c4] ss:$8 sps:$4 sm:$0xff]   ;;  %v16954_v47 = vld [vmem:[%s21645_s3 + $0x1c0] ss:$8 sps:$4 sm:$0xff]  }
  0x1c   : > { %v18305_v48 = vld [vmem:[%s18293_s22 + $0x4] ss:$8 sps:$4 sm:$0xff]   ;;  %v16955_v49 = vld [vmem:[%s21645_s3 + $0xb4] ss:$8 sps:$4 sm:$0xff]   ;;  %v16959_v51 = vld [vmem:[%s21645_s3 + $0xb0] ss:$8 sps:$4 sm:$0xff]  }
  0x1d   : > { %721 = vmatpush1.bf16.msra.mxu0 %v16911_v18  ;;  %v16957_v50 = vld [vmem:[%s21645_s3 + $0x1b4] ss:$8 sps:$4 sm:$0xff]   ;;  %744 = vmatprep.mubr.bf16.mxu0 %v18305_v48  ;;  %v16960_v52 = vld [vmem:[%s21645_s3 + $0x1b0] ss:$8 sps:$4 sm:$0xff]   ;;  %v16961_v53 = vld [vmem:[%s21645_s3 + $0xa4] ss:$8 sps:$4 sm:$0xff]  }
  0x1e   : > { %995 = vmatpush1.bf16.msra.mxu1 %v16912_v19  ;;  %722 = vmatprep.subr.bf16.mxu0 %v16913_v20  ;;  %v16963_v54 = vld [vmem:[%s21645_s3 + $0x1a4] ss:$8 sps:$4 sm:$0xff]   ;;  %v16965_v55 = vld [vmem:[%s21645_s3 + $0xa0] ss:$8 sps:$4 sm:$0xff]   ;;  %v16967_v57 = vld [vmem:[%s21645_s3 + $0x94] ss:$8 sps:$4 sm:$0xff]  }
  0x1f   : > { %996 = vmatprep.subr.bf16.mxu1 %v16915_v21  ;;  %1018 = vmatprep.mubr.bf16.mxu1 %v18305_v48  ;;  %v16966_v56 = vld [vmem:[%s21645_s3 + $0x1a0] ss:$8 sps:$4 sm:$0xff]   ;;  %v16969_v58 = vld [vmem:[%s21645_s3 + $0x194] ss:$8 sps:$4 sm:$0xff]   ;;  %v16971_v59 = vld [vmem:[%s21645_s3 + $0x90] ss:$8 sps:$4 sm:$0xff]  }
  0x20   : > { %v16972_v60 = vld [vmem:[%s21645_s3 + $0x190] ss:$8 sps:$4 sm:$0xff]   ;;  %v16973_v61 = vld [vmem:[%s21645_s3 + $0x84] ss:$8 sps:$4 sm:$0xff]   ;;  %v16977_v63 = vld [vmem:[%s21645_s3 + $0x80] ss:$8 sps:$4 sm:$0xff]  }
  0x21   : > { %723 = vmatpush1.bf16.msra.mxu0 %v16917_v22  ;;  %v16975_v62 = vld [vmem:[%s21645_s3 + $0x184] ss:$8 sps:$4 sm:$0xff]   ;;  %v16978_v0 = vld [vmem:[%s21645_s3 + $0x180] ss:$8 sps:$4 sm:$0xff]   ;;  %v16984_v1 = vld [vmem:[%s21645_s3 + $0x274] ss:$8 sps:$4 sm:$0xff]  }
  0x22   : > { %997 = vmatpush1.bf16.msra.mxu1 %v16918_v23  ;;  %724 = vmatprep.subr.bf16.mxu0 %v16919_v24  ;;  %v16987_v2 = vld [vmem:[%s21645_s3 + $0x374] ss:$8 sps:$4 sm:$0xff]   ;;  %v18364_v3 = vld [vmem:[%s18293_s22] ss:$8 sps:$4 sm:$0xff]   ;;  %v16982_v4 = vld [vmem:[%s21645_s3 + $0x270] ss:$8 sps:$4 sm:$0xff]  }
  0x23   : > { %998 = vmatprep.subr.bf16.mxu1 %v16921_v25  ;;  %v16985_v5 = vld [vmem:[%s21645_s3 + $0x370] ss:$8 sps:$4 sm:$0xff]   ;;  %v16990_v6 = vld [vmem:[%s21645_s3 + $0x264] ss:$8 sps:$4 sm:$0xff]   ;;  %v16988_v8 = vld [vmem:[%s21645_s3 + $0x260] ss:$8 sps:$4 sm:$0xff]  }
  0x24   : > { %v16993_v7 = vld [vmem:[%s21645_s3 + $0x364] ss:$8 sps:$4 sm:$0xff]   ;;  %v16991_v9 = vld [vmem:[%s21645_s3 + $0x360] ss:$8 sps:$4 sm:$0xff]   ;;  %v16996_v10 = vld [vmem:[%s21645_s3 + $0x254] ss:$8 sps:$4 sm:$0xff]  }
  0x25   : > { %725 = vmatpush1.bf16.msra.mxu0 %v16923_v26  ;;  %v16999_v11 = vld [vmem:[%s21645_s3 + $0x354] ss:$8 sps:$4 sm:$0xff]   ;;  %v16994_v12 = vld [vmem:[%s21645_s3 + $0x250] ss:$8 sps:$4 sm:$0xff]   ;;  %v17002_v14 = vld [vmem:[%s21645_s3 + $0x244] ss:$8 sps:$4 sm:$0xff]  }
  0x26   : > { %999 = vmatpush1.bf16.msra.mxu1 %v16924_v27  ;;  %726 = vmatprep.subr.bf16.mxu0 %v16925_v28  ;;  %v16997_v13 = vld [vmem:[%s21645_s3 + $0x350] ss:$8 sps:$4 sm:$0xff]   ;;  %v17005_v15 = vld [vmem:[%s21645_s3 + $0x344] ss:$8 sps:$4 sm:$0xff]   ;;  %v17000_v16 = vld [vmem:[%s21645_s3 + $0x240] ss:$8 sps:$4 sm:$0xff]  }
  0x27   : > { %1000 = vmatprep.subr.bf16.mxu1 %v16927_v29  ;;  %v17003_v17 = vld [vmem:[%s21645_s3 + $0x340] ss:$8 sps:$4 sm:$0xff]   ;;  %v17008_v18 = vld [vmem:[%s21645_s3 + $0x234] ss:$8 sps:$4 sm:$0xff]   ;;  %v17006_v20 = vld [vmem:[%s21645_s3 + $0x230] ss:$8 sps:$4 sm:$0xff]  }
  0x28   : > { %v17011_v19 = vld [vmem:[%s21645_s3 + $0x334] ss:$8 sps:$4 sm:$0xff]   ;;  %v17009_v21 = vld [vmem:[%s21645_s3 + $0x330] ss:$8 sps:$4 sm:$0xff]   ;;  %v17014_v24 = vld [vmem:[%s21645_s3 + $0x224] ss:$8 sps:$4 sm:$0xff]  }
  0x29   : > { %727 = vmatpush1.bf16.msra.mxu0 %v16929_v30  ;;  %v18423_v22 = vld [vmem:[%s18293_s22 + $0x14] ss:$8 sps:$4 sm:$0xff]   ;;  %v18426_v23 = vld [vmem:[%s18293_s22 + $0x10] ss:$8 sps:$4 sm:$0xff]   ;;  %v17017_v25 = vld [vmem:[%s21645_s3 + $0x324] ss:$8 sps:$4 sm:$0xff]  }
  0x2a   : > { %1001 = vmatpush1.bf16.msra.mxu1 %v16930_v31  ;;  %728 = vmatprep.subr.bf16.mxu0 %v16931_v32  ;;  %v17012_v26 = vld [vmem:[%s21645_s3 + $0x220] ss:$8 sps:$4 sm:$0xff]   ;;  %v17020_v28 = vld [vmem:[%s21645_s3 + $0x214] ss:$8 sps:$4 sm:$0xff]   ;;  %v17018_v30 = vld [vmem:[%s21645_s3 + $0x210] ss:$8 sps:$4 sm:$0xff]  }
  0x2b   : > { %1002 = vmatprep.subr.bf16.mxu1 %v16933_v33  ;;  %v17015_v27 = vld [vmem:[%s21645_s3 + $0x320] ss:$8 sps:$4 sm:$0xff]   ;;  %v17023_v29 = vld [vmem:[%s21645_s3 + $0x314] ss:$8 sps:$4 sm:$0xff]   ;;  %v17021_v31 = vld [vmem:[%s21645_s3 + $0x310] ss:$8 sps:$4 sm:$0xff]  }
  0x2c   : > { %v17026_v32 = vld [vmem:[%s21645_s3 + $0x204] ss:$8 sps:$4 sm:$0xff]  }
  0x2d   : > { %729 = vmatpush2.bf16.msra.mxu0 %v16935_v34  ;;  %v17029_v33 = vld [vmem:[%s21645_s3 + $0x304] ss:$8 sps:$4 sm:$0xff]   ;;  %v17024_v34 = vld [vmem:[%s21645_s3 + $0x200] ss:$8 sps:$4 sm:$0xff]  }
  0x2e   : > { %1003 = vmatpush2.bf16.msra.mxu1 %v16936_v35  ;;  %730 = vmatprep.subr.bf16.mxu0 %v16937_v36  ;;  %v17027_v35 = vld [vmem:[%s21645_s3 + $0x300] ss:$8 sps:$4 sm:$0xff]   ;;  %v17032_v36 = vld [vmem:[%s21645_s3 + $0x2f4] ss:$8 sps:$4 sm:$0xff]  }
  0x2f   : > { %1004 = vmatprep.subr.bf16.mxu1 %v16939_v37  ;;  %v17035_v37 = vld [vmem:[%s21645_s3 + $0x3f4] ss:$8 sps:$4 sm:$0xff]  }
  0x31   : > { %731 = vmatpush2.bf16.msra.mxu0 %v16941_v38  ;;  %v17030_v38 = vld [vmem:[%s21645_s3 + $0x2f0] ss:$8 sps:$4 sm:$0xff]  }
  0x32   : > { %1005 = vmatpush2.bf16.msra.mxu1 %v16942_v39  ;;  %732 = vmatprep.subr.bf16.mxu0 %v16943_v40  ;;  %v17033_v39 = vld [vmem:[%s21645_s3 + $0x3f0] ss:$8 sps:$4 sm:$0xff]   ;;  %v17038_v40 = vld [vmem:[%s21645_s3 + $0x2e4] ss:$8 sps:$4 sm:$0xff]  }
  0x33   : > { %1006 = vmatprep.subr.bf16.mxu1 %v16945_v41  ;;  %v17041_v41 = vld [vmem:[%s21645_s3 + $0x3e4] ss:$8 sps:$4 sm:$0xff]  }
  0x35   : > { %733 = vmatpush2.bf16.msra.mxu0 %v16947_v42  ;;  %v17036_v42 = vld [vmem:[%s21645_s3 + $0x2e0] ss:$8 sps:$4 sm:$0xff]  }
  0x36   : > { %1007 = vmatpush2.bf16.msra.mxu1 %v16948_v43  ;;  %734 = vmatprep.subr.bf16.mxu0 %v16949_v44  ;;  %v17039_v43 = vld [vmem:[%s21645_s3 + $0x3e0] ss:$8 sps:$4 sm:$0xff]   ;;  %v17044_v44 = vld [vmem:[%s21645_s3 + $0x2d4] ss:$8 sps:$4 sm:$0xff]  }
  0x37   : > { %1008 = vmatprep.subr.bf16.mxu1 %v16951_v45  ;;  %v17047_v45 = vld [vmem:[%s21645_s3 + $0x3d4] ss:$8 sps:$4 sm:$0xff]  }
  0x39   : > { %735 = vmatpush2.bf16.msra.mxu0 %v16953_v46  ;;  %v17042_v46 = vld [vmem:[%s21645_s3 + $0x2d0] ss:$8 sps:$4 sm:$0xff]  }
  0x3a   : > { %1009 = vmatpush2.bf16.msra.mxu1 %v16954_v47  ;;  %736 = vmatprep.subr.bf16.mxu0 %v16955_v49  ;;  %v17045_v47 = vld [vmem:[%s21645_s3 + $0x3d0] ss:$8 sps:$4 sm:$0xff]   ;;  %v17050_v49 = vld [vmem:[%s21645_s3 + $0x2c4] ss:$8 sps:$4 sm:$0xff]  }
  0x3b   : > { %1010 = vmatprep.subr.bf16.mxu1 %v16957_v50  ;;  %v17053_v50 = vld [vmem:[%s21645_s3 + $0x3c4] ss:$8 sps:$4 sm:$0xff]  }
  0x3d   : > { %737 = vmatpush2.bf16.msra.mxu0 %v16959_v51  ;;  %v17048_v51 = vld [vmem:[%s21645_s3 + $0x2c0] ss:$8 sps:$4 sm:$0xff]  }
  0x3e   : > { %1011 = vmatpush2.bf16.msra.mxu1 %v16960_v52  ;;  %738 = vmatprep.subr.bf16.mxu0 %v16961_v53  ;;  %v17051_v52 = vld [vmem:[%s21645_s3 + $0x3c0] ss:$8 sps:$4 sm:$0xff]   ;;  %v17056_v53 = vld [vmem:[%s21645_s3 + $0x2b4] ss:$8 sps:$4 sm:$0xff]  }
  0x3f   : > { %1012 = vmatprep.subr.bf16.mxu1 %v16963_v54  ;;  %v17059_v54 = vld [vmem:[%s21645_s3 + $0x3b4] ss:$8 sps:$4 sm:$0xff]  }
  0x41   : > { %739 = vmatpush2.bf16.msra.mxu0 %v16965_v55  ;;  %v17054_v55 = vld [vmem:[%s21645_s3 + $0x2b0] ss:$8 sps:$4 sm:$0xff]  }
  0x42   : > { %1013 = vmatpush2.bf16.msra.mxu1 %v16966_v56  ;;  %740 = vmatprep.subr.bf16.mxu0 %v16967_v57  ;;  %v17057_v56 = vld [vmem:[%s21645_s3 + $0x3b0] ss:$8 sps:$4 sm:$0xff]   ;;  %v17065_v57 = vld [vmem:[%s21645_s3 + $0x2a4] ss:$8 sps:$4 sm:$0xff]  }
  0x43   : > { %1014 = vmatprep.subr.bf16.mxu1 %v16969_v58  ;;  %v17068_v58 = vld [vmem:[%s21645_s3 + $0x3a4] ss:$8 sps:$4 sm:$0xff]  }
  0x45   : > { %741 = vmatpush2.bf16.msra.mxu0 %v16971_v59  ;;  %v17063_v59 = vld [vmem:[%s21645_s3 + $0x2a0] ss:$8 sps:$4 sm:$0xff]  }
  0x46   : > { %1015 = vmatpush2.bf16.msra.mxu1 %v16972_v60  ;;  %742 = vmatprep.subr.bf16.mxu0 %v16973_v61  ;;  %v17066_v60 = vld [vmem:[%s21645_s3 + $0x3a0] ss:$8 sps:$4 sm:$0xff]   ;;  %v17071_v61 = vld [vmem:[%s21645_s3 + $0x294] ss:$8 sps:$4 sm:$0xff]  }
  0x47   : > { %1016 = vmatprep.subr.bf16.mxu1 %v16975_v62  ;;  %v17074_v62 = vld [vmem:[%s21645_s3 + $0x394] ss:$8 sps:$4 sm:$0xff]  }
  0x49   : > { %743 = vmatpush2.bf16.msra.mxu0 %v16977_v63  ;;  %v17069_v63 = vld [vmem:[%s21645_s3 + $0x290] ss:$8 sps:$4 sm:$0xff]  }
  0x4a   : > { %1017 = vmatpush2.bf16.msra.mxu1 %v16978_v0  ;;  %1260 = vmatprep.subr.bf16.mxu0 %v16984_v1  ;;  %v17072_v0 = vld [vmem:[%s21645_s3 + $0x390] ss:$8 sps:$4 sm:$0xff]   ;;  %v17077_v1 = vld [vmem:[%s21645_s3 + $0x284] ss:$8 sps:$4 sm:$0xff]  }
  0x4b   : > { %1534 = vmatprep.subr.bf16.mxu1 %v16987_v2  ;;  %v17080_v2 = vld [vmem:[%s21645_s3 + $0x384] ss:$8 sps:$4 sm:$0xff]  }
  0x4c   : > { %745 = vmatmul.mubr.bf16.vlgmr.msra.gmra.mxu0 %v18364_v3 }
  0x4d   : > { %1019 = vmatmul.mubr.bf16.vlgmr.msra.gmra.mxu1 %v18364_v3  ;;  %1261 = vmatpush1.bf16.msra.mxu0 %v16982_v4  ;;  %v17075_v4 = vld [vmem:[%s21645_s3 + $0x280] ss:$8 sps:$4 sm:$0xff]  }
  0x4e   : > { %1535 = vmatpush1.bf16.msra.mxu1 %v16985_v5  ;;  %1262 = vmatprep.subr.bf16.mxu0 %v16990_v6  ;;  %v17078_v5 = vld [vmem:[%s21645_s3 + $0x380] ss:$8 sps:$4 sm:$0xff]   ;;  %v17083_v6 = vld [vmem:[%s21645_s3 + $0x474] ss:$8 sps:$4 sm:$0xff]  }
  0x4f   : > { %1536 = vmatprep.subr.bf16.mxu1 %v16993_v7  ;;  %754 = vmatprep.mubr.bf16.mxu0 %v18423_v22  ;;  %v17086_v7 = vld [vmem:[%s21645_s3 + $0x574] ss:$8 sps:$4 sm:$0xff]  }
  0x50   : > { %1028 = vmatprep.mubr.bf16.mxu1 %v18423_v22 }
  0x51   : > { %1263 = vmatpush1.bf16.msra.mxu0 %v16988_v8  ;;  %v17081_v8 = vld [vmem:[%s21645_s3 + $0x470] ss:$8 sps:$4 sm:$0xff]  }
  0x52   : > { %1537 = vmatpush1.bf16.msra.mxu1 %v16991_v9  ;;  %1264 = vmatprep.subr.bf16.mxu0 %v16996_v10  ;;  %v17084_v9 = vld [vmem:[%s21645_s3 + $0x570] ss:$8 sps:$4 sm:$0xff]   ;;  %v17089_v10 = vld [vmem:[%s21645_s3 + $0x464] ss:$8 sps:$4 sm:$0xff]  }
  0x53   : > { %1538 = vmatprep.subr.bf16.mxu1 %v16999_v11  ;;  %v17092_v11 = vld [vmem:[%s21645_s3 + $0x564] ss:$8 sps:$4 sm:$0xff]  }
  0x54   : > { %755 = vmatmul.mubr.bf16.gmra.mxu0 %v18426_v23 }
  0x55   : > { %1265 = vmatpush1.bf16.msra.mxu0 %v16994_v12  ;;  %1029 = vmatmul.mubr.bf16.gmra.mxu1 %v18426_v23  ;;  %v17087_v12 = vld [vmem:[%s21645_s3 + $0x460] ss:$8 sps:$4 sm:$0xff]  }
  0x56   : > { %1539 = vmatpush1.bf16.msra.mxu1 %v16997_v13  ;;  %1266 = vmatprep.subr.bf16.mxu0 %v17002_v14  ;;  %v17090_v13 = vld [vmem:[%s21645_s3 + $0x560] ss:$8 sps:$4 sm:$0xff]   ;;  %v17095_v14 = vld [vmem:[%s21645_s3 + $0x454] ss:$8 sps:$4 sm:$0xff]  }
  0x57   : > { %1540 = vmatprep.subr.bf16.mxu1 %v17005_v15  ;;  %1292 = vmatprep.mubr.bf16.mxu0 %v18305_v48  ;;  %v17098_v15 = vld [vmem:[%s21645_s3 + $0x554] ss:$8 sps:$4 sm:$0xff]  }
  0x58   : > { %1566 = vmatprep.mubr.bf16.mxu1 %v18305_v48 }
  0x59   : > { %1267 = vmatpush1.bf16.msra.mxu0 %v17000_v16  ;;  %v17093_v16 = vld [vmem:[%s21645_s3 + $0x450] ss:$8 sps:$4 sm:$0xff]  }
  0x5a   : > { %1541 = vmatpush1.bf16.msra.mxu1 %v17003_v17  ;;  %1268 = vmatprep.subr.bf16.mxu0 %v17008_v18  ;;  %v17096_v17 = vld [vmem:[%s21645_s3 + $0x550] ss:$8 sps:$4 sm:$0xff]   ;;  %v17101_v18 = vld [vmem:[%s21645_s3 + $0x444] ss:$8 sps:$4 sm:$0xff]  }
  0x5b   : > { %1542 = vmatprep.subr.bf16.mxu1 %v17011_v19  ;;  %v17104_v19 = vld [vmem:[%s21645_s3 + $0x544] ss:$8 sps:$4 sm:$0xff]  }
  0x5d   : > { %1269 = vmatpush1.bf16.msra.mxu0 %v17006_v20  ;;  %v17099_v20 = vld [vmem:[%s21645_s3 + $0x440] ss:$8 sps:$4 sm:$0xff]  }
  0x5e   : > { %1543 = vmatpush1.bf16.msra.mxu1 %v17009_v21  ;;  %1270 = vmatprep.subr.bf16.mxu0 %v17014_v24  ;;  %v17102_v21 = vld [vmem:[%s21645_s3 + $0x540] ss:$8 sps:$4 sm:$0xff]   ;;  %v17107_v24 = vld [vmem:[%s21645_s3 + $0x434] ss:$8 sps:$4 sm:$0xff]  }
  0x5f   : > { %1544 = vmatprep.subr.bf16.mxu1 %v17017_v25  ;;  %v17110_v25 = vld [vmem:[%s21645_s3 + $0x534] ss:$8 sps:$4 sm:$0xff]  }
  0x61   : > { %1271 = vmatpush1.bf16.msra.mxu0 %v17012_v26  ;;  %v17105_v26 = vld [vmem:[%s21645_s3 + $0x430] ss:$8 sps:$4 sm:$0xff]  }
  0x62   : > { %1545 = vmatpush1.bf16.msra.mxu1 %v17015_v27  ;;  %1272 = vmatprep.subr.bf16.mxu0 %v17020_v28  ;;  %v17108_v27 = vld [vmem:[%s21645_s3 + $0x530] ss:$8 sps:$4 sm:$0xff]   ;;  %v17113_v28 = vld [vmem:[%s21645_s3 + $0x424] ss:$8 sps:$4 sm:$0xff]  }
  0x63   : > { %1546 = vmatprep.subr.bf16.mxu1 %v17023_v29  ;;  %v17111_v29 = vld [vmem:[%s21645_s3 + $0x420] ss:$8 sps:$4 sm:$0xff]  }
  0x65   : > { %1273 = vmatpush1.bf16.msra.mxu0 %v17018_v30  ;;  %v17114_v30 = vld [vmem:[%s21645_s3 + $0x520] ss:$8 sps:$4 sm:$0xff]  }
  0x66   : > { %1547 = vmatpush1.bf16.msra.mxu1 %v17021_v31  ;;  %1274 = vmatprep.subr.bf16.mxu0 %v17026_v32  ;;  %v17119_v31 = vld [vmem:[%s21645_s3 + $0x414] ss:$8 sps:$4 sm:$0xff]  }
  0x67   : > { %1548 = vmatprep.subr.bf16.mxu1 %v17029_v33  ;;  %v17122_v32 = vld [vmem:[%s21645_s3 + $0x514] ss:$8 sps:$4 sm:$0xff]   ;;  %v17117_v33 = vld [vmem:[%s21645_s3 + $0x410] ss:$8 sps:$4 sm:$0xff]  }
  0x69   : > { %1275 = vmatpush1.bf16.msra.mxu0 %v17024_v34  ;;  %v17120_v34 = vld [vmem:[%s21645_s3 + $0x510] ss:$8 sps:$4 sm:$0xff]  }
  0x6a   : > { %1549 = vmatpush1.bf16.msra.mxu1 %v17027_v35  ;;  %1276 = vmatprep.subr.bf16.mxu0 %v17032_v36  ;;  %v17125_v35 = vld [vmem:[%s21645_s3 + $0x404] ss:$8 sps:$4 sm:$0xff]  }
  0x6b   : > { %1550 = vmatprep.subr.bf16.mxu1 %v17035_v37  ;;  %v17128_v36 = vld [vmem:[%s21645_s3 + $0x504] ss:$8 sps:$4 sm:$0xff]   ;;  %v17123_v37 = vld [vmem:[%s21645_s3 + $0x400] ss:$8 sps:$4 sm:$0xff]  }
  0x6d   : > { %1277 = vmatpush2.bf16.msra.mxu0 %v17030_v38  ;;  %v17126_v38 = vld [vmem:[%s21645_s3 + $0x500] ss:$8 sps:$4 sm:$0xff]  }
  0x6e   : > { %1551 = vmatpush2.bf16.msra.mxu1 %v17033_v39  ;;  %1278 = vmatprep.subr.bf16.mxu0 %v17038_v40  ;;  %v17131_v39 = vld [vmem:[%s21645_s3 + $0x4f4] ss:$8 sps:$4 sm:$0xff]  }
  0x6f   : > { %1552 = vmatprep.subr.bf16.mxu1 %v17041_v41  ;;  %v17134_v40 = vld [vmem:[%s21645_s3 + $0x5f4] ss:$8 sps:$4 sm:$0xff]   ;;  %v17129_v41 = vld [vmem:[%s21645_s3 + $0x4f0] ss:$8 sps:$4 sm:$0xff]  }
  0x71   : > { %1279 = vmatpush2.bf16.msra.mxu0 %v17036_v42  ;;  %v17132_v42 = vld [vmem:[%s21645_s3 + $0x5f0] ss:$8 sps:$4 sm:$0xff]  }
  0x72   : > { %1553 = vmatpush2.bf16.msra.mxu1 %v17039_v43  ;;  %1280 = vmatprep.subr.bf16.mxu0 %v17044_v44  ;;  %v17137_v43 = vld [vmem:[%s21645_s3 + $0x4e4] ss:$8 sps:$4 sm:$0xff]  }
  0x73   : > { %1554 = vmatprep.subr.bf16.mxu1 %v17047_v45  ;;  %v17140_v44 = vld [vmem:[%s21645_s3 + $0x5e4] ss:$8 sps:$4 sm:$0xff]   ;;  %v17135_v45 = vld [vmem:[%s21645_s3 + $0x4e0] ss:$8 sps:$4 sm:$0xff]  }
  0x75   : > { %1281 = vmatpush2.bf16.msra.mxu0 %v17042_v46  ;;  %v17138_v46 = vld [vmem:[%s21645_s3 + $0x5e0] ss:$8 sps:$4 sm:$0xff]  }
  0x76   : > { %1555 = vmatpush2.bf16.msra.mxu1 %v17045_v47  ;;  %1282 = vmatprep.subr.bf16.mxu0 %v17050_v49  ;;  %v17143_v47 = vld [vmem:[%s21645_s3 + $0x4d4] ss:$8 sps:$4 sm:$0xff]  }
  0x77   : > { %1556 = vmatprep.subr.bf16.mxu1 %v17053_v50  ;;  %v17146_v49 = vld [vmem:[%s21645_s3 + $0x5d4] ss:$8 sps:$4 sm:$0xff]   ;;  %v17141_v50 = vld [vmem:[%s21645_s3 + $0x4d0] ss:$8 sps:$4 sm:$0xff]  }
  0x79   : > { %1283 = vmatpush2.bf16.msra.mxu0 %v17048_v51  ;;  %v17144_v51 = vld [vmem:[%s21645_s3 + $0x5d0] ss:$8 sps:$4 sm:$0xff]  }
  0x7a   : > { %1557 = vmatpush2.bf16.msra.mxu1 %v17051_v52  ;;  %1284 = vmatprep.subr.bf16.mxu0 %v17056_v53  ;;  %v17149_v52 = vld [vmem:[%s21645_s3 + $0x4c4] ss:$8 sps:$4 sm:$0xff]  }
  0x7b   : > { %1558 = vmatprep.subr.bf16.mxu1 %v17059_v54  ;;  %v17152_v53 = vld [vmem:[%s21645_s3 + $0x5c4] ss:$8 sps:$4 sm:$0xff]   ;;  %v17147_v54 = vld [vmem:[%s21645_s3 + $0x4c0] ss:$8 sps:$4 sm:$0xff]  }
  0x7d   : > { %1285 = vmatpush2.bf16.msra.mxu0 %v17054_v55  ;;  %v17150_v55 = vld [vmem:[%s21645_s3 + $0x5c0] ss:$8 sps:$4 sm:$0xff]  }
  0x7e   : > { %1559 = vmatpush2.bf16.msra.mxu1 %v17057_v56  ;;  %1286 = vmatprep.subr.bf16.mxu0 %v17065_v57  ;;  %v17155_v56 = vld [vmem:[%s21645_s3 + $0x4b4] ss:$8 sps:$4 sm:$0xff]  }
  0x7f   : > { %1560 = vmatprep.subr.bf16.mxu1 %v17068_v58  ;;  %v17158_v57 = vld [vmem:[%s21645_s3 + $0x5b4] ss:$8 sps:$4 sm:$0xff]   ;;  %v17153_v58 = vld [vmem:[%s21645_s3 + $0x4b0] ss:$8 sps:$4 sm:$0xff]  }
  0x81   : > { %1287 = vmatpush2.bf16.msra.mxu0 %v17063_v59  ;;  %v17156_v59 = vld [vmem:[%s21645_s3 + $0x5b0] ss:$8 sps:$4 sm:$0xff]  }
  0x82   : > { %1561 = vmatpush2.bf16.msra.mxu1 %v17066_v60  ;;  %1288 = vmatprep.subr.bf16.mxu0 %v17071_v61  ;;  %v17161_v60 = vld [vmem:[%s21645_s3 + $0x4a4] ss:$8 sps:$4 sm:$0xff]  }
  0x83   : > { %1562 = vmatprep.subr.bf16.mxu1 %v17074_v62  ;;  %v17164_v61 = vld [vmem:[%s21645_s3 + $0x5a4] ss:$8 sps:$4 sm:$0xff]   ;;  %v17159_v62 = vld [vmem:[%s21645_s3 + $0x4a0] ss:$8 sps:$4 sm:$0xff]  }
  0x85   : > { %1289 = vmatpush2.bf16.msra.mxu0 %v17069_v63  ;;  %v17162_v63 = vld [vmem:[%s21645_s3 + $0x5a0] ss:$8 sps:$4 sm:$0xff]  }
  0x86   : > { %1563 = vmatpush2.bf16.msra.mxu1 %v17072_v0  ;;  %1290 = vmatprep.subr.bf16.mxu0 %v17077_v1  ;;  %v17167_v0 = vld [vmem:[%s21645_s3 + $0x494] ss:$8 sps:$4 sm:$0xff]  }
  0x87   : > { %1564 = vmatprep.subr.bf16.mxu1 %v17080_v2  ;;  %v17170_v1 = vld [vmem:[%s21645_s3 + $0x594] ss:$8 sps:$4 sm:$0xff]   ;;  %v17165_v2 = vld [vmem:[%s21645_s3 + $0x490] ss:$8 sps:$4 sm:$0xff]  }
  0x89   : > { %1291 = vmatpush2.bf16.msra.mxu0 %v17075_v4  ;;  %v17168_v4 = vld [vmem:[%s21645_s3 + $0x590] ss:$8 sps:$4 sm:$0xff]  }
  0x8a   : > { %1565 = vmatpush2.bf16.msra.mxu1 %v17078_v5  ;;  %1808 = vmatprep.subr.bf16.mxu0 %v17083_v6  ;;  %v17173_v5 = vld [vmem:[%s21645_s3 + $0x484] ss:$8 sps:$4 sm:$0xff]  }
  0x8b   : > { %2082 = vmatprep.subr.bf16.mxu1 %v17086_v7  ;;  %v17176_v6 = vld [vmem:[%s21645_s3 + $0x584] ss:$8 sps:$4 sm:$0xff]   ;;  %v17171_v7 = vld [vmem:[%s21645_s3 + $0x480] ss:$8 sps:$4 sm:$0xff]  }
  0x8c   : > { %1293 = vmatmul.mubr.bf16.vlgmr.msra.gmra.mxu0 %v18364_v3 }
  0x8d   : > { %1567 = vmatmul.mubr.bf16.vlgmr.msra.gmra.mxu1 %v18364_v3  ;;  %1809 = vmatpush1.bf16.msra.mxu0 %v17081_v8  ;;  %v17174_v8 = vld [vmem:[%s21645_s3 + $0x580] ss:$8 sps:$4 sm:$0xff]  }
  0x8e   : > { %2083 = vmatpush1.bf16.msra.mxu1 %v17084_v9  ;;  %1810 = vmatprep.subr.bf16.mxu0 %v17089_v10  ;;  %v17179_v9 = vld [vmem:[%s21645_s3 + $0x674] ss:$8 sps:$4 sm:$0xff]  }
  0x8f   : > { %2084 = vmatprep.subr.bf16.mxu1 %v17092_v11  ;;  %1576 = vmatprep.mubr.bf16.mxu1 %v18423_v22  ;;  %v17182_v10 = vld [vmem:[%s21645_s3 + $0x774] ss:$8 sps:$4 sm:$0xff]   ;;  %v17177_v11 = vld [vmem:[%s21645_s3 + $0x670] ss:$8 sps:$4 sm:$0xff]  }
  0x90   : > { %1302 = vmatprep.mubr.bf16.mxu0 %v18423_v22 }
  0x91   : > { %1811 = vmatpush1.bf16.msra.mxu0 %v17087_v12  ;;  %v17180_v12 = vld [vmem:[%s21645_s3 + $0x770] ss:$8 sps:$4 sm:$0xff]  }
  0x92   : > { %2085 = vmatpush1.bf16.msra.mxu1 %v17090_v13  ;;  %1812 = vmatprep.subr.bf16.mxu0 %v17095_v14  ;;  %v17185_v13 = vld [vmem:[%s21645_s3 + $0x664] ss:$8 sps:$4 sm:$0xff]  }
  0x93   : > { %2086 = vmatprep.subr.bf16.mxu1 %v17098_v15  ;;  %v17188_v14 = vld [vmem:[%s21645_s3 + $0x764] ss:$8 sps:$4 sm:$0xff]   ;;  %v17183_v15 = vld [vmem:[%s21645_s3 + $0x660] ss:$8 sps:$4 sm:$0xff]  }
  0x94   : > { %1303 = vmatmul.mubr.bf16.gmra.mxu0 %v18426_v23 }
  0x95   : > { %1577 = vmatmul.mubr.bf16.gmra.mxu1 %v18426_v23  ;;  %1813 = vmatpush1.bf16.msra.mxu0 %v17093_v16  ;;  %v17186_v16 = vld [vmem:[%s21645_s3 + $0x760] ss:$8 sps:$4 sm:$0xff]  }
  0x96   : > { %2087 = vmatpush1.bf16.msra.mxu1 %v17096_v17  ;;  %1814 = vmatprep.subr.bf16.mxu0 %v17101_v18  ;;  %v17191_v17 = vld [vmem:[%s21645_s3 + $0x654] ss:$8 sps:$4 sm:$0xff]  }
  0x97   : > { %2088 = vmatprep.subr.bf16.mxu1 %v17104_v19  ;;  %1840 = vmatprep.mubr.bf16.mxu0 %v18305_v48  ;;  %v17194_v18 = vld [vmem:[%s21645_s3 + $0x754] ss:$8 sps:$4 sm:$0xff]   ;;  %v17189_v19 = vld [vmem:[%s21645_s3 + $0x650] ss:$8 sps:$4 sm:$0xff]  }
  0x98   : > { %2114 = vmatprep.mubr.bf16.mxu1 %v18305_v48  ;;  %v17116_v48 = vld [vmem:[%s21645_s3 + $0x524] ss:$8 sps:$4 sm:$0xff]  }
  0x99   : > { %1815 = vmatpush1.bf16.msra.mxu0 %v17099_v20  ;;  %v17197_v20 = vld [vmem:[%s21645_s3 + $0x644] ss:$8 sps:$4 sm:$0xff]  }
  0x9a   : > { %2089 = vmatpush1.bf16.msra.mxu1 %v17102_v21  ;;  %1816 = vmatprep.subr.bf16.mxu0 %v17107_v24  ;;  %v17200_v21 = vld [vmem:[%s21645_s3 + $0x744] ss:$8 sps:$4 sm:$0xff]   ;;  %v17195_v24 = vld [vmem:[%s21645_s3 + $0x640] ss:$8 sps:$4 sm:$0xff]  }
  0x9b   : > { %2090 = vmatprep.subr.bf16.mxu1 %v17110_v25  ;;  %v17203_v25 = vld [vmem:[%s21645_s3 + $0x634] ss:$8 sps:$4 sm:$0xff]  }
  0x9d   : > { %1817 = vmatpush1.bf16.msra.mxu0 %v17105_v26  ;;  %v17206_v26 = vld [vmem:[%s21645_s3 + $0x734] ss:$8 sps:$4 sm:$0xff]  }
  0x9e   : > { %2091 = vmatpush1.bf16.msra.mxu1 %v17108_v27  ;;  %1818 = vmatprep.subr.bf16.mxu0 %v17113_v28  ;;  %v17201_v27 = vld [vmem:[%s21645_s3 + $0x630] ss:$8 sps:$4 sm:$0xff]  }
  0x9f   : > { %2092 = vmatprep.subr.bf16.mxu1 %v17116_v48  ;;  %v17204_v28 = vld [vmem:[%s21645_s3 + $0x730] ss:$8 sps:$4 sm:$0xff]   ;;  %v18833_v48 = vld [vmem:[%s18293_s22 + $0x4] ss:$8 sps:$4 sm:$0xff]  }
  0xa1   : > { %1819 = vmatpush1.bf16.msra.mxu0 %v17111_v29  ;;  %v17212_v29 = vld [vmem:[%s21645_s3 + $0x724] ss:$8 sps:$4 sm:$0xff]  }
  0xa2   : > { %2093 = vmatpush1.bf16.msra.mxu1 %v17114_v30  ;;  %1820 = vmatprep.subr.bf16.mxu0 %v17119_v31  ;;  %v17207_v30 = vld [vmem:[%s21645_s3 + $0x620] ss:$8 sps:$4 sm:$0xff]  }
  0xa3   : > { %2094 = vmatprep.subr.bf16.mxu1 %v17122_v32  ;;  %v17210_v31 = vld [vmem:[%s21645_s3 + $0x720] ss:$8 sps:$4 sm:$0xff]   ;;  %v17215_v32 = vld [vmem:[%s21645_s3 + $0x614] ss:$8 sps:$4 sm:$0xff]  }
  0xa5   : > { %1821 = vmatpush1.bf16.msra.mxu0 %v17117_v33  ;;  %v17218_v33 = vld [vmem:[%s21645_s3 + $0x714] ss:$8 sps:$4 sm:$0xff]  }
  0xa6   : > { %2095 = vmatpush1.bf16.msra.mxu1 %v17120_v34  ;;  %1822 = vmatprep.subr.bf16.mxu0 %v17125_v35  ;;  %v17213_v34 = vld [vmem:[%s21645_s3 + $0x610] ss:$8 sps:$4 sm:$0xff]  }
  0xa7   : > { %2096 = vmatprep.subr.bf16.mxu1 %v17128_v36  ;;  %v17216_v35 = vld [vmem:[%s21645_s3 + $0x710] ss:$8 sps:$4 sm:$0xff]   ;;  %v17221_v36 = vld [vmem:[%s21645_s3 + $0x604] ss:$8 sps:$4 sm:$0xff]  }
  0xa9   : > { %1823 = vmatpush1.bf16.msra.mxu0 %v17123_v37  ;;  %v17224_v37 = vld [vmem:[%s21645_s3 + $0x704] ss:$8 sps:$4 sm:$0xff]  }
  0xaa   : > { %2097 = vmatpush1.bf16.msra.mxu1 %v17126_v38  ;;  %1824 = vmatprep.subr.bf16.mxu0 %v17131_v39  ;;  %v17219_v38 = vld [vmem:[%s21645_s3 + $0x600] ss:$8 sps:$4 sm:$0xff]  }
  0xab   : > { %2098 = vmatprep.subr.bf16.mxu1 %v17134_v40  ;;  %v17222_v39 = vld [vmem:[%s21645_s3 + $0x700] ss:$8 sps:$4 sm:$0xff]   ;;  %v17227_v40 = vld [vmem:[%s21645_s3 + $0x6f4] ss:$8 sps:$4 sm:$0xff]  }
  0xad   : > { %1825 = vmatpush2.bf16.msra.mxu0 %v17129_v41  ;;  %v17230_v41 = vld [vmem:[%s21645_s3 + $0x7f4] ss:$8 sps:$4 sm:$0xff]  }
  0xae   : > { %2099 = vmatpush2.bf16.msra.mxu1 %v17132_v42  ;;  %1826 = vmatprep.subr.bf16.mxu0 %v17137_v43  ;;  %v17225_v42 = vld [vmem:[%s21645_s3 + $0x6f0] ss:$8 sps:$4 sm:$0xff]  }
  0xaf   : > { %2100 = vmatprep.subr.bf16.mxu1 %v17140_v44  ;;  %v17228_v43 = vld [vmem:[%s21645_s3 + $0x7f0] ss:$8 sps:$4 sm:$0xff]   ;;  %v17233_v44 = vld [vmem:[%s21645_s3 + $0x6e4] ss:$8 sps:$4 sm:$0xff]  }
  0xb1   : > { %1827 = vmatpush2.bf16.msra.mxu0 %v17135_v45  ;;  %v17236_v45 = vld [vmem:[%s21645_s3 + $0x7e4] ss:$8 sps:$4 sm:$0xff]  }
  0xb2   : > { %2101 = vmatpush2.bf16.msra.mxu1 %v17138_v46  ;;  %1828 = vmatprep.subr.bf16.mxu0 %v17143_v47  ;;  %v17231_v46 = vld [vmem:[%s21645_s3 + $0x6e0] ss:$8 sps:$4 sm:$0xff]  }
  0xb3   : > { %2102 = vmatprep.subr.bf16.mxu1 %v17146_v49  ;;  %v17234_v47 = vld [vmem:[%s21645_s3 + $0x7e0] ss:$8 sps:$4 sm:$0xff]   ;;  %v17239_v49 = vld [vmem:[%s21645_s3 + $0x6d4] ss:$8 sps:$4 sm:$0xff]  }
  0xb5   : > { %1829 = vmatpush2.bf16.msra.mxu0 %v17141_v50  ;;  %v17242_v50 = vld [vmem:[%s21645_s3 + $0x7d4] ss:$8 sps:$4 sm:$0xff]  }
  0xb6   : > { %2103 = vmatpush2.bf16.msra.mxu1 %v17144_v51  ;;  %1830 = vmatprep.subr.bf16.mxu0 %v17149_v52  ;;  %v17237_v51 = vld [vmem:[%s21645_s3 + $0x6d0] ss:$8 sps:$4 sm:$0xff]  }
  0xb7   : > { %2104 = vmatprep.subr.bf16.mxu1 %v17152_v53  ;;  %v17240_v52 = vld [vmem:[%s21645_s3 + $0x7d0] ss:$8 sps:$4 sm:$0xff]   ;;  %v17245_v53 = vld [vmem:[%s21645_s3 + $0x6c4] ss:$8 sps:$4 sm:$0xff]  }
  0xb9   : > { %1831 = vmatpush2.bf16.msra.mxu0 %v17147_v54  ;;  %v17248_v54 = vld [vmem:[%s21645_s3 + $0x7c4] ss:$8 sps:$4 sm:$0xff]  }
  0xba   : > { %2105 = vmatpush2.bf16.msra.mxu1 %v17150_v55  ;;  %1832 = vmatprep.subr.bf16.mxu0 %v17155_v56  ;;  %v17243_v55 = vld [vmem:[%s21645_s3 + $0x6c0] ss:$8 sps:$4 sm:$0xff]  }
  0xbb   : > { %2106 = vmatprep.subr.bf16.mxu1 %v17158_v57  ;;  %v17246_v56 = vld [vmem:[%s21645_s3 + $0x7c0] ss:$8 sps:$4 sm:$0xff]   ;;  %v17251_v57 = vld [vmem:[%s21645_s3 + $0x6b4] ss:$8 sps:$4 sm:$0xff]  }
  0xbd   : > { %1833 = vmatpush2.bf16.msra.mxu0 %v17153_v58  ;;  %v17254_v58 = vld [vmem:[%s21645_s3 + $0x7b4] ss:$8 sps:$4 sm:$0xff]  }
  0xbe   : > { %2107 = vmatpush2.bf16.msra.mxu1 %v17156_v59  ;;  %1834 = vmatprep.subr.bf16.mxu0 %v17161_v60  ;;  %v17249_v59 = vld [vmem:[%s21645_s3 + $0x6b0] ss:$8 sps:$4 sm:$0xff]  }
  0xbf   : > { %2108 = vmatprep.subr.bf16.mxu1 %v17164_v61  ;;  %v17252_v60 = vld [vmem:[%s21645_s3 + $0x7b0] ss:$8 sps:$4 sm:$0xff]   ;;  %v17257_v61 = vld [vmem:[%s21645_s3 + $0x6a4] ss:$8 sps:$4 sm:$0xff]  }
  0xc1   : > { %1835 = vmatpush2.bf16.msra.mxu0 %v17159_v62  ;;  %v17260_v62 = vld [vmem:[%s21645_s3 + $0x7a4] ss:$8 sps:$4 sm:$0xff]  }
  0xc2   : > { %2109 = vmatpush2.bf16.msra.mxu1 %v17162_v63  ;;  %1836 = vmatprep.subr.bf16.mxu0 %v17167_v0  ;;  %v17255_v63 = vld [vmem:[%s21645_s3 + $0x6a0] ss:$8 sps:$4 sm:$0xff]  }
  0xc3   : > { %2110 = vmatprep.subr.bf16.mxu1 %v17170_v1  ;;  %v17258_v0 = vld [vmem:[%s21645_s3 + $0x7a0] ss:$8 sps:$4 sm:$0xff]   ;;  %v17263_v1 = vld [vmem:[%s21645_s3 + $0x694] ss:$8 sps:$4 sm:$0xff]  }
  0xc5   : > { %1837 = vmatpush2.bf16.msra.mxu0 %v17165_v2  ;;  %v17266_v2 = vld [vmem:[%s21645_s3 + $0x794] ss:$8 sps:$4 sm:$0xff]  }
  0xc6   : > { %2111 = vmatpush2.bf16.msra.mxu1 %v17168_v4  ;;  %1838 = vmatprep.subr.bf16.mxu0 %v17173_v5  ;;  %v17261_v4 = vld [vmem:[%s21645_s3 + $0x690] ss:$8 sps:$4 sm:$0xff]  }
  0xc7   : > { %2112 = vmatprep.subr.bf16.mxu1 %v17176_v6  ;;  %v17264_v5 = vld [vmem:[%s21645_s3 + $0x790] ss:$8 sps:$4 sm:$0xff]   ;;  %v17269_v6 = vld [vmem:[%s21645_s3 + $0x684] ss:$8 sps:$4 sm:$0xff]  }
  0xc9   : > { %1839 = vmatpush2.bf16.msra.mxu0 %v17171_v7  ;;  %v17272_v7 = vld [vmem:[%s21645_s3 + $0x784] ss:$8 sps:$4 sm:$0xff]  }
  0xca   : > { %2113 = vmatpush2.bf16.msra.mxu1 %v17174_v8  ;;  %2356 = vmatprep.subr.bf16.mxu0 %v17179_v9  ;;  %v17267_v8 = vld [vmem:[%s21645_s3 + $0x680] ss:$8 sps:$4 sm:$0xff]  }
  0xcb   : > { %2630 = vmatprep.subr.bf16.mxu1 %v17182_v10  ;;  %v17270_v9 = vld [vmem:[%s21645_s3 + $0x780] ss:$8 sps:$4 sm:$0xff]   ;;  %v17275_v10 = vld [vmem:[%s21645_s3 + $0x874] ss:$8 sps:$4 sm:$0xff]  }
  0xcc   : > { %1841 = vmatmul.mubr.bf16.vlgmr.msra.gmra.mxu0 %v18364_v3 }
  0xcd   : > { %2115 = vmatmul.mubr.bf16.vlgmr.msra.gmra.mxu1 %v18364_v3  ;;  %2357 = vmatpush1.bf16.msra.mxu0 %v17177_v11  ;;  %v17192_v3 = vld [vmem:[%s21645_s3 + $0x750] ss:$8 sps:$4 sm:$0xff]  }
  0xce   : > { %2631 = vmatpush1.bf16.msra.mxu1 %v17180_v12  ;;  %2358 = vmatprep.subr.bf16.mxu0 %v17185_v13  ;;  %v17273_v11 = vld [vmem:[%s21645_s3 + $0x870] ss:$8 sps:$4 sm:$0xff]   ;;  %v17278_v12 = vld [vmem:[%s21645_s3 + $0x864] ss:$8 sps:$4 sm:$0xff]   ;;  %v17276_v13 = vld [vmem:[%s21645_s3 + $0x860] ss:$8 sps:$4 sm:$0xff]  }
  0xcf   : > { %2632 = vmatprep.subr.bf16.mxu1 %v17188_v14  ;;  %1850 = vmatprep.mubr.bf16.mxu0 %v18423_v22  ;;  %v18982_v14 = vld [vmem:[%s18293_s22] ss:$8 sps:$4 sm:$0xff]  }
  0xd0   : > { %2124 = vmatprep.mubr.bf16.mxu1 %v18423_v22  ;;  %v17198_v22 = vld [vmem:[%s21645_s3 + $0x740] ss:$8 sps:$4 sm:$0xff]  }
  0xd1   : > { %2359 = vmatpush1.bf16.msra.mxu0 %v17183_v15  ;;  %v17281_v15 = vld [vmem:[%s21645_s3 + $0x854] ss:$8 sps:$4 sm:$0xff]  }
  0xd2   : > { %2633 = vmatpush1.bf16.msra.mxu1 %v17186_v16  ;;  %2360 = vmatprep.subr.bf16.mxu0 %v17191_v17  ;;  %v18990_v16 = vld [vmem:[%s18293_s22 + $0x14] ss:$8 sps:$4 sm:$0xff]   ;;  %v17279_v17 = vld [vmem:[%s21645_s3 + $0x850] ss:$8 sps:$4 sm:$0xff]  }
  0xd3   : > { %2634 = vmatprep.subr.bf16.mxu1 %v17194_v18  ;;  %v17284_v18 = vld [vmem:[%s21645_s3 + $0x844] ss:$8 sps:$4 sm:$0xff]  }
  0xd4   : > { %1851 = vmatmul.mubr.bf16.gmra.mxu0 %v18426_v23 }
  0xd5   : > { %2125 = vmatmul.mubr.bf16.gmra.mxu1 %v18426_v23  ;;  %2361 = vmatpush1.bf16.msra.mxu0 %v17189_v19  ;;  %v17209_v23 = vld [vmem:[%s21645_s3 + $0x624] ss:$8 sps:$4 sm:$0xff]   ;;  %v17282_v19 = vld [vmem:[%s21645_s3 + $0x840] ss:$8 sps:$4 sm:$0xff]  }
  0xd6   : > { %2635 = vmatpush1.bf16.msra.mxu1 %v17192_v3  ;;  %2362 = vmatprep.subr.bf16.mxu0 %v17197_v20  ;;  %v19004_v3 = vld [vmem:[%s18293_s22 + $0x10] ss:$8 sps:$4 sm:$0xff]   ;;  %v17287_v20 = vld [vmem:[%s21645_s3 + $0x834] ss:$8 sps:$4 sm:$0xff]   ;;  %s494_s22 = scalar_lea.vmem %s21657_s15, %s14452_s26 }
  0xd7   : > { %2636 = vmatprep.subr.bf16.mxu1 %v17200_v21  ;;  %2388 = vmatprep.mubr.bf16.mxu0 %v18833_v48  ;;  %v17285_v21 = vld [vmem:[%s21645_s3 + $0x830] ss:$8 sps:$4 sm:$0xff]  }
  0xd8   : > { %2662 = vmatprep.mubr.bf16.mxu1 %v18833_v48 }
  0xd9   : > { %2363 = vmatpush1.bf16.msra.mxu0 %v17195_v24  ;;  %v17290_v24 = vld [vmem:[%s21645_s3 + $0x824] ss:$8 sps:$4 sm:$0xff]  }
  0xda   : > { %2637 = vmatpush1.bf16.msra.mxu1 %v17198_v22  ;;  %2364 = vmatprep.subr.bf16.mxu0 %v17203_v25  ;;  %v17288_v22 = vld [vmem:[%s21645_s3 + $0x820] ss:$8 sps:$4 sm:$0xff]   ;;  %v17293_v25 = vld [vmem:[%s21645_s3 + $0x814] ss:$8 sps:$4 sm:$0xff]  }
  0xdb   : > { %2638 = vmatprep.subr.bf16.mxu1 %v17206_v26  ;;  %v17291_v26 = vld [vmem:[%s21645_s3 + $0x810] ss:$8 sps:$4 sm:$0xff]  }
  0xdd   : > { %2365 = vmatpush1.bf16.msra.mxu0 %v17201_v27  ;;  %v17296_v27 = vld [vmem:[%s21645_s3 + $0x804] ss:$8 sps:$4 sm:$0xff]  }
  0xde   : > { %2639 = vmatpush1.bf16.msra.mxu1 %v17204_v28  ;;  %2366 = vmatprep.subr.bf16.mxu0 %v17209_v23  ;;  %v17294_v28 = vld [vmem:[%s21645_s3 + $0x800] ss:$8 sps:$4 sm:$0xff]   ;;  %v17297_v23 = vld [vmem:[%s21645_s3 + $0x8f0] ss:$8 sps:$4 sm:$0xff]  }
  0xdf   : > { %2640 = vmatprep.subr.bf16.mxu1 %v17212_v29  ;;  %v17302_v29 = vld [vmem:[%s21645_s3 + $0x8e4] ss:$8 sps:$4 sm:$0xff]  }
  0xe1   : > { %2367 = vmatpush1.bf16.msra.mxu0 %v17207_v30  ;;  %v17300_v30 = vld [vmem:[%s21645_s3 + $0x8e0] ss:$8 sps:$4 sm:$0xff]  }
  0xe2   : > { %2641 = vmatpush1.bf16.msra.mxu1 %v17210_v31  ;;  %2368 = vmatprep.subr.bf16.mxu0 %v17215_v32  ;;  %v17305_v31 = vld [vmem:[%s21645_s3 + $0x8d4] ss:$8 sps:$4 sm:$0xff]  }
  0xe3   : > { %2642 = vmatprep.subr.bf16.mxu1 %v17218_v33  ;;  %v17303_v33 = vld [vmem:[%s21645_s3 + $0x8d0] ss:$8 sps:$4 sm:$0xff]  }
  0xe5   : > { %2369 = vmatpush1.bf16.msra.mxu0 %v17213_v34 }
  0xe6   : > { %2643 = vmatpush1.bf16.msra.mxu1 %v17216_v35  ;;  %2370 = vmatprep.subr.bf16.mxu0 %v17221_v36  ;;  %v17308_v35 = vld [vmem:[%s21645_s3 + $0x8c4] ss:$8 sps:$4 sm:$0xff]  }
  0xe7   : > { %2644 = vmatprep.subr.bf16.mxu1 %v17224_v37  ;;  %v17306_v37 = vld [vmem:[%s21645_s3 + $0x8c0] ss:$8 sps:$4 sm:$0xff]  }
  0xe9   : > { %2371 = vmatpush1.bf16.msra.mxu0 %v17219_v38 }
  0xea   : > { %2645 = vmatpush1.bf16.msra.mxu1 %v17222_v39  ;;  %2372 = vmatprep.subr.bf16.mxu0 %v17227_v40  ;;  %v17311_v39 = vld [vmem:[%s21645_s3 + $0x8b4] ss:$8 sps:$4 sm:$0xff]  }
  0xeb   : > { %2646 = vmatprep.subr.bf16.mxu1 %v17230_v41  ;;  %v17309_v41 = vld [vmem:[%s21645_s3 + $0x8b0] ss:$8 sps:$4 sm:$0xff]  }
  0xed   : > { %2373 = vmatpush2.bf16.msra.mxu0 %v17225_v42 }
  0xee   : > { %2647 = vmatpush2.bf16.msra.mxu1 %v17228_v43  ;;  %2374 = vmatprep.subr.bf16.mxu0 %v17233_v44  ;;  %v17314_v43 = vld [vmem:[%s21645_s3 + $0x8a4] ss:$8 sps:$4 sm:$0xff]  }
  0xef   : > { %2648 = vmatprep.subr.bf16.mxu1 %v17236_v45  ;;  %v17312_v45 = vld [vmem:[%s21645_s3 + $0x8a0] ss:$8 sps:$4 sm:$0xff]  }
  0xf1   : > { %2375 = vmatpush2.bf16.msra.mxu0 %v17231_v46 }
  0xf2   : > { %2649 = vmatpush2.bf16.msra.mxu1 %v17234_v47  ;;  %2376 = vmatprep.subr.bf16.mxu0 %v17239_v49  ;;  %v17317_v49 = vld [vmem:[%s21645_s3 + $0x894] ss:$8 sps:$4 sm:$0xff]  }
  0xf3   : > { %2650 = vmatprep.subr.bf16.mxu1 %v17242_v50 }
  0xf5   : > { %2377 = vmatpush2.bf16.msra.mxu0 %v17237_v51  ;;  %v17315_v51 = vld [vmem:[%s21645_s3 + $0x890] ss:$8 sps:$4 sm:$0xff]  }
  0xf6   : > { %2651 = vmatpush2.bf16.msra.mxu1 %v17240_v52  ;;  %2378 = vmatprep.subr.bf16.mxu0 %v17245_v53  ;;  %v17320_v53 = vld [vmem:[%s21645_s3 + $0x884] ss:$8 sps:$4 sm:$0xff]  }
  0xf7   : > { %2652 = vmatprep.subr.bf16.mxu1 %v17248_v54 }
  0xf9   : > { %2379 = vmatpush2.bf16.msra.mxu0 %v17243_v55  ;;  %v17318_v55 = vld [vmem:[%s21645_s3 + $0x880] ss:$8 sps:$4 sm:$0xff]  }
  0xfa   : > { %2653 = vmatpush2.bf16.msra.mxu1 %v17246_v56  ;;  %2380 = vmatprep.subr.bf16.mxu0 %v17251_v57 }
  0xfb   : > { %2654 = vmatprep.subr.bf16.mxu1 %v17254_v58 }
  0xfd   : > { %2381 = vmatpush2.bf16.msra.mxu0 %v17249_v59 }
  0xfe   : > { %2655 = vmatpush2.bf16.msra.mxu1 %v17252_v60  ;;  %2382 = vmatprep.subr.bf16.mxu0 %v17257_v61 }
  0xff   : > { %2656 = vmatprep.subr.bf16.mxu1 %v17260_v62 }
 0x101   : > { %2383 = vmatpush2.bf16.msra.mxu0 %v17255_v63 }
 0x102   : > { %2657 = vmatpush2.bf16.msra.mxu1 %v17258_v0  ;;  %2384 = vmatprep.subr.bf16.mxu0 %v17263_v1 }
 0x103   : > { %2658 = vmatprep.subr.bf16.mxu1 %v17266_v2 }
 0x105   : > { %2385 = vmatpush2.bf16.msra.mxu0 %v17261_v4 }
 0x106   : > { %2659 = vmatpush2.bf16.msra.mxu1 %v17264_v5  ;;  %2386 = vmatprep.subr.bf16.mxu0 %v17269_v6 }
 0x107   : > { %2660 = vmatprep.subr.bf16.mxu1 %v17272_v7 }
 0x109   : > { %2387 = vmatpush2.bf16.msra.mxu0 %v17267_v8 }
 0x10a   : > { %2661 = vmatpush2.bf16.msra.mxu1 %v17270_v9  ;;  %2904 = vmatprep.subr.bf16.mxu0 %v17275_v10 }
 0x10c   : > { %2389 = vmatmul.mubr.bf16.vlgmr.msra.gmra.mxu0 %v18982_v14  ;;  %v19053_v34 = vpop.f32.mrf.mxu0 }
 0x10d   : > { %2663 = vmatmul.mubr.bf16.vlgmr.msra.gmra.mxu1 %v18982_v14  ;;  %2905 = vmatpush1.bf16.msra.mxu0 %v17273_v11  ;;  %v19048_v32 = vpop.f32.mrf.mxu1 }
 0x10e   : > { %2672 = vmatprep.mubr.bf16.mxu1 %v18990_v16  ;;  %2906 = vmatprep.subr.bf16.mxu0 %v17278_v12  ;;  %v19063_v38 = vpop.f32.mrf.mxu0 }
 0x10f   : > { %2398 = vmatprep.mubr.bf16.mxu0 %v18990_v16  ;;  %v19058_v36 = vpop.f32.mrf.mxu1 }
 0x110   : > { %v19073_v42 = vpop.f32.mrf.mxu0 }
 0x111   : > { %2907 = vmatpush1.bf16.msra.mxu0 %v17276_v13  ;;  %v19068_v40 = vpop.f32.mrf.mxu1 }
 0x112   : > { %2908 = vmatprep.subr.bf16.mxu0 %v17281_v15  ;;  %v19083_v46 = vpop.f32.mrf.mxu0 }
 0x113   : > { %v19078_v44 = vpop.f32.mrf.mxu1 }
 0x114   : > { %2399 = vmatmul.mubr.bf16.gmra.mxu0 %v19004_v3  ;;  %v19088_v50 = vpop.f32.mrf.mxu0 }
 0x115   : > { %2673 = vmatmul.mubr.bf16.gmra.mxu1 %v19004_v3  ;;  %2909 = vmatpush1.bf16.msra.mxu0 %v17279_v17  ;;  %v1030_v47 = vpop.f32.mrf.mxu1 }
 0x116   : > { %2936 = vmatprep.mubr.bf16.mxu0 %v18833_v48  ;;  %2910 = vmatprep.subr.bf16.mxu0 %v17284_v18  ;;  %v17299_v48 = vld [vmem:[%s21645_s3 + $0x8f4] ss:$8 sps:$4 sm:$0xff]   ;;  %v758_v54 = vpop.f32.mrf.mxu0 }
 0x117   : > { %v1032_v52 = vpop.f32.mrf.mxu1 }
 0x118   : > { %v760_v57 = vpop.f32.mrf.mxu0 }
 0x119   : > { %2911 = vmatpush1.bf16.msra.mxu0 %v17282_v19  ;;  %v1034_v56 = vpop.f32.mrf.mxu1 }
 0x11a   : > { %2912 = vmatprep.subr.bf16.mxu0 %v17287_v20  ;;  %v762_v59 = vpop.f32.mrf.mxu0 }
 0x11b   : > { %v1036_v58 = vpop.f32.mrf.mxu1 }
 0x11d   : > { %2913 = vmatpush1.bf16.msra.mxu0 %v17285_v21  ;;  %v15358_v21 = vpack.c.bf16 %v1034_v56, %v1030_v47  ;;  %v5740_v47 = vld [vmem:[%s21648_s6 + $0x48] sm:$0xff]  ;;  %v9556_v56 = vld [vmem:[%s21652_s10 + $0x10] sm:$0xff] }
 0x11e   : > { %2914 = vmatprep.subr.bf16.mxu0 %v17290_v24  ;;  %v15357_v24 = vpack.c.bf16 %v19078_v44, %v19058_v36  ;;  %v5731_v36 = vld [vmem:[%s21648_s6] sm:$0xff] }
 0x11f   : > { %v5739_v44 = vld [vmem:[%s21648_s6 + $0x40] sm:$0xff] }
 0x121   : > { %2915 = vmatpush1.bf16.msra.mxu0 %v17288_v22  ;;  %v15356_v22 = vpack.c.bf16 %v19068_v40, %v19048_v32  ;;  %v17323_v32 = vld [vmem:[%s21643_s1 + $0x4] ss:$12 sps:$4 sm:$0xff]  }
 0x122   : > { %2916 = vmatprep.subr.bf16.mxu0 %v17293_v25  ;;  %v15355_v25 = vpack.c.bf16 %v762_v59, %v758_v54  ;;  %3370 = vmatprep.mubr.bf16.mxu1 %v17323_v32  ;;  %v5735_v40 = vld [vmem:[%s21648_s6 + $0x20] sm:$0xff]  ;;  %v9571_v32 = vld [vmem:[%s21652_s10 + $0x88] sm:$0xff] }
 0x125   : > { %2917 = vmatpush1.bf16.msra.mxu0 %v17291_v26  ;;  %v15354_v26 = vpack.c.bf16 %v760_v57, %v19088_v50  ;;  %v5742_v50 = vld [vmem:[%s21648_s6 + $0x58] sm:$0xff] }
 0x126   : > { %2918 = vmatprep.subr.bf16.mxu0 %v17296_v27  ;;  %v15353_v27 = vpack.c.bf16 %v19083_v46, %v19063_v38  ;;  %v5733_v38 = vld [vmem:[%s21648_s6 + $0x10] sm:$0xff] }
 0x127   : > { %v5741_v46 = vld [vmem:[%s21648_s6 + $0x50] sm:$0xff] }
 0x129   : > { %2919 = vmatpush1.bf16.msra.mxu0 %v17294_v28  ;;  %v15352_v28 = vpack.c.bf16 %v19073_v42, %v19053_v34  ;;  %v3043_v34 = vld [vmem:[%s21644_s2 + $0x30] sm:$0xff] }
 0x12a   : > { %2920 = vmatprep.subr.bf16.mxu0 %v17299_v48  ;;  %v3037_v48 = vld [vmem:[%s21644_s2] sm:$0xff]  ;;  %v5737_v42 = vld [vmem:[%s21648_s6 + $0x30] sm:$0xff] }
 0x12d   : > { %2921 = vmatpush2.bf16.msra.mxu0 %v17297_v23  ;;  %v3039_v23 = vld [vmem:[%s21644_s2 + $0x10] sm:$0xff] }
 0x12e   : > { %2922 = vmatprep.subr.bf16.mxu0 %v17302_v29  ;;  %v21658_v29 = vmov 0  }
 0x12f   : > { %16881 = vset.pattern.permute.xlu0 %v21658_v29  ;;  %16882 = vset.pattern.permute.xlu1 %v21658_v29 }
 0x130   : > { %3047 = vperm.xlu0 %16881, %v3037_v48   ;;  %3057 = vperm.xlu1 %16882, %v3039_v23  }
 0x131   : > { %2923 = vmatpush2.bf16.msra.mxu0 %v17300_v30  ;;  %v3038_v30 = vld [vmem:[%s21644_s2 + $0x8] sm:$0xff] }
 0x132   : > { %2924 = vmatprep.subr.bf16.mxu0 %v17305_v31  ;;  %v3040_v31 = vld [vmem:[%s21644_s2 + $0x18] sm:$0xff] }
 0x134   : > { %3052 = vperm.xlu0 %16881, %v3038_v30   ;;  %3062 = vperm.xlu1 %16882, %v3040_v31  }
 0x135   : > { %2925 = vmatpush2.bf16.msra.mxu0 %v17303_v33  ;;  %v3041_v33 = vld [vmem:[%s21644_s2 + $0x20] sm:$0xff] }
 0x136   : > { %2926 = vmatprep.subr.bf16.mxu0 %v17308_v35  ;;  %v3042_v35 = vld [vmem:[%s21644_s2 + $0x28] sm:$0xff] }
 0x138   : > { %3067 = vperm.xlu0 %16881, %v3041_v33   ;;  %3072 = vperm.xlu1 %16882, %v3042_v35   ;;  %v9574_v33 = vld [vmem:[%s21652_s10 + $0xa0] sm:$0xff] }
 0x139   : > { %2927 = vmatpush2.bf16.msra.mxu0 %v17306_v37  ;;  %v3044_v37 = vld [vmem:[%s21644_s2 + $0x38] sm:$0xff] }
 0x13a   : > { %2928 = vmatprep.subr.bf16.mxu0 %v17311_v39  ;;  %v5732_v39 = vld [vmem:[%s21648_s6 + $0x8] sm:$0xff] }
 0x13c   : > { %3077 = vperm.xlu0 %16881, %v3043_v34   ;;  %3082 = vperm.xlu1 %16882, %v3044_v37  }
 0x13d   : > { %2929 = vmatpush2.bf16.msra.mxu0 %v17309_v41  ;;  %v5734_v41 = vld [vmem:[%s21648_s6 + $0x18] sm:$0xff] }
 0x13e   : > { %2930 = vmatprep.subr.bf16.mxu0 %v17314_v43  ;;  %v5736_v43 = vld [vmem:[%s21648_s6 + $0x28] sm:$0xff] }
 0x140   : > { %5749 = vperm.xlu0 %16881, %v5731_v36   ;;  %5754 = vperm.xlu1 %16882, %v5732_v39   ;;  %v9576_v39 = vld [vmem:[%s21652_s10 + $0xb0] sm:$0xff] }
 0x141   : > { %2931 = vmatpush2.bf16.msra.mxu0 %v17312_v45  ;;  %v5738_v45 = vld [vmem:[%s21648_s6 + $0x38] sm:$0xff] }
 0x142   : > { %2932 = vmatprep.subr.bf16.mxu0 %v17317_v49  ;;  %v5743_v49 = vld [vmem:[%s21648_s6 + $0x60] sm:$0xff] }
 0x144   : > { %5759 = vperm.xlu0 %16881, %v5733_v38   ;;  %5764 = vperm.xlu1 %16882, %v5734_v41   ;;  %v9573_v38 = vld [vmem:[%s21652_s10 + $0x98] sm:$0xff] }
 0x145   : > { %2933 = vmatpush2.bf16.msra.mxu0 %v17315_v51  ;;  %v5745_v51 = vld [vmem:[%s21648_s6 + $0x70] sm:$0xff] }
 0x146   : > { %2934 = vmatprep.subr.bf16.mxu0 %v17320_v53  ;;  %v9554_v53 = vld [vmem:[%s21652_s10] sm:$0xff] }
 0x148   : > { %5769 = vperm.xlu0 %16881, %v5735_v40   ;;  %5774 = vperm.xlu1 %16882, %v5736_v43  }
 0x149   : > { %2935 = vmatpush2.bf16.msra.mxu0 %v17318_v55  ;;  %v5746_v55 = vld [vmem:[%s21648_s6 + $0x78] sm:$0xff] }
 0x14c   : > { %v1294_v60 = vpop.f32.mrf.mxu0  ;;  %2937 = vmatmul.mubr.bf16.vlgmr.msra.gmra.mxu0 %v18982_v14  ;;  %5779 = vperm.xlu0 %16881, %v5737_v42  }
 0x14d   : > { %v1568_v61 = vpop.f32.mrf.mxu1  ;;  %2946 = vmatprep.mubr.bf16.mxu0 %v18990_v16  ;;  %5784 = vperm.xlu1 %16882, %v5738_v45  }
 0x14e   : > { %v1296_v62 = vpop.f32.mrf.mxu0 }
 0x14f   : > { %v1570_v63 = vpop.f32.mrf.mxu1 }
 0x150   : > { %v1298_v0 = vpop.f32.mrf.mxu0  ;;  %5789 = vperm.xlu0 %16881, %v5739_v44  }
 0x151   : > { %v1572_v1 = vpop.f32.mrf.mxu1  ;;  %v15360_v20 = vpack.c.bf16 %v1298_v0, %v1294_v60  ;;  %5794 = vperm.xlu1 %16882, %v5740_v47   ;;  %v9555_v60 = vld [vmem:[%s21652_s10 + $0x8] sm:$0xff]  ;;  %v9560_v0 = vld [vmem:[%s21652_s10 + $0x30] sm:$0xff] }
 0x152   : > { %v1300_v2 = vpop.f32.mrf.mxu0  ;;  %v15364_v16 = vpack.c.bf16 %v1572_v1, %v1568_v61  ;;  %v9558_v61 = vld [vmem:[%s21652_s10 + $0x20] sm:$0xff] }
 0x153   : > { %v1574_v4 = vpop.f32.mrf.mxu1  ;;  %v15361_v19 = vpack.c.bf16 %v1300_v2, %v1296_v62 }
 0x154   : > { %2947 = vmatmul.mubr.bf16.gmra.mxu0 %v19004_v3  ;;  %v1304_v6 = vpop.f32.mrf.mxu0  ;;  %v15365_v13 = vpack.c.bf16 %v1574_v4, %v1570_v63  ;;  %v15359_v3 = vpack.c.bf16 %v1036_v58, %v1032_v52  ;;  %5799 = vperm.xlu0 %16881, %v5741_v46   ;;  %v5744_v52 = vld [vmem:[%s21648_s6 + $0x68] sm:$0xff]  ;;  %v9557_v63 = vld [vmem:[%s21652_s10 + $0x18] sm:$0xff] }
 0x155   : > { %v1578_v5 = vpop.f32.mrf.mxu1  ;;  %3443 = vmatprep.mubr.bf16.mxu0 %v21658_v29  ;;  %5804 = vperm.xlu1 %16882, %v5742_v50   ;;  %v9575_v46 = vld [vmem:[%s21652_s10 + $0xa8] sm:$0xff] }
 0x156   : > { %v1306_v8 = vpop.f32.mrf.mxu0 }
 0x157   : > { %v1580_v7 = vpop.f32.mrf.mxu1 }
 0x158   : > { %v1308_v10 = vpop.f32.mrf.mxu0  ;;  %5809 = vperm.xlu0 %16881, %v5743_v49   ;;  %v9578_v49 = vld [vmem:[%s21652_s10 + $0xc0] sm:$0xff] }
 0x159   : > { %v1582_v9 = vpop.f32.mrf.mxu1  ;;  %v15362_v18 = vpack.c.bf16 %v1308_v10, %v1304_v6  ;;  %5814 = vperm.xlu1 %16882, %v5744_v52   ;;  %v9559_v6 = vld [vmem:[%s21652_s10 + $0x28] sm:$0xff]  ;;  %v9564_v10 = vld [vmem:[%s21652_s10 + $0x50] sm:$0xff]  ;;  %v9577_v52 = vld [vmem:[%s21652_s10 + $0xb8] sm:$0xff] }
 0x15a   : > { %v15366_v11 = vpack.c.bf16 %v1582_v9, %v1578_v5  ;;  %v1310_v15 = vpop.f32.mrf.mxu0  ;;  %v9561_v9 = vld [vmem:[%s21652_s10 + $0x38] sm:$0xff] }
 0x15b   : > { %v1584_v12 = vpop.f32.mrf.mxu1  ;;  %v15363_v17 = vpack.c.bf16 %v1310_v15, %v1306_v8 }
 0x15c   : > { %v15367_v14 = vpack.c.bf16 %v1584_v12, %v1580_v7  ;;  %5819 = vperm.xlu0 %16881, %v5745_v51   ;;  %v9562_v7 = vld [vmem:[%s21652_s10 + $0x40] sm:$0xff] }
 0x15d   : > { %5824 = vperm.xlu1 %16882, %v5746_v55  }
 0x15e   : > { %3338 = vmatprep.subr.bf16.mxu1 %v15367_v14  ;;  %v9566_v14 = vld [vmem:[%s21652_s10 + $0x60] sm:$0xff] }
 0x15f   : > { %3339 = vmatpush1.bf16.msra.mxu1 %v15366_v11 }
 0x160   : > { %3340 = vmatprep.subr.bf16.mxu1 %v15365_v13  ;;  %9588 = vperm.xlu0 %16881, %v9554_v53   ;;  %v9563_v13 = vld [vmem:[%s21652_s10 + $0x48] sm:$0xff]  ;;  %v9580_v53 = vld [vmem:[%s21652_s10 + $0xd0] sm:$0xff] }
 0x161   : > { %9593 = vperm.xlu1 %16882, %v9555_v60   ;;  %v9582_v60 = vld [vmem:[%s21652_s10 + $0xe0] sm:$0xff] }
 0x163   : > { %3341 = vmatpush1.bf16.msra.mxu1 %v15364_v16 }
 0x164   : > { %3342 = vmatprep.subr.bf16.mxu1 %v15363_v17  ;;  %9598 = vperm.xlu0 %16881, %v9556_v56   ;;  %v9565_v17 = vld [vmem:[%s21652_s10 + $0x58] sm:$0xff]  ;;  %v9579_v56 = vld [vmem:[%s21652_s10 + $0xc8] sm:$0xff] }
 0x165   : > { %9603 = vperm.xlu1 %16882, %v9557_v63  }
 0x167   : > { %3343 = vmatpush1.bf16.msra.mxu1 %v15362_v18  ;;  %v9568_v18 = vld [vmem:[%s21652_s10 + $0x70] sm:$0xff] }
 0x168   : > { %3344 = vmatprep.subr.bf16.mxu1 %v15361_v19  ;;  %9608 = vperm.xlu0 %16881, %v9558_v61  }
 0x169   : > { %9613 = vperm.xlu1 %16882, %v9559_v6  }
 0x16b   : > { %3345 = vmatpush1.bf16.msra.mxu1 %v15360_v20  ;;  %v9567_v20 = vld [vmem:[%s21652_s10 + $0x68] sm:$0xff] }
 0x16c   : > { %3346 = vmatprep.subr.bf16.mxu1 %v15359_v3  ;;  %9618 = vperm.xlu0 %16881, %v9560_v0   ;;  %v9581_v0 = vld [vmem:[%s21652_s10 + $0xd8] sm:$0xff] }
 0x16d   : > { %9623 = vperm.xlu1 %16882, %v9561_v9  }
 0x16f   : > { %3347 = vmatpush1.bf16.msra.mxu1 %v15358_v21  ;;  %v9570_v21 = vld [vmem:[%s21652_s10 + $0x80] sm:$0xff] }
 0x170   : > { %3348 = vmatprep.subr.bf16.mxu1 %v15357_v24  ;;  %9628 = vperm.xlu0 %16881, %v9562_v7   ;;  %v9584_v7 = vld [vmem:[%s21652_s10 + $0xf0] sm:$0xff] }
 0x171   : > { %9633 = vperm.xlu1 %16882, %v9563_v13   ;;  %v9585_v13 = vld [vmem:[%s21652_s10 + $0xf8] sm:$0xff] }
 0x173   : > { %3349 = vmatpush1.bf16.msra.mxu1 %v15356_v22 }
 0x174   : > { %3350 = vmatprep.subr.bf16.mxu1 %v15355_v25  ;;  %9638 = vperm.xlu0 %16881, %v9564_v10   ;;  %v9583_v10 = vld [vmem:[%s21652_s10 + $0xe8] sm:$0xff] }
 0x175   : > { %9643 = vperm.xlu1 %16882, %v9565_v17   ;;  %v17349_v17 = vld [vmem:[%s21646_s4 + $0xa0] ss:$16 sps:$4 sm:$0xff]  }
 0x177   : > { %3351 = vmatpush1.bf16.msra.mxu1 %v15354_v26 }
 0x178   : > { %3352 = vmatprep.subr.bf16.mxu1 %v15353_v27  ;;  %9648 = vperm.xlu0 %16881, %v9566_v14   ;;  %v9569_v27 = vld [vmem:[%s21652_s10 + $0x78] sm:$0xff] }
 0x179   : > { %9653 = vperm.xlu1 %16882, %v9567_v20   ;;  %v17329_v20 = vld [vmem:[%s21643_s1 + $0x30] ss:$12 sps:$4 sm:$0xff]  }
 0x17b   : > { %3353 = vmatpush1.bf16.msra.mxu1 %v15352_v28  ;;  %v9572_v28 = vld [vmem:[%s21652_s10 + $0x90] sm:$0xff] }
 0x17c   : > { %9658 = vperm.xlu0 %16881, %v9568_v18   ;;  %v17357_v18 = vld [vmem:[%s21646_s4 + $0x84] ss:$16 sps:$4 sm:$0xff]  }
 0x17d   : > { %9663 = vperm.xlu1 %16882, %v9569_v27   ;;  %v17367_v27 = vld [vmem:[%s21646_s4 + $0x40] ss:$16 sps:$4 sm:$0xff]  }
 0x180   : > { %9668 = vperm.xlu0 %16881, %v9570_v21   ;;  %v17330_v21 = vld [vmem:[%s21643_s1 + $0x4c] ss:$12 sps:$4 sm:$0xff]  }
 0x181   : > { %9673 = vperm.xlu1 %16882, %v9571_v32  }
 0x184   : > { %9678 = vperm.xlu0 %16881, %v9572_v28  }
 0x185   : > { %9683 = vperm.xlu1 %16882, %v9573_v38  }
 0x188   : > { %9688 = vperm.xlu0 %16881, %v9574_v33  }
 0x189   : > { %9693 = vperm.xlu1 %16882, %v9575_v46   ;;  %v17360_v46 = vld [vmem:[%s21646_s4 + $0x8c] ss:$16 sps:$4 sm:$0xff]  }
 0x18c   : > { %v19197_v57 = vpop.f32.mrf.mxu0  ;;  %9698 = vperm.xlu0 %16881, %v9576_v39   ;;  %v17333_v39 = vld [vmem:[%s21643_s1 + $0x8] ss:$12 sps:$4 sm:$0xff]  }
 0x18d   : > { %v19189_v54 = vpop.f32.mrf.mxu1  ;;  %9703 = vperm.xlu1 %16882, %v9577_v52   ;;  %v17372_v52 = vld [vmem:[%s21646_s4 + $0x4c] ss:$16 sps:$4 sm:$0xff]  }
 0x18e   : > { %v19201_v59 = vpop.f32.mrf.mxu0 }
 0x18f   : > { %v19199_v58 = vpop.f32.mrf.mxu1 }
 0x190   : > { %v19217_v1 = vpop.f32.mrf.mxu0  ;;  %9708 = vperm.xlu0 %16881, %v9578_v49   ;;  %v17366_v49 = vld [vmem:[%s21646_s4 + $0x6c] ss:$16 sps:$4 sm:$0xff]  }
 0x191   : > { %v19209_v62 = vpop.f32.mrf.mxu1  ;;  %9713 = vperm.xlu1 %16882, %v9579_v56   ;;  %v17373_v56 = vld [vmem:[%s21646_s4 + $0x20] ss:$16 sps:$4 sm:$0xff]  }
 0x192   : > { %v19221_v4 = vpop.f32.mrf.mxu0 }
 0x193   : > { %v19219_v2 = vpop.f32.mrf.mxu1 }
 0x194   : > { %v19231_v8 = vpop.f32.mrf.mxu0  ;;  %9718 = vperm.xlu0 %16881, %v9580_v53   ;;  %v17370_v53 = vld [vmem:[%s21646_s4 + $0x48] ss:$16 sps:$4 sm:$0xff]  }
 0x195   : > { %v19223_v5 = vpop.f32.mrf.mxu1  ;;  %9723 = vperm.xlu1 %16882, %v9581_v0   ;;  %v17379_v0 = vld [vmem:[%s21646_s4] ss:$16 sps:$4 sm:$0xff]  }
 0x196   : > { %v19241_v12 = vpop.f32.mrf.mxu0 }
 0x197   : > { %v19239_v11 = vpop.f32.mrf.mxu1 }
 0x198   : > { %v19251_v16 = vpop.f32.mrf.mxu0  ;;  %9728 = vperm.xlu0 %16881, %v9582_v60   ;;  %v17375_v60 = vld [vmem:[%s21646_s4 + $0x24] ss:$16 sps:$4 sm:$0xff]  }
 0x199   : > { %v19249_v15 = vpop.f32.mrf.mxu1  ;;  %9733 = vperm.xlu1 %16882, %v9583_v10   ;;  %v17385_v10 = vld [vmem:[%s21646_s4 + $0x1e0] ss:$16 sps:$4 sm:$0xff]  }
 0x19a   : > { %v19261_v3 = vpop.f32.mrf.mxu0  ;;  %v15374_v9 = vpack.c.bf16 %v19249_v15, %v19223_v5  ;;  %v15372_v5 = vpack.c.bf16 %v19209_v62, %v19189_v54  ;;  %v15370_v15 = vpack.c.bf16 %v19251_v16, %v19231_v8  ;;  %v15368_v54 = vpack.c.bf16 %v19217_v1, %v19197_v57  ;;  %v17321_v62 = vld [vmem:[%s21643_s1] ss:$12 sps:$4 sm:$0xff]   ;;  %v17324_v8 = vld [vmem:[%s21643_s1 + $0x1c] ss:$12 sps:$4 sm:$0xff]   ;;  %v17351_v1 = vld [vmem:[%s21646_s4 + $0xa4] ss:$16 sps:$4 sm:$0xff]  }
 0x19b   : > { %v19259_v19 = vpop.f32.mrf.mxu1  ;;  %v15371_v14 = vpack.c.bf16 %v19261_v3, %v19241_v12  ;;  %v17343_v57 = vld [vmem:[%s21646_s4 + $0xc0] ss:$16 sps:$4 sm:$0xff]   ;;  %v17326_v12 = vld [vmem:[%s21643_s1 + $0x18] ss:$12 sps:$4 sm:$0xff]  }
 0x19c   : > { %v15375_v63 = vpack.c.bf16 %v19259_v19, %v19239_v11  ;;  %9738 = vperm.xlu0 %16881, %v9584_v7   ;;  %v15373_v11 = vpack.c.bf16 %v19219_v2, %v19199_v58  ;;  %v15369_v58 = vpack.c.bf16 %v19221_v4, %v19201_v59  ;;  %v17339_v2 = vld [vmem:[%s21646_s4 + $0xe4] ss:$16 sps:$4 sm:$0xff]   ;;  %v17337_v59 = vld [vmem:[%s21646_s4 + $0xe0] ss:$16 sps:$4 sm:$0xff]   ;;  %v17382_v7 = vld [vmem:[%s21646_s4 + $0x8] ss:$16 sps:$4 sm:$0xff]  }
 0x19d   : > { %9743 = vperm.xlu1 %16882, %v9585_v13   ;;  %v17345_v4 = vld [vmem:[%s21646_s4 + $0xc4] ss:$16 sps:$4 sm:$0xff]   ;;  %v17355_v19 = vld [vmem:[%s21646_s4 + $0x80] ss:$16 sps:$4 sm:$0xff]   ;;  %v17388_v13 = vld [vmem:[%s21646_s4 + $0x1e8] ss:$16 sps:$4 sm:$0xff]  }
 0x19e   : > { %v17327_v16 = vld [vmem:[%s21643_s1 + $0x34] ss:$12 sps:$4 sm:$0xff]  }
 0x19f   : > { %v17363_v3 = vld [vmem:[%s21646_s4 + $0x64] ss:$16 sps:$4 sm:$0xff]  }
 0x1cc   : > { %v2390_v24 = vpop.f32.mrf.mxu0 }
 0x1cd   : > { %v2664_v22 = vpop.f32.mrf.mxu1 }
 0x1ce   : > { %v2392_v25 = vpop.f32.mrf.mxu0 }
 0x1cf   : > { %v2666_v26 = vpop.f32.mrf.mxu1 }
 0x1d0   : > { %v2394_v48 = vpop.f32.mrf.mxu0 }
 0x1d1   : > { %v2668_v23 = vpop.f32.mrf.mxu1  ;;  %v15376_v6 = vpack.c.bf16 %v2394_v48, %v2390_v24  ;;  %v17361_v24 = vld [vmem:[%s21646_s4 + $0x60] ss:$16 sps:$4 sm:$0xff]   ;;  %v17332_v48 = vld [vmem:[%s21643_s1 + $0x48] ss:$12 sps:$4 sm:$0xff]  }
 0x1d2   : > { %v2396_v30 = vpop.f32.mrf.mxu0  ;;  %v15380_v50 = vpack.c.bf16 %v2668_v23, %v2664_v22  ;;  %v17369_v22 = vld [vmem:[%s21646_s4 + $0x44] ss:$16 sps:$4 sm:$0xff]  }
 0x1d3   : > { %v2670_v31 = vpop.f32.mrf.mxu1  ;;  %v15377_v61 = vpack.c.bf16 %v2396_v30, %v2392_v25 }
 0x1d4   : > { %v2400_v35 = vpop.f32.mrf.mxu0  ;;  %v15381_v44 = vpack.c.bf16 %v2670_v31, %v2666_v26 }
 0x1d5   : > { %v2674_v34 = vpop.f32.mrf.mxu1 }
 0x1d6   : > { %v2402_v37 = vpop.f32.mrf.mxu0 }
 0x1d7   : > { %v2676_v36 = vpop.f32.mrf.mxu1 }
 0x1d8   : > { %v2404_v41 = vpop.f32.mrf.mxu0 }
 0x1d9   : > { %v2678_v40 = vpop.f32.mrf.mxu1  ;;  %v15378_v55 = vpack.c.bf16 %v2404_v41, %v2400_v35  ;;  %v17348_v41 = vld [vmem:[%s21646_s4 + $0xcc] ss:$16 sps:$4 sm:$0xff]  }
 0x1da   : > { %v15382_v42 = vpack.c.bf16 %v2678_v40, %v2674_v34  ;;  %v2406_v47 = vpop.f32.mrf.mxu0  ;;  %v17340_v40 = vld [vmem:[%s21646_s4 + $0xe8] ss:$16 sps:$4 sm:$0xff]  }
 0x1db   : > { %v2680_v43 = vpop.f32.mrf.mxu1  ;;  %v15379_v51 = vpack.c.bf16 %v2406_v47, %v2402_v37  ;;  %v17342_v37 = vld [vmem:[%s21646_s4 + $0xec] ss:$16 sps:$4 sm:$0xff]   ;;  %v17358_v47 = vld [vmem:[%s21646_s4 + $0x88] ss:$16 sps:$4 sm:$0xff]  }
 0x1dc   : > { %v15383_v45 = vpack.c.bf16 %v2680_v43, %v2676_v36  ;;  %v17354_v43 = vld [vmem:[%s21646_s4 + $0xac] ss:$16 sps:$4 sm:$0xff]  }
 0x1de   : > { %3354 = vmatprep.subr.bf16.mxu1 %v15383_v45  ;;  %v17352_v45 = vld [vmem:[%s21646_s4 + $0xa8] ss:$16 sps:$4 sm:$0xff]  }
 0x1df   : > { %3355 = vmatpush2.bf16.msra.mxu1 %v15382_v42  ;;  %v17346_v42 = vld [vmem:[%s21646_s4 + $0xc8] ss:$16 sps:$4 sm:$0xff]  }
 0x1e0   : > { %3356 = vmatprep.subr.bf16.mxu1 %v15381_v44  ;;  %v17334_v44 = vld [vmem:[%s21643_s1 + $0x20] ss:$12 sps:$4 sm:$0xff]  }
 0x1e3   : > { %3357 = vmatpush2.bf16.msra.mxu1 %v15380_v50  ;;  %v17335_v50 = vld [vmem:[%s21643_s1 + $0x38] ss:$12 sps:$4 sm:$0xff]  }
 0x1e4   : > { %3358 = vmatprep.subr.bf16.mxu1 %v15379_v51  ;;  %v17364_v51 = vld [vmem:[%s21646_s4 + $0x68] ss:$16 sps:$4 sm:$0xff]  }
 0x1e7   : > { %3359 = vmatpush2.bf16.msra.mxu1 %v15378_v55  ;;  %v17336_v55 = vld [vmem:[%s21643_s1 + $0x50] ss:$12 sps:$4 sm:$0xff]  }
 0x1e8   : > { %3360 = vmatprep.subr.bf16.mxu1 %v15377_v61  ;;  %v17376_v61 = vld [vmem:[%s21646_s4 + $0x28] ss:$16 sps:$4 sm:$0xff]  }
 0x1eb   : > { %3361 = vmatpush2.bf16.msra.mxu1 %v15376_v6  ;;  %v17381_v6 = vld [vmem:[%s21646_s4 + $0x4] ss:$16 sps:$4 sm:$0xff]  }
 0x1ec   : > { %3362 = vmatprep.subr.bf16.mxu1 %v15375_v63  ;;  %v17378_v63 = vld [vmem:[%s21646_s4 + $0x2c] ss:$16 sps:$4 sm:$0xff]  }
 0x1ef   : > { %3363 = vmatpush2.bf16.msra.mxu1 %v15374_v9  ;;  %v17384_v9 = vld [vmem:[%s21646_s4 + $0xc] ss:$16 sps:$4 sm:$0xff]  }
 0x1f0   : > { %3364 = vmatprep.subr.bf16.mxu1 %v15373_v11  ;;  %v17387_v11 = vld [vmem:[%s21646_s4 + $0x1e4] ss:$16 sps:$4 sm:$0xff]  }
 0x1f3   : > { %3365 = vmatpush2.bf16.msra.mxu1 %v15372_v5  ;;  %v17390_v5 = vld [vmem:[%s21646_s4 + $0x1ec] ss:$16 sps:$4 sm:$0xff]  }
 0x1f4   : > { %3366 = vmatprep.subr.bf16.mxu1 %v15371_v14  ;;  %v17391_v14 = vld [vmem:[%s21646_s4 + $0x1c0] ss:$16 sps:$4 sm:$0xff]  }
 0x1f7   : > { %3367 = vmatpush2.bf16.msra.mxu1 %v15370_v15  ;;  %v17393_v15 = vld [vmem:[%s21646_s4 + $0x1c4] ss:$16 sps:$4 sm:$0xff]  }
 0x1f8   : > { %3368 = vmatprep.subr.bf16.mxu1 %v15369_v58  ;;  %v17394_v58 = vld [vmem:[%s21646_s4 + $0x1c8] ss:$16 sps:$4 sm:$0xff]  }
 0x1fb   : > { %3369 = vmatpush2.bf16.msra.mxu1 %v15368_v54  ;;  %v17397_v54 = vld [vmem:[%s21646_s4 + $0x1a0] ss:$16 sps:$4 sm:$0xff]  }
 0x1fc   : > { %3908 = vmatprep.subr.bf16.mxu1 %v17339_v2  ;;  %v17396_v2 = vld [vmem:[%s21646_s4 + $0x1cc] ss:$16 sps:$4 sm:$0xff]  }
 0x1fe   : > { %3371 = vmatmul.mubr.bf16.vlgmr.msra.gmra.mxu1 %v17321_v62  ;;  %v17399_v62 = vld [vmem:[%s21646_s4 + $0x1a4] ss:$16 sps:$4 sm:$0xff]  }
 0x1ff   : > { %3380 = vmatprep.mubr.bf16.mxu1 %v17324_v8  ;;  %3909 = vmatpush1.bf16.msra.mxu1 %v17337_v59  ;;  %v17400_v8 = vld [vmem:[%s21646_s4 + $0x1a8] ss:$16 sps:$4 sm:$0xff]   ;;  %v17402_v59 = vld [vmem:[%s21646_s4 + $0x1ac] ss:$16 sps:$4 sm:$0xff]  }
 0x200   : > { %3910 = vmatprep.subr.bf16.mxu1 %v17345_v4  ;;  %v17403_v4 = vld [vmem:[%s21646_s4 + $0x180] ss:$16 sps:$4 sm:$0xff]  }
 0x203   : > { %3911 = vmatpush1.bf16.msra.mxu1 %v17343_v57  ;;  %v17405_v57 = vld [vmem:[%s21646_s4 + $0x184] ss:$16 sps:$4 sm:$0xff]  }
 0x204   : > { %3912 = vmatprep.subr.bf16.mxu1 %v17351_v1  ;;  %v17406_v1 = vld [vmem:[%s21646_s4 + $0x188] ss:$16 sps:$4 sm:$0xff]  }
 0x206   : > { %3381 = vmatmul.mubr.bf16.gmra.mxu1 %v17326_v12  ;;  %v17408_v12 = vld [vmem:[%s21646_s4 + $0x18c] ss:$16 sps:$4 sm:$0xff]  }
 0x207   : > { %3390 = vmatprep.mubr.bf16.mxu1 %v17327_v16  ;;  %3913 = vmatpush1.bf16.msra.mxu1 %v17349_v17  ;;  %v17411_v16 = vld [vmem:[%s21646_s4 + $0x164] ss:$16 sps:$4 sm:$0xff]   ;;  %v17414_v17 = vld [vmem:[%s21646_s4 + $0x16c] ss:$16 sps:$4 sm:$0xff]  }
 0x208   : > { %3914 = vmatprep.subr.bf16.mxu1 %v17357_v18  ;;  %v17409_v18 = vld [vmem:[%s21646_s4 + $0x160] ss:$16 sps:$4 sm:$0xff]  }
 0x20b   : > { %3915 = vmatpush1.bf16.msra.mxu1 %v17355_v19  ;;  %v17412_v19 = vld [vmem:[%s21646_s4 + $0x168] ss:$16 sps:$4 sm:$0xff]  }
 0x20c   : > { %3916 = vmatprep.subr.bf16.mxu1 %v17363_v3  ;;  %v2938_v25 = vpop.f32.mrf.mxu0  ;;  %v17417_v3 = vld [vmem:[%s21646_s4 + $0x144] ss:$16 sps:$4 sm:$0xff]  }
 0x20e   : > { %3391 = vmatmul.mubr.bf16.gmra.mxu1 %v17329_v20  ;;  %v2940_v26 = vpop.f32.mrf.mxu0  ;;  %v17420_v20 = vld [vmem:[%s21646_s4 + $0x14c] ss:$16 sps:$4 sm:$0xff]  }
 0x20f   : > { %3400 = vmatprep.mubr.bf16.mxu1 %v17330_v21  ;;  %3917 = vmatpush1.bf16.msra.mxu1 %v17361_v24  ;;  %v17415_v21 = vld [vmem:[%s21646_s4 + $0x140] ss:$16 sps:$4 sm:$0xff]   ;;  %v17418_v24 = vld [vmem:[%s21646_s4 + $0x148] ss:$16 sps:$4 sm:$0xff]  }
 0x210   : > { %3918 = vmatprep.subr.bf16.mxu1 %v17369_v22  ;;  %v2942_v28 = vpop.f32.mrf.mxu0  ;;  %v17423_v22 = vld [vmem:[%s21646_s4 + $0x124] ss:$16 sps:$4 sm:$0xff]  }
 0x211   : > { %v15384_v38 = vpack.c.bf16 %v2942_v28, %v2938_v25  ;;  %v17426_v25 = vld [vmem:[%s21646_s4 + $0x12c] ss:$16 sps:$4 sm:$0xff]   ;;  %v17429_v28 = vld [vmem:[%s21646_s4 + $0x104] ss:$16 sps:$4 sm:$0xff]  }
 0x212   : > { %v2944_v23 = vpop.f32.mrf.mxu0 }
 0x213   : > { %3919 = vmatpush1.bf16.msra.mxu1 %v17367_v27  ;;  %v15385_v36 = vpack.c.bf16 %v2944_v23, %v2940_v26  ;;  %v17421_v26 = vld [vmem:[%s21646_s4 + $0x120] ss:$16 sps:$4 sm:$0xff]   ;;  %v17424_v27 = vld [vmem:[%s21646_s4 + $0x128] ss:$16 sps:$4 sm:$0xff]  }
 0x214   : > { %v2948_v30 = vpop.f32.mrf.mxu0  ;;  %3920 = vmatprep.subr.bf16.mxu1 %v17375_v60  ;;  %v17427_v23 = vld [vmem:[%s21646_s4 + $0x100] ss:$16 sps:$4 sm:$0xff]  }
 0x216   : > { %3401 = vmatmul.mubr.bf16.gmra.mxu1 %v17332_v48  ;;  %v2950_v31 = vpop.f32.mrf.mxu0  ;;  %v17432_v48 = vld [vmem:[%s21646_s4 + $0x10c] ss:$16 sps:$4 sm:$0xff]  }
 0x217   : > { %3921 = vmatpush1.bf16.msra.mxu1 %v17373_v56 }
 0x218   : > { %v2952_v32 = vpop.f32.mrf.mxu0  ;;  %3922 = vmatprep.subr.bf16.mxu1 %v17381_v6 }
 0x219   : > { %v15386_v35 = vpack.c.bf16 %v2952_v32, %v2948_v30  ;;  %v17430_v30 = vld [vmem:[%s21646_s4 + $0x108] ss:$16 sps:$4 sm:$0xff]  }
 0x21a   : > { %v2954_v33 = vpop.f32.mrf.mxu0  ;;  %v19573_v32 = vld [vmem:[%s21649_s7 + $0x78] sm:$0xff]  }
 0x21b   : > { %v15387_v34 = vpack.c.bf16 %v2954_v33, %v2950_v31  ;;  %3923 = vmatpush1.bf16.msra.mxu1 %v17379_v0  ;;  %v19568_v31 = vld [vmem:[%s21649_s7 + $0x38] sm:$0xff]  }
 0x21c   : > { %3924 = vmatprep.subr.bf16.mxu1 %v17387_v11 }
 0x21d   : > { %3423 = vmatprep.subr.bf16.mxu0 %v15387_v34 }
 0x21e   : > { %3424 = vmatpush1.bf16.msra.mxu0 %v15386_v35 }
 0x21f   : > { %3425 = vmatprep.subr.bf16.mxu0 %v15385_v36  ;;  %3925 = vmatpush2.bf16.msra.mxu1 %v17385_v10 }
 0x220   : > { %3926 = vmatprep.subr.bf16.mxu1 %v17393_v15 }
 0x222   : > { %3426 = vmatpush1.bf16.msra.mxu0 %v15384_v38 }
 0x223   : > { %3981 = vmatprep.subr.bf16.mxu0 %v17342_v37  ;;  %3927 = vmatpush2.bf16.msra.mxu1 %v17391_v14 }
 0x224   : > { %3928 = vmatprep.subr.bf16.mxu1 %v17399_v62 }
 0x225   : > { %13402 = vmatmul.mubr.msk.bf16.vlgmr.msra.gmra.mxu0 %vm3325_vm0, %v17333_v39 }
 0x226   : > { %3453 = vmatprep.mubr.bf16.mxu0 %v21658_v29  ;;  %3982 = vmatpush1.bf16.msra.mxu0 %v17340_v40  ;;  %v3048_v40 = vpop.permute.xlu0 %3047 }
 0x227   : > { %3983 = vmatprep.subr.bf16.mxu0 %v17348_v41  ;;  %3929 = vmatpush2.bf16.msra.mxu1 %v17397_v54 }
 0x228   : > { %3930 = vmatprep.subr.bf16.mxu1 %v17405_v57 }
 0x22a   : > { %3984 = vmatpush1.bf16.msra.mxu0 %v17346_v42 }
 0x22b   : > { %3985 = vmatprep.subr.bf16.mxu0 %v17354_v43  ;;  %3931 = vmatpush2.bf16.msra.mxu1 %v17403_v4 }
 0x22c   : > { %3932 = vmatprep.subr.bf16.mxu1 %v17411_v16 }
 0x22d   : > { %13403 = vmatmul.mubr.msk.bf16.gmra.mxu0 %vm3325_vm0, %v17334_v44 }
 0x22e   : > { %3463 = vmatprep.mubr.bf16.mxu0 %v21658_v29  ;;  %3986 = vmatpush1.bf16.msra.mxu0 %v17352_v45 }
 0x22f   : > { %3987 = vmatprep.subr.bf16.mxu0 %v17360_v46  ;;  %3933 = vmatpush2.bf16.msra.mxu1 %v17409_v18  ;;  %v3053_v46 = vpop.permute.xlu0 %3052 }
 0x230   : > { %3934 = vmatprep.subr.bf16.mxu1 %v17417_v3  ;;  %v17435_v3 = vld [vmem:[%s21649_s7 + $0x30] sm:$0xff]  }
 0x232   : > { %3988 = vmatpush1.bf16.msra.mxu0 %v17358_v47 }
 0x233   : > { %3989 = vmatprep.subr.bf16.mxu0 %v17366_v49  ;;  %3935 = vmatpush2.bf16.msra.mxu1 %v17415_v21  ;;  %v3058_v49 = vpop.permute.xlu1 %3057  ;;  %v3068_v21 = vpop.permute.xlu0 %3067 }
 0x234   : > { %3936 = vmatprep.subr.bf16.mxu1 %v17423_v22 }
 0x235   : > { %13404 = vmatmul.mubr.msk.bf16.gmra.mxu0 %vm3325_vm0, %v17335_v50 }
 0x236   : > { %3473 = vmatprep.mubr.bf16.mxu0 %v21658_v29  ;;  %3990 = vmatpush1.bf16.msra.mxu0 %v17364_v51 }
 0x237   : > { %3991 = vmatprep.subr.bf16.mxu0 %v17372_v52  ;;  %3937 = vmatpush2.bf16.msra.mxu1 %v17421_v26  ;;  %v3063_v14 = vpop.permute.xlu1 %3062 }
 0x238   : > { %3938 = vmatprep.subr.bf16.mxu1 %v17429_v28 }
 0x23a   : > { %3992 = vmatpush1.bf16.msra.mxu0 %v17370_v53 }
 0x23b   : > { %3993 = vmatprep.subr.bf16.mxu0 %v17378_v63  ;;  %3939 = vmatpush2.bf16.msra.mxu1 %v17427_v23 }
 0x23c   : > { %16296 = vmatprep.subr.bf16.mxu1 %v19568_v31 }
 0x23d   : > { %13405 = vmatmul.mubr.msk.bf16.gmra.mxu0 %vm3325_vm0, %v17336_v55 }
 0x23e   : > { %3994 = vmatpush1.bf16.msra.mxu0 %v17376_v61 }
 0x23f   : > { %3995 = vmatprep.subr.bf16.mxu0 %v17384_v9 }
 0x242   : > { %3996 = vmatpush1.bf16.msra.mxu0 %v17382_v7 }
 0x243   : > { %3997 = vmatprep.subr.bf16.mxu0 %v17390_v5 }
 0x246   : > { %3998 = vmatpush2.bf16.msra.mxu0 %v17388_v13 }
 0x247   : > { %3999 = vmatprep.subr.bf16.mxu0 %v17396_v2 }
 0x24a   : > { %4000 = vmatpush2.bf16.msra.mxu0 %v17394_v58 }
 0x24b   : > { %4001 = vmatprep.subr.bf16.mxu0 %v17402_v59 }
 0x24e   : > { %4002 = vmatpush2.bf16.msra.mxu0 %v17400_v8 }
 0x24f   : > { %4003 = vmatprep.subr.bf16.mxu0 %v17408_v12 }
 0x252   : > { %4004 = vmatpush2.bf16.msra.mxu0 %v17406_v1 }
 0x253   : > { %4005 = vmatprep.subr.bf16.mxu0 %v17414_v17 }
 0x256   : > { %4006 = vmatpush2.bf16.msra.mxu0 %v17412_v19 }
 0x257   : > { %4007 = vmatprep.subr.bf16.mxu0 %v17420_v20  ;;  %v17436_v20 = vld [vmem:[%s21649_s7 + $0x70] sm:$0xff]  }
 0x25a   : > { %4008 = vmatpush2.bf16.msra.mxu0 %v17418_v24 }
 0x25b   : > { %4009 = vmatprep.subr.bf16.mxu0 %v17426_v25 }
 0x25e   : > { %4010 = vmatpush2.bf16.msra.mxu0 %v17424_v27 }
 0x25f   : > { %4011 = vmatprep.subr.bf16.mxu0 %v17432_v48 }
 0x262   : > { %4012 = vmatpush2.bf16.msra.mxu0 %v17430_v30  ;;  %v3073_v30 = vpop.permute.xlu1 %3072 }
 0x263   : > { %16320 = vmatprep.subr.bf16.mxu0 %v19573_v32 }
 0x2be   : > { %v3372_v33 = vpop.f32.mrf.mxu1 }
 0x2bf   : > { %v3373_v42 = vadd.f32 %v3372_v33, %v3048_v40 }
 0x2c0   : > { %v3374_v34 = vpop.f32.mrf.mxu1 }
 0x2c1   : > { %v3375_v45 = vadd.f32 %v3374_v34, %v3048_v40 }
 0x2c2   : > { %v3376_v35 = vpop.f32.mrf.mxu1 }
 0x2c3   : > { %v3377_v50 = vadd.f32 %v3376_v35, %v3053_v46 }
 0x2c4   : > { %v3378_v36 = vpop.f32.mrf.mxu1 }
 0x2c5   : > { %v3379_v56 = vadd.f32 %v3378_v36, %v3053_v46  ;;  %v17437_v36 = vld [vmem:[%s21649_s7 + $0x28] sm:$0xff]  }
 0x2c6   : > { %v3382_v37 = vpop.f32.mrf.mxu1 }
 0x2c7   : > { %v3383_v7 = vadd.f32 %v3382_v37, %v3058_v49  ;;  %v17438_v37 = vld [vmem:[%s21649_s7 + $0x68] sm:$0xff]  }
 0x2c8   : > { %v3384_v38 = vpop.f32.mrf.mxu1 }
 0x2c9   : > { %v3385_v13 = vadd.f32 %v3384_v38, %v3058_v49 }
 0x2ca   : > { %v3386_v39 = vpop.f32.mrf.mxu1 }
 0x2cb   : > { %v3387_v2 = vadd.f32 %v3386_v39, %v3063_v14 }
 0x2cc   : > { %v3388_v41 = vpop.f32.mrf.mxu1 }
 0x2cd   : > { %v3389_v12 = vadd.f32 %v3388_v41, %v3063_v14 }
 0x2ce   : > { %v3392_v43 = vpop.f32.mrf.mxu1 }
 0x2cf   : > { %v3393_v33 = vadd.f32 %v3392_v43, %v3068_v21 }
 0x2d0   : > { %v3394_v52 = vpop.f32.mrf.mxu1 }
 0x2d1   : > { %v3395_v48 = vadd.f32 %v3394_v52, %v3068_v21 }
 0x2d2   : > { %v3396_v9 = vpop.f32.mrf.mxu1 }
 0x2d3   : > { %v3397_v38 = vadd.f32 %v3396_v9, %v3073_v30 }
 0x2d4   : > { %v3398_v59 = vpop.f32.mrf.mxu1 }
 0x2d6   : > { %v3402_v26 = vpop.f32.mrf.mxu1 }
 0x2d8   : > { %v3404_v41 = vpop.f32.mrf.mxu1 }
 0x2e5   : > { %v3445_v44 = vpop.f32.mrf.mxu0 }
 0x2e6   : > { %v3446_v53 = vadd.f32 %v3445_v44, %v3373_v42  ;;  %v3399_v44 = vadd.f32 %v3398_v59, %v3073_v30  ;;  %v17446_v30 = vld [vmem:[%s21649_s7 + $0x48] sm:$0xff]  }
 0x2e7   : > { %v3447_v47 = vpop.f32.mrf.mxu0 }
 0x2e8   : > { %v3448_v51 = vadd.f32 %v3447_v47, %v3375_v45  ;;  %v3484_v10 = vmul.f32 0.01, %v3446_v53  ;;  %v3406_v47 = vpop.f32.mrf.mxu1 }
 0x2e9   : > { %v3449_v55 = vpop.f32.mrf.mxu0 }
 0x2ea   : > { %v3450_v60 = vadd.f32 %v3449_v55, %v3377_v50  ;;  %v3485_v63 = vmul.f32 0.01, %v3448_v51  ;;  %v3500_v4 = vmax.f32 %v3446_v53, %v3484_v10  ;;  %v3078_v55 = vpop.permute.xlu0 %3077 }
 0x2eb   : > { %v3451_v61 = vpop.f32.mrf.mxu0 }
 0x2ec   : > { %v3486_v0 = vmul.f32 0.01, %v3450_v60  ;;  %v3452_v6 = vadd.f32 %v3451_v61, %v3379_v56  ;;  %v3501_v54 = vmax.f32 %v3448_v51, %v3485_v63  ;;  %v3083_v61 = vpop.permute.xlu1 %3082  ;;  %v3405_v63 = vadd.f32 %v3404_v41, %v3078_v55 }
 0x2ed   : > { %v3455_v11 = vpop.f32.mrf.mxu0 }
 0x2ee   : > { %v3487_v5 = vmul.f32 0.01, %v3452_v6  ;;  %v3502_v15 = vmax.f32 %v3450_v60, %v3486_v0  ;;  %v3456_v57 = vadd.f32 %v3455_v11, %v3383_v7  ;;  %v3408_v7 = vpop.f32.mrf.mxu1  ;;  %v3407_v11 = vadd.f32 %v3406_v47, %v3083_v61 }
 0x2ef   : > { %v3457_v58 = vpop.f32.mrf.mxu0 }
 0x2f0   : > { %v3503_v62 = vmax.f32 %v3452_v6, %v3487_v5  ;;  %v3458_v8 = vadd.f32 %v3457_v58, %v3385_v13  ;;  %v3516_v18 = vpack.c.bf16 %v3502_v15, %v3500_v4  ;;  %v3488_v27 = vmul.f32 0.01, %v3456_v57 }
 0x2f1   : > { %v3459_v1 = vpop.f32.mrf.mxu0  ;;  %v3403_v6 = vadd.f32 %v3402_v26, %v3078_v55  ;;  %v17441_v26 = vld [vmem:[%s21649_s7 + $0x18] sm:$0xff]  }
 0x2f2   : > { %v3460_v16 = vadd.f32 %v3459_v1, %v3387_v2  ;;  %v3517_v17 = vpack.c.bf16 %v3503_v62, %v3501_v54  ;;  %v3489_v24 = vmul.f32 0.01, %v3458_v8  ;;  %v3409_v54 = vadd.f32 %v3408_v7, %v3083_v61 }
 0x2f3   : > { %v3461_v19 = vpop.f32.mrf.mxu0 }
 0x2f4   : > { %v3490_v22 = vmul.f32 0.01, %v3460_v16  ;;  %v3462_v25 = vadd.f32 %v3461_v19, %v3389_v12  ;;  %3940 = vmatprep.mubr.bf16.mxu1 %v3517_v17  ;;  %4013 = vmatprep.mubr.bf16.mxu0 %v3517_v17  ;;  %v3505_v39 = vmax.f32 %v3458_v8, %v3489_v24 }
 0x2f5   : > { %v3465_v28 = vpop.f32.mrf.mxu0  ;;  %3941 = vmatmul.mubr.bf16.vlgmr.msra.gmra.mxu1 %v3516_v18  ;;  %4014 = vmatmul.mubr.bf16.vlgmr.msra.gmra.mxu0 %v3516_v18 }
 0x2f6   : > { %v3491_v23 = vmul.f32 0.01, %v3462_v25  ;;  %16297 = vmatpush3.bf16.msra.mxu1 %v19568_v31  ;;  %16321 = vmatpush3.bf16.msra.mxu0 %v19573_v32  ;;  %v3506_v34 = vmax.f32 %v3460_v16, %v3490_v22  ;;  %v3504_v32 = vmax.f32 %v3456_v57, %v3488_v27  ;;  %v3466_v42 = vadd.f32 %v3465_v28, %v3393_v33  ;;  %v17439_v22 = vld [vmem:[%s21649_s7 + $0x20] sm:$0xff]   ;;  %v17442_v27 = vld [vmem:[%s21649_s7 + $0x58] sm:$0xff]   ;;  %v17443_v28 = vld [vmem:[%s21649_s7 + $0x10] sm:$0xff]  }
 0x2f7   : > { %v3467_v35 = vpop.f32.mrf.mxu0  ;;  %16298 = vmatprep.subr.bf16.mxu1 %v17435_v3  ;;  %16322 = vmatprep.subr.bf16.mxu0 %v17436_v20  ;;  %v17447_v33 = vld [vmem:[%s21649_s7] sm:$0xff]  }
 0x2f8   : > { %v3507_v40 = vmax.f32 %v3462_v25, %v3491_v23  ;;  %v3468_v31 = vadd.f32 %v3467_v35, %v3395_v48  ;;  %v3518_v50 = vpack.c.bf16 %v3506_v34, %v3504_v32  ;;  %v3492_v56 = vmul.f32 0.01, %v3466_v42  ;;  %v17440_v25 = vld [vmem:[%s21649_s7 + $0x60] sm:$0xff]   ;;  %v17444_v48 = vld [vmem:[%s21649_s7 + $0x50] sm:$0xff]   ;;  %v17445_v23 = vld [vmem:[%s21649_s7 + $0x8] sm:$0xff]  }
 0x2f9   : > { %v3469_v43 = vpop.f32.mrf.mxu0  ;;  %v17448_v34 = vld [vmem:[%s21649_s7 + $0x40] sm:$0xff]   ;;  %v17449_v35 = vld [vmem:[%s21649_s7 + $0xb8] sm:$0xff]  }
 0x2fa   : > { %v3470_v45 = vadd.f32 %v3469_v43, %v3397_v38  ;;  %v3519_v46 = vpack.c.bf16 %v3507_v40, %v3505_v39  ;;  %16299 = vmatpush3.bf16.msra.mxu1 %v17435_v3  ;;  %16323 = vmatpush3.bf16.msra.mxu0 %v17436_v20  ;;  %v3493_v51 = vmul.f32 0.01, %v3468_v31  ;;  %v3508_v15 = vmax.f32 %v3466_v42, %v3492_v56 }
 0x2fb   : > { %v3471_v49 = vpop.f32.mrf.mxu0  ;;  %16300 = vmatprep.subr.bf16.mxu1 %v17437_v36  ;;  %16324 = vmatprep.subr.bf16.mxu0 %v17438_v37 }
 0x2fc   : > { %v3494_v52 = vmul.f32 0.01, %v3470_v45  ;;  %v3472_v53 = vadd.f32 %v3471_v49, %v3399_v44  ;;  %3950 = vmatprep.mubr.bf16.mxu1 %v3519_v46  ;;  %4023 = vmatprep.mubr.bf16.mxu0 %v3519_v46  ;;  %v3509_v13 = vmax.f32 %v3468_v31, %v3493_v51 }
 0x2fd   : > { %v3475_v60 = vpop.f32.mrf.mxu0  ;;  %3951 = vmatmul.mubr.bf16.gmra.mxu1 %v3518_v50  ;;  %4024 = vmatmul.mubr.bf16.gmra.mxu0 %v3518_v50 }
 0x2fe   : > { %v3495_v0 = vmul.f32 0.01, %v3472_v53  ;;  %16301 = vmatpush3.bf16.msra.mxu1 %v17437_v36  ;;  %16325 = vmatpush3.bf16.msra.mxu0 %v17438_v37  ;;  %v3510_v9 = vmax.f32 %v3470_v45, %v3494_v52  ;;  %v3476_v58 = vadd.f32 %v3475_v60, %v3403_v6  ;;  %v17450_v36 = vld [vmem:[%s21649_s7 + $0xf8] sm:$0xff]  }
 0x2ff   : > { %v3477_v10 = vpop.f32.mrf.mxu0  ;;  %16302 = vmatprep.subr.bf16.mxu1 %v17439_v22  ;;  %16326 = vmatprep.subr.bf16.mxu0 %v17440_v25 }
 0x300   : > { %v3511_v5 = vmax.f32 %v3472_v53, %v3495_v0  ;;  %v3478_v14 = vadd.f32 %v3477_v10, %v3405_v63  ;;  %v3520_v4 = vpack.c.bf16 %v3510_v9, %v3508_v15  ;;  %v3496_v16 = vmul.f32 0.01, %v3476_v58 }
 0x301   : > { %v3479_v2 = vpop.f32.mrf.mxu0 }
 0x302   : > { %v3480_v62 = vadd.f32 %v3479_v2, %v3407_v11  ;;  %v3521_v8 = vpack.c.bf16 %v3511_v5, %v3509_v13  ;;  %v3497_v57 = vmul.f32 0.01, %v3478_v14  ;;  %v3512_v20 = vmax.f32 %v3476_v58, %v3496_v16  ;;  %16303 = vmatpush3.bf16.msra.mxu1 %v17439_v22  ;;  %16327 = vmatpush3.bf16.msra.mxu0 %v17440_v25  ;;  %v17451_v2 = vld [vmem:[%s21649_s7 + $0xb0] sm:$0xff]  }
 0x303   : > { %v3481_v59 = vpop.f32.mrf.mxu0  ;;  %16304 = vmatprep.subr.bf16.mxu1 %v17441_v26  ;;  %16328 = vmatprep.subr.bf16.mxu0 %v17442_v27 }
 0x304   : > { %v3498_v1 = vmul.f32 0.01, %v3480_v62  ;;  %v3482_v12 = vadd.f32 %v3481_v59, %v3409_v54  ;;  %3960 = vmatprep.mubr.bf16.mxu1 %v3521_v8  ;;  %4033 = vmatprep.mubr.bf16.mxu0 %v3521_v8  ;;  %v3513_v19 = vmax.f32 %v3478_v14, %v3497_v57  ;;  %v17452_v54 = vld [vmem:[%s21649_s7 + $0xf0] sm:$0xff]  }
 0x305   : > { %3961 = vmatmul.mubr.bf16.gmra.mxu1 %v3520_v4  ;;  %4034 = vmatmul.mubr.bf16.gmra.mxu0 %v3520_v4 }
 0x306   : > { %v3499_v17 = vmul.f32 0.01, %v3482_v12  ;;  %v3514_v18 = vmax.f32 %v3480_v62, %v3498_v1  ;;  %16305 = vmatpush3.bf16.msra.mxu1 %v17441_v26  ;;  %16329 = vmatpush3.bf16.msra.mxu0 %v17442_v27  ;;  %v17455_v26 = vld [vmem:[%s21649_s7 + $0xa0] sm:$0xff]  }
 0x307   : > { %16306 = vmatprep.subr.bf16.mxu1 %v17443_v28  ;;  %16330 = vmatprep.subr.bf16.mxu0 %v17444_v48  ;;  %v17456_v27 = vld [vmem:[%s21649_s7 + $0xe0] sm:$0xff]  }
 0x308   : > { %v3515_v3 = vmax.f32 %v3482_v12, %v3499_v17  ;;  %v3522_v24 = vpack.c.bf16 %v3514_v18, %v3512_v20  ;;  %v17453_v17 = vld [vmem:[%s21649_s7 + $0xa8] sm:$0xff]  }
 0x309   : > { %v17454_v18 = vld [vmem:[%s21649_s7 + $0xe8] sm:$0xff]  }
 0x30a   : > { %v3523_v21 = vpack.c.bf16 %v3515_v3, %v3513_v19  ;;  %16307 = vmatpush3.bf16.msra.mxu1 %v17443_v28  ;;  %16331 = vmatpush3.bf16.msra.mxu0 %v17444_v48 }
 0x30b   : > { %16308 = vmatprep.subr.bf16.mxu1 %v17445_v23  ;;  %16332 = vmatprep.subr.bf16.mxu0 %v17446_v30 }
 0x30c   : > { %3970 = vmatprep.mubr.bf16.mxu1 %v3523_v21  ;;  %4043 = vmatprep.mubr.bf16.mxu0 %v3523_v21 }
 0x30d   : > { %3971 = vmatmul.mubr.bf16.gmra.mxu1 %v3522_v24  ;;  %4044 = vmatmul.mubr.bf16.gmra.mxu0 %v3522_v24 }
 0x30e   : > { %16309 = vmatpush3.bf16.msra.mxu1 %v17445_v23  ;;  %16333 = vmatpush3.bf16.msra.mxu0 %v17446_v30 }
 0x30f   : > { %16310 = vmatprep.subr.bf16.mxu1 %v17447_v33  ;;  %16334 = vmatprep.subr.bf16.mxu0 %v17448_v34 }
 0x312   : > { %16311 = vmatpush3.bf16.msra.mxu1 %v17447_v33  ;;  %16335 = vmatpush3.bf16.msra.mxu0 %v17448_v34 }
 0x313   : > { %16344 = vmatprep.subr.bf16.mxu1 %v17449_v35  ;;  %16368 = vmatprep.subr.bf16.mxu0 %v17450_v36 }
 0x3b5   : > { %v3942_v37 = vpop.f32.mrf.mxu1  ;;  %v4015_v38 = vpop.f32.mrf.mxu0 }
 0x3b7   : > { %v3944_v39 = vpop.f32.mrf.mxu1  ;;  %v4017_v40 = vpop.f32.mrf.mxu0 }
 0x3b8   : > { %v4054_v32 = vmax.f32 %v3942_v37, %v3944_v39  ;;  %v4062_v42 = vmax.f32 %v4015_v38, %v4017_v40  ;;  %v17457_v37 = vld [vmem:[%s21649_s7 + $0x98] sm:$0xff]  }
 0x3b9   : > { %v3946_v31 = vpop.f32.mrf.mxu1  ;;  %v4019_v41 = vpop.f32.mrf.mxu0  ;;  %v17458_v38 = vld [vmem:[%s21649_s7 + $0xd8] sm:$0xff]  }
 0x3ba   : > { %v4070_v50 = vmax.f32 %v4054_v32, %v4062_v42  ;;  %v17460_v32 = vld [vmem:[%s21649_s7 + $0xd0] sm:$0xff]   ;;  %v17461_v42 = vld [vmem:[%s21649_s7 + $0x88] sm:$0xff]  }
 0x3bb   : > { %v3948_v43 = vpop.f32.mrf.mxu1  ;;  %v4021_v44 = vpop.f32.mrf.mxu0 }
 0x3bc   : > { %v4055_v45 = vmax.f32 %v3946_v31, %v3948_v43  ;;  %v4063_v46 = vmax.f32 %v4019_v41, %v4021_v44  ;;  %v17459_v41 = vld [vmem:[%s21649_s7 + $0x90] sm:$0xff]   ;;  %v17462_v43 = vld [vmem:[%s21649_s7 + $0xc8] sm:$0xff]   ;;  %v17463_v44 = vld [vmem:[%s21649_s7 + $0x80] sm:$0xff]  }
 0x3bd   : > { %v3952_v47 = vpop.f32.mrf.mxu1  ;;  %v4025_v49 = vpop.f32.mrf.mxu0 }
 0x3be   : > { %v4071_v51 = vmax.f32 %v4055_v45, %v4063_v46  ;;  %v17464_v45 = vld [vmem:[%s21649_s7 + $0xc0] sm:$0xff]   ;;  %v17465_v46 = vld [vmem:[%s21649_s7 + $0x138] sm:$0xff]  }
 0x3bf   : > { %v3954_v52 = vpop.f32.mrf.mxu1  ;;  %v4027_v53 = vpop.f32.mrf.mxu0 }
 0x3c0   : > { %v19627_v55 = vpack.c.bf16 %v4071_v51, %v4070_v50  ;;  %v4056_v61 = vmax.f32 %v3952_v47, %v3954_v52  ;;  %v4064_v63 = vmax.f32 %v4025_v49, %v4027_v53  ;;  %v17466_v47 = vld [vmem:[%s21649_s7 + $0x178] sm:$0xff]   ;;  %v17467_v49 = vld [vmem:[%s21649_s7 + $0x130] sm:$0xff]   ;;  %v17469_v51 = vld [vmem:[%s21649_s7 + $0x128] sm:$0xff]  }
 0x3c1   : > { %v3956_v56 = vpop.f32.mrf.mxu1  ;;  %v4029_v60 = vpop.f32.mrf.mxu0  ;;  %v17468_v50 = vld [vmem:[%s21649_s7 + $0x170] sm:$0xff]   ;;  %v17470_v52 = vld [vmem:[%s21649_s7 + $0x168] sm:$0xff]   ;;  %v17471_v53 = vld [vmem:[%s21649_s7 + $0x120] sm:$0xff]  }
 0x3c2   : > { %16312 = vmatprep.mubr.bf16.mxu1 %v19627_v55  ;;  %16336 = vmatprep.mubr.bf16.mxu0 %v19627_v55  ;;  %v4072_v13 = vmax.f32 %v4056_v61, %v4064_v63  ;;  %v17474_v61 = vld [vmem:[%s21649_s7 + $0x158] sm:$0xff]   ;;  %v17475_v63 = vld [vmem:[%s21649_s7 + $0x110] sm:$0xff]  }
 0x3c3   : > { %v3958_v0 = vpop.f32.mrf.mxu1  ;;  %v4031_v6 = vpop.f32.mrf.mxu0 }
 0x3c4   : > { %v4057_v7 = vmax.f32 %v3956_v56, %v3958_v0  ;;  %v4065_v9 = vmax.f32 %v4029_v60, %v4031_v6  ;;  %v17472_v56 = vld [vmem:[%s21649_s7 + $0x160] sm:$0xff]   ;;  %v17473_v60 = vld [vmem:[%s21649_s7 + $0x118] sm:$0xff]   ;;  %v17476_v0 = vld [vmem:[%s21649_s7 + $0x150] sm:$0xff]  }
 0x3c5   : > { %v3962_v10 = vpop.f32.mrf.mxu1  ;;  %v4035_v11 = vpop.f32.mrf.mxu0  ;;  %v17477_v6 = vld [vmem:[%s21649_s7 + $0x108] sm:$0xff]  }
 0x3c6   : > { %v4073_v5 = vmax.f32 %v4057_v7, %v4065_v9  ;;  %v17478_v7 = vld [vmem:[%s21649_s7 + $0x148] sm:$0xff]   ;;  %v17479_v9 = vld [vmem:[%s21649_s7 + $0x100] sm:$0xff]  }
 0x3c7   : > { %v3964_v14 = vpop.f32.mrf.mxu1  ;;  %v4037_v15 = vpop.f32.mrf.mxu0 }
 0x3c8   : > { %v19631_v58 = vpack.c.bf16 %v4073_v5, %v4072_v13  ;;  %v4058_v59 = vmax.f32 %v3962_v10, %v3964_v14  ;;  %v4066_v4 = vmax.f32 %v4035_v11, %v4037_v15  ;;  %v17480_v10 = vld [vmem:[%s21649_s7 + $0x140] sm:$0xff]   ;;  %v17481_v11 = vld [vmem:[%s21649_s7 + $0x1b8] sm:$0xff]   ;;  %v17483_v5 = vld [vmem:[%s21649_s7 + $0x1b0] sm:$0xff]  }
 0x3c9   : > { %v3966_v62 = vpop.f32.mrf.mxu1  ;;  %v4039_v8 = vpop.f32.mrf.mxu0  ;;  %v17482_v13 = vld [vmem:[%s21649_s7 + $0x1f8] sm:$0xff]   ;;  %v17484_v14 = vld [vmem:[%s21649_s7 + $0x1f0] sm:$0xff]   ;;  %v17485_v15 = vld [vmem:[%s21649_s7 + $0x1a8] sm:$0xff]  }
 0x3ca   : > { %16313 = vmatmul.mubr.bf16.vlgmr.msra.gmra.mxu1 %v19631_v58  ;;  %16337 = vmatmul.mubr.bf16.vlgmr.msra.gmra.mxu0 %v19631_v58  ;;  %v4074_v20 = vmax.f32 %v4058_v59, %v4066_v4  ;;  %v17490_v59 = vld [vmem:[%s21649_s7 + $0x1d8] sm:$0xff]   ;;  %v17491_v4 = vld [vmem:[%s21649_s7 + $0x190] sm:$0xff]  }
 0x3cb   : > { %16345 = vmatpush3.bf16.msra.mxu1 %v17449_v35  ;;  %16369 = vmatpush3.bf16.msra.mxu0 %v17450_v36  ;;  %v3968_v57 = vpop.f32.mrf.mxu1  ;;  %v4041_v1 = vpop.f32.mrf.mxu0 }
 0x3cc   : > { %v4059_v12 = vmax.f32 %v3966_v62, %v3968_v57  ;;  %v4067_v16 = vmax.f32 %v4039_v8, %v4041_v1  ;;  %16346 = vmatprep.subr.bf16.mxu1 %v17451_v2  ;;  %16370 = vmatprep.subr.bf16.mxu0 %v17452_v54  ;;  %v17488_v62 = vld [vmem:[%s21649_s7 + $0x1e0] sm:$0xff]   ;;  %v17489_v8 = vld [vmem:[%s21649_s7 + $0x198] sm:$0xff]   ;;  %v17492_v57 = vld [vmem:[%s21649_s7 + $0x1d0] sm:$0xff]  }
 0x3cd   : > { %v3972_v19 = vpop.f32.mrf.mxu1  ;;  %v4045_v3 = vpop.f32.mrf.mxu0  ;;  %v17493_v1 = vld [vmem:[%s21649_s7 + $0x188] sm:$0xff]  }
 0x3ce   : > { %v4075_v21 = vmax.f32 %v4059_v12, %v4067_v16  ;;  %v17494_v12 = vld [vmem:[%s21649_s7 + $0x1c8] sm:$0xff]   ;;  %v17495_v16 = vld [vmem:[%s21649_s7 + $0x180] sm:$0xff]  }
 0x3cf   : > { %16347 = vmatpush3.bf16.msra.mxu1 %v17451_v2  ;;  %16371 = vmatpush3.bf16.msra.mxu0 %v17452_v54  ;;  %v3974_v24 = vpop.f32.mrf.mxu1  ;;  %v4047_v22 = vpop.f32.mrf.mxu0  ;;  %v17486_v2 = vld [vmem:[%s21649_s7 + $0x1e8] sm:$0xff]   ;;  %v17487_v54 = vld [vmem:[%s21649_s7 + $0x1a0] sm:$0xff]  }
 0x3d0   : > { %v19647_v25 = vpack.c.bf16 %v4075_v21, %v4074_v20  ;;  %16348 = vmatprep.subr.bf16.mxu1 %v17453_v17  ;;  %16372 = vmatprep.subr.bf16.mxu0 %v17454_v18  ;;  %v4060_v23 = vmax.f32 %v3972_v19, %v3974_v24  ;;  %v4068_v30 = vmax.f32 %v4045_v3, %v4047_v22  ;;  %v17498_v19 = vld [vmem:[%s21649_s7 + $0x230] sm:$0xff]   ;;  %v17499_v3 = vld [vmem:[%s21649_s7 + $0x228] sm:$0xff]   ;;  %v17500_v20 = vld [vmem:[%s21649_s7 + $0x220] sm:$0xff]  }
 0x3d1   : > { %v3976_v28 = vpop.f32.mrf.mxu1  ;;  %v4049_v48 = vpop.f32.mrf.mxu0  ;;  %v17501_v21 = vld [vmem:[%s21649_s7 + $0x218] sm:$0xff]   ;;  %v17502_v24 = vld [vmem:[%s21649_s7 + $0x210] sm:$0xff]   ;;  %v17503_v22 = vld [vmem:[%s21649_s7 + $0x208] sm:$0xff]  }
 0x3d2   : > { %16316 = vmatprep.mubr.bf16.mxu1 %v19647_v25  ;;  %16340 = vmatprep.mubr.bf16.mxu0 %v19647_v25  ;;  %v4076_v39 = vmax.f32 %v4060_v23, %v4068_v30 }
 0x3d3   : > { %16349 = vmatpush3.bf16.msra.mxu1 %v17453_v17  ;;  %16373 = vmatpush3.bf16.msra.mxu0 %v17454_v18  ;;  %v3978_v33 = vpop.f32.mrf.mxu1  ;;  %v4051_v34 = vpop.f32.mrf.mxu0  ;;  %v17496_v17 = vld [vmem:[%s21649_s7 + $0x1c0] sm:$0xff]   ;;  %v17497_v18 = vld [vmem:[%s21649_s7 + $0x238] sm:$0xff]  }
 0x3d4   : > { %v4061_v35 = vmax.f32 %v3976_v28, %v3978_v33  ;;  %v4069_v36 = vmax.f32 %v4049_v48, %v4051_v34  ;;  %16350 = vmatprep.subr.bf16.mxu1 %v17455_v26  ;;  %16374 = vmatprep.subr.bf16.mxu0 %v17456_v27 }
 0x3d6   : > { %v4077_v40 = vmax.f32 %v4061_v35, %v4069_v36 }
 0x3d7   : > { %16351 = vmatpush3.bf16.msra.mxu1 %v17455_v26  ;;  %16375 = vmatpush3.bf16.msra.mxu0 %v17456_v27  ;;  %v17523_v26 = vld [vmem:[%s21647_s5 + $0x4] ss:$20 sps:$4 sm:$0xff]  }
 0x3d8   : > { %v19663_v31 = vpack.c.bf16 %v4077_v40, %v4076_v39  ;;  %16352 = vmatprep.subr.bf16.mxu1 %v17457_v37  ;;  %16376 = vmatprep.subr.bf16.mxu0 %v17458_v38 }
 0x3da   : > { %16317 = vmatmul.mubr.bf16.gmra.mxu1 %v19663_v31  ;;  %16341 = vmatmul.mubr.bf16.gmra.mxu0 %v19663_v31 }
 0x3db   : > { %16353 = vmatpush3.bf16.msra.mxu1 %v17457_v37  ;;  %16377 = vmatpush3.bf16.msra.mxu0 %v17458_v38 }
 0x3dc   : > { %16360 = vmatprep.mubr.bf16.mxu1 %v19627_v55  ;;  %16384 = vmatprep.mubr.bf16.mxu0 %v19627_v55 }
 0x3dd   : > { %16354 = vmatprep.subr.bf16.mxu1 %v17459_v41  ;;  %16378 = vmatprep.subr.bf16.mxu0 %v17460_v32 }
 0x3df   : > { %16355 = vmatpush3.bf16.msra.mxu1 %v17459_v41  ;;  %16379 = vmatpush3.bf16.msra.mxu0 %v17460_v32 }
 0x3e0   : > { %16356 = vmatprep.subr.bf16.mxu1 %v17461_v42  ;;  %16380 = vmatprep.subr.bf16.mxu0 %v17462_v43 }
 0x3e3   : > { %16357 = vmatpush3.bf16.msra.mxu1 %v17461_v42  ;;  %16381 = vmatpush3.bf16.msra.mxu0 %v17462_v43 }
 0x3e4   : > { %16358 = vmatprep.subr.bf16.mxu1 %v17463_v44  ;;  %16382 = vmatprep.subr.bf16.mxu0 %v17464_v45 }
 0x3e7   : > { %16359 = vmatpush3.bf16.msra.mxu1 %v17463_v44  ;;  %16383 = vmatpush3.bf16.msra.mxu0 %v17464_v45 }
 0x3e8   : > { %16392 = vmatprep.subr.bf16.mxu1 %v17465_v46  ;;  %16416 = vmatprep.subr.bf16.mxu0 %v17466_v47 }
 0x3ea   : > { %16361 = vmatmul.mubr.bf16.vlgmr.msra.gmra.mxu1 %v19631_v58  ;;  %16385 = vmatmul.mubr.bf16.vlgmr.msra.gmra.mxu0 %v19631_v58 }
 0x3eb   : > { %16364 = vmatprep.mubr.bf16.mxu1 %v19647_v25  ;;  %16388 = vmatprep.mubr.bf16.mxu0 %v19647_v25 }
 0x3ec   : > { %16393 = vmatpush3.bf16.msra.mxu1 %v17465_v46  ;;  %16417 = vmatpush3.bf16.msra.mxu0 %v17466_v47 }
 0x3ed   : > { %16394 = vmatprep.subr.bf16.mxu1 %v17467_v49  ;;  %16418 = vmatprep.subr.bf16.mxu0 %v17468_v50 }
 0x3f0   : > { %16395 = vmatpush3.bf16.msra.mxu1 %v17467_v49  ;;  %16419 = vmatpush3.bf16.msra.mxu0 %v17468_v50  ;;  %v17563_v49 = vld [vmem:[%s21647_s5 + $0xc] ss:$20 sps:$4 sm:$0xff]  }
 0x3f1   : > { %16396 = vmatprep.subr.bf16.mxu1 %v17469_v51  ;;  %16420 = vmatprep.subr.bf16.mxu0 %v17470_v52 }
 0x3f2   : > { %16365 = vmatmul.mubr.bf16.gmra.mxu1 %v19663_v31  ;;  %16389 = vmatmul.mubr.bf16.gmra.mxu0 %v19663_v31 }
 0x3f3   : > { %16408 = vmatprep.mubr.bf16.mxu1 %v19627_v55  ;;  %16432 = vmatprep.mubr.bf16.mxu0 %v19627_v55 }
 0x3f4   : > { %16397 = vmatpush3.bf16.msra.mxu1 %v17469_v51  ;;  %16421 = vmatpush3.bf16.msra.mxu0 %v17470_v52 }
 0x3f5   : > { %16398 = vmatprep.subr.bf16.mxu1 %v17471_v53  ;;  %16422 = vmatprep.subr.bf16.mxu0 %v17472_v56 }
 0x3f8   : > { %16399 = vmatpush3.bf16.msra.mxu1 %v17471_v53  ;;  %16423 = vmatpush3.bf16.msra.mxu0 %v17472_v56 }
 0x3f9   : > { %16400 = vmatprep.subr.bf16.mxu1 %v17473_v60  ;;  %16424 = vmatprep.subr.bf16.mxu0 %v17474_v61 }
 0x3fc   : > { %16401 = vmatpush3.bf16.msra.mxu1 %v17473_v60  ;;  %16425 = vmatpush3.bf16.msra.mxu0 %v17474_v61 }
 0x3fd   : > { %16402 = vmatprep.subr.bf16.mxu1 %v17475_v63  ;;  %16426 = vmatprep.subr.bf16.mxu0 %v17476_v0 }
 0x400   : > { %16403 = vmatpush3.bf16.msra.mxu1 %v17475_v63  ;;  %16427 = vmatpush3.bf16.msra.mxu0 %v17476_v0 }
 0x401   : > { %16404 = vmatprep.subr.bf16.mxu1 %v17477_v6  ;;  %16428 = vmatprep.subr.bf16.mxu0 %v17478_v7 }
 0x404   : > { %16405 = vmatpush3.bf16.msra.mxu1 %v17477_v6  ;;  %16429 = vmatpush3.bf16.msra.mxu0 %v17478_v7 }
 0x405   : > { %16406 = vmatprep.subr.bf16.mxu1 %v17479_v9  ;;  %16430 = vmatprep.subr.bf16.mxu0 %v17480_v10 }
 0x408   : > { %16407 = vmatpush3.bf16.msra.mxu1 %v17479_v9  ;;  %16431 = vmatpush3.bf16.msra.mxu0 %v17480_v10 }
 0x409   : > { %16440 = vmatprep.subr.bf16.mxu1 %v17481_v11  ;;  %16464 = vmatprep.subr.bf16.mxu0 %v17482_v13 }
 0x40b   : > { %16409 = vmatmul.mubr.bf16.vlgmr.msra.gmra.mxu1 %v19631_v58  ;;  %16433 = vmatmul.mubr.bf16.vlgmr.msra.gmra.mxu0 %v19631_v58 }
 0x40c   : > { %16412 = vmatprep.mubr.bf16.mxu1 %v19647_v25  ;;  %16436 = vmatprep.mubr.bf16.mxu0 %v19647_v25 }
 0x40d   : > { %16441 = vmatpush3.bf16.msra.mxu1 %v17481_v11  ;;  %16465 = vmatpush3.bf16.msra.mxu0 %v17482_v13 }
 0x40e   : > { %16442 = vmatprep.subr.bf16.mxu1 %v17483_v5  ;;  %16466 = vmatprep.subr.bf16.mxu0 %v17484_v14 }
 0x411   : > { %16443 = vmatpush3.bf16.msra.mxu1 %v17483_v5  ;;  %16467 = vmatpush3.bf16.msra.mxu0 %v17484_v14 }
 0x412   : > { %16444 = vmatprep.subr.bf16.mxu1 %v17485_v15  ;;  %16468 = vmatprep.subr.bf16.mxu0 %v17486_v2 }
 0x413   : > { %16413 = vmatmul.mubr.bf16.gmra.mxu1 %v19663_v31  ;;  %16437 = vmatmul.mubr.bf16.gmra.mxu0 %v19663_v31 }
 0x414   : > { %16456 = vmatprep.mubr.bf16.mxu1 %v19627_v55  ;;  %16480 = vmatprep.mubr.bf16.mxu0 %v19627_v55 }
 0x415   : > { %16445 = vmatpush3.bf16.msra.mxu1 %v17485_v15  ;;  %16469 = vmatpush3.bf16.msra.mxu0 %v17486_v2 }
 0x416   : > { %16446 = vmatprep.subr.bf16.mxu1 %v17487_v54  ;;  %16470 = vmatprep.subr.bf16.mxu0 %v17488_v62 }
 0x419   : > { %16447 = vmatpush3.bf16.msra.mxu1 %v17487_v54  ;;  %16471 = vmatpush3.bf16.msra.mxu0 %v17488_v62 }
 0x41a   : > { %16448 = vmatprep.subr.bf16.mxu1 %v17489_v8  ;;  %16472 = vmatprep.subr.bf16.mxu0 %v17490_v59 }
 0x41d   : > { %16449 = vmatpush3.bf16.msra.mxu1 %v17489_v8  ;;  %16473 = vmatpush3.bf16.msra.mxu0 %v17490_v59 }
 0x41e   : > { %16450 = vmatprep.subr.bf16.mxu1 %v17491_v4  ;;  %16474 = vmatprep.subr.bf16.mxu0 %v17492_v57 }
 0x421   : > { %16451 = vmatpush3.bf16.msra.mxu1 %v17491_v4  ;;  %16475 = vmatpush3.bf16.msra.mxu0 %v17492_v57 }
 0x422   : > { %16452 = vmatprep.subr.bf16.mxu1 %v17493_v1  ;;  %16476 = vmatprep.subr.bf16.mxu0 %v17494_v12 }
 0x425   : > { %16453 = vmatpush3.bf16.msra.mxu1 %v17493_v1  ;;  %16477 = vmatpush3.bf16.msra.mxu0 %v17494_v12 }
 0x426   : > { %16454 = vmatprep.subr.bf16.mxu1 %v17495_v16  ;;  %16478 = vmatprep.subr.bf16.mxu0 %v17496_v17 }
 0x429   : > { %16455 = vmatpush3.bf16.msra.mxu1 %v17495_v16  ;;  %16479 = vmatpush3.bf16.msra.mxu0 %v17496_v17 }
 0x42a   : > { %16488 = vmatprep.subr.bf16.mxu1 %v17497_v18 }
 0x42c   : > { %16457 = vmatmul.mubr.bf16.vlgmr.msra.gmra.mxu1 %v19631_v58  ;;  %16481 = vmatmul.mubr.bf16.vlgmr.msra.gmra.mxu0 %v19631_v58 }
 0x42d   : > { %16460 = vmatprep.mubr.bf16.mxu1 %v19647_v25  ;;  %16484 = vmatprep.mubr.bf16.mxu0 %v19647_v25 }
 0x42e   : > { %16489 = vmatpush3.bf16.msra.mxu1 %v17497_v18 }
 0x42f   : > { %16490 = vmatprep.subr.bf16.mxu1 %v17498_v19 }
 0x432   : > { %16491 = vmatpush3.bf16.msra.mxu1 %v17498_v19 }
 0x433   : > { %16492 = vmatprep.subr.bf16.mxu1 %v17499_v3 }
 0x434   : > { %16461 = vmatmul.mubr.bf16.gmra.mxu1 %v19663_v31  ;;  %16485 = vmatmul.mubr.bf16.gmra.mxu0 %v19663_v31 }
 0x435   : > { %16504 = vmatprep.mubr.bf16.mxu1 %v19627_v55  ;;  %v17504_v55 = vld [vmem:[%s21649_s7 + $0x200] sm:$0xff]   ;;  %6300 = vmatprep.mubr.bf16.mxu0 %v17523_v26 }
 0x436   : > { %16493 = vmatpush3.bf16.msra.mxu1 %v17499_v3 }
 0x437   : > { %16494 = vmatprep.subr.bf16.mxu1 %v17500_v20 }
 0x43a   : > { %16495 = vmatpush3.bf16.msra.mxu1 %v17500_v20 }
 0x43b   : > { %16496 = vmatprep.subr.bf16.mxu1 %v17501_v21 }
 0x43e   : > { %16497 = vmatpush3.bf16.msra.mxu1 %v17501_v21 }
 0x43f   : > { %16498 = vmatprep.subr.bf16.mxu1 %v17502_v24 }
 0x442   : > { %16499 = vmatpush3.bf16.msra.mxu1 %v17502_v24 }
 0x443   : > { %16500 = vmatprep.subr.bf16.mxu1 %v17503_v22 }
 0x446   : > { %16501 = vmatpush3.bf16.msra.mxu1 %v17503_v22 }
 0x447   : > { %16502 = vmatprep.subr.bf16.mxu1 %v17504_v55 }
 0x44a   : > { %16503 = vmatpush3.bf16.msra.mxu1 %v17504_v55 }
 0x44d   : > { %16505 = vmatmul.mubr.bf16.vlgmr.msra.gmra.mxu1 %v19631_v58 }
 0x44e   : > { %16508 = vmatprep.mubr.bf16.mxu1 %v19647_v25 }
 0x455   : > { %16509 = vmatmul.mubr.bf16.gmra.mxu1 %v19663_v31 }
 0x456   : > { %6397 = vmatprep.mubr.bf16.mxu1 %v17563_v49 }
 0x48a   : > { %v16314_v27 = vpop.f32.mrf.mxu1  ;;  %v16338_v28 = vpop.f32.mrf.mxu0 }
 0x48c   : > { %v4180_v48 = vpop.f32.mrf.mxu1  ;;  %v4350_v23 = vpop.f32.mrf.mxu0 }
 0x48e   : > { %v16315_v30 = vpop.f32.mrf.mxu1  ;;  %v16339_v33 = vpop.f32.mrf.mxu0 }
 0x48f   : > { %v14714_v34 = vpack.c.bf16 %v16315_v30, %v16314_v27  ;;  %v14734_v35 = vpack.c.bf16 %v16339_v33, %v16338_v28 }
 0x490   : > { %v4183_v36 = vpop.f32.mrf.mxu1  ;;  %v4353_v37 = vpop.f32.mrf.mxu0 }
 0x491   : > { %15246 = vst [vmem:[#allocation3 + $0x8] sm:$0xff] %v14714_v34   ;;  %15250 = vst [vmem:[#allocation3 + $0x28] sm:$0xff] %v14734_v35   ;;  %v14709_v58 = vpack.c.bf16 %v4183_v36, %v4180_v48  ;;  %v14729_v25 = vpack.c.bf16 %v4353_v37, %v4350_v23 }
 0x493   : > { %14710 = vst [vmem:[#allocation3] sm:$0xff] %v14709_v58   ;;  %15249 = vst [vmem:[#allocation3 + $0x20] sm:$0xff] %v14729_v25  }
 0x498   : > { %v17510_v18 = vld [vmem:[#allocation3 + $0x28] sm:$0xff]  }
 0x49a   : > { %v16318_v38 = vpop.f32.mrf.mxu1  ;;  %v16342_v39 = vpop.f32.mrf.mxu0  ;;  %v17512_v22 = vld [vmem:[#allocation3 + $0x20] sm:$0xff]  }
 0x49c   : > { %v4196_v40 = vpop.f32.mrf.mxu1  ;;  %v4366_v31 = vpop.f32.mrf.mxu0 }
 0x49e   : > { %v16319_v41 = vpop.f32.mrf.mxu1  ;;  %v16343_v32 = vpop.f32.mrf.mxu0 }
 0x49f   : > { %v14724_v42 = vpack.c.bf16 %v16319_v41, %v16318_v38  ;;  %v14744_v43 = vpack.c.bf16 %v16343_v32, %v16342_v39 }
 0x4a0   : > { %v4199_v44 = vpop.f32.mrf.mxu1  ;;  %v4369_v45 = vpop.f32.mrf.mxu0 }
 0x4a1   : > { %15248 = vst [vmem:[#allocation3 + $0x18] sm:$0xff] %v14724_v42   ;;  %15252 = vst [vmem:[#allocation3 + $0x38] sm:$0xff] %v14744_v43   ;;  %v14719_v46 = vpack.c.bf16 %v4199_v44, %v4196_v40  ;;  %v14739_v47 = vpack.c.bf16 %v4369_v45, %v4366_v31  ;;  %v17518_v45 = vld [vmem:[#allocation3 + $0x8] sm:$0xff]  }
 0x4a3   : > { %15247 = vst [vmem:[#allocation3 + $0x10] sm:$0xff] %v14719_v46   ;;  %15251 = vst [vmem:[#allocation3 + $0x30] sm:$0xff] %v14739_v47  }
 0x4a8   : > { %v17506_v1 = vld [vmem:[#allocation3 + $0x38] sm:$0xff]  }
 0x4a9   : > { %v17514_v33 = vld [vmem:[#allocation3 + $0x18] sm:$0xff]  }
 0x4aa   : > { %v16362_v50 = vpop.f32.mrf.mxu1  ;;  %v16386_v51 = vpop.f32.mrf.mxu0  ;;  %v17508_v16 = vld [vmem:[#allocation3 + $0x30] sm:$0xff]  }
 0x4ab   : > { %v17516_v39 = vld [vmem:[#allocation3 + $0x10] sm:$0xff]  }
 0x4ac   : > { %v4520_v52 = vpop.f32.mrf.mxu1  ;;  %v4690_v53 = vpop.f32.mrf.mxu0 }
 0x4ae   : > { %v16363_v56 = vpop.f32.mrf.mxu1  ;;  %v16387_v60 = vpop.f32.mrf.mxu0 }
 0x4af   : > { %v14754_v61 = vpack.c.bf16 %v16363_v56, %v16362_v50  ;;  %v14774_v63 = vpack.c.bf16 %v16387_v60, %v16386_v51  ;;  %v17520_v50 = vld [vmem:[#allocation3] sm:$0xff]   ;;  %v17529_v56 = vld [vmem:[%s21647_s5 + $0x54] ss:$20 sps:$4 sm:$0xff]  }
 0x4b0   : > { %v4523_v0 = vpop.f32.mrf.mxu1  ;;  %v4693_v6 = vpop.f32.mrf.mxu0  ;;  %v17521_v51 = vld [vmem:[%s21647_s5] ss:$20 sps:$4 sm:$0xff]  }
 0x4b1   : > { %15254 = vst [vmem:[#allocation3 + $0x48] sm:$0xff] %v14754_v61   ;;  %15258 = vst [vmem:[#allocation3 + $0x68] sm:$0xff] %v14774_v63   ;;  %v14749_v7 = vpack.c.bf16 %v4523_v0, %v4520_v52  ;;  %v14769_v9 = vpack.c.bf16 %v4693_v6, %v4690_v53  ;;  %v17524_v52 = vld [vmem:[%s21647_s5 + $0x2c] ss:$20 sps:$4 sm:$0xff]   ;;  %v17526_v53 = vld [vmem:[%s21647_s5 + $0x28] ss:$20 sps:$4 sm:$0xff]  }
 0x4b2   : > { %v16366_v10 = vpop.f32.mrf.mxu1  ;;  %v16390_v11 = vpop.f32.mrf.mxu0  ;;  %v17527_v6 = vld [vmem:[%s21647_s5 + $0x50] ss:$20 sps:$4 sm:$0xff]  }
 0x4b3   : > { %15253 = vst [vmem:[#allocation3 + $0x40] sm:$0xff] %v14749_v7   ;;  %15257 = vst [vmem:[#allocation3 + $0x60] sm:$0xff] %v14769_v9   ;;  %v17532_v7 = vld [vmem:[%s21647_s5 + $0x7c] ss:$20 sps:$4 sm:$0xff]  }
 0x4b4   : > { %v4536_v13 = vpop.f32.mrf.mxu1  ;;  %v4706_v5 = vpop.f32.mrf.mxu0 }
 0x4b6   : > { %v16367_v14 = vpop.f32.mrf.mxu1  ;;  %v16391_v15 = vpop.f32.mrf.mxu0 }
 0x4b7   : > { %v14764_v2 = vpack.c.bf16 %v16367_v14, %v16366_v10  ;;  %v14784_v54 = vpack.c.bf16 %v16391_v15, %v16390_v11 }
 0x4b8   : > { %v4539_v62 = vpop.f32.mrf.mxu1  ;;  %v4709_v8 = vpop.f32.mrf.mxu0  ;;  %v17509_v17 = vld [vmem:[#allocation3 + $0x68] sm:$0xff]  }
 0x4b9   : > { %15256 = vst [vmem:[#allocation3 + $0x58] sm:$0xff] %v14764_v2   ;;  %15260 = vst [vmem:[#allocation3 + $0x78] sm:$0xff] %v14784_v54   ;;  %v14759_v59 = vpack.c.bf16 %v4539_v62, %v4536_v13  ;;  %v14779_v4 = vpack.c.bf16 %v4709_v8, %v4706_v5  ;;  %v17517_v40 = vld [vmem:[#allocation3 + $0x48] sm:$0xff]  }
 0x4ba   : > { %v17511_v19 = vld [vmem:[#allocation3 + $0x60] sm:$0xff]  }
 0x4bb   : > { %15255 = vst [vmem:[#allocation3 + $0x50] sm:$0xff] %v14759_v59   ;;  %15259 = vst [vmem:[#allocation3 + $0x70] sm:$0xff] %v14779_v4   ;;  %v17519_v49 = vld [vmem:[#allocation3 + $0x40] sm:$0xff]   ;;  %v17530_v4 = vld [vmem:[%s21647_s5 + $0x78] ss:$20 sps:$4 sm:$0xff]  }
 0x4c0   : > { %v17505_v57 = vld [vmem:[#allocation3 + $0x78] sm:$0xff]  }
 0x4c1   : > { %15496 = vmatprep.subr.bf16.mxu0 %v17505_v57  ;;  %v17513_v55 = vld [vmem:[#allocation3 + $0x58] sm:$0xff]  }
 0x4c2   : > { %v17507_v12 = vld [vmem:[#allocation3 + $0x70] sm:$0xff]   ;;  %15497 = vmatpush3.bf16.msra.mxu0 %v17506_v1  ;;  %v17535_v57 = vld [vmem:[%s21647_s5 + $0xa4] ss:$20 sps:$4 sm:$0xff]  }
 0x4c3   : > { %15498 = vmatprep.subr.bf16.mxu0 %v17507_v12  ;;  %v17515_v36 = vld [vmem:[#allocation3 + $0x50] sm:$0xff]  }
 0x4c6   : > { %15499 = vmatpush3.bf16.msra.mxu0 %v17508_v16 }
 0x4c7   : > { %15500 = vmatprep.subr.bf16.mxu0 %v17509_v17 }
 0x4ca   : > { %15501 = vmatpush3.bf16.msra.mxu0 %v17510_v18 }
 0x4cb   : > { %v16410_v3 = vpop.f32.mrf.mxu1  ;;  %v16434_v20 = vpop.f32.mrf.mxu0  ;;  %15502 = vmatprep.subr.bf16.mxu0 %v17511_v19 }
 0x4cd   : > { %v4860_v21 = vpop.f32.mrf.mxu1  ;;  %v5030_v24 = vpop.f32.mrf.mxu0 }
 0x4ce   : > { %15503 = vmatpush3.bf16.msra.mxu0 %v17512_v22 }
 0x4cf   : > { %v16411_v26 = vpop.f32.mrf.mxu1  ;;  %v16435_v27 = vpop.f32.mrf.mxu0  ;;  %15504 = vmatprep.subr.bf16.mxu0 %v17513_v55 }
 0x4d0   : > { %v14794_v28 = vpack.c.bf16 %v16411_v26, %v16410_v3  ;;  %v14814_v48 = vpack.c.bf16 %v16435_v27, %v16434_v20  ;;  %v17541_v27 = vld [vmem:[%s21647_s5 + $0xc8] ss:$20 sps:$4 sm:$0xff]  }
 0x4d1   : > { %v4863_v23 = vpop.f32.mrf.mxu1  ;;  %v5033_v30 = vpop.f32.mrf.mxu0 }
 0x4d2   : > { %15262 = vst [vmem:[#allocation3 + $0x88] sm:$0xff] %v14794_v28   ;;  %15266 = vst [vmem:[#allocation3 + $0xa8] sm:$0xff] %v14814_v48   ;;  %v14789_v34 = vpack.c.bf16 %v4863_v23, %v4860_v21  ;;  %v14809_v35 = vpack.c.bf16 %v5033_v30, %v5030_v24  ;;  %15505 = vmatpush3.bf16.msra.mxu0 %v17514_v33  ;;  %v17533_v21 = vld [vmem:[%s21647_s5 + $0xa0] ss:$20 sps:$4 sm:$0xff]  }
 0x4d3   : > { %v16414_v37 = vpop.f32.mrf.mxu1  ;;  %v16438_v58 = vpop.f32.mrf.mxu0  ;;  %15506 = vmatprep.subr.bf16.mxu0 %v17515_v36  ;;  %v17543_v24 = vld [vmem:[%s21647_s5 + $0xcc] ss:$20 sps:$4 sm:$0xff]   ;;  %v17550_v48 = vld [vmem:[%s21647_s5 + $0xf4] ss:$20 sps:$4 sm:$0xff]  }
 0x4d4   : > { %15261 = vst [vmem:[#allocation3 + $0x80] sm:$0xff] %v14789_v34   ;;  %15265 = vst [vmem:[#allocation3 + $0xa0] sm:$0xff] %v14809_v35   ;;  %v17548_v35 = vld [vmem:[%s21647_s5 + $0xf0] ss:$20 sps:$4 sm:$0xff]  }
 0x4d5   : > { %v4876_v25 = vpop.f32.mrf.mxu1  ;;  %v5046_v38 = vpop.f32.mrf.mxu0 }
 0x4d6   : > { %15507 = vmatpush3.bf16.msra.mxu0 %v17516_v39 }
 0x4d7   : > { %v16415_v31 = vpop.f32.mrf.mxu1  ;;  %v16439_v41 = vpop.f32.mrf.mxu0  ;;  %15508 = vmatprep.subr.bf16.mxu0 %v17517_v40 }
 0x4d8   : > { %v14804_v32 = vpack.c.bf16 %v16415_v31, %v16414_v37  ;;  %v14824_v42 = vpack.c.bf16 %v16439_v41, %v16438_v58  ;;  %v17557_v58 = vld [vmem:[%s21647_s5 + $0x11c] ss:$20 sps:$4 sm:$0xff]  }
 0x4d9   : > { %v4879_v43 = vpop.f32.mrf.mxu1  ;;  %v5049_v44 = vpop.f32.mrf.mxu0  ;;  %v17544_v30 = vld [vmem:[#allocation3 + $0xa8] sm:$0xff]  }
 0x4da   : > { %15264 = vst [vmem:[#allocation3 + $0x98] sm:$0xff] %v14804_v32   ;;  %15268 = vst [vmem:[#allocation3 + $0xb8] sm:$0xff] %v14824_v42   ;;  %v14799_v46 = vpack.c.bf16 %v4879_v43, %v4876_v25  ;;  %v14819_v47 = vpack.c.bf16 %v5049_v44, %v5046_v38  ;;  %15509 = vmatpush3.bf16.msra.mxu0 %v17518_v45  ;;  %v17555_v43 = vld [vmem:[%s21647_s5 + $0x118] ss:$20 sps:$4 sm:$0xff]  }
 0x4db   : > { %15510 = vmatprep.subr.bf16.mxu0 %v17519_v49  ;;  %v17546_v37 = vld [vmem:[#allocation3 + $0xa0] sm:$0xff]  }
 0x4dc   : > { %15263 = vst [vmem:[#allocation3 + $0x90] sm:$0xff] %v14799_v46   ;;  %15267 = vst [vmem:[#allocation3 + $0xb0] sm:$0xff] %v14819_v47   ;;  %v17574_v46 = vld [vmem:[%s21647_s5 + $0x10] ss:$20 sps:$4 sm:$0xff]  }
 0x4de   : > { %15511 = vmatpush3.bf16.msra.mxu0 %v17520_v50 }
 0x4e1   : > { %6301 = vmatmul.mubr.bf16.vlgmr.msra.gmra.mxu0 %v17521_v51  ;;  %v17537_v55 = vld [vmem:[#allocation3 + $0xb8] sm:$0xff]  }
 0x4e2   : > { %6308 = vmatprep.mubr.bf16.mxu0 %v17524_v52  ;;  %v17551_v31 = vld [vmem:[#allocation3 + $0x98] sm:$0xff]   ;;  %v17558_v52 = vld [vmem:[#allocation3 + $0x88] sm:$0xff]  }
 0x4e3   : > { %v17539_v28 = vld [vmem:[#allocation3 + $0xb0] sm:$0xff]  }
 0x4e4   : > { %v17553_v45 = vld [vmem:[#allocation3 + $0x90] sm:$0xff]  }
 0x4e9   : > { %6309 = vmatmul.mubr.bf16.gmra.mxu0 %v17526_v53 }
 0x4ea   : > { %6316 = vmatprep.mubr.bf16.mxu0 %v17529_v56 }
 0x4ec   : > { %v16458_v60 = vpop.f32.mrf.mxu1  ;;  %v16482_v61 = vpop.f32.mrf.mxu0 }
 0x4ee   : > { %v5200_v63 = vpop.f32.mrf.mxu1  ;;  %v5370_v0 = vpop.f32.mrf.mxu0 }
 0x4f0   : > { %v16459_v9 = vpop.f32.mrf.mxu1  ;;  %v16483_v10 = vpop.f32.mrf.mxu0 }
 0x4f1   : > { %v14834_v11 = vpack.c.bf16 %v16459_v9, %v16458_v60  ;;  %v14854_v13 = vpack.c.bf16 %v16483_v10, %v16482_v61  ;;  %6317 = vmatmul.mubr.bf16.gmra.mxu0 %v17527_v6  ;;  %v17560_v60 = vld [vmem:[#allocation3 + $0x80] sm:$0xff]   ;;  %v17561_v61 = vld [vmem:[%s21647_s5 + $0x8] ss:$20 sps:$4 sm:$0xff]  }
 0x4f2   : > { %v5203_v5 = vpop.f32.mrf.mxu1  ;;  %v5373_v14 = vpop.f32.mrf.mxu0  ;;  %6324 = vmatprep.mubr.bf16.mxu0 %v17532_v7  ;;  %v17569_v7 = vld [vmem:[%s21647_s5 + $0x30] ss:$20 sps:$4 sm:$0xff]  }
 0x4f3   : > { %15270 = vst [vmem:[#allocation3 + $0xc8] sm:$0xff] %v14834_v11   ;;  %15274 = vst [vmem:[#allocation3 + $0xe8] sm:$0xff] %v14854_v13   ;;  %v14829_v15 = vpack.c.bf16 %v5203_v5, %v5200_v63  ;;  %v14849_v2 = vpack.c.bf16 %v5373_v14, %v5370_v0  ;;  %v17567_v63 = vld [vmem:[%s21647_s5 + $0x34] ss:$20 sps:$4 sm:$0xff]   ;;  %v17573_v10 = vld [vmem:[%s21647_s5 + $0x5c] ss:$20 sps:$4 sm:$0xff]  }
 0x4f4   : > { %v16462_v54 = vpop.f32.mrf.mxu1  ;;  %v16486_v62 = vpop.f32.mrf.mxu0  ;;  %v17571_v13 = vld [vmem:[%s21647_s5 + $0x58] ss:$20 sps:$4 sm:$0xff]  }
 0x4f5   : > { %15269 = vst [vmem:[#allocation3 + $0xc0] sm:$0xff] %v14829_v15   ;;  %15273 = vst [vmem:[#allocation3 + $0xe0] sm:$0xff] %v14849_v2   ;;  %v17575_v5 = vld [vmem:[%s21647_s5 + $0x38] ss:$20 sps:$4 sm:$0xff]   ;;  %v17579_v15 = vld [vmem:[%s21647_s5 + $0x60] ss:$20 sps:$4 sm:$0xff]  }
 0x4f6   : > { %v5216_v8 = vpop.f32.mrf.mxu1  ;;  %v5386_v59 = vpop.f32.mrf.mxu0  ;;  %v17578_v14 = vld [vmem:[%s21647_s5 + $0x84] ss:$20 sps:$4 sm:$0xff]   ;;  %v17576_v2 = vld [vmem:[%s21647_s5 + $0x80] ss:$20 sps:$4 sm:$0xff]  }
 0x4f8   : > { %v16463_v1 = vpop.f32.mrf.mxu1  ;;  %v16487_v12 = vpop.f32.mrf.mxu0 }
 0x4f9   : > { %v14844_v16 = vpack.c.bf16 %v16463_v1, %v16462_v54  ;;  %v14864_v17 = vpack.c.bf16 %v16487_v12, %v16486_v62  ;;  %6325 = vmatmul.mubr.bf16.gmra.mxu0 %v17530_v4  ;;  %v17580_v54 = vld [vmem:[%s21647_s5 + $0x88] ss:$20 sps:$4 sm:$0xff]   ;;  %v17583_v62 = vld [vmem:[%s21647_s5 + $0xac] ss:$20 sps:$4 sm:$0xff]   ;;  %v17586_v12 = vld [vmem:[%s21647_s5 + $0xd0] ss:$20 sps:$4 sm:$0xff]  }
 0x4fa   : > { %v5219_v18 = vpop.f32.mrf.mxu1  ;;  %v5389_v19 = vpop.f32.mrf.mxu0  ;;  %6332 = vmatprep.mubr.bf16.mxu0 %v17535_v57  ;;  %v17540_v23 = vld [vmem:[#allocation3 + $0xe8] sm:$0xff]   ;;  %v17592_v1 = vld [vmem:[%s21647_s5 + $0x100] ss:$20 sps:$4 sm:$0xff]  }
 0x4fb   : > { %15272 = vst [vmem:[#allocation3 + $0xd8] sm:$0xff] %v14844_v16   ;;  %15276 = vst [vmem:[#allocation3 + $0xf8] sm:$0xff] %v14864_v17   ;;  %v14839_v3 = vpack.c.bf16 %v5219_v18, %v5216_v8  ;;  %v14859_v20 = vpack.c.bf16 %v5389_v19, %v5386_v59  ;;  %v17554_v47 = vld [vmem:[#allocation3 + $0xc8] sm:$0xff]   ;;  %v17584_v8 = vld [vmem:[%s21647_s5 + $0xb0] ss:$20 sps:$4 sm:$0xff]  }
 0x4fc   : > { %v17545_v33 = vld [vmem:[#allocation3 + $0xe0] sm:$0xff]   ;;  %v17581_v59 = vld [vmem:[%s21647_s5 + $0xa8] ss:$20 sps:$4 sm:$0xff]   ;;  %v17585_v4 = vld [vmem:[%s21647_s5 + $0xd8] ss:$20 sps:$4 sm:$0xff]  }
 0x4fd   : > { %15271 = vst [vmem:[#allocation3 + $0xd0] sm:$0xff] %v14839_v3   ;;  %15275 = vst [vmem:[#allocation3 + $0xf0] sm:$0xff] %v14859_v20   ;;  %v17559_v56 = vld [vmem:[#allocation3 + $0xc0] sm:$0xff]   ;;  %v17588_v57 = vld [vmem:[%s21647_s5 + $0xd4] ss:$20 sps:$4 sm:$0xff]  }
 0x4fe   : > { %v17591_v16 = vld [vmem:[%s21647_s5 + $0xfc] ss:$20 sps:$4 sm:$0xff]   ;;  %v17589_v18 = vld [vmem:[%s21647_s5 + $0xf8] ss:$20 sps:$4 sm:$0xff]   ;;  %v17594_v3 = vld [vmem:[%s21647_s5 + $0x120] ss:$20 sps:$4 sm:$0xff]  }
 0x4ff   : > { %v17593_v17 = vld [vmem:[%s21647_s5 + $0x128] ss:$20 sps:$4 sm:$0xff]   ;;  %v17596_v19 = vld [vmem:[%s21647_s5 + $0x124] ss:$20 sps:$4 sm:$0xff]  }
 0x500   : > { %v17599_v20 = vld [vmem:[%s21650_s8 + $0xe4] ss:$16 sps:$4 sm:$0xff]  }
 0x501   : > { %6333 = vmatmul.mubr.bf16.gmra.mxu0 %v17533_v21  ;;  %v17602_v21 = vld [vmem:[%s21650_s8 + $0xec] ss:$16 sps:$4 sm:$0xff]  }
 0x502   : > { %v17536_v22 = vld [vmem:[#allocation3 + $0xf8] sm:$0xff]   ;;  %6340 = vmatprep.mubr.bf16.mxu0 %v17543_v24  ;;  %v17597_v24 = vld [vmem:[%s21650_s8 + $0xe0] ss:$16 sps:$4 sm:$0xff]  }
 0x503   : > { %15560 = vmatprep.subr.bf16.mxu1 %v17536_v22  ;;  %v17547_v25 = vld [vmem:[#allocation3 + $0xd8] sm:$0xff]  }
 0x504   : > { %v17538_v26 = vld [vmem:[#allocation3 + $0xf0] sm:$0xff]   ;;  %15561 = vmatpush3.bf16.msra.mxu1 %v17537_v55  ;;  %v17600_v22 = vld [vmem:[%s21650_s8 + $0xe8] ss:$16 sps:$4 sm:$0xff]  }
 0x505   : > { %15562 = vmatprep.subr.bf16.mxu1 %v17538_v26  ;;  %v17552_v32 = vld [vmem:[#allocation3 + $0xd0] sm:$0xff]   ;;  %v17608_v26 = vld [vmem:[%s21650_s8 + $0xcc] ss:$16 sps:$4 sm:$0xff]  }
 0x506   : > { %v17605_v55 = vld [vmem:[%s21650_s8 + $0xc4] ss:$16 sps:$4 sm:$0xff]  }
 0x508   : > { %15563 = vmatpush3.bf16.msra.mxu1 %v17539_v28  ;;  %v17606_v28 = vld [vmem:[%s21650_s8 + $0xc8] ss:$16 sps:$4 sm:$0xff]  }
 0x509   : > { %15564 = vmatprep.subr.bf16.mxu1 %v17540_v23  ;;  %6341 = vmatmul.mubr.bf16.gmra.mxu0 %v17541_v27  ;;  %v17603_v27 = vld [vmem:[%s21650_s8 + $0xc0] ss:$16 sps:$4 sm:$0xff]   ;;  %v17614_v23 = vld [vmem:[%s21650_s8 + $0xac] ss:$16 sps:$4 sm:$0xff]  }
 0x50a   : > { %6348 = vmatprep.mubr.bf16.mxu0 %v17550_v48  ;;  %v17611_v48 = vld [vmem:[%s21650_s8 + $0xa4] ss:$16 sps:$4 sm:$0xff]  }
 0x50c   : > { %15565 = vmatpush3.bf16.msra.mxu1 %v17544_v30  ;;  %v17609_v30 = vld [vmem:[%s21650_s8 + $0xa0] ss:$16 sps:$4 sm:$0xff]  }
 0x50d   : > { %v16506_v34 = vpop.f32.mrf.mxu1  ;;  %15566 = vmatprep.subr.bf16.mxu1 %v17545_v33  ;;  %v17612_v33 = vld [vmem:[%s21650_s8 + $0xa8] ss:$16 sps:$4 sm:$0xff]  }
 0x50f   : > { %v5540_v36 = vpop.f32.mrf.mxu1 }
 0x510   : > { %15567 = vmatpush3.bf16.msra.mxu1 %v17546_v37  ;;  %v17618_v37 = vld [vmem:[%s21650_s8 + $0x88] ss:$16 sps:$4 sm:$0xff]  }
 0x511   : > { %v16507_v38 = vpop.f32.mrf.mxu1  ;;  %15568 = vmatprep.subr.bf16.mxu1 %v17547_v25  ;;  %6349 = vmatmul.mubr.bf16.gmra.mxu0 %v17548_v35  ;;  %v17620_v35 = vld [vmem:[%s21650_s8 + $0x8c] ss:$16 sps:$4 sm:$0xff]  }
 0x512   : > { %v14874_v39 = vpack.c.bf16 %v16507_v38, %v16506_v34  ;;  %6356 = vmatprep.mubr.bf16.mxu0 %v17557_v58  ;;  %v17617_v34 = vld [vmem:[%s21650_s8 + $0x84] ss:$16 sps:$4 sm:$0xff]   ;;  %v17626_v25 = vld [vmem:[%s21650_s8 + $0x6c] ss:$16 sps:$4 sm:$0xff]   ;;  %v17621_v38 = vld [vmem:[%s21650_s8 + $0x60] ss:$16 sps:$4 sm:$0xff]  }
 0x513   : > { %v5543_v40 = vpop.f32.mrf.mxu1  ;;  %v17623_v58 = vld [vmem:[%s21650_s8 + $0x64] ss:$16 sps:$4 sm:$0xff]  }
 0x514   : > { %15278 = vst [vmem:[#allocation3 + $0x108] sm:$0xff] %v14874_v39   ;;  %v14869_v41 = vpack.c.bf16 %v5543_v40, %v5540_v36  ;;  %15569 = vmatpush3.bf16.msra.mxu1 %v17551_v31  ;;  %v17615_v36 = vld [vmem:[%s21650_s8 + $0x80] ss:$16 sps:$4 sm:$0xff]   ;;  %v17624_v39 = vld [vmem:[%s21650_s8 + $0x68] ss:$16 sps:$4 sm:$0xff]  }
 0x515   : > { %v16510_v42 = vpop.f32.mrf.mxu1  ;;  %15570 = vmatprep.subr.bf16.mxu1 %v17552_v32  ;;  %v17629_v40 = vld [vmem:[%s21650_s8 + $0x44] ss:$16 sps:$4 sm:$0xff]   ;;  %v17632_v31 = vld [vmem:[%s21650_s8 + $0x4c] ss:$16 sps:$4 sm:$0xff]   ;;  %v17630_v32 = vld [vmem:[%s21650_s8 + $0x48] ss:$16 sps:$4 sm:$0xff]  }
 0x516   : > { %15277 = vst [vmem:[#allocation3 + $0x100] sm:$0xff] %v14869_v41   ;;  %v17627_v41 = vld [vmem:[%s21650_s8 + $0x40] ss:$16 sps:$4 sm:$0xff]  }
 0x517   : > { %v5556_v44 = vpop.f32.mrf.mxu1 }
 0x518   : > { %15571 = vmatpush3.bf16.msra.mxu1 %v17553_v45  ;;  %v17636_v45 = vld [vmem:[%s21650_s8 + $0x28] ss:$16 sps:$4 sm:$0xff]  }
 0x519   : > { %v16511_v49 = vpop.f32.mrf.mxu1  ;;  %15572 = vmatprep.subr.bf16.mxu1 %v17554_v47  ;;  %6357 = vmatmul.mubr.bf16.gmra.mxu0 %v17555_v43  ;;  %v17638_v43 = vld [vmem:[%s21650_s8 + $0x2c] ss:$16 sps:$4 sm:$0xff]  }
 0x51a   : > { %v14884_v50 = vpack.c.bf16 %v16511_v49, %v16510_v42  ;;  %16520 = vmatprep.mubr.msk.bf16.mxu0 %vm6243_vm1, %v17574_v46  ;;  %v17635_v42 = vld [vmem:[%s21650_s8 + $0x24] ss:$16 sps:$4 sm:$0xff]   ;;  %v17644_v47 = vld [vmem:[%s21650_s8 + $0xc] ss:$16 sps:$4 sm:$0xff]   ;;  %v17639_v49 = vld [vmem:[%s21650_s8] ss:$16 sps:$4 sm:$0xff]  }
 0x51b   : > { %v5559_v51 = vpop.f32.mrf.mxu1  ;;  %v17566_v9 = vld [vmem:[#allocation3 + $0x108] sm:$0xff]   ;;  %v17641_v46 = vld [vmem:[%s21650_s8 + $0x4] ss:$16 sps:$4 sm:$0xff]  }
 0x51c   : > { %15280 = vst [vmem:[#allocation3 + $0x118] sm:$0xff] %v14884_v50   ;;  %v14879_v53 = vpack.c.bf16 %v5559_v51, %v5556_v44  ;;  %15573 = vmatpush3.bf16.msra.mxu1 %v17558_v52  ;;  %v17633_v44 = vld [vmem:[%s21650_s8 + $0x20] ss:$16 sps:$4 sm:$0xff]   ;;  %v17642_v50 = vld [vmem:[%s21650_s8 + $0x8] ss:$16 sps:$4 sm:$0xff]  }
 0x51d   : > { %15574 = vmatprep.subr.bf16.mxu1 %v17559_v56  ;;  %v17570_v11 = vld [vmem:[#allocation3 + $0x100] sm:$0xff]  }
 0x51e   : > { %15279 = vst [vmem:[#allocation3 + $0x110] sm:$0xff] %v14879_v53  }
 0x520   : > { %15575 = vmatpush3.bf16.msra.mxu1 %v17560_v60 }
 0x521   : > { %6791 = vmatprep.subr.bf16.mxu1 %v17599_v20 }
 0x523   : > { %v17564_v0 = vld [vmem:[#allocation3 + $0x118] sm:$0xff]   ;;  %6398 = vmatmul.mubr.bf16.vlgmr.msra.gmra.mxu1 %v17561_v61 }
 0x524   : > { %16512 = vmatprep.subr.bf16.mxu0 %v17564_v0  ;;  %6405 = vmatprep.mubr.bf16.mxu1 %v17567_v63 }
 0x525   : > { %v17565_v6 = vld [vmem:[#allocation3 + $0x110] sm:$0xff]   ;;  %16513 = vmatpush3.bf16.msra.mxu0 %v17564_v0  ;;  %6792 = vmatpush1.bf16.msra.mxu1 %v17597_v24 }
 0x526   : > { %16514 = vmatprep.subr.bf16.mxu0 %v17565_v6  ;;  %6793 = vmatprep.subr.bf16.mxu1 %v17605_v55 }
 0x529   : > { %16515 = vmatpush3.bf16.msra.mxu0 %v17565_v6  ;;  %6794 = vmatpush1.bf16.msra.mxu1 %v17603_v27 }
 0x52a   : > { %16516 = vmatprep.subr.bf16.mxu0 %v17566_v9  ;;  %6795 = vmatprep.subr.bf16.mxu1 %v17611_v48 }
 0x52b   : > { %6406 = vmatmul.mubr.bf16.gmra.mxu1 %v17569_v7 }
 0x52c   : > { %6413 = vmatprep.mubr.bf16.mxu1 %v17573_v10 }
 0x52d   : > { %16517 = vmatpush3.bf16.msra.mxu0 %v17566_v9  ;;  %6796 = vmatpush1.bf16.msra.mxu1 %v17609_v30  ;;  %v5750_v30 = vpop.permute.xlu0 %5749 }
 0x52e   : > { %16518 = vmatprep.subr.bf16.mxu0 %v17570_v11  ;;  %6797 = vmatprep.subr.bf16.mxu1 %v17617_v34 }
 0x531   : > { %16519 = vmatpush3.bf16.msra.mxu0 %v17570_v11  ;;  %6798 = vmatpush1.bf16.msra.mxu1 %v17615_v36 }
 0x532   : > { %6904 = vmatprep.subr.bf16.mxu0 %v17602_v21  ;;  %6799 = vmatprep.subr.bf16.mxu1 %v17623_v58 }
 0x533   : > { %6414 = vmatmul.mubr.bf16.gmra.mxu1 %v17571_v13 }
 0x534   : > { %16521 = vmatmul.mubr.msk.bf16.vlgmr.msra.gmra.mxu0 %vm6243_vm1, %v17575_v5  ;;  %6421 = vmatprep.mubr.bf16.mxu1 %v17578_v14  ;;  %v20074_v5 = vld [vmem:[%s21653_s11 + $0x38] sm:$0xff]  }
 0x535   : > { %16524 = vmatprep.mubr.msk.bf16.mxu0 %vm6243_vm1, %v17579_v15  ;;  %6905 = vmatpush1.bf16.msra.mxu0 %v17600_v22  ;;  %v20079_v14 = vld [vmem:[%s21653_s11 + $0x78] sm:$0xff]  }
 0x536   : > { %6906 = vmatprep.subr.bf16.mxu0 %v17608_v26  ;;  %6800 = vmatpush1.bf16.msra.mxu1 %v17621_v38 }
 0x537   : > { %6801 = vmatprep.subr.bf16.mxu1 %v17629_v40 }
 0x539   : > { %6907 = vmatpush1.bf16.msra.mxu0 %v17606_v28 }
 0x53a   : > { %6908 = vmatprep.subr.bf16.mxu0 %v17614_v23  ;;  %6802 = vmatpush1.bf16.msra.mxu1 %v17627_v41 }
 0x53b   : > { %6422 = vmatmul.mubr.bf16.gmra.mxu1 %v17576_v2  ;;  %6803 = vmatprep.subr.bf16.mxu1 %v17635_v42 }
 0x53c   : > { %16525 = vmatmul.mubr.msk.bf16.gmra.mxu0 %vm6243_vm1, %v17580_v54  ;;  %6429 = vmatprep.mubr.bf16.mxu1 %v17583_v62 }
 0x53d   : > { %16528 = vmatprep.mubr.msk.bf16.mxu0 %vm6243_vm1, %v17584_v8  ;;  %6909 = vmatpush1.bf16.msra.mxu0 %v17612_v33 }
 0x53e   : > { %6910 = vmatprep.subr.bf16.mxu0 %v17620_v35  ;;  %6804 = vmatpush1.bf16.msra.mxu1 %v17633_v44  ;;  %v5755_v35 = vpop.permute.xlu1 %5754 }
 0x53f   : > { %6805 = vmatprep.subr.bf16.mxu1 %v17641_v46 }
 0x541   : > { %6911 = vmatpush1.bf16.msra.mxu0 %v17618_v37 }
 0x542   : > { %6912 = vmatprep.subr.bf16.mxu0 %v17626_v25  ;;  %6806 = vmatpush1.bf16.msra.mxu1 %v17639_v49 }
 0x543   : > { %6430 = vmatmul.mubr.bf16.gmra.mxu1 %v17581_v59  ;;  %16536 = vmatprep.subr.bf16.mxu1 %v20074_v5 }
 0x544   : > { %16529 = vmatmul.mubr.msk.bf16.gmra.mxu0 %vm6243_vm1, %v17585_v4  ;;  %6437 = vmatprep.mubr.bf16.mxu1 %v17588_v57 }
 0x545   : > { %16532 = vmatprep.mubr.msk.bf16.mxu0 %vm6243_vm1, %v17592_v1  ;;  %6913 = vmatpush1.bf16.msra.mxu0 %v17624_v39 }
 0x546   : > { %6914 = vmatprep.subr.bf16.mxu0 %v17632_v31 }
 0x549   : > { %6915 = vmatpush1.bf16.msra.mxu0 %v17630_v32 }
 0x54a   : > { %6916 = vmatprep.subr.bf16.mxu0 %v17638_v43 }
 0x54b   : > { %6438 = vmatmul.mubr.bf16.gmra.mxu1 %v17586_v12 }
 0x54c   : > { %6445 = vmatprep.mubr.bf16.mxu1 %v17591_v16  ;;  %16533 = vmatmul.mubr.msk.bf16.gmra.mxu0 %vm6243_vm1, %v17593_v17 }
 0x54d   : > { %6936 = vmatprep.mubr.bf16.mxu0 %v21658_v29  ;;  %6917 = vmatpush1.bf16.msra.mxu0 %v17636_v45 }
 0x54e   : > { %6918 = vmatprep.subr.bf16.mxu0 %v17644_v47  ;;  %v5765_v47 = vpop.permute.xlu1 %5764 }
 0x551   : > { %6919 = vmatpush1.bf16.msra.mxu0 %v17642_v50 }
 0x552   : > { %16568 = vmatprep.subr.bf16.mxu0 %v20079_v14 }
 0x553   : > { %6446 = vmatmul.mubr.bf16.gmra.mxu1 %v17589_v18 }
 0x554   : > { %6453 = vmatprep.mubr.bf16.mxu1 %v17596_v19 }
 0x55b   : > { %6454 = vmatmul.mubr.bf16.gmra.mxu1 %v17594_v3 }
 0x55c   : > { %6823 = vmatprep.mubr.bf16.mxu1 %v21658_v29 }
 0x5a1   : > { %v15512_v51 = vpop.f32.mrf.mxu0 }
 0x5a3   : > { %v15513_v52 = vpop.f32.mrf.mxu0 }
 0x5a4   : > { %v15514_v48 = vadd.f32 %v15513_v52, %v15512_v51 }
 0x5a5   : > { %v15515_v53 = vpop.f32.mrf.mxu0 }
 0x5a6   : > { %v6303_v37 = vadd.f32 %v15514_v48, %v5750_v30 }
 0x5a7   : > { %v15516_v56 = vpop.f32.mrf.mxu0 }
 0x5a8   : > { %v15517_v58 = vadd.f32 %v15516_v56, %v15515_v53 }
 0x5a9   : > { %v15518_v60 = vpop.f32.mrf.mxu0 }
 0x5aa   : > { %v6306_v42 = vadd.f32 %v15517_v58, %v5755_v35 }
 0x5ab   : > { %v15519_v61 = vpop.f32.mrf.mxu0 }
 0x5ac   : > { %v15520_v43 = vadd.f32 %v15519_v61, %v15518_v60 }
 0x5ad   : > { %v15521_v63 = vpop.f32.mrf.mxu0 }
 0x5af   : > { %v15522_v0 = vpop.f32.mrf.mxu0 }
 0x5b0   : > { %v15523_v39 = vadd.f32 %v15522_v0, %v15521_v63 }
 0x5b1   : > { %v20059_v6 = vpop.f32.mrf.mxu0 }
 0x5b2   : > { %v6314_v50 = vadd.f32 %v15523_v39, %v5765_v47 }
 0x5b3   : > { %v20061_v7 = vpop.f32.mrf.mxu0 }
 0x5b5   : > { %v20063_v9 = vpop.f32.mrf.mxu0 }
 0x5b7   : > { %v20065_v10 = vpop.f32.mrf.mxu0 }
 0x5b8   : > { %v15529_v60 = vadd.f32 %v20065_v10, %v20063_v9 }
 0x5b9   : > { %v20067_v11 = vpop.f32.mrf.mxu0 }
 0x5bb   : > { %v20069_v13 = vpop.f32.mrf.mxu0 }
 0x5bd   : > { %v20081_v15 = vpop.f32.mrf.mxu0 }
 0x5bf   : > { %v20085_v2 = vpop.f32.mrf.mxu0 }
 0x5c1   : > { %v20087_v54 = vpop.f32.mrf.mxu0 }
 0x5c3   : > { %v20089_v62 = vpop.f32.mrf.mxu0 }
 0x5c5   : > { %v20091_v8 = vpop.f32.mrf.mxu0 }
 0x5c7   : > { %v20093_v59 = vpop.f32.mrf.mxu0 }
 0x5c9   : > { %v20095_v4 = vpop.f32.mrf.mxu0 }
 0x5cb   : > { %v20097_v57 = vpop.f32.mrf.mxu0 }
 0x5cd   : > { %v20099_v1 = vpop.f32.mrf.mxu0 }
 0x5cf   : > { %v20101_v12 = vpop.f32.mrf.mxu0 }
 0x5d1   : > { %v20103_v16 = vpop.f32.mrf.mxu0 }
 0x5d3   : > { %v20105_v17 = vpop.f32.mrf.mxu0 }
 0x5d5   : > { %v20107_v18 = vpop.f32.mrf.mxu0 }
 0x5d7   : > { %v20109_v19 = vpop.f32.mrf.mxu0 }
 0x5d9   : > { %v20111_v21 = vpop.f32.mrf.mxu0 }
 0x5db   : > { %v20113_v55 = vpop.f32.mrf.mxu0 }
 0x5dd   : > { %v20115_v28 = vpop.f32.mrf.mxu0 }
 0x5df   : > { %v20117_v36 = vpop.f32.mrf.mxu0 }
 0x5e3   : > { %v15576_v3 = vpop.f32.mrf.mxu1 }
 0x5e5   : > { %v15577_v20 = vpop.f32.mrf.mxu1 }
 0x5e6   : > { %v15578_v33 = vadd.f32 %v15577_v20, %v15576_v3  ;;  %v5760_v20 = vpop.permute.xlu0 %5759 }
 0x5e7   : > { %v15579_v24 = vpop.f32.mrf.mxu1  ;;  %v6311_v56 = vadd.f32 %v15520_v43, %v5760_v20 }
 0x5e8   : > { %v6400_v41 = vadd.f32 %v15578_v33, %v6303_v37 }
 0x5e9   : > { %v15580_v22 = vpop.f32.mrf.mxu1 }
 0x5ea   : > { %v15581_v40 = vadd.f32 %v15580_v22, %v15579_v24 }
 0x5eb   : > { %v15582_v26 = vpop.f32.mrf.mxu1 }
 0x5ec   : > { %v6403_v3 = vadd.f32 %v15581_v40, %v6306_v42  ;;  %v5775_v40 = vpop.permute.xlu1 %5774  ;;  %v5770_v42 = vpop.permute.xlu0 %5769 }
 0x5ed   : > { %v15583_v27 = vpop.f32.mrf.mxu1  ;;  %v6322_v43 = vadd.f32 %v15529_v60, %v5775_v40 }
 0x5ee   : > { %v15584_v51 = vadd.f32 %v15583_v27, %v15582_v26  ;;  %v15526_v26 = vadd.f32 %v20061_v7, %v20059_v6  ;;  %v17647_v6 = vld [vmem:[%s21653_s11 + $0x30] sm:$0xff]  }
 0x5ef   : > { %v15585_v23 = vpop.f32.mrf.mxu1  ;;  %v17648_v7 = vld [vmem:[%s21653_s11 + $0x70] sm:$0xff]  }
 0x5f0   : > { %v6408_v61 = vadd.f32 %v15584_v51, %v6311_v56  ;;  %v6319_v47 = vadd.f32 %v15526_v26, %v5770_v42 }
 0x5f1   : > { %v15586_v34 = vpop.f32.mrf.mxu1 }
 0x5f2   : > { %v15587_v44 = vadd.f32 %v15586_v34, %v15585_v23 }
 0x5f3   : > { %v15588_v25 = vpop.f32.mrf.mxu1 }
 0x5f4   : > { %v16522_v38 = vpop.f32.mrf.mxu0  ;;  %v6411_v63 = vadd.f32 %v15587_v44, %v6314_v50 }
 0x5f5   : > { %v15589_v31 = vpop.f32.mrf.mxu1  ;;  %v6505_v34 = vadd.f32 %v16522_v38, %v6408_v61  ;;  %v15535_v38 = vadd.f32 %v20085_v2, %v20081_v15  ;;  %v5785_v15 = vpop.permute.xlu1 %5784 }
 0x5f6   : > { %v6496_v32 = vpop.f32.mrf.mxu0 }
 0x5f7   : > { %v6497_v45 = vadd.f32 %v6496_v32, %v6400_v41  ;;  %v15591_v46 = vpop.f32.mrf.mxu1  ;;  %v15590_v41 = vadd.f32 %v15589_v31, %v15588_v25  ;;  %v6561_v25 = vmul.f32 0.01, %v6505_v34 }
 0x5f8   : > { %v16523_v49 = vpop.f32.mrf.mxu0 }
 0x5f9   : > { %v15592_v52 = vpop.f32.mrf.mxu1  ;;  %v6559_v48 = vmul.f32 0.01, %v6497_v45  ;;  %v6508_v23 = vadd.f32 %v16523_v49, %v6411_v63  ;;  %v6416_v50 = vadd.f32 %v15590_v41, %v6319_v47  ;;  %v6577_v56 = vmax.f32 %v6505_v34, %v6561_v25  ;;  %v5795_v41 = vpop.permute.xlu1 %5794 }
 0x5fa   : > { %v6499_v53 = vpop.f32.mrf.mxu0  ;;  %v15593_v37 = vadd.f32 %v15592_v52, %v15591_v46  ;;  %v15532_v46 = vadd.f32 %v20069_v13, %v20067_v11  ;;  %v17649_v11 = vld [vmem:[%s21653_s11 + $0x28] sm:$0xff]  }
 0x5fb   : > { %v6500_v0 = vadd.f32 %v6499_v53, %v6403_v3  ;;  %v15594_v24 = vpop.f32.mrf.mxu1  ;;  %v6575_v35 = vmax.f32 %v6497_v45, %v6559_v48  ;;  %v6562_v44 = vmul.f32 0.01, %v6508_v23  ;;  %v17650_v13 = vld [vmem:[%s21653_s11 + $0x68] sm:$0xff]   ;;  %v6330_v53 = vadd.f32 %v15535_v38, %v5785_v15 }
 0x5fc   : > { %v20119_v22 = vpop.f32.mrf.mxu0  ;;  %v6419_v31 = vadd.f32 %v15593_v37, %v6322_v43 }
 0x5fd   : > { %v6560_v30 = vmul.f32 0.01, %v6500_v0  ;;  %v15595_v33 = vpop.f32.mrf.mxu1  ;;  %v6578_v51 = vmax.f32 %v6508_v23, %v6562_v44 }
 0x5fe   : > { %v6512_v27 = vpop.f32.mrf.mxu0  ;;  %v15596_v48 = vadd.f32 %v15595_v33, %v15594_v24  ;;  %v15538_v33 = vadd.f32 %v20089_v62, %v20087_v54 }
 0x5ff   : > { %v6576_v58 = vmax.f32 %v6500_v0, %v6560_v30  ;;  %v15597_v39 = vpop.f32.mrf.mxu1  ;;  %v6513_v63 = vadd.f32 %v6512_v27, %v6416_v50  ;;  %v5780_v0 = vpop.permute.xlu0 %5779  ;;  %v6592_v60 = vpack.c.bf16 %v6578_v51, %v6577_v56 }
 0x600   : > { %v16527_v32 = vpop.f32.mrf.mxu0 }
 0x601   : > { %v6591_v9 = vpack.c.bf16 %v6576_v58, %v6575_v35  ;;  %v15598_v10 = vpop.f32.mrf.mxu1  ;;  %v15541_v35 = vadd.f32 %v20093_v59, %v20091_v8  ;;  %v6563_v58 = vmul.f32 0.01, %v6513_v63 }
 0x602   : > { %v6515_v49 = vpop.f32.mrf.mxu0  ;;  %v15599_v52 = vadd.f32 %v15598_v10, %v15597_v39 }
 0x603   : > { %6824 = vmatmul.mubr.bf16.vlgmr.msra.gmra.mxu1 %v6591_v9  ;;  %6937 = vmatmul.mubr.bf16.vlgmr.msra.gmra.mxu0 %v6591_v9  ;;  %v15600_v45 = vpop.f32.mrf.mxu1  ;;  %v6516_v3 = vadd.f32 %v6515_v49, %v6419_v31  ;;  %v6338_v59 = vadd.f32 %v15541_v35, %v5795_v41  ;;  %v6579_v43 = vmax.f32 %v6513_v63, %v6563_v58  ;;  %v5790_v10 = vpop.permute.xlu0 %5789 }
 0x604   : > { %6833 = vmatprep.mubr.bf16.mxu1 %v21658_v29  ;;  %6946 = vmatprep.mubr.bf16.mxu0 %v21658_v29  ;;  %v20139_v2 = vpop.f32.mrf.mxu0  ;;  %v6427_v61 = vadd.f32 %v15599_v52, %v6330_v53  ;;  %v6335_v54 = vadd.f32 %v15538_v33, %v5790_v10  ;;  %v5805_v52 = vpop.permute.xlu1 %5804 }
 0x605   : > { %v15601_v20 = vpop.f32.mrf.mxu1  ;;  %16537 = vmatpush3.bf16.msra.mxu1 %v20074_v5  ;;  %16569 = vmatpush3.bf16.msra.mxu0 %v20079_v14  ;;  %v6327_v14 = vadd.f32 %v15532_v46, %v5780_v0  ;;  %v6564_v23 = vmul.f32 0.01, %v6516_v3 }
 0x606   : > { %16538 = vmatprep.subr.bf16.mxu1 %v17647_v6  ;;  %16570 = vmatprep.subr.bf16.mxu0 %v17648_v7  ;;  %v6528_v26 = vpop.f32.mrf.mxu0  ;;  %v6524_v27 = vadd.f32 %v16527_v32, %v6427_v61  ;;  %v15602_v44 = vadd.f32 %v15601_v20, %v15600_v45  ;;  %v15550_v61 = vadd.f32 %v20105_v17, %v20103_v16 }
 0x607   : > { %v15603_v5 = vpop.f32.mrf.mxu1  ;;  %v6424_v37 = vadd.f32 %v15596_v48, %v6327_v14  ;;  %v6580_v34 = vmax.f32 %v6516_v3, %v6564_v23  ;;  %v15559_v16 = vadd.f32 %v20117_v36, %v20115_v28 }
 0x608   : > { %v16531_v8 = vpop.f32.mrf.mxu0  ;;  %v6566_v62 = vmul.f32 0.01, %v6524_v27  ;;  %v6432_v25 = vadd.f32 %v15602_v44, %v6335_v54 }
 0x609   : > { %v15604_v30 = vpop.f32.mrf.mxu1  ;;  %16539 = vmatpush3.bf16.msra.mxu1 %v17647_v6  ;;  %16571 = vmatpush3.bf16.msra.mxu0 %v17648_v7  ;;  %v6521_v42 = vadd.f32 %v20119_v22, %v6424_v37  ;;  %v6593_v47 = vpack.c.bf16 %v6580_v34, %v6579_v43  ;;  %v15547_v7 = vadd.f32 %v20101_v12, %v20099_v1  ;;  %v5815_v37 = vpop.permute.xlu1 %5814 }
 0x60a   : > { %16540 = vmatprep.subr.bf16.mxu1 %v17649_v11  ;;  %16572 = vmatprep.subr.bf16.mxu0 %v17650_v13  ;;  %v15605_v39 = vadd.f32 %v15604_v30, %v15603_v5  ;;  %v6531_v32 = vpop.f32.mrf.mxu0  ;;  %v15544_v22 = vadd.f32 %v20097_v57, %v20095_v4  ;;  %v6582_v45 = vmax.f32 %v6524_v27, %v6566_v62 }
 0x60b   : > { %6834 = vmatmul.mubr.bf16.gmra.mxu1 %v6592_v60  ;;  %6947 = vmatmul.mubr.bf16.gmra.mxu0 %v6592_v60  ;;  %v15606_v24 = vpop.f32.mrf.mxu1  ;;  %v6565_v38 = vmul.f32 0.01, %v6521_v42  ;;  %v6346_v1 = vadd.f32 %v15547_v7, %v5805_v52  ;;  %v6529_v20 = vadd.f32 %v6528_v26, %v6432_v25  ;;  %v15553_v4 = vadd.f32 %v20109_v19, %v20107_v18 }
 0x60c   : > { %6843 = vmatprep.mubr.bf16.mxu1 %v21658_v29  ;;  %6956 = vmatprep.mubr.bf16.mxu0 %v21658_v29  ;;  %v6435_v49 = vadd.f32 %v15605_v39, %v6338_v59  ;;  %v20160_v3 = vpop.f32.mrf.mxu0 }
 0x60d   : > { %v15607_v40 = vpop.f32.mrf.mxu1  ;;  %16541 = vmatpush3.bf16.msra.mxu1 %v17649_v11  ;;  %16573 = vmatpush3.bf16.msra.mxu0 %v17650_v13  ;;  %v6581_v12 = vmax.f32 %v6521_v42, %v6565_v38  ;;  %v5800_v13 = vpop.permute.xlu0 %5799  ;;  %v6567_v57 = vmul.f32 0.01, %v6529_v20 }
 0x60e   : > { %v6532_v46 = vadd.f32 %v6531_v32, %v6435_v49  ;;  %v15608_v15 = vadd.f32 %v15607_v40, %v15606_v24  ;;  %v6343_v53 = vadd.f32 %v15544_v22, %v5800_v13  ;;  %v6544_v0 = vpop.f32.mrf.mxu0  ;;  %v6354_v24 = vadd.f32 %v15553_v4, %v5815_v37  ;;  %v5825_v54 = vpop.permute.xlu1 %5824  ;;  %v17655_v13 = vld [vmem:[%s21653_s11 + $0x10] sm:$0xff]   ;;  %v17662_v4 = vld [vmem:[%s21653_s11 + $0xf8] sm:$0xff]  }
 0x60f   : > { %v15609_v9 = vpop.f32.mrf.mxu1  ;;  %v6594_v5 = vpack.c.bf16 %v6582_v45, %v6581_v12  ;;  %v6583_v18 = vmax.f32 %v6529_v20, %v6567_v57  ;;  %v6362_v62 = vadd.f32 %v15559_v16, %v5825_v54  ;;  %v17651_v20 = vld [vmem:[%s21653_s11 + $0x20] sm:$0xff]  }
 0x610   : > { %v6568_v56 = vmul.f32 0.01, %v6532_v46  ;;  %v6440_v14 = vadd.f32 %v15608_v15, %v6343_v53  ;;  %v16535_v58 = vpop.f32.mrf.mxu0  ;;  %16542 = vmatprep.subr.bf16.mxu1 %v17651_v20  ;;  %v17653_v15 = vld [vmem:[%s21653_s11 + $0x18] sm:$0xff]   ;;  %v17656_v53 = vld [vmem:[%s21653_s11 + $0x50] sm:$0xff]  }
 0x611   : > { %v15610_v6 = vpop.f32.mrf.mxu1  ;;  %v5810_v34 = vpop.permute.xlu0 %5809  ;;  %16543 = vmatpush3.bf16.msra.mxu1 %v17651_v20 }
 0x612   : > { %v15611_v50 = vadd.f32 %v15610_v6, %v15609_v9  ;;  %v6584_v23 = vmax.f32 %v6532_v46, %v6568_v56  ;;  %v6537_v19 = vadd.f32 %v20139_v2, %v6440_v14  ;;  %v6351_v39 = vadd.f32 %v15550_v61, %v5810_v34  ;;  %v6547_v42 = vpop.f32.mrf.mxu0  ;;  %16544 = vmatprep.subr.bf16.mxu1 %v17653_v15  ;;  %v17657_v56 = vld [vmem:[%s21653_s11 + $0x8] sm:$0xff]  }
 0x613   : > { %6844 = vmatmul.mubr.bf16.gmra.mxu1 %v6593_v47  ;;  %6957 = vmatmul.mubr.bf16.gmra.mxu0 %v6593_v47  ;;  %v15612_v31 = vpop.f32.mrf.mxu1  ;;  %v15556_v2 = vadd.f32 %v20113_v55, %v20111_v21 }
 0x614   : > { %6853 = vmatprep.mubr.bf16.mxu1 %v21658_v29  ;;  %6966 = vmatprep.mubr.bf16.mxu0 %v21658_v29  ;;  %v6443_v48 = vadd.f32 %v15611_v50, %v6346_v1  ;;  %v6595_v40 = vpack.c.bf16 %v6584_v23, %v6583_v18  ;;  %v6569_v17 = vmul.f32 0.01, %v6537_v19 }
 0x615   : > { %v15613_v51 = vpop.f32.mrf.mxu1  ;;  %v5820_v28 = vpop.permute.xlu0 %5819  ;;  %16545 = vmatpush3.bf16.msra.mxu1 %v17653_v15  ;;  %v17667_v15 = vld [vmem:[%s21653_s11 + $0xa0] sm:$0xff]  }
 0x616   : > { %v6540_v30 = vadd.f32 %v16531_v8, %v6443_v48  ;;  %v15614_v33 = vadd.f32 %v15613_v51, %v15612_v31  ;;  %v6585_v47 = vmax.f32 %v6537_v19, %v6569_v17  ;;  %v6359_v36 = vadd.f32 %v15556_v2, %v5820_v28  ;;  %16546 = vmatprep.subr.bf16.mxu1 %v17655_v13  ;;  %v17658_v48 = vld [vmem:[%s21653_s11 + $0x48] sm:$0xff]   ;;  %v17663_v28 = vld [vmem:[%s21653_s11 + $0xb0] sm:$0xff]  }
 0x617   : > { %v15615_v11 = vpop.f32.mrf.mxu1 }
 0x618   : > { %v6570_v41 = vmul.f32 0.01, %v6540_v30  ;;  %v6448_v8 = vadd.f32 %v15614_v33, %v6351_v39 }
 0x619   : > { %v15616_v63 = vpop.f32.mrf.mxu1  ;;  %16547 = vmatpush3.bf16.msra.mxu1 %v17655_v13 }
 0x61a   : > { %v15617_v26 = vadd.f32 %v15616_v63, %v15615_v11  ;;  %v6586_v44 = vmax.f32 %v6540_v30, %v6570_v41  ;;  %v6545_v49 = vadd.f32 %v6544_v0, %v6448_v8  ;;  %v17654_v11 = vld [vmem:[%s21653_s11 + $0x58] sm:$0xff]   ;;  %16548 = vmatprep.subr.bf16.mxu1 %v17657_v56  ;;  %v17659_v63 = vld [vmem:[%s21653_s11] sm:$0xff]  }
 0x61b   : > { %6854 = vmatmul.mubr.bf16.gmra.mxu1 %v6594_v5  ;;  %6967 = vmatmul.mubr.bf16.gmra.mxu0 %v6594_v5  ;;  %v15618_v60 = vpop.f32.mrf.mxu1  ;;  %v17660_v5 = vld [vmem:[%s21653_s11 + $0x40] sm:$0xff]   ;;  %v17661_v0 = vld [vmem:[%s21653_s11 + $0xb8] sm:$0xff]  }
 0x61c   : > { %6863 = vmatprep.mubr.bf16.mxu1 %v21658_v29  ;;  %6976 = vmatprep.mubr.bf16.mxu0 %v21658_v29  ;;  %v6451_v59 = vadd.f32 %v15617_v26, %v6354_v24  ;;  %v6596_v38 = vpack.c.bf16 %v6586_v44, %v6585_v47  ;;  %v6571_v25 = vmul.f32 0.01, %v6545_v49 }
 0x61d   : > { %v15619_v35 = vpop.f32.mrf.mxu1  ;;  %16549 = vmatpush3.bf16.msra.mxu1 %v17657_v56 }
 0x61e   : > { %v6548_v9 = vadd.f32 %v6547_v42, %v6451_v59  ;;  %v15620_v6 = vadd.f32 %v15619_v35, %v15618_v60  ;;  %v6587_v22 = vmax.f32 %v6545_v49, %v6571_v25  ;;  %16550 = vmatprep.subr.bf16.mxu1 %v17659_v63 }
 0x61f   : > { %v15621_v27 = vpop.f32.mrf.mxu1 }
 0x620   : > { %v6572_v32 = vmul.f32 0.01, %v6548_v9  ;;  %v6456_v31 = vadd.f32 %v15620_v6, %v6359_v36  ;;  %v17664_v36 = vld [vmem:[%s21653_s11 + $0xf0] sm:$0xff]  }
 0x621   : > { %v15622_v43 = vpop.f32.mrf.mxu1  ;;  %16551 = vmatpush3.bf16.msra.mxu1 %v17659_v63 }
 0x622   : > { %v15623_v10 = vadd.f32 %v15622_v43, %v15621_v27  ;;  %v6588_v21 = vmax.f32 %v6548_v9, %v6572_v32  ;;  %v6553_v45 = vadd.f32 %v20160_v3, %v6456_v31  ;;  %v17652_v3 = vld [vmem:[%s21653_s11 + $0x60] sm:$0xff]   ;;  %16600 = vmatprep.subr.bf16.mxu1 %v17661_v0 }
 0x623   : > { %6864 = vmatmul.mubr.bf16.gmra.mxu1 %v6595_v40  ;;  %6977 = vmatmul.mubr.bf16.gmra.mxu0 %v6595_v40 }
 0x624   : > { %6873 = vmatprep.mubr.bf16.mxu1 %v21658_v29  ;;  %6986 = vmatprep.mubr.bf16.mxu0 %v21658_v29  ;;  %v6459_v7 = vadd.f32 %v15623_v10, %v6362_v62  ;;  %v6597_v46 = vpack.c.bf16 %v6588_v21, %v6587_v22  ;;  %v6573_v51 = vmul.f32 0.01, %v6553_v45 }
 0x625   : > { %16574 = vmatprep.subr.bf16.mxu0 %v17652_v3 }
 0x626   : > { %v6556_v55 = vadd.f32 %v16535_v58, %v6459_v7  ;;  %v6589_v1 = vmax.f32 %v6553_v45, %v6573_v51  ;;  %16575 = vmatpush3.bf16.msra.mxu0 %v17652_v3  ;;  %v17665_v45 = vld [vmem:[%s21653_s11 + $0xa8] sm:$0xff]  }
 0x627   : > { %16576 = vmatprep.subr.bf16.mxu0 %v17654_v11 }
 0x628   : > { %v6574_v50 = vmul.f32 0.01, %v6556_v55 }
 0x62a   : > { %v6590_v52 = vmax.f32 %v6556_v55, %v6574_v50  ;;  %16577 = vmatpush3.bf16.msra.mxu0 %v17654_v11  ;;  %v17668_v11 = vld [vmem:[%s21653_s11 + $0xe0] sm:$0xff]  }
 0x62b   : > { %6874 = vmatmul.mubr.bf16.gmra.mxu1 %v6596_v38  ;;  %6987 = vmatmul.mubr.bf16.gmra.mxu0 %v6596_v38 }
 0x62c   : > { %6883 = vmatprep.mubr.bf16.mxu1 %v21658_v29  ;;  %6996 = vmatprep.mubr.bf16.mxu0 %v21658_v29  ;;  %v6598_v12 = vpack.c.bf16 %v6590_v52, %v6589_v1 }
 0x62d   : > { %16578 = vmatprep.subr.bf16.mxu0 %v17656_v53 }
 0x62e   : > { %16579 = vmatpush3.bf16.msra.mxu0 %v17656_v53 }
 0x62f   : > { %16580 = vmatprep.subr.bf16.mxu0 %v17658_v48 }
 0x632   : > { %16581 = vmatpush3.bf16.msra.mxu0 %v17658_v48 }
 0x633   : > { %6884 = vmatmul.mubr.bf16.gmra.mxu1 %v6597_v46  ;;  %6997 = vmatmul.mubr.bf16.gmra.mxu0 %v6597_v46  ;;  %v17666_v46 = vld [vmem:[%s21653_s11 + $0xe8] sm:$0xff]  }
 0x634   : > { %6893 = vmatprep.mubr.bf16.mxu1 %v21658_v29  ;;  %7006 = vmatprep.mubr.bf16.mxu0 %v21658_v29 }
 0x635   : > { %16582 = vmatprep.subr.bf16.mxu0 %v17660_v5 }
 0x636   : > { %16583 = vmatpush3.bf16.msra.mxu0 %v17660_v5 }
 0x637   : > { %16632 = vmatprep.subr.bf16.mxu0 %v17662_v4 }
 0x63b   : > { %6894 = vmatmul.mubr.bf16.gmra.mxu1 %v6598_v12  ;;  %7007 = vmatmul.mubr.bf16.gmra.mxu0 %v6598_v12 }
 0x6c3   : > { %v6825_v57 = vpop.f32.mrf.mxu1  ;;  %v6938_v14 = vpop.f32.mrf.mxu0 }
 0x6c5   : > { %v6827_v60 = vpop.f32.mrf.mxu1  ;;  %v6940_v61 = vpop.f32.mrf.mxu0 }
 0x6c6   : > { %v7017_v26 = vmax.f32 %v6825_v57, %v6827_v60  ;;  %v7033_v35 = vmax.f32 %v6938_v14, %v6940_v61  ;;  %v17669_v57 = vld [vmem:[%s21653_s11 + $0x98] sm:$0xff]  }
 0x6c7   : > { %v6829_v23 = vpop.f32.mrf.mxu1  ;;  %v6942_v30 = vpop.f32.mrf.mxu0  ;;  %v17670_v14 = vld [vmem:[%s21653_s11 + $0xd8] sm:$0xff]  }
 0x6c8   : > { %v7049_v27 = vmax.f32 %v7017_v26, %v7033_v35 }
 0x6c9   : > { %v6831_v37 = vpop.f32.mrf.mxu1  ;;  %v6944_v58 = vpop.f32.mrf.mxu0 }
 0x6ca   : > { %v7018_v24 = vmax.f32 %v6829_v23, %v6831_v37  ;;  %v7034_v18 = vmax.f32 %v6942_v30, %v6944_v58  ;;  %v17671_v58 = vld [vmem:[%s21653_s11 + $0x90] sm:$0xff]  }
 0x6cb   : > { %v6835_v19 = vpop.f32.mrf.mxu1  ;;  %v6948_v33 = vpop.f32.mrf.mxu0 }
 0x6cc   : > { %v7050_v34 = vmax.f32 %v7018_v24, %v7034_v18  ;;  %v17672_v24 = vld [vmem:[%s21653_s11 + $0xd0] sm:$0xff]  }
 0x6cd   : > { %v6837_v39 = vpop.f32.mrf.mxu1  ;;  %v6950_v40 = vpop.f32.mrf.mxu0 }
 0x6ce   : > { %v20216_v41 = vpack.c.bf16 %v7050_v34, %v7049_v27  ;;  %v7019_v43 = vmax.f32 %v6835_v19, %v6837_v39  ;;  %v7035_v16 = vmax.f32 %v6948_v33, %v6950_v40 }
 0x6cf   : > { %v6839_v59 = vpop.f32.mrf.mxu1  ;;  %v6952_v42 = vpop.f32.mrf.mxu0 }
 0x6d0   : > { %16552 = vmatprep.mubr.bf16.mxu1 %v20216_v41  ;;  %16584 = vmatprep.mubr.bf16.mxu0 %v20216_v41  ;;  %v7051_v54 = vmax.f32 %v7019_v43, %v7035_v16  ;;  %v17674_v43 = vld [vmem:[%s21653_s11 + $0xc8] sm:$0xff]  }
 0x6d1   : > { %v6841_v17 = vpop.f32.mrf.mxu1  ;;  %v6954_v8 = vpop.f32.mrf.mxu0 }
 0x6d2   : > { %v7020_v2 = vmax.f32 %v6839_v59, %v6841_v17  ;;  %v7036_v44 = vmax.f32 %v6952_v42, %v6954_v8  ;;  %v17673_v42 = vld [vmem:[%s21653_s11 + $0x88] sm:$0xff]  }
 0x6d3   : > { %v6845_v9 = vpop.f32.mrf.mxu1  ;;  %v6958_v10 = vpop.f32.mrf.mxu0 }
 0x6d4   : > { %v7052_v62 = vmax.f32 %v7020_v2, %v7036_v44 }
 0x6d5   : > { %v6847_v47 = vpop.f32.mrf.mxu1  ;;  %v6960_v49 = vpop.f32.mrf.mxu0 }
 0x6d6   : > { %v20220_v6 = vpack.c.bf16 %v7052_v62, %v7051_v54  ;;  %v7021_v38 = vmax.f32 %v6845_v9, %v6847_v47  ;;  %v7037_v25 = vmax.f32 %v6958_v10, %v6960_v49  ;;  %v17675_v54 = vld [vmem:[%s21653_s11 + $0x80] sm:$0xff]  }
 0x6d7   : > { %v6849_v32 = vpop.f32.mrf.mxu1  ;;  %v6962_v7 = vpop.f32.mrf.mxu0  ;;  %v17676_v62 = vld [vmem:[%s21653_s11 + $0xc0] sm:$0xff]  }
 0x6d8   : > { %16553 = vmatmul.mubr.bf16.vlgmr.msra.gmra.mxu1 %v20220_v6  ;;  %16585 = vmatmul.mubr.bf16.vlgmr.msra.gmra.mxu0 %v20220_v6  ;;  %v7053_v52 = vmax.f32 %v7021_v38, %v7037_v25 }
 0x6d9   : > { %v6851_v31 = vpop.f32.mrf.mxu1  ;;  %v6964_v21 = vpop.f32.mrf.mxu0  ;;  %16601 = vmatpush3.bf16.msra.mxu1 %v17661_v0  ;;  %16633 = vmatpush3.bf16.msra.mxu0 %v17662_v4 }
 0x6da   : > { %v7022_v55 = vmax.f32 %v6849_v32, %v6851_v31  ;;  %v7038_v22 = vmax.f32 %v6962_v7, %v6964_v21  ;;  %16602 = vmatprep.subr.bf16.mxu1 %v17663_v28  ;;  %16634 = vmatprep.subr.bf16.mxu0 %v17664_v36  ;;  %v17677_v31 = vld [vmem:[%s21653_s11 + $0x138] sm:$0xff]  }
 0x6db   : > { %v6855_v50 = vpop.f32.mrf.mxu1  ;;  %v6968_v51 = vpop.f32.mrf.mxu0  ;;  %v17678_v21 = vld [vmem:[%s21653_s11 + $0x178] sm:$0xff]  }
 0x6dc   : > { %v7054_v1 = vmax.f32 %v7022_v55, %v7038_v22 }
 0x6dd   : > { %v6857_v12 = vpop.f32.mrf.mxu1  ;;  %v6970_v20 = vpop.f32.mrf.mxu0  ;;  %16603 = vmatpush3.bf16.msra.mxu1 %v17663_v28  ;;  %16635 = vmatpush3.bf16.msra.mxu0 %v17664_v36 }
 0x6de   : > { %v20236_v3 = vpack.c.bf16 %v7054_v1, %v7053_v52  ;;  %16604 = vmatprep.subr.bf16.mxu1 %v17665_v45  ;;  %16636 = vmatprep.subr.bf16.mxu0 %v17666_v46  ;;  %v7023_v56 = vmax.f32 %v6855_v50, %v6857_v12  ;;  %v7039_v48 = vmax.f32 %v6968_v51, %v6970_v20 }
 0x6df   : > { %v6859_v13 = vpop.f32.mrf.mxu1  ;;  %v6972_v53 = vpop.f32.mrf.mxu0 }
 0x6e0   : > { %16556 = vmatprep.mubr.bf16.mxu1 %v20236_v3  ;;  %16588 = vmatprep.mubr.bf16.mxu0 %v20236_v3  ;;  %v7055_v23 = vmax.f32 %v7023_v56, %v7039_v48 }
 0x6e1   : > { %v6861_v63 = vpop.f32.mrf.mxu1  ;;  %v6974_v5 = vpop.f32.mrf.mxu0  ;;  %16605 = vmatpush3.bf16.msra.mxu1 %v17665_v45  ;;  %16637 = vmatpush3.bf16.msra.mxu0 %v17666_v46 }
 0x6e2   : > { %v7024_v0 = vmax.f32 %v6859_v13, %v6861_v63  ;;  %v7040_v4 = vmax.f32 %v6972_v53, %v6974_v5  ;;  %16606 = vmatprep.subr.bf16.mxu1 %v17667_v15  ;;  %16638 = vmatprep.subr.bf16.mxu0 %v17668_v11 }
 0x6e3   : > { %v6865_v60 = vpop.f32.mrf.mxu1  ;;  %v6978_v61 = vpop.f32.mrf.mxu0 }
 0x6e4   : > { %v7056_v30 = vmax.f32 %v7024_v0, %v7040_v4 }
 0x6e5   : > { %v6867_v26 = vpop.f32.mrf.mxu1  ;;  %v6980_v35 = vpop.f32.mrf.mxu0  ;;  %16607 = vmatpush3.bf16.msra.mxu1 %v17667_v15  ;;  %16639 = vmatpush3.bf16.msra.mxu0 %v17668_v11 }
 0x6e6   : > { %v20252_v37 = vpack.c.bf16 %v7056_v30, %v7055_v23  ;;  %16608 = vmatprep.subr.bf16.mxu1 %v17669_v57  ;;  %16640 = vmatprep.subr.bf16.mxu0 %v17670_v14  ;;  %v7025_v33 = vmax.f32 %v6865_v60, %v6867_v26  ;;  %v7041_v27 = vmax.f32 %v6978_v61, %v6980_v35 }
 0x6e7   : > { %v6869_v18 = vpop.f32.mrf.mxu1  ;;  %v6982_v19 = vpop.f32.mrf.mxu0 }
 0x6e8   : > { %16557 = vmatmul.mubr.bf16.gmra.mxu1 %v20252_v37  ;;  %16589 = vmatmul.mubr.bf16.gmra.mxu0 %v20252_v37  ;;  %v7057_v8 = vmax.f32 %v7025_v33, %v7041_v27  ;;  %v17679_v27 = vld [vmem:[%s21653_s11 + $0x130] sm:$0xff]  }
 0x6e9   : > { %v6871_v34 = vpop.f32.mrf.mxu1  ;;  %v6984_v39 = vpop.f32.mrf.mxu0  ;;  %16609 = vmatpush3.bf16.msra.mxu1 %v17669_v57  ;;  %16641 = vmatpush3.bf16.msra.mxu0 %v17670_v14 }
 0x6ea   : > { %v7026_v40 = vmax.f32 %v6869_v18, %v6871_v34  ;;  %v7042_v59 = vmax.f32 %v6982_v19, %v6984_v39  ;;  %16610 = vmatprep.subr.bf16.mxu1 %v17671_v58  ;;  %16642 = vmatprep.subr.bf16.mxu0 %v17672_v24  ;;  %v17680_v34 = vld [vmem:[%s21653_s11 + $0x170] sm:$0xff]   ;;  %v17681_v39 = vld [vmem:[%s21653_s11 + $0x128] sm:$0xff]  }
 0x6eb   : > { %v6875_v16 = vpop.f32.mrf.mxu1  ;;  %v6988_v17 = vpop.f32.mrf.mxu0 }
 0x6ec   : > { %v7058_v2 = vmax.f32 %v7026_v40, %v7042_v59  ;;  %v17682_v40 = vld [vmem:[%s21653_s11 + $0x168] sm:$0xff]   ;;  %v17683_v59 = vld [vmem:[%s21653_s11 + $0x120] sm:$0xff]  }
 0x6ed   : > { %v6877_v44 = vpop.f32.mrf.mxu1  ;;  %v6990_v9 = vpop.f32.mrf.mxu0  ;;  %16611 = vmatpush3.bf16.msra.mxu1 %v17671_v58  ;;  %16643 = vmatpush3.bf16.msra.mxu0 %v17672_v24 }
 0x6ee   : > { %v20268_v10 = vpack.c.bf16 %v7058_v2, %v7057_v8  ;;  %16612 = vmatprep.subr.bf16.mxu1 %v17673_v42  ;;  %16644 = vmatprep.subr.bf16.mxu0 %v17674_v43  ;;  %v7027_v28 = vmax.f32 %v6875_v16, %v6877_v44  ;;  %v7043_v36 = vmax.f32 %v6988_v17, %v6990_v9  ;;  %v17686_v16 = vld [vmem:[%s21653_s11 + $0x158] sm:$0xff]   ;;  %v17687_v17 = vld [vmem:[%s21653_s11 + $0x110] sm:$0xff]   ;;  %v17689_v2 = vld [vmem:[%s21653_s11 + $0x108] sm:$0xff]  }
 0x6ef   : > { %v6879_v47 = vpop.f32.mrf.mxu1  ;;  %v6992_v49 = vpop.f32.mrf.mxu0  ;;  %v17688_v8 = vld [vmem:[%s21653_s11 + $0x150] sm:$0xff]   ;;  %v17690_v44 = vld [vmem:[%s21653_s11 + $0x148] sm:$0xff]   ;;  %v17691_v9 = vld [vmem:[%s21653_s11 + $0x100] sm:$0xff]  }
 0x6f0   : > { %16560 = vmatprep.mubr.bf16.mxu1 %v20268_v10  ;;  %16592 = vmatprep.mubr.bf16.mxu0 %v20268_v10  ;;  %v7059_v45 = vmax.f32 %v7027_v28, %v7043_v36  ;;  %v17696_v28 = vld [vmem:[%s21653_s11 + $0x1f0] sm:$0xff]   ;;  %v17697_v36 = vld [vmem:[%s21653_s11 + $0x1a8] sm:$0xff]  }
 0x6f1   : > { %v6881_v32 = vpop.f32.mrf.mxu1  ;;  %v6994_v7 = vpop.f32.mrf.mxu0  ;;  %16613 = vmatpush3.bf16.msra.mxu1 %v17673_v42  ;;  %16645 = vmatpush3.bf16.msra.mxu0 %v17674_v43  ;;  %v17684_v42 = vld [vmem:[%s21653_s11 + $0x160] sm:$0xff]   ;;  %v17685_v43 = vld [vmem:[%s21653_s11 + $0x118] sm:$0xff]  }
 0x6f2   : > { %v7028_v38 = vmax.f32 %v6879_v47, %v6881_v32  ;;  %v7044_v25 = vmax.f32 %v6992_v49, %v6994_v7  ;;  %16614 = vmatprep.subr.bf16.mxu1 %v17675_v54  ;;  %16646 = vmatprep.subr.bf16.mxu0 %v17676_v62  ;;  %v17694_v47 = vld [vmem:[%s21653_s11 + $0x1f8] sm:$0xff]   ;;  %v17695_v49 = vld [vmem:[%s21653_s11 + $0x1b0] sm:$0xff]   ;;  %v17698_v32 = vld [vmem:[%s21653_s11 + $0x1e8] sm:$0xff]  }
 0x6f3   : > { %v6885_v55 = vpop.f32.mrf.mxu1  ;;  %v6998_v22 = vpop.f32.mrf.mxu0  ;;  %v17699_v7 = vld [vmem:[%s21653_s11 + $0x1a0] sm:$0xff]  }
 0x6f4   : > { %v7060_v46 = vmax.f32 %v7028_v38, %v7044_v25  ;;  %v17700_v38 = vld [vmem:[%s21653_s11 + $0x1e0] sm:$0xff]   ;;  %v17701_v25 = vld [vmem:[%s21653_s11 + $0x198] sm:$0xff]  }
 0x6f5   : > { %v6887_v50 = vpop.f32.mrf.mxu1  ;;  %v7000_v51 = vpop.f32.mrf.mxu0  ;;  %16615 = vmatpush3.bf16.msra.mxu1 %v17675_v54  ;;  %16647 = vmatpush3.bf16.msra.mxu0 %v17676_v62  ;;  %v17692_v54 = vld [vmem:[%s21653_s11 + $0x140] sm:$0xff]   ;;  %v17693_v62 = vld [vmem:[%s21653_s11 + $0x1b8] sm:$0xff]  }
 0x6f6   : > { %v20284_v52 = vpack.c.bf16 %v7060_v46, %v7059_v45  ;;  %16664 = vmatprep.subr.bf16.mxu1 %v17677_v31  ;;  %16696 = vmatprep.subr.bf16.mxu0 %v17678_v21  ;;  %v7029_v20 = vmax.f32 %v6885_v55, %v6887_v50  ;;  %v7045_v15 = vmax.f32 %v6998_v22, %v7000_v51  ;;  %v17704_v55 = vld [vmem:[%s21653_s11 + $0x1d0] sm:$0xff]   ;;  %v17705_v22 = vld [vmem:[%s21653_s11 + $0x188] sm:$0xff]   ;;  %v17707_v46 = vld [vmem:[%s21653_s11 + $0x180] sm:$0xff]  }
 0x6f7   : > { %v6889_v1 = vpop.f32.mrf.mxu1  ;;  %v7002_v12 = vpop.f32.mrf.mxu0  ;;  %v17706_v45 = vld [vmem:[%s21653_s11 + $0x1c8] sm:$0xff]   ;;  %v17708_v50 = vld [vmem:[%s21653_s11 + $0x1c0] sm:$0xff]   ;;  %v17709_v51 = vld [vmem:[%s21653_s11 + $0x238] sm:$0xff]  }
 0x6f8   : > { %16561 = vmatmul.mubr.bf16.gmra.mxu1 %v20284_v52  ;;  %16593 = vmatmul.mubr.bf16.gmra.mxu0 %v20284_v52  ;;  %v7061_v5 = vmax.f32 %v7029_v20, %v7045_v15  ;;  %v17712_v20 = vld [vmem:[%s21653_s11 + $0x220] sm:$0xff]   ;;  %v17713_v15 = vld [vmem:[%s21653_s11 + $0x218] sm:$0xff]  }
 0x6f9   : > { %v6891_v11 = vpop.f32.mrf.mxu1  ;;  %v7004_v13 = vpop.f32.mrf.mxu0 }
 0x6fa   : > { %v7030_v53 = vmax.f32 %v6889_v1, %v6891_v11  ;;  %v7046_v56 = vmax.f32 %v7002_v12, %v7004_v13  ;;  %v17710_v1 = vld [vmem:[%s21653_s11 + $0x230] sm:$0xff]   ;;  %v17711_v12 = vld [vmem:[%s21653_s11 + $0x228] sm:$0xff]  }
 0x6fb   : > { %v6895_v48 = vpop.f32.mrf.mxu1  ;;  %v7008_v63 = vpop.f32.mrf.mxu0  ;;  %v17714_v11 = vld [vmem:[%s21653_s11 + $0x210] sm:$0xff]   ;;  %v17715_v13 = vld [vmem:[%s21653_s11 + $0x208] sm:$0xff]  }
 0x6fc   : > { %v7062_v0 = vmax.f32 %v7030_v53, %v7046_v56  ;;  %v17716_v53 = vld [vmem:[%s21653_s11 + $0x200] sm:$0xff]  }
 0x6fd   : > { %v6897_v4 = vpop.f32.mrf.mxu1  ;;  %v7010_v57 = vpop.f32.mrf.mxu0  ;;  %v17735_v56 = vld [vmem:[%s21651_s9 + $0x4] ss:$36 sps:$4 sm:$0xff]  }
 0x6fe   : > { %v20288_v14 = vpack.c.bf16 %v7062_v0, %v7061_v5  ;;  %v7031_v23 = vmax.f32 %v6895_v48, %v6897_v4  ;;  %v7047_v30 = vmax.f32 %v7008_v63, %v7010_v57 }
 0x6ff   : > { %v6899_v60 = vpop.f32.mrf.mxu1  ;;  %v7012_v61 = vpop.f32.mrf.mxu0 }
 0x700   : > { %16564 = vmatprep.mubr.bf16.mxu1 %v20288_v14  ;;  %16596 = vmatprep.mubr.bf16.mxu0 %v20288_v14  ;;  %v7063_v18 = vmax.f32 %v7031_v23, %v7047_v30 }
 0x701   : > { %v6901_v26 = vpop.f32.mrf.mxu1  ;;  %v7014_v35 = vpop.f32.mrf.mxu0 }
 0x702   : > { %v7032_v58 = vmax.f32 %v6899_v60, %v6901_v26  ;;  %v7048_v24 = vmax.f32 %v7012_v61, %v7014_v35 }
 0x704   : > { %v7064_v19 = vmax.f32 %v7032_v58, %v7048_v24 }
 0x706   : > { %v20292_v33 = vpack.c.bf16 %v7064_v19, %v7063_v18 }
 0x708   : > { %16565 = vmatmul.mubr.bf16.gmra.mxu1 %v20292_v33  ;;  %16597 = vmatmul.mubr.bf16.gmra.mxu0 %v20292_v33 }
 0x709   : > { %16616 = vmatprep.mubr.bf16.mxu1 %v20216_v41  ;;  %16648 = vmatprep.mubr.bf16.mxu0 %v20216_v41 }
 0x710   : > { %16617 = vmatmul.mubr.bf16.vlgmr.msra.gmra.mxu1 %v20220_v6  ;;  %16649 = vmatmul.mubr.bf16.vlgmr.msra.gmra.mxu0 %v20220_v6 }
 0x711   : > { %16620 = vmatprep.mubr.bf16.mxu1 %v20236_v3  ;;  %16652 = vmatprep.mubr.bf16.mxu0 %v20236_v3 }
 0x712   : > { %16665 = vmatpush3.bf16.msra.mxu1 %v17677_v31  ;;  %16697 = vmatpush3.bf16.msra.mxu0 %v17678_v21  ;;  %v17702_v31 = vld [vmem:[%s21653_s11 + $0x1d8] sm:$0xff]   ;;  %v17703_v21 = vld [vmem:[%s21653_s11 + $0x190] sm:$0xff]  }
 0x713   : > { %16666 = vmatprep.subr.bf16.mxu1 %v17679_v27  ;;  %16698 = vmatprep.subr.bf16.mxu0 %v17680_v34 }
 0x716   : > { %16667 = vmatpush3.bf16.msra.mxu1 %v17679_v27  ;;  %16699 = vmatpush3.bf16.msra.mxu0 %v17680_v34 }
 0x717   : > { %16668 = vmatprep.subr.bf16.mxu1 %v17681_v39  ;;  %16700 = vmatprep.subr.bf16.mxu0 %v17682_v40 }
 0x718   : > { %16621 = vmatmul.mubr.bf16.gmra.mxu1 %v20252_v37  ;;  %16653 = vmatmul.mubr.bf16.gmra.mxu0 %v20252_v37 }
 0x719   : > { %16624 = vmatprep.mubr.bf16.mxu1 %v20268_v10  ;;  %16656 = vmatprep.mubr.bf16.mxu0 %v20268_v10 }
 0x71a   : > { %16669 = vmatpush3.bf16.msra.mxu1 %v17681_v39  ;;  %16701 = vmatpush3.bf16.msra.mxu0 %v17682_v40 }
 0x71b   : > { %16670 = vmatprep.subr.bf16.mxu1 %v17683_v59  ;;  %16702 = vmatprep.subr.bf16.mxu0 %v17684_v42 }
 0x71e   : > { %16671 = vmatpush3.bf16.msra.mxu1 %v17683_v59  ;;  %16703 = vmatpush3.bf16.msra.mxu0 %v17684_v42 }
 0x71f   : > { %16672 = vmatprep.subr.bf16.mxu1 %v17685_v43  ;;  %16704 = vmatprep.subr.bf16.mxu0 %v17686_v16 }
 0x720   : > { %16625 = vmatmul.mubr.bf16.gmra.mxu1 %v20284_v52  ;;  %16657 = vmatmul.mubr.bf16.gmra.mxu0 %v20284_v52 }
 0x721   : > { %16628 = vmatprep.mubr.bf16.mxu1 %v20288_v14  ;;  %16660 = vmatprep.mubr.bf16.mxu0 %v20288_v14 }
 0x722   : > { %16673 = vmatpush3.bf16.msra.mxu1 %v17685_v43  ;;  %16705 = vmatpush3.bf16.msra.mxu0 %v17686_v16 }
 0x723   : > { %16674 = vmatprep.subr.bf16.mxu1 %v17687_v17  ;;  %16706 = vmatprep.subr.bf16.mxu0 %v17688_v8 }
 0x726   : > { %16675 = vmatpush3.bf16.msra.mxu1 %v17687_v17  ;;  %16707 = vmatpush3.bf16.msra.mxu0 %v17688_v8 }
 0x727   : > { %16676 = vmatprep.subr.bf16.mxu1 %v17689_v2  ;;  %16708 = vmatprep.subr.bf16.mxu0 %v17690_v44 }
 0x728   : > { %16629 = vmatmul.mubr.bf16.gmra.mxu1 %v20292_v33  ;;  %16661 = vmatmul.mubr.bf16.gmra.mxu0 %v20292_v33 }
 0x729   : > { %16680 = vmatprep.mubr.bf16.mxu1 %v20216_v41  ;;  %16712 = vmatprep.mubr.bf16.mxu0 %v20216_v41 }
 0x72a   : > { %16677 = vmatpush3.bf16.msra.mxu1 %v17689_v2  ;;  %16709 = vmatpush3.bf16.msra.mxu0 %v17690_v44 }
 0x72b   : > { %16678 = vmatprep.subr.bf16.mxu1 %v17691_v9  ;;  %16710 = vmatprep.subr.bf16.mxu0 %v17692_v54 }
 0x72e   : > { %16679 = vmatpush3.bf16.msra.mxu1 %v17691_v9  ;;  %16711 = vmatpush3.bf16.msra.mxu0 %v17692_v54 }
 0x72f   : > { %16728 = vmatprep.subr.bf16.mxu1 %v17693_v62  ;;  %16760 = vmatprep.subr.bf16.mxu0 %v17694_v47 }
 0x731   : > { %16681 = vmatmul.mubr.bf16.vlgmr.msra.gmra.mxu1 %v20220_v6  ;;  %16713 = vmatmul.mubr.bf16.vlgmr.msra.gmra.mxu0 %v20220_v6 }
 0x732   : > { %16684 = vmatprep.mubr.bf16.mxu1 %v20236_v3  ;;  %16716 = vmatprep.mubr.bf16.mxu0 %v20236_v3 }
 0x733   : > { %16729 = vmatpush3.bf16.msra.mxu1 %v17693_v62  ;;  %16761 = vmatpush3.bf16.msra.mxu0 %v17694_v47 }
 0x734   : > { %16730 = vmatprep.subr.bf16.mxu1 %v17695_v49  ;;  %16762 = vmatprep.subr.bf16.mxu0 %v17696_v28 }
 0x737   : > { %16731 = vmatpush3.bf16.msra.mxu1 %v17695_v49  ;;  %16763 = vmatpush3.bf16.msra.mxu0 %v17696_v28 }
 0x738   : > { %16732 = vmatprep.subr.bf16.mxu1 %v17697_v36  ;;  %16764 = vmatprep.subr.bf16.mxu0 %v17698_v32 }
 0x739   : > { %16685 = vmatmul.mubr.bf16.gmra.mxu1 %v20252_v37  ;;  %16717 = vmatmul.mubr.bf16.gmra.mxu0 %v20252_v37 }
 0x73a   : > { %16688 = vmatprep.mubr.bf16.mxu1 %v20268_v10  ;;  %16720 = vmatprep.mubr.bf16.mxu0 %v20268_v10 }
 0x73b   : > { %16733 = vmatpush3.bf16.msra.mxu1 %v17697_v36  ;;  %16765 = vmatpush3.bf16.msra.mxu0 %v17698_v32 }
 0x73c   : > { %16734 = vmatprep.subr.bf16.mxu1 %v17699_v7  ;;  %16766 = vmatprep.subr.bf16.mxu0 %v17700_v38 }
 0x73f   : > { %16735 = vmatpush3.bf16.msra.mxu1 %v17699_v7  ;;  %16767 = vmatpush3.bf16.msra.mxu0 %v17700_v38 }
 0x740   : > { %16736 = vmatprep.subr.bf16.mxu1 %v17701_v25  ;;  %16768 = vmatprep.subr.bf16.mxu0 %v17702_v31 }
 0x741   : > { %16689 = vmatmul.mubr.bf16.gmra.mxu1 %v20284_v52  ;;  %16721 = vmatmul.mubr.bf16.gmra.mxu0 %v20284_v52 }
 0x742   : > { %16692 = vmatprep.mubr.bf16.mxu1 %v20288_v14  ;;  %16724 = vmatprep.mubr.bf16.mxu0 %v20288_v14 }
 0x743   : > { %16737 = vmatpush3.bf16.msra.mxu1 %v17701_v25  ;;  %16769 = vmatpush3.bf16.msra.mxu0 %v17702_v31 }
 0x744   : > { %16738 = vmatprep.subr.bf16.mxu1 %v17703_v21  ;;  %16770 = vmatprep.subr.bf16.mxu0 %v17704_v55 }
 0x747   : > { %16739 = vmatpush3.bf16.msra.mxu1 %v17703_v21  ;;  %16771 = vmatpush3.bf16.msra.mxu0 %v17704_v55 }
 0x748   : > { %16740 = vmatprep.subr.bf16.mxu1 %v17705_v22  ;;  %16772 = vmatprep.subr.bf16.mxu0 %v17706_v45 }
 0x749   : > { %16693 = vmatmul.mubr.bf16.gmra.mxu1 %v20292_v33  ;;  %16725 = vmatmul.mubr.bf16.gmra.mxu0 %v20292_v33 }
 0x74a   : > { %16744 = vmatprep.mubr.bf16.mxu1 %v20216_v41  ;;  %16776 = vmatprep.mubr.bf16.mxu0 %v20216_v41 }
 0x74b   : > { %16741 = vmatpush3.bf16.msra.mxu1 %v17705_v22  ;;  %16773 = vmatpush3.bf16.msra.mxu0 %v17706_v45 }
 0x74c   : > { %16742 = vmatprep.subr.bf16.mxu1 %v17707_v46  ;;  %16774 = vmatprep.subr.bf16.mxu0 %v17708_v50 }
 0x74f   : > { %16743 = vmatpush3.bf16.msra.mxu1 %v17707_v46  ;;  %16775 = vmatpush3.bf16.msra.mxu0 %v17708_v50 }
 0x750   : > { %16792 = vmatprep.subr.bf16.mxu1 %v17709_v51 }
 0x752   : > { %16745 = vmatmul.mubr.bf16.vlgmr.msra.gmra.mxu1 %v20220_v6  ;;  %16777 = vmatmul.mubr.bf16.vlgmr.msra.gmra.mxu0 %v20220_v6 }
 0x753   : > { %16748 = vmatprep.mubr.bf16.mxu1 %v20236_v3  ;;  %16780 = vmatprep.mubr.bf16.mxu0 %v20236_v3 }
 0x754   : > { %16793 = vmatpush3.bf16.msra.mxu1 %v17709_v51 }
 0x755   : > { %16794 = vmatprep.subr.bf16.mxu1 %v17710_v1 }
 0x758   : > { %16795 = vmatpush3.bf16.msra.mxu1 %v17710_v1 }
 0x759   : > { %16796 = vmatprep.subr.bf16.mxu1 %v17711_v12 }
 0x75a   : > { %16749 = vmatmul.mubr.bf16.gmra.mxu1 %v20252_v37  ;;  %16781 = vmatmul.mubr.bf16.gmra.mxu0 %v20252_v37 }
 0x75b   : > { %16752 = vmatprep.mubr.bf16.mxu1 %v20268_v10  ;;  %16784 = vmatprep.mubr.bf16.mxu0 %v20268_v10 }
 0x75c   : > { %16797 = vmatpush3.bf16.msra.mxu1 %v17711_v12 }
 0x75d   : > { %16798 = vmatprep.subr.bf16.mxu1 %v17712_v20 }
 0x760   : > { %16799 = vmatpush3.bf16.msra.mxu1 %v17712_v20 }
 0x761   : > { %16800 = vmatprep.subr.bf16.mxu1 %v17713_v15 }
 0x762   : > { %16753 = vmatmul.mubr.bf16.gmra.mxu1 %v20284_v52  ;;  %16785 = vmatmul.mubr.bf16.gmra.mxu0 %v20284_v52 }
 0x763   : > { %16756 = vmatprep.mubr.bf16.mxu1 %v20288_v14  ;;  %16788 = vmatprep.mubr.bf16.mxu0 %v20288_v14 }
 0x764   : > { %16801 = vmatpush3.bf16.msra.mxu1 %v17713_v15 }
 0x765   : > { %16802 = vmatprep.subr.bf16.mxu1 %v17714_v11 }
 0x768   : > { %16803 = vmatpush3.bf16.msra.mxu1 %v17714_v11 }
 0x769   : > { %16804 = vmatprep.subr.bf16.mxu1 %v17715_v13 }
 0x76a   : > { %16757 = vmatmul.mubr.bf16.gmra.mxu1 %v20292_v33  ;;  %16789 = vmatmul.mubr.bf16.gmra.mxu0 %v20292_v33 }
 0x76b   : > { %16808 = vmatprep.mubr.bf16.mxu1 %v20216_v41  ;;  %10946 = vmatprep.mubr.bf16.mxu0 %v17735_v56 }
 0x76c   : > { %16805 = vmatpush3.bf16.msra.mxu1 %v17715_v13 }
 0x76d   : > { %16806 = vmatprep.subr.bf16.mxu1 %v17716_v53 }
 0x770   : > { %16807 = vmatpush3.bf16.msra.mxu1 %v17716_v53 }
 0x773   : > { %16809 = vmatmul.mubr.bf16.vlgmr.msra.gmra.mxu1 %v20220_v6  ;;  %v17766_v6 = vld [vmem:[%s21651_s9 + $0xc] ss:$36 sps:$4 sm:$0xff]  }
 0x774   : > { %16812 = vmatprep.mubr.bf16.mxu1 %v20236_v3 }
 0x77b   : > { %16813 = vmatmul.mubr.bf16.gmra.mxu1 %v20252_v37 }
 0x77c   : > { %16816 = vmatprep.mubr.bf16.mxu1 %v20268_v10 }
 0x783   : > { %16817 = vmatmul.mubr.bf16.gmra.mxu1 %v20284_v52 }
 0x784   : > { %16820 = vmatprep.mubr.bf16.mxu1 %v20288_v14 }
 0x78b   : > { %16821 = vmatmul.mubr.bf16.gmra.mxu1 %v20292_v33 }
 0x78c   : > { %11107 = vmatprep.mubr.bf16.mxu1 %v17766_v6 }
 0x798   : > { %v16554_v41 = vpop.f32.mrf.mxu1  ;;  %v16586_v48 = vpop.f32.mrf.mxu0 }
 0x79a   : > { %v7171_v3 = vpop.f32.mrf.mxu1  ;;  %v7413_v63 = vpop.f32.mrf.mxu0 }
 0x79c   : > { %v16555_v5 = vpop.f32.mrf.mxu1  ;;  %v16587_v0 = vpop.f32.mrf.mxu0 }
 0x79d   : > { %v14894_v37 = vpack.c.bf16 %v16555_v5, %v16554_v41  ;;  %v14934_v4 = vpack.c.bf16 %v16587_v0, %v16586_v48 }
 0x79e   : > { %v7174_v10 = vpop.f32.mrf.mxu1  ;;  %v7416_v57 = vpop.f32.mrf.mxu0 }
 0x79f   : > { %15281 = vst [vmem:[#allocation4 + $0x8] sm:$0xff] %v14894_v37   ;;  %15289 = vst [vmem:[#allocation4 + $0x48] sm:$0xff] %v14934_v4   ;;  %v14889_v52 = vpack.c.bf16 %v7174_v10, %v7171_v3  ;;  %v14929_v14 = vpack.c.bf16 %v7416_v57, %v7413_v63 }
 0x7a1   : > { %14890 = vst [vmem:[#allocation4] sm:$0xff] %v14889_v52   ;;  %15288 = vst [vmem:[#allocation4 + $0x40] sm:$0xff] %v14929_v14  }
 0x7a8   : > { %v16558_v60 = vpop.f32.mrf.mxu1  ;;  %v16590_v61 = vpop.f32.mrf.mxu0 }
 0x7aa   : > { %v7187_v23 = vpop.f32.mrf.mxu1  ;;  %v7429_v30 = vpop.f32.mrf.mxu0 }
 0x7ac   : > { %v16559_v26 = vpop.f32.mrf.mxu1  ;;  %v16591_v35 = vpop.f32.mrf.mxu0 }
 0x7ad   : > { %v14904_v58 = vpack.c.bf16 %v16559_v26, %v16558_v60  ;;  %v14944_v24 = vpack.c.bf16 %v16591_v35, %v16590_v61 }
 0x7ae   : > { %v7190_v18 = vpop.f32.mrf.mxu1  ;;  %v7432_v19 = vpop.f32.mrf.mxu0 }
 0x7af   : > { %15283 = vst [vmem:[#allocation4 + $0x18] sm:$0xff] %v14904_v58   ;;  %15291 = vst [vmem:[#allocation4 + $0x58] sm:$0xff] %v14944_v24   ;;  %v14899_v33 = vpack.c.bf16 %v7190_v18, %v7187_v23  ;;  %v14939_v27 = vpack.c.bf16 %v7432_v19, %v7429_v30 }
 0x7b1   : > { %15282 = vst [vmem:[#allocation4 + $0x10] sm:$0xff] %v14899_v33   ;;  %15290 = vst [vmem:[#allocation4 + $0x50] sm:$0xff] %v14939_v27  }
 0x7b6   : > { %v17725_v27 = vld [vmem:[#allocation4 + $0x58] sm:$0xff]  }
 0x7b8   : > { %v16562_v34 = vpop.f32.mrf.mxu1  ;;  %v16594_v39 = vpop.f32.mrf.mxu0 }
 0x7ba   : > { %v7203_v40 = vpop.f32.mrf.mxu1  ;;  %v7445_v59 = vpop.f32.mrf.mxu0 }
 0x7bc   : > { %v16563_v42 = vpop.f32.mrf.mxu1  ;;  %v16595_v43 = vpop.f32.mrf.mxu0 }
 0x7bd   : > { %v14914_v16 = vpack.c.bf16 %v16563_v42, %v16562_v34  ;;  %v14954_v17 = vpack.c.bf16 %v16595_v43, %v16594_v39 }
 0x7be   : > { %v7206_v8 = vpop.f32.mrf.mxu1  ;;  %v7448_v2 = vpop.f32.mrf.mxu0 }
 0x7bf   : > { %15285 = vst [vmem:[#allocation4 + $0x28] sm:$0xff] %v14914_v16   ;;  %15293 = vst [vmem:[#allocation4 + $0x68] sm:$0xff] %v14954_v17   ;;  %v14909_v44 = vpack.c.bf16 %v7206_v8, %v7203_v40  ;;  %v14949_v9 = vpack.c.bf16 %v7448_v2, %v7445_v59  ;;  %v17726_v16 = vld [vmem:[#allocation4 + $0x18] sm:$0xff]   ;;  %v17727_v2 = vld [vmem:[#allocation4 + $0x50] sm:$0xff]  }
 0x7c1   : > { %15284 = vst [vmem:[#allocation4 + $0x20] sm:$0xff] %v14909_v44   ;;  %15292 = vst [vmem:[#allocation4 + $0x60] sm:$0xff] %v14949_v9  }
 0x7c6   : > { %v17721_v4 = vld [vmem:[#allocation4 + $0x68] sm:$0xff]  }
 0x7c7   : > { %v17722_v23 = vld [vmem:[#allocation4 + $0x28] sm:$0xff]  }
 0x7c8   : > { %v16566_v54 = vpop.f32.mrf.mxu1  ;;  %v16598_v62 = vpop.f32.mrf.mxu0  ;;  %v17723_v35 = vld [vmem:[#allocation4 + $0x60] sm:$0xff]  }
 0x7c9   : > { %v17724_v18 = vld [vmem:[#allocation4 + $0x20] sm:$0xff]  }
 0x7ca   : > { %v7219_v47 = vpop.f32.mrf.mxu1  ;;  %v7461_v49 = vpop.f32.mrf.mxu0 }
 0x7cc   : > { %v16567_v28 = vpop.f32.mrf.mxu1  ;;  %v16599_v36 = vpop.f32.mrf.mxu0 }
 0x7cd   : > { %v14924_v32 = vpack.c.bf16 %v16567_v28, %v16566_v54  ;;  %v14964_v7 = vpack.c.bf16 %v16599_v36, %v16598_v62  ;;  %v17728_v54 = vld [vmem:[#allocation4 + $0x10] sm:$0xff]  }
 0x7ce   : > { %v7222_v38 = vpop.f32.mrf.mxu1  ;;  %v7464_v25 = vpop.f32.mrf.mxu0 }
 0x7cf   : > { %15287 = vst [vmem:[#allocation4 + $0x38] sm:$0xff] %v14924_v32   ;;  %15295 = vst [vmem:[#allocation4 + $0x78] sm:$0xff] %v14964_v7   ;;  %v14919_v31 = vpack.c.bf16 %v7222_v38, %v7219_v47  ;;  %v14959_v21 = vpack.c.bf16 %v7464_v25, %v7461_v49  ;;  %v17729_v49 = vld [vmem:[#allocation4 + $0x48] sm:$0xff]  }
 0x7d0   : > { %v16618_v55 = vpop.f32.mrf.mxu1  ;;  %v16650_v22 = vpop.f32.mrf.mxu0 }
 0x7d1   : > { %15286 = vst [vmem:[#allocation4 + $0x30] sm:$0xff] %v14919_v31   ;;  %15294 = vst [vmem:[#allocation4 + $0x70] sm:$0xff] %v14959_v21   ;;  %v17730_v31 = vld [vmem:[#allocation4 + $0x8] sm:$0xff]   ;;  %v17731_v21 = vld [vmem:[#allocation4 + $0x40] sm:$0xff]  }
 0x7d2   : > { %v7655_v45 = vpop.f32.mrf.mxu1  ;;  %v7897_v46 = vpop.f32.mrf.mxu0 }
 0x7d4   : > { %v16619_v50 = vpop.f32.mrf.mxu1  ;;  %v16651_v51 = vpop.f32.mrf.mxu0 }
 0x7d5   : > { %v14974_v1 = vpack.c.bf16 %v16619_v50, %v16618_v55  ;;  %v15014_v12 = vpack.c.bf16 %v16651_v51, %v16650_v22  ;;  %v17732_v50 = vld [vmem:[#allocation4] sm:$0xff]  }
 0x7d6   : > { %v7658_v20 = vpop.f32.mrf.mxu1  ;;  %v7900_v15 = vpop.f32.mrf.mxu0  ;;  %v17717_v11 = vld [vmem:[#allocation4 + $0x78] sm:$0xff]   ;;  %v17733_v51 = vld [vmem:[%s21651_s9] ss:$36 sps:$4 sm:$0xff]  }
 0x7d7   : > { %15297 = vst [vmem:[#allocation4 + $0x88] sm:$0xff] %v14974_v1   ;;  %15305 = vst [vmem:[#allocation4 + $0xc8] sm:$0xff] %v15014_v12   ;;  %v14969_v13 = vpack.c.bf16 %v7658_v20, %v7655_v45  ;;  %v15009_v53 = vpack.c.bf16 %v7900_v15, %v7897_v46  ;;  %v17718_v56 = vld [vmem:[#allocation4 + $0x38] sm:$0xff]   ;;  %15780 = vmatprep.subr.bf16.mxu0 %v17717_v11  ;;  %v17743_v20 = vld [vmem:[%s21651_s9 + $0x4c] ss:$36 sps:$4 sm:$0xff]  }
 0x7d8   : > { %v16622_v41 = vpop.f32.mrf.mxu1  ;;  %v16654_v48 = vpop.f32.mrf.mxu0  ;;  %v17719_v6 = vld [vmem:[#allocation4 + $0x70] sm:$0xff]   ;;  %15781 = vmatpush3.bf16.msra.mxu0 %v17718_v56 }
 0x7d9   : > { %15296 = vst [vmem:[#allocation4 + $0x80] sm:$0xff] %v14969_v13   ;;  %15304 = vst [vmem:[#allocation4 + $0xc0] sm:$0xff] %v15009_v53   ;;  %15782 = vmatprep.subr.bf16.mxu0 %v17719_v6  ;;  %v17720_v5 = vld [vmem:[#allocation4 + $0x30] sm:$0xff]  }
 0x7da   : > { %v7671_v3 = vpop.f32.mrf.mxu1  ;;  %v7913_v63 = vpop.f32.mrf.mxu0 }
 0x7dc   : > { %v16623_v0 = vpop.f32.mrf.mxu1  ;;  %v16655_v37 = vpop.f32.mrf.mxu0  ;;  %15783 = vmatpush3.bf16.msra.mxu0 %v17720_v5 }
 0x7dd   : > { %v14984_v10 = vpack.c.bf16 %v16623_v0, %v16622_v41  ;;  %v15024_v57 = vpack.c.bf16 %v16655_v37, %v16654_v48  ;;  %15784 = vmatprep.subr.bf16.mxu0 %v17721_v4 }
 0x7de   : > { %v7674_v52 = vpop.f32.mrf.mxu1  ;;  %v7916_v14 = vpop.f32.mrf.mxu0 }
 0x7df   : > { %15299 = vst [vmem:[#allocation4 + $0x98] sm:$0xff] %v14984_v10   ;;  %15307 = vst [vmem:[#allocation4 + $0xd8] sm:$0xff] %v15024_v57   ;;  %v14979_v60 = vpack.c.bf16 %v7674_v52, %v7671_v3  ;;  %v15019_v61 = vpack.c.bf16 %v7916_v14, %v7913_v63  ;;  %v17741_v57 = vld [vmem:[%s21651_s9 + $0x48] ss:$36 sps:$4 sm:$0xff]  }
 0x7e0   : > { %v16626_v30 = vpop.f32.mrf.mxu1  ;;  %v16658_v26 = vpop.f32.mrf.mxu0  ;;  %15785 = vmatpush3.bf16.msra.mxu0 %v17722_v23 }
 0x7e1   : > { %15298 = vst [vmem:[#allocation4 + $0x90] sm:$0xff] %v14979_v60   ;;  %15306 = vst [vmem:[#allocation4 + $0xd0] sm:$0xff] %v15019_v61   ;;  %15786 = vmatprep.subr.bf16.mxu0 %v17723_v35  ;;  %v17750_v60 = vld [vmem:[%s21651_s9 + $0x94] ss:$36 sps:$4 sm:$0xff]  }
 0x7e2   : > { %v7687_v58 = vpop.f32.mrf.mxu1  ;;  %v7929_v24 = vpop.f32.mrf.mxu0 }
 0x7e4   : > { %v16627_v19 = vpop.f32.mrf.mxu1  ;;  %v16659_v33 = vpop.f32.mrf.mxu0  ;;  %15787 = vmatpush3.bf16.msra.mxu0 %v17724_v18 }
 0x7e5   : > { %v14994_v34 = vpack.c.bf16 %v16627_v19, %v16626_v30  ;;  %v15034_v39 = vpack.c.bf16 %v16659_v33, %v16658_v26  ;;  %15788 = vmatprep.subr.bf16.mxu0 %v17725_v27 }
 0x7e6   : > { %v7690_v40 = vpop.f32.mrf.mxu1  ;;  %v7932_v59 = vpop.f32.mrf.mxu0 }
 0x7e7   : > { %15301 = vst [vmem:[#allocation4 + $0xa8] sm:$0xff] %v14994_v34   ;;  %15309 = vst [vmem:[#allocation4 + $0xe8] sm:$0xff] %v15034_v39   ;;  %v14989_v42 = vpack.c.bf16 %v7690_v40, %v7687_v58  ;;  %v15029_v43 = vpack.c.bf16 %v7932_v59, %v7929_v24  ;;  %v17747_v40 = vld [vmem:[#allocation4 + $0xd8] sm:$0xff]   ;;  %v17748_v59 = vld [vmem:[%s21651_s9 + $0x90] ss:$36 sps:$4 sm:$0xff]  }
 0x7e8   : > { %v16630_v17 = vpop.f32.mrf.mxu1  ;;  %v16662_v8 = vpop.f32.mrf.mxu0  ;;  %15789 = vmatpush3.bf16.msra.mxu0 %v17726_v16  ;;  %v17757_v16 = vld [vmem:[%s21651_s9 + $0xdc] ss:$36 sps:$4 sm:$0xff]  }
 0x7e9   : > { %15300 = vst [vmem:[#allocation4 + $0xa0] sm:$0xff] %v14989_v42   ;;  %15308 = vst [vmem:[#allocation4 + $0xe0] sm:$0xff] %v15029_v43   ;;  %15790 = vmatprep.subr.bf16.mxu0 %v17727_v2 }
 0x7ea   : > { %v7703_v44 = vpop.f32.mrf.mxu1  ;;  %v7945_v9 = vpop.f32.mrf.mxu0 }
 0x7ec   : > { %v16631_v62 = vpop.f32.mrf.mxu1  ;;  %v16663_v47 = vpop.f32.mrf.mxu0  ;;  %15791 = vmatpush3.bf16.msra.mxu0 %v17728_v54 }
 0x7ed   : > { %v15004_v28 = vpack.c.bf16 %v16631_v62, %v16630_v17  ;;  %v15044_v36 = vpack.c.bf16 %v16663_v47, %v16662_v8  ;;  %15792 = vmatprep.subr.bf16.mxu0 %v17729_v49  ;;  %v17752_v47 = vld [vmem:[#allocation4 + $0xd0] sm:$0xff]  }
 0x7ee   : > { %v7706_v32 = vpop.f32.mrf.mxu1  ;;  %v7948_v7 = vpop.f32.mrf.mxu0  ;;  %v17740_v10 = vld [vmem:[#allocation4 + $0xe8] sm:$0xff]  }
 0x7ef   : > { %15303 = vst [vmem:[#allocation4 + $0xb8] sm:$0xff] %v15004_v28   ;;  %15311 = vst [vmem:[#allocation4 + $0xf8] sm:$0xff] %v15044_v36   ;;  %v14999_v38 = vpack.c.bf16 %v7706_v32, %v7703_v44  ;;  %v15039_v25 = vpack.c.bf16 %v7948_v7, %v7945_v9  ;;  %v17744_v35 = vld [vmem:[#allocation4 + $0xa8] sm:$0xff]   ;;  %v17751_v9 = vld [vmem:[#allocation4 + $0x98] sm:$0xff]  }
 0x7f0   : > { %15793 = vmatpush3.bf16.msra.mxu0 %v17730_v31  ;;  %v17745_v18 = vld [vmem:[#allocation4 + $0xe0] sm:$0xff]   ;;  %v17753_v7 = vld [vmem:[#allocation4 + $0x90] sm:$0xff]  }
 0x7f1   : > { %15302 = vst [vmem:[#allocation4 + $0xb0] sm:$0xff] %v14999_v38   ;;  %15310 = vst [vmem:[#allocation4 + $0xf0] sm:$0xff] %v15039_v25   ;;  %v16682_v55 = vpop.f32.mrf.mxu1  ;;  %v16714_v22 = vpop.f32.mrf.mxu0  ;;  %15794 = vmatprep.subr.bf16.mxu0 %v17731_v21  ;;  %v17746_v39 = vld [vmem:[#allocation4 + $0xa0] sm:$0xff]   ;;  %v17754_v38 = vld [vmem:[#allocation4 + $0xc8] sm:$0xff]  }
 0x7f2   : > { %v17755_v25 = vld [vmem:[%s21651_s9 + $0xd8] ss:$36 sps:$4 sm:$0xff]  }
 0x7f3   : > { %v8139_v45 = vpop.f32.mrf.mxu1  ;;  %v8381_v46 = vpop.f32.mrf.mxu0 }
 0x7f4   : > { %15795 = vmatpush3.bf16.msra.mxu0 %v17732_v50 }
 0x7f5   : > { %v16683_v1 = vpop.f32.mrf.mxu1  ;;  %v16715_v12 = vpop.f32.mrf.mxu0 }
 0x7f6   : > { %v15054_v15 = vpack.c.bf16 %v16683_v1, %v16682_v55  ;;  %v15094_v11 = vpack.c.bf16 %v16715_v12, %v16714_v22  ;;  %v17736_v13 = vld [vmem:[#allocation4 + $0xf8] sm:$0xff]   ;;  %v17763_v55 = vld [vmem:[%s21651_s9 + $0x124] ss:$36 sps:$4 sm:$0xff]  }
 0x7f7   : > { %v8142_v53 = vpop.f32.mrf.mxu1  ;;  %v8384_v56 = vpop.f32.mrf.mxu0  ;;  %v17737_v41 = vld [vmem:[#allocation4 + $0xb8] sm:$0xff]   ;;  %10947 = vmatmul.mubr.bf16.vlgmr.msra.gmra.mxu0 %v17733_v51  ;;  %15892 = vmatprep.subr.bf16.mxu1 %v17736_v13  ;;  %v17758_v51 = vld [vmem:[#allocation4 + $0x88] sm:$0xff]   ;;  %v17760_v13 = vld [vmem:[#allocation4 + $0x80] sm:$0xff]  }
 0x7f8   : > { %15313 = vst [vmem:[#allocation4 + $0x108] sm:$0xff] %v15054_v15   ;;  %15321 = vst [vmem:[#allocation4 + $0x148] sm:$0xff] %v15094_v11   ;;  %v15049_v48 = vpack.c.bf16 %v8142_v53, %v8139_v45  ;;  %v15089_v6 = vpack.c.bf16 %v8384_v56, %v8381_v46  ;;  %v17738_v3 = vld [vmem:[#allocation4 + $0xf0] sm:$0xff]   ;;  %15893 = vmatpush3.bf16.msra.mxu1 %v17737_v41  ;;  %10954 = vmatprep.mubr.bf16.mxu0 %v17743_v20  ;;  %v17759_v20 = vld [vmem:[#allocation4 + $0xc0] sm:$0xff]  }
 0x7f9   : > { %v16686_v63 = vpop.f32.mrf.mxu1  ;;  %v16718_v5 = vpop.f32.mrf.mxu0  ;;  %15894 = vmatprep.subr.bf16.mxu1 %v17738_v3  ;;  %v17739_v4 = vld [vmem:[#allocation4 + $0xb0] sm:$0xff]   ;;  %v17761_v41 = vld [vmem:[%s21651_s9 + $0x120] ss:$36 sps:$4 sm:$0xff]  }
 0x7fa   : > { %15312 = vst [vmem:[#allocation4 + $0x100] sm:$0xff] %v15049_v48   ;;  %15320 = vst [vmem:[#allocation4 + $0x140] sm:$0xff] %v15089_v6   ;;  %v17764_v48 = vld [vmem:[%s21651_s9 + $0x8] ss:$36 sps:$4 sm:$0xff]  }
 0x7fb   : > { %v8155_v0 = vpop.f32.mrf.mxu1  ;;  %v8397_v37 = vpop.f32.mrf.mxu0  ;;  %v17774_v6 = vld [vmem:[%s21651_s9 + $0x16c] ss:$36 sps:$4 sm:$0xff]  }
 0x7fc   : > { %15895 = vmatpush3.bf16.msra.mxu1 %v17739_v4 }
 0x7fd   : > { %v16687_v52 = vpop.f32.mrf.mxu1  ;;  %v16719_v14 = vpop.f32.mrf.mxu0  ;;  %15896 = vmatprep.subr.bf16.mxu1 %v17740_v10 }
 0x7fe   : > { %v15064_v61 = vpack.c.bf16 %v16687_v52, %v16686_v63  ;;  %v15104_v23 = vpack.c.bf16 %v16719_v14, %v16718_v5  ;;  %v17777_v5 = vld [vmem:[%s21651_s9 + $0x54] ss:$36 sps:$4 sm:$0xff]  }
 0x7ff   : > { %v8158_v30 = vpop.f32.mrf.mxu1  ;;  %v8400_v26 = vpop.f32.mrf.mxu0  ;;  %10955 = vmatmul.mubr.bf16.gmra.mxu0 %v17741_v57 }
 0x800   : > { %15315 = vst [vmem:[#allocation4 + $0x118] sm:$0xff] %v15064_v61   ;;  %15323 = vst [vmem:[#allocation4 + $0x158] sm:$0xff] %v15104_v23   ;;  %v15059_v58 = vpack.c.bf16 %v8158_v30, %v8155_v0  ;;  %v15099_v24 = vpack.c.bf16 %v8400_v26, %v8397_v37  ;;  %15897 = vmatpush3.bf16.msra.mxu1 %v17744_v35  ;;  %10962 = vmatprep.mubr.bf16.mxu0 %v17750_v60 }
 0x801   : > { %v16690_v19 = vpop.f32.mrf.mxu1  ;;  %v16722_v33 = vpop.f32.mrf.mxu0  ;;  %15898 = vmatprep.subr.bf16.mxu1 %v17745_v18  ;;  %v17775_v18 = vld [vmem:[%s21651_s9 + $0x50] ss:$36 sps:$4 sm:$0xff]  }
 0x802   : > { %15314 = vst [vmem:[#allocation4 + $0x110] sm:$0xff] %v15059_v58   ;;  %15322 = vst [vmem:[#allocation4 + $0x150] sm:$0xff] %v15099_v24   ;;  %v17772_v24 = vld [vmem:[%s21651_s9 + $0x168] ss:$36 sps:$4 sm:$0xff]  }
 0x803   : > { %v8171_v27 = vpop.f32.mrf.mxu1  ;;  %v8413_v34 = vpop.f32.mrf.mxu0 }
 0x804   : > { %15899 = vmatpush3.bf16.msra.mxu1 %v17746_v39 }
 0x805   : > { %v16691_v42 = vpop.f32.mrf.mxu1  ;;  %v16723_v43 = vpop.f32.mrf.mxu0  ;;  %15900 = vmatprep.subr.bf16.mxu1 %v17747_v40 }
 0x806   : > { %v15074_v17 = vpack.c.bf16 %v16691_v42, %v16690_v19  ;;  %v15114_v8 = vpack.c.bf16 %v16723_v43, %v16722_v33  ;;  %v17784_v33 = vld [vmem:[%s21651_s9 + $0x1b4] ss:$36 sps:$4 sm:$0xff]  }
 0x807   : > { %v8174_v2 = vpop.f32.mrf.mxu1  ;;  %v8416_v44 = vpop.f32.mrf.mxu0  ;;  %10963 = vmatmul.mubr.bf16.gmra.mxu0 %v17748_v59 }
 0x808   : > { %15317 = vst [vmem:[#allocation4 + $0x128] sm:$0xff] %v15074_v17   ;;  %15325 = vst [vmem:[#allocation4 + $0x168] sm:$0xff] %v15114_v8   ;;  %v15069_v54 = vpack.c.bf16 %v8174_v2, %v8171_v27  ;;  %v15109_v62 = vpack.c.bf16 %v8416_v44, %v8413_v34  ;;  %15901 = vmatpush3.bf16.msra.mxu1 %v17751_v9  ;;  %10970 = vmatprep.mubr.bf16.mxu0 %v17757_v16  ;;  %v17787_v27 = vld [vmem:[%s21651_s9 + $0x9c] ss:$36 sps:$4 sm:$0xff]  }
 0x809   : > { %v16694_v49 = vpop.f32.mrf.mxu1  ;;  %v16726_v28 = vpop.f32.mrf.mxu0  ;;  %15902 = vmatprep.subr.bf16.mxu1 %v17752_v47 }
 0x80a   : > { %15316 = vst [vmem:[#allocation4 + $0x120] sm:$0xff] %v15069_v54   ;;  %15324 = vst [vmem:[#allocation4 + $0x160] sm:$0xff] %v15109_v62  }
 0x80b   : > { %v8187_v36 = vpop.f32.mrf.mxu1  ;;  %v8429_v32 = vpop.f32.mrf.mxu0 }
 0x80c   : > { %15903 = vmatpush3.bf16.msra.mxu1 %v17753_v7  ;;  %v17797_v7 = vld [vmem:[%s21651_s9 + $0xe4] ss:$36 sps:$4 sm:$0xff]  }
 0x80d   : > { %v16695_v31 = vpop.f32.mrf.mxu1  ;;  %v16727_v21 = vpop.f32.mrf.mxu0  ;;  %15904 = vmatprep.subr.bf16.mxu1 %v17754_v38 }
 0x80e   : > { %v15084_v22 = vpack.c.bf16 %v16695_v31, %v16694_v49  ;;  %v15124_v45 = vpack.c.bf16 %v16727_v21, %v16726_v28  ;;  %v17782_v49 = vld [vmem:[%s21651_s9 + $0x1b0] ss:$36 sps:$4 sm:$0xff]   ;;  %v17785_v28 = vld [vmem:[%s21651_s9 + $0x98] ss:$36 sps:$4 sm:$0xff]  }
 0x80f   : > { %v8190_v46 = vpop.f32.mrf.mxu1  ;;  %v8432_v50 = vpop.f32.mrf.mxu0  ;;  %10971 = vmatmul.mubr.bf16.gmra.mxu0 %v17755_v25  ;;  %v17771_v19 = vld [vmem:[#allocation4 + $0x168] sm:$0xff]  }
 0x810   : > { %15319 = vst [vmem:[#allocation4 + $0x138] sm:$0xff] %v15084_v22   ;;  %15327 = vst [vmem:[#allocation4 + $0x178] sm:$0xff] %v15124_v45   ;;  %v15079_v1 = vpack.c.bf16 %v8190_v46, %v8187_v36  ;;  %v15119_v12 = vpack.c.bf16 %v8432_v50, %v8429_v32  ;;  %15905 = vmatpush3.bf16.msra.mxu1 %v17758_v51  ;;  %10978 = vmatprep.mubr.bf16.mxu0 %v17763_v55  ;;  %v17778_v16 = vld [vmem:[#allocation4 + $0x128] sm:$0xff]   ;;  %v17781_v36 = vld [vmem:[#allocation4 + $0x158] sm:$0xff]  }
 0x811   : > { %15906 = vmatprep.subr.bf16.mxu1 %v17759_v20  ;;  %v17779_v2 = vld [vmem:[#allocation4 + $0x160] sm:$0xff]   ;;  %v17788_v45 = vld [vmem:[#allocation4 + $0x118] sm:$0xff]   ;;  %v17789_v51 = vld [vmem:[#allocation4 + $0x150] sm:$0xff]  }
 0x812   : > { %15318 = vst [vmem:[#allocation4 + $0x130] sm:$0xff] %v15079_v1   ;;  %15326 = vst [vmem:[#allocation4 + $0x170] sm:$0xff] %v15119_v12   ;;  %v16746_v15 = vpop.f32.mrf.mxu1  ;;  %v16778_v11 = vpop.f32.mrf.mxu0  ;;  %v17780_v47 = vld [vmem:[#allocation4 + $0x120] sm:$0xff]  }
 0x813   : > { %v17794_v32 = vld [vmem:[%s21651_s9 + $0x1fc] ss:$36 sps:$4 sm:$0xff]  }
 0x814   : > { %v8623_v53 = vpop.f32.mrf.mxu1  ;;  %v8865_v56 = vpop.f32.mrf.mxu0  ;;  %15907 = vmatpush3.bf16.msra.mxu1 %v17760_v13  ;;  %v17792_v13 = vld [vmem:[%s21651_s9 + $0x1f8] ss:$36 sps:$4 sm:$0xff]  }
 0x816   : > { %v16747_v3 = vpop.f32.mrf.mxu1  ;;  %v16779_v63 = vpop.f32.mrf.mxu0 }
 0x817   : > { %v15134_v0 = vpack.c.bf16 %v16747_v3, %v16746_v15  ;;  %v15174_v37 = vpack.c.bf16 %v16779_v63, %v16778_v11  ;;  %v17767_v4 = vld [vmem:[#allocation4 + $0x178] sm:$0xff]   ;;  %10979 = vmatmul.mubr.bf16.gmra.mxu0 %v17761_v41  ;;  %11108 = vmatmul.mubr.bf16.vlgmr.msra.gmra.mxu1 %v17764_v48  ;;  %v17790_v11 = vld [vmem:[#allocation4 + $0x110] sm:$0xff]   ;;  %v17803_v41 = vld [vmem:[%s21651_s9 + $0x244] ss:$36 sps:$4 sm:$0xff]  }
 0x818   : > { %v8626_v10 = vpop.f32.mrf.mxu1  ;;  %v8868_v57 = vpop.f32.mrf.mxu0  ;;  %v17768_v52 = vld [vmem:[#allocation4 + $0x138] sm:$0xff]   ;;  %16004 = vmatprep.subr.bf16.mxu0 %v17767_v4  ;;  %10986 = vmatprep.mubr.bf16.mxu0 %v17774_v6  ;;  %v17806_v48 = vld [vmem:[%s21651_s9 + $0x12c] ss:$36 sps:$4 sm:$0xff]  }
 0x819   : > { %15329 = vst [vmem:[#allocation4 + $0x188] sm:$0xff] %v15134_v0   ;;  %15337 = vst [vmem:[#allocation4 + $0x1c8] sm:$0xff] %v15174_v37   ;;  %v15129_v14 = vpack.c.bf16 %v8626_v10, %v8623_v53  ;;  %v15169_v60 = vpack.c.bf16 %v8868_v57, %v8865_v56  ;;  %v17769_v61 = vld [vmem:[#allocation4 + $0x170] sm:$0xff]   ;;  %16005 = vmatpush3.bf16.msra.mxu0 %v17768_v52  ;;  %11115 = vmatprep.mubr.bf16.mxu1 %v17777_v5  ;;  %v17795_v53 = vld [vmem:[%s21651_s9 + $0xe0] ss:$36 sps:$4 sm:$0xff]  }
 0x81a   : > { %v16750_v23 = vpop.f32.mrf.mxu1  ;;  %v16782_v30 = vpop.f32.mrf.mxu0  ;;  %16006 = vmatprep.subr.bf16.mxu0 %v17769_v61  ;;  %v17770_v58 = vld [vmem:[#allocation4 + $0x130] sm:$0xff]   ;;  %v17791_v56 = vld [vmem:[#allocation4 + $0x148] sm:$0xff]   ;;  %v17799_v52 = vld [vmem:[#allocation4 + $0x140] sm:$0xff]  }
 0x81b   : > { %15328 = vst [vmem:[#allocation4 + $0x180] sm:$0xff] %v15129_v14   ;;  %15336 = vst [vmem:[#allocation4 + $0x1c0] sm:$0xff] %v15169_v60   ;;  %v17798_v4 = vld [vmem:[#allocation4 + $0x108] sm:$0xff]   ;;  %v17800_v60 = vld [vmem:[#allocation4 + $0x100] sm:$0xff]  }
 0x81c   : > { %v8639_v26 = vpop.f32.mrf.mxu1  ;;  %v8881_v35 = vpop.f32.mrf.mxu0  ;;  %v17801_v61 = vld [vmem:[%s21651_s9 + $0x240] ss:$36 sps:$4 sm:$0xff]  }
 0x81d   : > { %16007 = vmatpush3.bf16.msra.mxu0 %v17770_v58 }
 0x81e   : > { %v16751_v34 = vpop.f32.mrf.mxu1  ;;  %v16783_v39 = vpop.f32.mrf.mxu0  ;;  %16008 = vmatprep.subr.bf16.mxu0 %v17771_v19 }
 0x81f   : > { %v15144_v40 = vpack.c.bf16 %v16751_v34, %v16750_v23  ;;  %v15184_v59 = vpack.c.bf16 %v16783_v39, %v16782_v30  ;;  %10987 = vmatmul.mubr.bf16.gmra.mxu0 %v17772_v24  ;;  %11116 = vmatmul.mubr.bf16.gmra.mxu1 %v17775_v18  ;;  %v17804_v23 = vld [vmem:[%s21651_s9 + $0x128] ss:$36 sps:$4 sm:$0xff]  }
 0x820   : > { %v8642_v42 = vpop.f32.mrf.mxu1  ;;  %v8884_v43 = vpop.f32.mrf.mxu0  ;;  %10994 = vmatprep.mubr.bf16.mxu0 %v17784_v33  ;;  %11123 = vmatprep.mubr.bf16.mxu1 %v17787_v27 }
 0x821   : > { %15331 = vst [vmem:[#allocation4 + $0x198] sm:$0xff] %v15144_v40   ;;  %15339 = vst [vmem:[#allocation4 + $0x1d8] sm:$0xff] %v15184_v59   ;;  %v15139_v17 = vpack.c.bf16 %v8642_v42, %v8639_v26  ;;  %v15179_v8 = vpack.c.bf16 %v8884_v43, %v8881_v35  ;;  %16009 = vmatpush3.bf16.msra.mxu0 %v17778_v16  ;;  %v17814_v26 = vld [vmem:[%s21651_s9 + $0x28c] ss:$36 sps:$4 sm:$0xff]   ;;  %v17817_v35 = vld [vmem:[%s21651_s9 + $0x174] ss:$36 sps:$4 sm:$0xff]  }
 0x822   : > { %v16754_v44 = vpop.f32.mrf.mxu1  ;;  %v16786_v9 = vpop.f32.mrf.mxu0  ;;  %16010 = vmatprep.subr.bf16.mxu0 %v17779_v2  ;;  %v17812_v40 = vld [vmem:[%s21651_s9 + $0x288] ss:$36 sps:$4 sm:$0xff]   ;;  %v17815_v43 = vld [vmem:[%s21651_s9 + $0x170] ss:$36 sps:$4 sm:$0xff]  }
 0x823   : > { %15330 = vst [vmem:[#allocation4 + $0x190] sm:$0xff] %v15139_v17   ;;  %15338 = vst [vmem:[#allocation4 + $0x1d0] sm:$0xff] %v15179_v8   ;;  %v17824_v16 = vld [vmem:[%s21651_s9 + $0x2d4] ss:$36 sps:$4 sm:$0xff]   ;;  %v17827_v8 = vld [vmem:[%s21651_s9 + $0x1bc] ss:$36 sps:$4 sm:$0xff]  }
 0x824   : > { %v8655_v54 = vpop.f32.mrf.mxu1  ;;  %v8897_v62 = vpop.f32.mrf.mxu0 }
 0x825   : > { %16011 = vmatpush3.bf16.msra.mxu0 %v17780_v47 }
 0x826   : > { %v16755_v38 = vpop.f32.mrf.mxu1  ;;  %v16787_v25 = vpop.f32.mrf.mxu0  ;;  %16012 = vmatprep.subr.bf16.mxu0 %v17781_v36 }
 0x827   : > { %v15154_v31 = vpack.c.bf16 %v16755_v38, %v16754_v44  ;;  %v15194_v21 = vpack.c.bf16 %v16787_v25, %v16786_v9  ;;  %10995 = vmatmul.mubr.bf16.gmra.mxu0 %v17782_v49  ;;  %11124 = vmatmul.mubr.bf16.gmra.mxu1 %v17785_v28  ;;  %v17822_v28 = vld [vmem:[%s21651_s9 + $0x2d0] ss:$36 sps:$4 sm:$0xff]   ;;  %v17834_v38 = vld [vmem:[%s21651_s9 + $0x31c] ss:$36 sps:$4 sm:$0xff]  }
 0x828   : > { %v8658_v55 = vpop.f32.mrf.mxu1  ;;  %v8900_v22 = vpop.f32.mrf.mxu0  ;;  %11002 = vmatprep.mubr.bf16.mxu0 %v17794_v32  ;;  %11131 = vmatprep.mubr.bf16.mxu1 %v17797_v7  ;;  %v17825_v7 = vld [vmem:[%s21651_s9 + $0x1b8] ss:$36 sps:$4 sm:$0xff]  }
 0x829   : > { %15333 = vst [vmem:[#allocation4 + $0x1a8] sm:$0xff] %v15154_v31   ;;  %15341 = vst [vmem:[#allocation4 + $0x1e8] sm:$0xff] %v15194_v21   ;;  %v15149_v46 = vpack.c.bf16 %v8658_v55, %v8655_v54  ;;  %v15189_v50 = vpack.c.bf16 %v8900_v22, %v8897_v62  ;;  %16013 = vmatpush3.bf16.msra.mxu0 %v17788_v45  ;;  %v17821_v25 = vld [vmem:[#allocation4 + $0x1d8] sm:$0xff]   ;;  %v17837_v31 = vld [vmem:[%s21651_s9 + $0x204] ss:$36 sps:$4 sm:$0xff]  }
 0x82a   : > { %v16758_v1 = vpop.f32.mrf.mxu1  ;;  %v16790_v12 = vpop.f32.mrf.mxu0  ;;  %16014 = vmatprep.subr.bf16.mxu0 %v17789_v51  ;;  %v17828_v45 = vld [vmem:[#allocation4 + $0x198] sm:$0xff]  }
 0x82b   : > { %15332 = vst [vmem:[#allocation4 + $0x1a0] sm:$0xff] %v15149_v46   ;;  %15340 = vst [vmem:[#allocation4 + $0x1e0] sm:$0xff] %v15189_v50   ;;  %v17829_v50 = vld [vmem:[#allocation4 + $0x1d0] sm:$0xff]  }
 0x82c   : > { %v8671_v20 = vpop.f32.mrf.mxu1  ;;  %v8913_v15 = vpop.f32.mrf.mxu0 }
 0x82d   : > { %16015 = vmatpush3.bf16.msra.mxu0 %v17790_v11  ;;  %v17843_v11 = vld [vmem:[%s21651_s9 + $0x364] ss:$36 sps:$4 sm:$0xff]  }
 0x82e   : > { %v16759_v6 = vpop.f32.mrf.mxu1  ;;  %v16791_v3 = vpop.f32.mrf.mxu0  ;;  %16016 = vmatprep.subr.bf16.mxu0 %v17791_v56 }
 0x82f   : > { %v15164_v63 = vpack.c.bf16 %v16759_v6, %v16758_v1  ;;  %v15204_v5 = vpack.c.bf16 %v16791_v3, %v16790_v12  ;;  %11003 = vmatmul.mubr.bf16.gmra.mxu0 %v17792_v13  ;;  %11132 = vmatmul.mubr.bf16.gmra.mxu1 %v17795_v53  ;;  %v17832_v1 = vld [vmem:[%s21651_s9 + $0x318] ss:$36 sps:$4 sm:$0xff]   ;;  %v17831_v13 = vld [vmem:[#allocation4 + $0x1c8] sm:$0xff]  }
 0x830   : > { %v8674_v0 = vpop.f32.mrf.mxu1  ;;  %v8916_v37 = vpop.f32.mrf.mxu0  ;;  %11010 = vmatprep.mubr.bf16.mxu0 %v17803_v41  ;;  %11139 = vmatprep.mubr.bf16.mxu1 %v17806_v48  ;;  %v17811_v17 = vld [vmem:[#allocation4 + $0x1e8] sm:$0xff]  }
 0x831   : > { %15335 = vst [vmem:[#allocation4 + $0x1b8] sm:$0xff] %v15164_v63   ;;  %15343 = vst [vmem:[#allocation4 + $0x1f8] sm:$0xff] %v15204_v5   ;;  %v15159_v10 = vpack.c.bf16 %v8674_v0, %v8671_v20  ;;  %v15199_v57 = vpack.c.bf16 %v8916_v37, %v8913_v15  ;;  %16017 = vmatpush3.bf16.msra.mxu0 %v17798_v4  ;;  %v17818_v54 = vld [vmem:[#allocation4 + $0x1a8] sm:$0xff]   ;;  %v17830_v20 = vld [vmem:[#allocation4 + $0x190] sm:$0xff]  }
 0x832   : > { %16018 = vmatprep.subr.bf16.mxu0 %v17799_v52  ;;  %v17819_v47 = vld [vmem:[#allocation4 + $0x1e0] sm:$0xff]   ;;  %v17846_v53 = vld [vmem:[%s21651_s9 + $0x24c] ss:$36 sps:$4 sm:$0xff]  }
 0x833   : > { %15334 = vst [vmem:[#allocation4 + $0x1b0] sm:$0xff] %v15159_v10   ;;  %15342 = vst [vmem:[#allocation4 + $0x1f0] sm:$0xff] %v15199_v57   ;;  %v16810_v14 = vpop.f32.mrf.mxu1  ;;  %v17820_v32 = vld [vmem:[#allocation4 + $0x1a0] sm:$0xff]   ;;  %v17838_v6 = vld [vmem:[#allocation4 + $0x188] sm:$0xff]  }
 0x834   : > { %v17835_v15 = vld [vmem:[%s21651_s9 + $0x200] ss:$36 sps:$4 sm:$0xff]   ;;  %v17844_v37 = vld [vmem:[%s21651_s9 + $0x248] ss:$36 sps:$4 sm:$0xff]   ;;  %v17853_v10 = vld [vmem:[%s21651_s9 + $0x294] ss:$36 sps:$4 sm:$0xff]  }
 0x835   : > { %v9107_v30 = vpop.f32.mrf.mxu1  ;;  %16019 = vmatpush3.bf16.msra.mxu0 %v17800_v60  ;;  %v17839_v63 = vld [vmem:[#allocation4 + $0x1c0] sm:$0xff]   ;;  %v17850_v4 = vld [vmem:[%s21651_s9 + $0x3ac] ss:$36 sps:$4 sm:$0xff]   ;;  %v17856_v60 = vld [vmem:[%s21651_s9 + $0x3f4] ss:$36 sps:$4 sm:$0xff]  }
 0x836   : > { %v17841_v5 = vld [vmem:[%s21651_s9 + $0x360] ss:$36 sps:$4 sm:$0xff]   ;;  %v17848_v52 = vld [vmem:[%s21651_s9 + $0x3a8] ss:$36 sps:$4 sm:$0xff]  }
 0x837   : > { %v16811_v58 = vpop.f32.mrf.mxu1  ;;  %11011 = vmatmul.mubr.bf16.gmra.mxu0 %v17801_v61  ;;  %11140 = vmatmul.mubr.bf16.gmra.mxu1 %v17804_v23  ;;  %v17840_v0 = vld [vmem:[#allocation4 + $0x180] sm:$0xff]   ;;  %v17854_v23 = vld [vmem:[%s21651_s9 + $0x3f0] ss:$36 sps:$4 sm:$0xff]  }
 0x838   : > { %v15214_v24 = vpack.c.bf16 %v16811_v58, %v16810_v14  ;;  %v17807_v18 = vld [vmem:[#allocation4 + $0x1f8] sm:$0xff]   ;;  %11018 = vmatprep.mubr.bf16.mxu0 %v17814_v26  ;;  %11147 = vmatprep.mubr.bf16.mxu1 %v17817_v35  ;;  %v17851_v14 = vld [vmem:[%s21651_s9 + $0x290] ss:$36 sps:$4 sm:$0xff]   ;;  %v17865_v35 = vld [vmem:[%s21651_s9 + $0x324] ss:$36 sps:$4 sm:$0xff]  }
 0x839   : > { %v9110_v19 = vpop.f32.mrf.mxu1  ;;  %v17808_v33 = vld [vmem:[#allocation4 + $0x1b8] sm:$0xff]   ;;  %16116 = vmatprep.subr.bf16.mxu1 %v17807_v18 }
 0x83a   : > { %15345 = vst [vmem:[#allocation4 + $0x208] sm:$0xff] %v15214_v24   ;;  %v15209_v27 = vpack.c.bf16 %v9110_v19, %v9107_v30  ;;  %v17809_v34 = vld [vmem:[#allocation4 + $0x1f0] sm:$0xff]   ;;  %16117 = vmatpush3.bf16.msra.mxu1 %v17808_v33  ;;  %v17859_v61 = vld [vmem:[%s21651_s9 + $0x2dc] ss:$36 sps:$4 sm:$0xff]  }
 0x83b   : > { %v16814_v39 = vpop.f32.mrf.mxu1  ;;  %16118 = vmatprep.subr.bf16.mxu1 %v17809_v34  ;;  %v17810_v42 = vld [vmem:[#allocation4 + $0x1b0] sm:$0xff]   ;;  %v17857_v30 = vld [vmem:[%s21651_s9 + $0x2d8] ss:$36 sps:$4 sm:$0xff]   ;;  %v17863_v24 = vld [vmem:[%s21651_s9 + $0x320] ss:$36 sps:$4 sm:$0xff]  }
 0x83c   : > { %15344 = vst [vmem:[#allocation4 + $0x200] sm:$0xff] %v15209_v27   ;;  %v17862_v26 = vld [vmem:[%s21651_s9 + $0x43c] ss:$36 sps:$4 sm:$0xff]   ;;  %v17871_v18 = vld [vmem:[%s21651_s9 + $0x14] ss:$36 sps:$4 sm:$0xff]  }
 0x83d   : > { %v9123_v59 = vpop.f32.mrf.mxu1  ;;  %v17860_v58 = vld [vmem:[%s21651_s9 + $0x438] ss:$36 sps:$4 sm:$0xff]   ;;  %v17868_v19 = vld [vmem:[%s21651_s9 + $0x36c] ss:$36 sps:$4 sm:$0xff]  }
 0x83e   : > { %16119 = vmatpush3.bf16.msra.mxu1 %v17810_v42  ;;  %v17869_v33 = vld [vmem:[%s21651_s9 + $0x10] ss:$36 sps:$4 sm:$0xff]   ;;  %v17866_v27 = vld [vmem:[%s21651_s9 + $0x368] ss:$36 sps:$4 sm:$0xff]   ;;  %v17877_v42 = vld [vmem:[%s21651_s9 + $0x58] ss:$36 sps:$4 sm:$0xff]  }
 0x83f   : > { %v16815_v2 = vpop.f32.mrf.mxu1  ;;  %16120 = vmatprep.subr.bf16.mxu1 %v17811_v17  ;;  %11019 = vmatmul.mubr.bf16.gmra.mxu0 %v17812_v40  ;;  %v17876_v34 = vld [vmem:[%s21651_s9 + $0x3b4] ss:$36 sps:$4 sm:$0xff]   ;;  %v17887_v17 = vld [vmem:[%s21651_s9 + $0xa4] ss:$36 sps:$4 sm:$0xff]  }
 0x840   : > { %v15224_v44 = vpack.c.bf16 %v16815_v2, %v16814_v39  ;;  %11148 = vmatmul.mubr.bf16.gmra.mxu1 %v17815_v43  ;;  %11026 = vmatprep.mubr.bf16.mxu0 %v17824_v16  ;;  %v17879_v39 = vld [vmem:[%s21651_s9 + $0x5c] ss:$36 sps:$4 sm:$0xff]   ;;  %v17874_v43 = vld [vmem:[%s21651_s9 + $0x3b0] ss:$36 sps:$4 sm:$0xff]  }
 0x841   : > { %v9126_v9 = vpop.f32.mrf.mxu1  ;;  %11155 = vmatprep.mubr.bf16.mxu1 %v17827_v8  ;;  %v17884_v16 = vld [vmem:[%s21651_s9 + $0x3fc] ss:$36 sps:$4 sm:$0xff]  }
 0x842   : > { %15347 = vst [vmem:[#allocation4 + $0x218] sm:$0xff] %v15224_v44   ;;  %v15219_v62 = vpack.c.bf16 %v9126_v9, %v9123_v59  ;;  %16121 = vmatpush3.bf16.msra.mxu1 %v17818_v54  ;;  %v17885_v44 = vld [vmem:[%s21651_s9 + $0xa0] ss:$36 sps:$4 sm:$0xff]   ;;  %v17882_v9 = vld [vmem:[%s21651_s9 + $0x3f8] ss:$36 sps:$4 sm:$0xff]  }
 0x843   : > { %v16818_v49 = vpop.f32.mrf.mxu1  ;;  %16122 = vmatprep.subr.bf16.mxu1 %v17819_v47  ;;  %v17892_v54 = vld [vmem:[%s21651_s9 + $0x444] ss:$36 sps:$4 sm:$0xff]  }
 0x844   : > { %15346 = vst [vmem:[#allocation4 + $0x210] sm:$0xff] %v15219_v62   ;;  %v17895_v62 = vld [vmem:[%s21651_s9 + $0xec] ss:$36 sps:$4 sm:$0xff]  }
 0x845   : > { %v9139_v36 = vpop.f32.mrf.mxu1 }
 0x846   : > { %16123 = vmatpush3.bf16.msra.mxu1 %v17820_v32  ;;  %v17899_v32 = vld [vmem:[%s21651_s9 + $0x134] ss:$36 sps:$4 sm:$0xff]  }
 0x847   : > { %v16819_v21 = vpop.f32.mrf.mxu1  ;;  %16124 = vmatprep.subr.bf16.mxu1 %v17821_v25  ;;  %11027 = vmatmul.mubr.bf16.gmra.mxu0 %v17822_v28  ;;  %v17893_v28 = vld [vmem:[%s21651_s9 + $0xe8] ss:$36 sps:$4 sm:$0xff]   ;;  %v17897_v25 = vld [vmem:[%s21651_s9 + $0x130] ss:$36 sps:$4 sm:$0xff]  }
 0x848   : > { %v15234_v55 = vpack.c.bf16 %v16819_v21, %v16818_v49  ;;  %11156 = vmatmul.mubr.bf16.gmra.mxu1 %v17825_v7  ;;  %11034 = vmatprep.mubr.bf16.mxu0 %v17834_v38  ;;  %v17889_v49 = vld [vmem:[#allocation4 + $0x208] sm:$0xff]   ;;  %v17902_v7 = vld [vmem:[%s21651_s9 + $0x1c] ss:$36 sps:$4 sm:$0xff]  }
 0x849   : > { %v9142_v22 = vpop.f32.mrf.mxu1  ;;  %11163 = vmatprep.mubr.bf16.mxu1 %v17837_v31  ;;  %v17881_v2 = vld [vmem:[#allocation4 + $0x218] sm:$0xff]   ;;  %v17896_v38 = vld [vmem:[#allocation4 + $0x200] sm:$0xff]  }
 0x84a   : > { %15349 = vst [vmem:[#allocation4 + $0x228] sm:$0xff] %v15234_v55   ;;  %v15229_v46 = vpack.c.bf16 %v9142_v22, %v9139_v36  ;;  %16125 = vmatpush3.bf16.msra.mxu1 %v17828_v45  ;;  %v17890_v36 = vld [vmem:[%s21651_s9 + $0x440] ss:$36 sps:$4 sm:$0xff]   ;;  %v17900_v31 = vld [vmem:[%s21651_s9 + $0x18] ss:$36 sps:$4 sm:$0xff]  }
 0x84b   : > { %v16822_v51 = vpop.f32.mrf.mxu1  ;;  %16126 = vmatprep.subr.bf16.mxu1 %v17829_v50  ;;  %v17888_v47 = vld [vmem:[#allocation4 + $0x210] sm:$0xff]   ;;  %v17905_v21 = vld [vmem:[%s21651_s9 + $0x17c] ss:$36 sps:$4 sm:$0xff]   ;;  %v17908_v55 = vld [vmem:[%s21651_s9 + $0x64] ss:$36 sps:$4 sm:$0xff]  }
 0x84c   : > { %15348 = vst [vmem:[#allocation4 + $0x220] sm:$0xff] %v15229_v46   ;;  %v17903_v22 = vld [vmem:[%s21651_s9 + $0x178] ss:$36 sps:$4 sm:$0xff]   ;;  %v17906_v45 = vld [vmem:[%s21651_s9 + $0x60] ss:$36 sps:$4 sm:$0xff]  }
 0x84d   : > { %v9155_v12 = vpop.f32.mrf.mxu1  ;;  %v17911_v46 = vld [vmem:[%s21651_s9 + $0x1c4] ss:$36 sps:$4 sm:$0xff]   ;;  %v17914_v50 = vld [vmem:[%s21651_s9 + $0xac] ss:$36 sps:$4 sm:$0xff]  }
 0x84e   : > { %16127 = vmatpush3.bf16.msra.mxu1 %v17830_v20  ;;  %v17920_v20 = vld [vmem:[%s21651_s9 + $0xf4] ss:$36 sps:$4 sm:$0xff]  }
 0x84f   : > { %v16823_v56 = vpop.f32.mrf.mxu1  ;;  %16128 = vmatprep.subr.bf16.mxu1 %v17831_v13  ;;  %11035 = vmatmul.mubr.bf16.gmra.mxu0 %v17832_v1  ;;  %v17912_v1 = vld [vmem:[%s21651_s9 + $0xa8] ss:$36 sps:$4 sm:$0xff]   ;;  %v17923_v13 = vld [vmem:[%s21651_s9 + $0x254] ss:$36 sps:$4 sm:$0xff]  }
 0x850   : > { %v15244_v41 = vpack.c.bf16 %v16823_v56, %v16822_v51  ;;  %11164 = vmatmul.mubr.bf16.gmra.mxu1 %v17835_v15  ;;  %11042 = vmatprep.mubr.bf16.mxu0 %v17843_v11  ;;  %v17909_v51 = vld [vmem:[%s21651_s9 + $0x1c0] ss:$36 sps:$4 sm:$0xff]   ;;  %v17915_v15 = vld [vmem:[%s21651_s9 + $0x208] ss:$36 sps:$4 sm:$0xff]   ;;  %v17918_v11 = vld [vmem:[%s21651_s9 + $0xf0] ss:$36 sps:$4 sm:$0xff]  }
 0x851   : > { %v9158_v48 = vpop.f32.mrf.mxu1  ;;  %11171 = vmatprep.mubr.bf16.mxu1 %v17846_v53  ;;  %v17873_v59 = vld [vmem:[#allocation4 + $0x228] sm:$0xff]   ;;  %v17926_v53 = vld [vmem:[%s21651_s9 + $0x13c] ss:$36 sps:$4 sm:$0xff]   ;;  %v17921_v56 = vld [vmem:[%s21651_s9 + $0x250] ss:$36 sps:$4 sm:$0xff]  }
 0x852   : > { %15351 = vst [vmem:[#allocation4 + $0x238] sm:$0xff] %v15244_v41   ;;  %v15239_v3 = vpack.c.bf16 %v9158_v48, %v9155_v12  ;;  %16129 = vmatpush3.bf16.msra.mxu1 %v17838_v6  ;;  %v17917_v12 = vld [vmem:[%s21651_s9 + $0x20c] ss:$36 sps:$4 sm:$0xff]   ;;  %v17924_v41 = vld [vmem:[%s21651_s9 + $0x138] ss:$36 sps:$4 sm:$0xff]  }
 0x853   : > { %16130 = vmatprep.subr.bf16.mxu1 %v17839_v63  ;;  %v17880_v8 = vld [vmem:[#allocation4 + $0x220] sm:$0xff]  }
 0x854   : > { %15350 = vst [vmem:[#allocation4 + $0x230] sm:$0xff] %v15239_v3   ;;  %v17929_v48 = vld [vmem:[%s21651_s9 + $0x29c] ss:$36 sps:$4 sm:$0xff]   ;;  %v17932_v6 = vld [vmem:[%s21651_s9 + $0x184] ss:$36 sps:$4 sm:$0xff]  }
 0x856   : > { %16131 = vmatpush3.bf16.msra.mxu1 %v17840_v0 }
 0x857   : > { %11043 = vmatmul.mubr.bf16.gmra.mxu0 %v17841_v5 }
 0x858   : > { %11172 = vmatmul.mubr.bf16.gmra.mxu1 %v17844_v37  ;;  %11050 = vmatprep.mubr.bf16.mxu0 %v17850_v4  ;;  %v17927_v37 = vld [vmem:[%s21651_s9 + $0x298] ss:$36 sps:$4 sm:$0xff]   ;;  %v17930_v4 = vld [vmem:[%s21651_s9 + $0x180] ss:$36 sps:$4 sm:$0xff]  }
 0x859   : > { %v17847_v57 = vld [vmem:[#allocation4 + $0x238] sm:$0xff]   ;;  %11179 = vmatprep.mubr.bf16.mxu1 %v17853_v10  ;;  %v17935_v10 = vld [vmem:[%s21651_s9 + $0x2e4] ss:$36 sps:$4 sm:$0xff]  }
 0x85a   : > { %16824 = vmatprep.subr.bf16.mxu0 %v17847_v57 }
 0x85b   : > { %v17872_v40 = vld [vmem:[#allocation4 + $0x230] sm:$0xff]  }
 0x85f   : > { %11051 = vmatmul.mubr.bf16.gmra.mxu0 %v17848_v52  ;;  %v17938_v52 = vld [vmem:[%s21651_s9 + $0x1cc] ss:$36 sps:$4 sm:$0xff]  }
 0x860   : > { %11180 = vmatmul.mubr.bf16.gmra.mxu1 %v17851_v14  ;;  %11058 = vmatprep.mubr.bf16.mxu0 %v17856_v60 }
 0x861   : > { %11187 = vmatprep.mubr.bf16.mxu1 %v17859_v61 }
 0x867   : > { %11059 = vmatmul.mubr.bf16.gmra.mxu0 %v17854_v23 }
 0x868   : > { %11188 = vmatmul.mubr.bf16.gmra.mxu1 %v17857_v30  ;;  %11066 = vmatprep.mubr.bf16.mxu0 %v17862_v26  ;;  %v17933_v26 = vld [vmem:[%s21651_s9 + $0x2e0] ss:$36 sps:$4 sm:$0xff]  }
 0x869   : > { %11195 = vmatprep.mubr.bf16.mxu1 %v17865_v35  ;;  %v17936_v35 = vld [vmem:[%s21651_s9 + $0x1c8] ss:$36 sps:$4 sm:$0xff]  }
 0x86f   : > { %11067 = vmatmul.mubr.bf16.gmra.mxu0 %v17860_v58  ;;  %v17941_v58 = vld [vmem:[%s21651_s9 + $0x32c] ss:$36 sps:$4 sm:$0xff]  }
 0x870   : > { %11196 = vmatmul.mubr.bf16.gmra.mxu1 %v17863_v24  ;;  %11268 = vmatprep.mubr.bf16.mxu0 %v17871_v18  ;;  %v17944_v18 = vld [vmem:[%s21651_s9 + $0x214] ss:$36 sps:$4 sm:$0xff]  }
 0x871   : > { %11203 = vmatprep.mubr.bf16.mxu1 %v17868_v19 }
 0x877   : > { %11269 = vmatmul.mubr.bf16.vlgmr.msra.gmra.mxu0 %v17869_v33 }
 0x878   : > { %11204 = vmatmul.mubr.bf16.gmra.mxu1 %v17866_v27  ;;  %16825 = vmatpush3.bf16.msra.mxu0 %v17847_v57 }
 0x879   : > { %16826 = vmatprep.subr.bf16.mxu0 %v17872_v40  ;;  %11211 = vmatprep.mubr.bf16.mxu1 %v17876_v34 }
 0x87a   : > { %11276 = vmatprep.mubr.bf16.mxu0 %v17879_v39 }
 0x87c   : > { %16827 = vmatpush3.bf16.msra.mxu0 %v17872_v40  ;;  %v17939_v40 = vld [vmem:[%s21651_s9 + $0x328] ss:$36 sps:$4 sm:$0xff]  }
 0x87d   : > { %16828 = vmatprep.subr.bf16.mxu0 %v17873_v59 }
 0x87f   : > { %11277 = vmatmul.mubr.bf16.gmra.mxu0 %v17877_v42  ;;  %v17947_v42 = vld [vmem:[%s21651_s9 + $0x374] ss:$36 sps:$4 sm:$0xff]  }
 0x880   : > { %11212 = vmatmul.mubr.bf16.gmra.mxu1 %v17874_v43  ;;  %16829 = vmatpush3.bf16.msra.mxu0 %v17873_v59  ;;  %v17942_v59 = vld [vmem:[%s21651_s9 + $0x210] ss:$36 sps:$4 sm:$0xff]  }
 0x881   : > { %16830 = vmatprep.subr.bf16.mxu0 %v17880_v8  ;;  %11219 = vmatprep.mubr.bf16.mxu1 %v17884_v16  ;;  %v17950_v16 = vld [vmem:[%s21651_s9 + $0x25c] ss:$36 sps:$4 sm:$0xff]  }
 0x882   : > { %11284 = vmatprep.mubr.bf16.mxu0 %v17887_v17 }
 0x884   : > { %16831 = vmatpush3.bf16.msra.mxu0 %v17880_v8 }
 0x885   : > { %16832 = vmatprep.subr.bf16.mxu0 %v17881_v2 }
 0x887   : > { %11285 = vmatmul.mubr.bf16.gmra.mxu0 %v17885_v44 }
 0x888   : > { %11220 = vmatmul.mubr.bf16.gmra.mxu1 %v17882_v9  ;;  %16833 = vmatpush3.bf16.msra.mxu0 %v17881_v2 }
 0x889   : > { %16834 = vmatprep.subr.bf16.mxu0 %v17888_v47  ;;  %11227 = vmatprep.mubr.bf16.mxu1 %v17892_v54  ;;  %v17945_v54 = vld [vmem:[%s21651_s9 + $0x370] ss:$36 sps:$4 sm:$0xff]  }
 0x88a   : > { %11292 = vmatprep.mubr.bf16.mxu0 %v17895_v62  ;;  %v17948_v62 = vld [vmem:[%s21651_s9 + $0x258] ss:$36 sps:$4 sm:$0xff]  }
 0x88c   : > { %16835 = vmatpush3.bf16.msra.mxu0 %v17888_v47  ;;  %v17953_v47 = vld [vmem:[%s21651_s9 + $0x3bc] ss:$36 sps:$4 sm:$0xff]  }
 0x88d   : > { %16836 = vmatprep.subr.bf16.mxu0 %v17889_v49 }
 0x88f   : > { %11293 = vmatmul.mubr.bf16.gmra.mxu0 %v17893_v28  ;;  %v17956_v28 = vld [vmem:[%s21651_s9 + $0x2a4] ss:$36 sps:$4 sm:$0xff]  }
 0x890   : > { %11228 = vmatmul.mubr.bf16.gmra.mxu1 %v17890_v36  ;;  %16837 = vmatpush3.bf16.msra.mxu0 %v17889_v49 }
 0x891   : > { %16838 = vmatprep.subr.bf16.mxu0 %v17896_v38  ;;  %11300 = vmatprep.mubr.bf16.mxu0 %v17899_v32 }
 0x892   : > { %11429 = vmatprep.mubr.bf16.mxu1 %v17902_v7 }
 0x894   : > { %16839 = vmatpush3.bf16.msra.mxu0 %v17896_v38  ;;  %v9589_v38 = vpop.permute.xlu0 %9588 }
 0x897   : > { %11301 = vmatmul.mubr.bf16.gmra.mxu0 %v17897_v25 }
 0x898   : > { %11430 = vmatmul.mubr.bf16.vlgmr.msra.gmra.mxu1 %v17900_v31  ;;  %11308 = vmatprep.mubr.bf16.mxu0 %v17905_v21 }
 0x899   : > { %11437 = vmatprep.mubr.bf16.mxu1 %v17908_v55 }
 0x89f   : > { %11309 = vmatmul.mubr.bf16.gmra.mxu0 %v17903_v22 }
 0x8a0   : > { %11438 = vmatmul.mubr.bf16.gmra.mxu1 %v17906_v45  ;;  %11316 = vmatprep.mubr.bf16.mxu0 %v17911_v46 }
 0x8a1   : > { %11445 = vmatprep.mubr.bf16.mxu1 %v17914_v50  ;;  %v17951_v50 = vld [vmem:[%s21651_s9 + $0x3b8] ss:$36 sps:$4 sm:$0xff]  }
 0x8a7   : > { %11317 = vmatmul.mubr.bf16.gmra.mxu0 %v17909_v51  ;;  %v9594_v51 = vpop.permute.xlu1 %9593 }
 0x8a8   : > { %11446 = vmatmul.mubr.bf16.gmra.mxu1 %v17912_v1  ;;  %11324 = vmatprep.mubr.bf16.mxu0 %v17917_v12  ;;  %v17954_v12 = vld [vmem:[%s21651_s9 + $0x2a0] ss:$36 sps:$4 sm:$0xff]  }
 0x8a9   : > { %11453 = vmatprep.mubr.bf16.mxu1 %v17920_v20  ;;  %v17959_v20 = vld [vmem:[%s21651_s9 + $0x404] ss:$36 sps:$4 sm:$0xff]  }
 0x8af   : > { %11325 = vmatmul.mubr.bf16.gmra.mxu0 %v17915_v15 }
 0x8b0   : > { %11454 = vmatmul.mubr.bf16.gmra.mxu1 %v17918_v11  ;;  %11332 = vmatprep.mubr.bf16.mxu0 %v17923_v13  ;;  %v17962_v13 = vld [vmem:[%s21651_s9 + $0x2ec] ss:$36 sps:$4 sm:$0xff]  }
 0x8b1   : > { %11461 = vmatprep.mubr.bf16.mxu1 %v17926_v53 }
 0x8b7   : > { %v15796_v3 = vpop.f32.mrf.mxu0  ;;  %11333 = vmatmul.mubr.bf16.gmra.mxu0 %v17921_v56 }
 0x8b8   : > { %11462 = vmatmul.mubr.bf16.gmra.mxu1 %v17924_v41  ;;  %11340 = vmatprep.mubr.bf16.mxu0 %v17929_v48 }
 0x8b9   : > { %v15797_v63 = vpop.f32.mrf.mxu0  ;;  %11469 = vmatprep.mubr.bf16.mxu1 %v17932_v6 }
 0x8ba   : > { %v15798_v5 = vadd.f32 %v15797_v63, %v15796_v3  ;;  %v9599_v3 = vpop.permute.xlu0 %9598 }
 0x8bb   : > { %v15799_v0 = vpop.f32.mrf.mxu0 }
 0x8bc   : > { %v10949_v21 = vadd.f32 %v15798_v5, %v9589_v38 }
 0x8bd   : > { %v15800_v57 = vpop.f32.mrf.mxu0 }
 0x8be   : > { %v20760_v14 = vadd.f32 %v15800_v57, %v15799_v0 }
 0x8bf   : > { %v15802_v60 = vpop.f32.mrf.mxu0  ;;  %11341 = vmatmul.mubr.bf16.gmra.mxu0 %v17927_v37 }
 0x8c0   : > { %11470 = vmatmul.mubr.bf16.gmra.mxu1 %v17930_v4  ;;  %11348 = vmatprep.mubr.bf16.mxu0 %v17935_v10  ;;  %v10952_v53 = vadd.f32 %v20760_v14, %v9594_v51  ;;  %v17957_v14 = vld [vmem:[%s21651_s9 + $0x400] ss:$36 sps:$4 sm:$0xff]  }
 0x8c1   : > { %v15803_v61 = vpop.f32.mrf.mxu0  ;;  %11477 = vmatprep.mubr.bf16.mxu1 %v17938_v52 }
 0x8c2   : > { %v20762_v23 = vadd.f32 %v15803_v61, %v15802_v60  ;;  %v9604_v60 = vpop.permute.xlu1 %9603 }
 0x8c3   : > { %v15805_v30 = vpop.f32.mrf.mxu0 }
 0x8c4   : > { %v10957_v37 = vadd.f32 %v20762_v23, %v9599_v3  ;;  %v17965_v23 = vld [vmem:[%s21651_s9 + $0x44c] ss:$36 sps:$4 sm:$0xff]  }
 0x8c5   : > { %v15806_v24 = vpop.f32.mrf.mxu0 }
 0x8c6   : > { %v20776_v19 = vadd.f32 %v15806_v24, %v15805_v30  ;;  %v17960_v30 = vld [vmem:[%s21651_s9 + $0x2e8] ss:$36 sps:$4 sm:$0xff]  }
 0x8c7   : > { %v15808_v33 = vpop.f32.mrf.mxu0  ;;  %11349 = vmatmul.mubr.bf16.gmra.mxu0 %v17933_v26 }
 0x8c8   : > { %11478 = vmatmul.mubr.bf16.gmra.mxu1 %v17936_v35  ;;  %11356 = vmatprep.mubr.bf16.mxu0 %v17941_v58  ;;  %v17968_v58 = vld [vmem:[%s21651_s9 + $0x334] ss:$36 sps:$4 sm:$0xff]   ;;  %v10960_v24 = vadd.f32 %v20776_v19, %v9604_v60 }
 0x8c9   : > { %v15809_v27 = vpop.f32.mrf.mxu0  ;;  %11485 = vmatprep.mubr.bf16.mxu1 %v17944_v18 }
 0x8ca   : > { %v20778_v34 = vadd.f32 %v15809_v27, %v15808_v33 }
 0x8cb   : > { %v15811_v39 = vpop.f32.mrf.mxu0 }
 0x8cd   : > { %v15812_v43 = vpop.f32.mrf.mxu0 }
 0x8ce   : > { %v20792_v17 = vadd.f32 %v15812_v43, %v15811_v39 }
 0x8cf   : > { %v15814_v8 = vpop.f32.mrf.mxu0  ;;  %11357 = vmatmul.mubr.bf16.gmra.mxu0 %v17939_v40  ;;  %v9609_v40 = vpop.permute.xlu0 %9608 }
 0x8d0   : > { %11486 = vmatmul.mubr.bf16.gmra.mxu1 %v17942_v59  ;;  %11364 = vmatprep.mubr.bf16.mxu0 %v17947_v42 }
 0x8d1   : > { %v15815_v2 = vpop.f32.mrf.mxu0  ;;  %11493 = vmatprep.mubr.bf16.mxu1 %v17950_v16  ;;  %v10965_v16 = vadd.f32 %v20778_v34, %v9609_v40  ;;  %v17972_v34 = vld [vmem:[%s21651_s9 + $0x20] ss:$36 sps:$4 sm:$0xff]  }
 0x8d2   : > { %v20794_v44 = vadd.f32 %v15815_v2, %v15814_v8  ;;  %v17974_v40 = vld [vmem:[%s21651_s9 + $0x3c0] ss:$36 sps:$4 sm:$0xff]  }
 0x8d3   : > { %v15817_v9 = vpop.f32.mrf.mxu0 }
 0x8d5   : > { %v15818_v49 = vpop.f32.mrf.mxu0 }
 0x8d6   : > { %v20808_v36 = vadd.f32 %v15818_v49, %v15817_v9  ;;  %v17966_v49 = vld [vmem:[%s21651_s9 + $0x330] ss:$36 sps:$4 sm:$0xff]  }
 0x8d7   : > { %v15820_v32 = vpop.f32.mrf.mxu0  ;;  %v15908_v7 = vpop.f32.mrf.mxu1  ;;  %11365 = vmatmul.mubr.bf16.gmra.mxu0 %v17945_v54  ;;  %v17963_v54 = vld [vmem:[%s21651_s9 + $0x448] ss:$36 sps:$4 sm:$0xff]  }
 0x8d8   : > { %11494 = vmatmul.mubr.bf16.gmra.mxu1 %v17948_v62  ;;  %11372 = vmatprep.mubr.bf16.mxu0 %v17953_v47  ;;  %v9614_v62 = vpop.permute.xlu1 %9613 }
 0x8d9   : > { %v15821_v25 = vpop.f32.mrf.mxu0  ;;  %v15909_v31 = vpop.f32.mrf.mxu1  ;;  %11501 = vmatprep.mubr.bf16.mxu1 %v17956_v28  ;;  %v10968_v38 = vadd.f32 %v20792_v17, %v9614_v62 }
 0x8da   : > { %v20810_v55 = vadd.f32 %v15821_v25, %v15820_v32  ;;  %v15910_v22 = vadd.f32 %v15909_v31, %v15908_v7  ;;  %v17971_v7 = vld [vmem:[%s21651_s9 + $0x37c] ss:$36 sps:$4 sm:$0xff]  }
 0x8db   : > { %v15823_v45 = vpop.f32.mrf.mxu0  ;;  %v15911_v46 = vpop.f32.mrf.mxu1 }
 0x8dc   : > { %v20815_v1 = vadd.f32 %v15910_v22, %v10949_v21 }
 0x8dd   : > { %v15824_v15 = vpop.f32.mrf.mxu0  ;;  %v15912_v11 = vpop.f32.mrf.mxu1 }
 0x8de   : > { %v20827_v56 = vadd.f32 %v15824_v15, %v15823_v45  ;;  %v15913_v41 = vadd.f32 %v15912_v11, %v15911_v46  ;;  %v9619_v45 = vpop.permute.xlu0 %9618 }
 0x8df   : > { %v15826_v48 = vpop.f32.mrf.mxu0  ;;  %v15914_v6 = vpop.f32.mrf.mxu1  ;;  %11373 = vmatmul.mubr.bf16.gmra.mxu0 %v17951_v50 }
 0x8e0   : > { %v20829_v63 = vadd.f32 %v15913_v41, %v10952_v53  ;;  %11502 = vmatmul.mubr.bf16.gmra.mxu1 %v17954_v12  ;;  %11380 = vmatprep.mubr.bf16.mxu0 %v17959_v20  ;;  %v10973_v12 = vadd.f32 %v20794_v44, %v9619_v45  ;;  %v9624_v53 = vpop.permute.xlu1 %9623  ;;  %v17977_v44 = vld [vmem:[%s21651_s9 + $0xb0] ss:$36 sps:$4 sm:$0xff]   ;;  %v17979_v45 = vld [vmem:[%s21651_s9 + $0x408] ss:$36 sps:$4 sm:$0xff]  }
 0x8e1   : > { %v15827_v5 = vpop.f32.mrf.mxu0  ;;  %v15915_v0 = vpop.f32.mrf.mxu1  ;;  %11509 = vmatprep.mubr.bf16.mxu1 %v17962_v13  ;;  %v17973_v13 = vld [vmem:[%s21651_s9 + $0x68] ss:$36 sps:$4 sm:$0xff]  }
 0x8e2   : > { %v20832_v4 = vadd.f32 %v15827_v5, %v15826_v48  ;;  %v15916_v10 = vadd.f32 %v15915_v0, %v15914_v6  ;;  %v17969_v48 = vld [vmem:[%s21651_s9 + $0x378] ss:$36 sps:$4 sm:$0xff]   ;;  %v17976_v5 = vld [vmem:[%s21651_s9 + $0x3c4] ss:$36 sps:$4 sm:$0xff]   ;;  %v10976_v0 = vadd.f32 %v20808_v36, %v9624_v53 }
 0x8e3   : > { %v15829_v57 = vpop.f32.mrf.mxu0  ;;  %v15917_v52 = vpop.f32.mrf.mxu1 }
 0x8e4   : > { %v20837_v61 = vadd.f32 %v15916_v10, %v10957_v37 }
 0x8e5   : > { %v15830_v26 = vpop.f32.mrf.mxu0  ;;  %v15918_v35 = vpop.f32.mrf.mxu1 }
 0x8e6   : > { %v20849_v18 = vadd.f32 %v15830_v26, %v15829_v57  ;;  %v15919_v33 = vadd.f32 %v15918_v35, %v15917_v52 }
 0x8e7   : > { %v15832_v27 = vpop.f32.mrf.mxu0  ;;  %v15920_v39 = vpop.f32.mrf.mxu1  ;;  %11381 = vmatmul.mubr.bf16.gmra.mxu0 %v17957_v14 }
 0x8e8   : > { %v20851_v59 = vadd.f32 %v15919_v33, %v10960_v24  ;;  %11510 = vmatmul.mubr.bf16.gmra.mxu1 %v17960_v30  ;;  %11388 = vmatprep.mubr.bf16.mxu0 %v17965_v23  ;;  %v9629_v14 = vpop.permute.xlu0 %9628  ;;  %v17978_v33 = vld [vmem:[%s21651_s9 + $0xf8] ss:$36 sps:$4 sm:$0xff]  }
 0x8e9   : > { %v15833_v42 = vpop.f32.mrf.mxu0  ;;  %v15921_v43 = vpop.f32.mrf.mxu1  ;;  %11517 = vmatprep.mubr.bf16.mxu1 %v17968_v58  ;;  %v10981_v26 = vadd.f32 %v20810_v55, %v9629_v14  ;;  %v17982_v55 = vld [vmem:[%s21651_s9 + $0x140] ss:$36 sps:$4 sm:$0xff]  }
 0x8ea   : > { %v20854_v8 = vadd.f32 %v15833_v42, %v15832_v27  ;;  %v15922_v2 = vadd.f32 %v15921_v43, %v15920_v39  ;;  %v9634_v27 = vpop.permute.xlu1 %9633 }
 0x8eb   : > { %v15835_v19 = vpop.f32.mrf.mxu0  ;;  %v15923_v9 = vpop.f32.mrf.mxu1 }
 0x8ec   : > { %v20859_v47 = vadd.f32 %v15922_v2, %v10965_v16  ;;  %v17981_v16 = vld [vmem:[%s21651_s9 + $0x40c] ss:$36 sps:$4 sm:$0xff]   ;;  %v10984_v2 = vadd.f32 %v20827_v56, %v9634_v27 }
 0x8ed   : > { %v15836_v28 = vpop.f32.mrf.mxu0  ;;  %v15924_v32 = vpop.f32.mrf.mxu1 }
 0x8ee   : > { %v20871_v25 = vadd.f32 %v15836_v28, %v15835_v19  ;;  %v15925_v31 = vadd.f32 %v15924_v32, %v15923_v9  ;;  %v9639_v28 = vpop.permute.xlu0 %9638 }
 0x8ef   : > { %v15838_v21 = vpop.f32.mrf.mxu0  ;;  %v15926_v22 = vpop.f32.mrf.mxu1  ;;  %11389 = vmatmul.mubr.bf16.gmra.mxu0 %v17963_v54 }
 0x8f0   : > { %v20873_v46 = vadd.f32 %v15925_v31, %v10968_v38  ;;  %11518 = vmatmul.mubr.bf16.gmra.mxu1 %v17966_v49  ;;  %16840 = vmatprep.mubr.bf16.mxu0 %v17972_v34  ;;  %v10989_v38 = vadd.f32 %v20832_v4, %v9639_v28  ;;  %v17986_v4 = vld [vmem:[%s21651_s9 + $0x454] ss:$36 sps:$4 sm:$0xff]  }
 0x8f1   : > { %v15839_v50 = vpop.f32.mrf.mxu0  ;;  %v15927_v51 = vpop.f32.mrf.mxu1  ;;  %11525 = vmatprep.mubr.bf16.mxu1 %v17971_v7 }
 0x8f2   : > { %v20876_v20 = vadd.f32 %v15839_v50, %v15838_v21  ;;  %v15928_v15 = vadd.f32 %v15927_v51, %v15926_v22  ;;  %v17983_v21 = vld [vmem:[%s21651_s9 + $0x188] ss:$36 sps:$4 sm:$0xff]   ;;  %v17987_v50 = vld [vmem:[%s21651_s9 + $0x1d0] ss:$36 sps:$4 sm:$0xff]  }
 0x8f3   : > { %v15841_v17 = vpop.f32.mrf.mxu0  ;;  %v15929_v11 = vpop.f32.mrf.mxu1 }
 0x8f4   : > { %v20881_v41 = vadd.f32 %v15928_v15, %v10973_v12  ;;  %v9644_v15 = vpop.permute.xlu1 %9643 }
 0x8f5   : > { %v15842_v6 = vpop.f32.mrf.mxu0  ;;  %v15930_v3 = vpop.f32.mrf.mxu1 }
 0x8f6   : > { %v20893_v37 = vadd.f32 %v15842_v6, %v15841_v17  ;;  %v15931_v10 = vadd.f32 %v15930_v3, %v15929_v11 }
 0x8f7   : > { %v15844_v57 = vpop.f32.mrf.mxu0  ;;  %v15932_v52 = vpop.f32.mrf.mxu1  ;;  %16841 = vmatmul.mubr.bf16.vlgmr.msra.gmra.mxu0 %v17973_v13  ;;  %v10992_v13 = vadd.f32 %v20849_v18, %v9644_v15  ;;  %v17988_v18 = vld [vmem:[%s21651_s9 + $0x218] ss:$36 sps:$4 sm:$0xff]  }
 0x8f8   : > { %v20895_v60 = vadd.f32 %v15931_v10, %v10976_v0  ;;  %11526 = vmatmul.mubr.bf16.gmra.mxu1 %v17969_v48  ;;  %16844 = vmatprep.mubr.bf16.mxu0 %v17977_v44 }
 0x8f9   : > { %v15845_v30 = vpop.f32.mrf.mxu0  ;;  %v15933_v23 = vpop.f32.mrf.mxu1  ;;  %11533 = vmatprep.mubr.bf16.mxu1 %v17976_v5 }
 0x8fa   : > { %v20898_v35 = vadd.f32 %v15845_v30, %v15844_v57  ;;  %v15934_v58 = vadd.f32 %v15933_v23, %v15932_v52  ;;  %v9649_v5 = vpop.permute.xlu0 %9648  ;;  %v17984_v23 = vld [vmem:[%s21651_s9 + $0x450] ss:$36 sps:$4 sm:$0xff]  }
 0x8fb   : > { %v15847_v36 = vpop.f32.mrf.mxu0  ;;  %v15935_v24 = vpop.f32.mrf.mxu1  ;;  %v10997_v57 = vadd.f32 %v20854_v8, %v9649_v5 }
 0x8fc   : > { %v20903_v39 = vadd.f32 %v15934_v58, %v10981_v26  ;;  %v17989_v26 = vld [vmem:[%s21651_s9 + $0x260] ss:$36 sps:$4 sm:$0xff]  }
 0x8fd   : > { %v15848_v42 = vpop.f32.mrf.mxu0  ;;  %v15936_v43 = vpop.f32.mrf.mxu1 }
 0x8fe   : > { %v20915_v19 = vadd.f32 %v15848_v42, %v15847_v36  ;;  %v15937_v9 = vadd.f32 %v15936_v43, %v15935_v24  ;;  %v9654_v24 = vpop.permute.xlu1 %9653 }
 0x8ff   : > { %v15850_v54 = vpop.f32.mrf.mxu0  ;;  %16845 = vmatmul.mubr.bf16.gmra.mxu0 %v17978_v33  ;;  %v11000_v27 = vadd.f32 %v20871_v25, %v9654_v24  ;;  %v17990_v25 = vld [vmem:[%s21651_s9 + $0x2a8] ss:$36 sps:$4 sm:$0xff]  }
 0x900   : > { %v20917_v62 = vadd.f32 %v15937_v9, %v10984_v2  ;;  %v15938_v49 = vpop.f32.mrf.mxu1  ;;  %11534 = vmatmul.mubr.bf16.gmra.mxu1 %v17974_v40  ;;  %16848 = vmatprep.mubr.bf16.mxu0 %v17982_v55  ;;  %v9659_v2 = vpop.permute.xlu0 %9658 }
 0x901   : > { %v15851_v34 = vpop.f32.mrf.mxu0  ;;  %11541 = vmatprep.mubr.bf16.mxu1 %v17981_v16 }
 0x902   : > { %v20919_v32 = vadd.f32 %v15851_v34, %v15850_v54  ;;  %v15939_v7 = vpop.f32.mrf.mxu1 }
 0x903   : > { %v15940_v31 = vadd.f32 %v15939_v7, %v15938_v49  ;;  %v15853_v56 = vpop.f32.mrf.mxu0  ;;  %v11005_v49 = vadd.f32 %v20876_v20, %v9659_v2 }
 0x904   : > { %v15941_v22 = vpop.f32.mrf.mxu1 }
 0x905   : > { %v20931_v51 = vadd.f32 %v15940_v31, %v10989_v38  ;;  %v15854_v12 = vpop.f32.mrf.mxu0  ;;  %v17991_v38 = vld [vmem:[%s21651_s9 + $0x2f0] ss:$36 sps:$4 sm:$0xff]  }
 0x906   : > { %v20936_v17 = vadd.f32 %v15854_v12, %v15853_v56  ;;  %v15942_v11 = vpop.f32.mrf.mxu1 }
 0x907   : > { %v15943_v53 = vadd.f32 %v15942_v11, %v15941_v22  ;;  %v15856_v48 = vpop.f32.mrf.mxu0  ;;  %16849 = vmatmul.mubr.bf16.gmra.mxu0 %v17983_v21  ;;  %v9664_v21 = vpop.permute.xlu1 %9663 }
 0x908   : > { %v15944_v44 = vpop.f32.mrf.mxu1  ;;  %11542 = vmatmul.mubr.bf16.gmra.mxu1 %v17979_v45  ;;  %16852 = vmatprep.mubr.bf16.mxu0 %v17987_v50  ;;  %v11008_v20 = vadd.f32 %v20893_v37, %v9664_v21  ;;  %v17992_v37 = vld [vmem:[%s21651_s9 + $0x338] ss:$36 sps:$4 sm:$0xff]  }
 0x909   : > { %v20939_v6 = vadd.f32 %v15943_v53, %v10992_v13  ;;  %v15857_v3 = vpop.f32.mrf.mxu0  ;;  %11549 = vmatprep.mubr.bf16.mxu1 %v17986_v4  ;;  %v9669_v13 = vpop.permute.xlu0 %9668 }
 0x90a   : > { %v20941_v0 = vadd.f32 %v15857_v3, %v15856_v48  ;;  %v15945_v10 = vpop.f32.mrf.mxu1 }
 0x90b   : > { %v15946_v52 = vadd.f32 %v15945_v10, %v15944_v44  ;;  %v15859_v14 = vpop.f32.mrf.mxu0  ;;  %v11013_v44 = vadd.f32 %v20898_v35, %v9669_v13 }
 0x90c   : > { %v15947_v30 = vpop.f32.mrf.mxu1 }
 0x90d   : > { %v20953_v58 = vadd.f32 %v15946_v52, %v10997_v57  ;;  %v15860_v36 = vpop.f32.mrf.mxu0  ;;  %v17993_v57 = vld [vmem:[%s21651_s9 + $0x380] ss:$36 sps:$4 sm:$0xff]  }
 0x90e   : > { %v20955_v8 = vadd.f32 %v15860_v36, %v15859_v14  ;;  %v15948_v33 = vpop.f32.mrf.mxu1 }
 0x90f   : > { %v15949_v40 = vadd.f32 %v15948_v33, %v15947_v30  ;;  %v15862_v55 = vpop.f32.mrf.mxu0  ;;  %16853 = vmatmul.mubr.bf16.gmra.mxu0 %v17988_v18  ;;  %v9674_v18 = vpop.permute.xlu1 %9673 }
 0x910   : > { %v15950_v42 = vpop.f32.mrf.mxu1  ;;  %11550 = vmatmul.mubr.bf16.gmra.mxu1 %v17984_v23  ;;  %16856 = vmatprep.mubr.bf16.mxu0 %v17989_v26  ;;  %v11016_v35 = vadd.f32 %v20915_v19, %v9674_v18  ;;  %v17994_v19 = vld [vmem:[%s21651_s9 + $0x3c8] ss:$36 sps:$4 sm:$0xff]  }
 0x911   : > { %v20958_v43 = vadd.f32 %v15949_v40, %v11000_v27  ;;  %v15863_v16 = vpop.f32.mrf.mxu0  ;;  %12023 = vmatprep.mubr.bf16.mxu1 %v21658_v29  ;;  %v9679_v27 = vpop.permute.xlu0 %9678  ;;  %v18008_v18 = vld [vmem:[%s21654_s12 + $0xcc] ss:$16 sps:$4 sm:$0xff]  }
 0x912   : > { %v20961_v9 = vadd.f32 %v15863_v16, %v15862_v55  ;;  %v15951_v54 = vpop.f32.mrf.mxu1 }
 0x913   : > { %v15952_v34 = vadd.f32 %v15951_v54, %v15950_v42  ;;  %v15865_v28 = vpop.f32.mrf.mxu0  ;;  %v11021_v42 = vadd.f32 %v20919_v32, %v9679_v27  ;;  %v17999_v32 = vld [vmem:[%s21654_s12 + $0xe4] ss:$16 sps:$4 sm:$0xff]  }
 0x914   : > { %v15953_v7 = vpop.f32.mrf.mxu1  ;;  %11991 = vmatprep.subr.bf16.mxu1 %v17999_v32 }
 0x915   : > { %v20970_v31 = vadd.f32 %v15952_v34, %v11005_v49  ;;  %v15866_v56 = vpop.f32.mrf.mxu0  ;;  %v17995_v49 = vld [vmem:[%s21651_s9 + $0x410] ss:$36 sps:$4 sm:$0xff]   ;;  %v9689_v13 = vpop.permute.xlu0 %9688 }
 0x916   : > { %v20972_v22 = vadd.f32 %v15866_v56, %v15865_v28  ;;  %v15954_v45 = vpop.f32.mrf.mxu1  ;;  %v17997_v34 = vld [vmem:[%s21654_s12 + $0xe0] ss:$16 sps:$4 sm:$0xff]  }
 0x917   : > { %v15955_v50 = vadd.f32 %v15954_v45, %v15953_v7  ;;  %v15868_v12 = vpop.f32.mrf.mxu0  ;;  %16857 = vmatmul.mubr.bf16.gmra.mxu0 %v17990_v25  ;;  %v9684_v7 = vpop.permute.xlu1 %9683  ;;  %11992 = vmatpush1.bf16.msra.mxu1 %v17997_v34 }
 0x918   : > { %v15956_v4 = vpop.f32.mrf.mxu1  ;;  %16860 = vmatprep.mubr.bf16.mxu0 %v17991_v38  ;;  %v11024_v56 = vadd.f32 %v20936_v17, %v9684_v7 }
 0x919   : > { %v20975_v15 = vadd.f32 %v15955_v50, %v11008_v20  ;;  %v15869_v11 = vpop.f32.mrf.mxu0  ;;  %v18002_v20 = vld [vmem:[%s21654_s12 + $0xec] ss:$16 sps:$4 sm:$0xff]   ;;  %v9699_v7 = vpop.permute.xlu0 %9698 }
 0x91a   : > { %v20977_v53 = vadd.f32 %v15869_v11, %v15868_v12  ;;  %v15957_v48 = vpop.f32.mrf.mxu1  ;;  %v18000_v12 = vld [vmem:[%s21654_s12 + $0xe8] ss:$16 sps:$4 sm:$0xff]   ;;  %12184 = vmatprep.subr.bf16.mxu0 %v18002_v20 }
 0x91b   : > { %v15958_v3 = vadd.f32 %v15957_v48, %v15956_v4  ;;  %v20980_v5 = vpop.f32.mrf.mxu0  ;;  %12185 = vmatpush1.bf16.msra.mxu0 %v18000_v12  ;;  %v18020_v12 = vld [vmem:[%s21654_s12 + $0x8c] ss:$16 sps:$4 sm:$0xff]  }
 0x91c   : > { %v15959_v10 = vpop.f32.mrf.mxu1  ;;  %12186 = vmatprep.subr.bf16.mxu0 %v18008_v18 }
 0x91d   : > { %v20988_v52 = vadd.f32 %v15958_v3, %v11013_v44  ;;  %v20990_v14 = vpop.f32.mrf.mxu0  ;;  %v11029_v44 = vadd.f32 %v20941_v0, %v9689_v13  ;;  %v18003_v0 = vld [vmem:[%s21654_s12 + $0xc0] ss:$16 sps:$4 sm:$0xff]  }
 0x91e   : > { %v15960_v30 = vpop.f32.mrf.mxu1  ;;  %v18015_v13 = vld [vmem:[%s21654_s12 + $0x80] ss:$16 sps:$4 sm:$0xff]  }
 0x91f   : > { %v15961_v23 = vadd.f32 %v15960_v30, %v15959_v10  ;;  %v15874_v26 = vpop.f32.mrf.mxu0  ;;  %16861 = vmatmul.mubr.bf16.gmra.mxu0 %v17992_v37  ;;  %v17996_v10 = vld [vmem:[%s21651_s9 + $0x458] ss:$36 sps:$4 sm:$0xff]  }
 0x920   : > { %v15962_v36 = vpop.f32.mrf.mxu1  ;;  %16864 = vmatprep.mubr.bf16.mxu0 %v17993_v57  ;;  %v18005_v57 = vld [vmem:[%s21654_s12 + $0xc4] ss:$16 sps:$4 sm:$0xff]  }
 0x921   : > { %v20993_v24 = vadd.f32 %v15961_v23, %v11016_v35  ;;  %v15875_v33 = vpop.f32.mrf.mxu0  ;;  %v18006_v35 = vld [vmem:[%s21654_s12 + $0xc8] ss:$16 sps:$4 sm:$0xff]   ;;  %11993 = vmatprep.subr.bf16.mxu1 %v18005_v57 }
 0x922   : > { %v20995_v40 = vadd.f32 %v15875_v33, %v15874_v26  ;;  %v15963_v55 = vpop.f32.mrf.mxu1  ;;  %11994 = vmatpush1.bf16.msra.mxu1 %v18003_v0  ;;  %12187 = vmatpush1.bf16.msra.mxu0 %v18006_v35  ;;  %v18023_v0 = vld [vmem:[%s21654_s12 + $0x64] ss:$16 sps:$4 sm:$0xff]   ;;  %v18026_v35 = vld [vmem:[%s21654_s12 + $0x6c] ss:$16 sps:$4 sm:$0xff]  }
 0x923   : > { %v15964_v16 = vadd.f32 %v15963_v55, %v15962_v36  ;;  %v20998_v2 = vpop.f32.mrf.mxu0  ;;  %v9694_v36 = vpop.permute.xlu1 %9693 }
 0x924   : > { %v15965_v54 = vpop.f32.mrf.mxu1  ;;  %v11032_v27 = vadd.f32 %v20955_v8, %v9694_v36  ;;  %v18012_v8 = vld [vmem:[%s21654_s12 + $0xa8] ss:$16 sps:$4 sm:$0xff]  }
 0x925   : > { %v21012_v28 = vadd.f32 %v15964_v16, %v11021_v42  ;;  %v21014_v25 = vpop.f32.mrf.mxu0  ;;  %v18011_v16 = vld [vmem:[%s21654_s12 + $0xa4] ss:$16 sps:$4 sm:$0xff]  }
 0x926   : > { %v15966_v38 = vpop.f32.mrf.mxu1  ;;  %11995 = vmatprep.subr.bf16.mxu1 %v18011_v16 }
 0x927   : > { %v15967_v21 = vadd.f32 %v15966_v38, %v15965_v54  ;;  %v15880_v45 = vpop.f32.mrf.mxu0  ;;  %16865 = vmatmul.mubr.bf16.gmra.mxu0 %v17994_v19  ;;  %v18014_v19 = vld [vmem:[%s21654_s12 + $0xac] ss:$16 sps:$4 sm:$0xff]  }
 0x928   : > { %v15968_v50 = vpop.f32.mrf.mxu1  ;;  %16868 = vmatprep.mubr.bf16.mxu0 %v17995_v49  ;;  %v18009_v49 = vld [vmem:[%s21654_s12 + $0xa0] ss:$16 sps:$4 sm:$0xff]   ;;  %12188 = vmatprep.subr.bf16.mxu0 %v18014_v19 }
 0x929   : > { %v21023_v4 = vadd.f32 %v15967_v21, %v11024_v56  ;;  %v15881_v11 = vpop.f32.mrf.mxu0  ;;  %11996 = vmatpush1.bf16.msra.mxu1 %v18009_v49  ;;  %12189 = vmatpush1.bf16.msra.mxu0 %v18012_v8  ;;  %v11037_v21 = vadd.f32 %v20961_v9, %v9699_v7  ;;  %v18018_v9 = vld [vmem:[%s21654_s12 + $0x88] ss:$16 sps:$4 sm:$0xff]   ;;  %v15873_v49 = vadd.f32 %v20990_v14, %v20980_v5  ;;  %v18029_v7 = vld [vmem:[%s21654_s12 + $0x44] ss:$16 sps:$4 sm:$0xff]  }
 0x92a   : > { %v21025_v17 = vadd.f32 %v15881_v11, %v15880_v45  ;;  %v15969_v48 = vpop.f32.mrf.mxu1  ;;  %12190 = vmatprep.subr.bf16.mxu0 %v18020_v12  ;;  %v18030_v5 = vld [vmem:[%s21654_s12 + $0x48] ss:$16 sps:$4 sm:$0xff]  }
 0x92b   : > { %v15970_v3 = vadd.f32 %v15969_v48, %v15968_v50  ;;  %v21028_v37 = vpop.f32.mrf.mxu0  ;;  %v18017_v50 = vld [vmem:[%s21654_s12 + $0x84] ss:$16 sps:$4 sm:$0xff]  }
 0x92c   : > { %v15971_v30 = vpop.f32.mrf.mxu1  ;;  %11997 = vmatprep.subr.bf16.mxu1 %v18017_v50 }
 0x92d   : > { %v21045_v23 = vadd.f32 %v15970_v3, %v11029_v44  ;;  %v21047_v26 = vpop.f32.mrf.mxu0  ;;  %v9704_v3 = vpop.permute.xlu1 %9703  ;;  %11998 = vmatpush1.bf16.msra.mxu1 %v18015_v13  ;;  %12191 = vmatpush1.bf16.msra.mxu0 %v18018_v9 }
 0x92e   : > { %v15972_v33 = vpop.f32.mrf.mxu1  ;;  %v11040_v57 = vadd.f32 %v20972_v22, %v9704_v3  ;;  %11999 = vmatprep.subr.bf16.mxu1 %v18023_v0  ;;  %12192 = vmatprep.subr.bf16.mxu0 %v18026_v35  ;;  %v18033_v0 = vld [vmem:[%s21654_s12 + $0x20] ss:$16 sps:$4 sm:$0xff]   ;;  %v18036_v35 = vld [vmem:[%s21654_s12 + $0x28] ss:$16 sps:$4 sm:$0xff]  }
 0x92f   : > { %v15973_v55 = vadd.f32 %v15972_v33, %v15971_v30  ;;  %v15886_v42 = vpop.f32.mrf.mxu0  ;;  %16869 = vmatmul.mubr.bf16.gmra.mxu0 %v17996_v10  ;;  %v18021_v33 = vld [vmem:[%s21654_s12 + $0x60] ss:$16 sps:$4 sm:$0xff]  }
 0x930   : > { %v15974_v54 = vpop.f32.mrf.mxu1  ;;  %12216 = vmatprep.mubr.bf16.mxu0 %v21658_v29 }
 0x931   : > { %v21063_v34 = vadd.f32 %v15973_v55, %v11032_v27  ;;  %v15887_v32 = vpop.f32.mrf.mxu0  ;;  %v18024_v27 = vld [vmem:[%s21654_s12 + $0x68] ss:$16 sps:$4 sm:$0xff]   ;;  %12000 = vmatpush1.bf16.msra.mxu1 %v18021_v33  ;;  %v9714_v12 = vpop.permute.xlu1 %9713 }
 0x932   : > { %v21065_v38 = vadd.f32 %v15887_v32, %v15886_v42  ;;  %v15975_v56 = vpop.f32.mrf.mxu1  ;;  %v9709_v42 = vpop.permute.xlu0 %9708  ;;  %12193 = vmatpush1.bf16.msra.mxu0 %v18024_v27  ;;  %12001 = vmatprep.subr.bf16.mxu1 %v18029_v7 }
 0x933   : > { %v15976_v45 = vadd.f32 %v15975_v56, %v15974_v54  ;;  %v21068_v20 = vpop.f32.mrf.mxu0  ;;  %v11045_v54 = vadd.f32 %v20977_v53, %v9709_v42  ;;  %v18032_v56 = vld [vmem:[%s21654_s12 + $0x4c] ss:$16 sps:$4 sm:$0xff]   ;;  %v18027_v53 = vld [vmem:[%s21654_s12 + $0x40] ss:$16 sps:$4 sm:$0xff]  }
 0x934   : > { %v15977_v11 = vpop.f32.mrf.mxu1  ;;  %12194 = vmatprep.subr.bf16.mxu0 %v18032_v56 }
 0x935   : > { %v21082_v48 = vadd.f32 %v15976_v45, %v11037_v21  ;;  %v21084_v44 = vpop.f32.mrf.mxu0  ;;  %12002 = vmatpush1.bf16.msra.mxu1 %v18027_v53 }
 0x936   : > { %v15978_v10 = vpop.f32.mrf.mxu1  ;;  %12195 = vmatpush1.bf16.msra.mxu0 %v18030_v5  ;;  %v9719_v27 = vpop.permute.xlu0 %9718 }
 0x937   : > { %v15979_v18 = vadd.f32 %v15978_v10, %v15977_v11  ;;  %v16020_v30 = vpop.f32.mrf.mxu0  ;;  %v18035_v10 = vld [vmem:[%s21654_s12 + $0x24] ss:$16 sps:$4 sm:$0xff]  }
 0x938   : > { %v15980_v36 = vpop.f32.mrf.mxu1  ;;  %12003 = vmatprep.subr.bf16.mxu1 %v18035_v10 }
 0x939   : > { %v21099_v22 = vadd.f32 %v15979_v18, %v11040_v57  ;;  %v16021_v55 = vpop.f32.mrf.mxu0  ;;  %v18038_v57 = vld [vmem:[%s21654_s12 + $0x2c] ss:$16 sps:$4 sm:$0xff]   ;;  %12004 = vmatpush1.bf16.msra.mxu1 %v18033_v0  ;;  %v15885_v0 = vadd.f32 %v21047_v26, %v21028_v37 }
 0x93a   : > { %v15981_v16 = vpop.f32.mrf.mxu1  ;;  %v16022_v19 = vadd.f32 %v16021_v55, %v16020_v30  ;;  %12196 = vmatprep.subr.bf16.mxu0 %v18038_v57 }
 0x93b   : > { %v15982_v8 = vadd.f32 %v15981_v16, %v15980_v36  ;;  %v16023_v32 = vpop.f32.mrf.mxu0  ;;  %12197 = vmatpush1.bf16.msra.mxu0 %v18036_v35  ;;  %v15879_v16 = vadd.f32 %v21014_v25, %v20998_v2  ;;  %v18042_v2 = vld [vmem:[%s21654_s12 + $0x8] ss:$16 sps:$4 sm:$0xff]  }
 0x93c   : > { %v21111_v21 = vadd.f32 %v16022_v19, %v20815_v1  ;;  %v15983_v45 = vpop.f32.mrf.mxu1  ;;  %v11048_v1 = vadd.f32 %v15873_v49, %v9714_v12  ;;  %v18041_v49 = vld [vmem:[%s21654_s12 + $0x4] ss:$16 sps:$4 sm:$0xff]  }
 0x93d   : > { %v21119_v14 = vadd.f32 %v15982_v8, %v11045_v54  ;;  %v16024_v50 = vpop.f32.mrf.mxu0  ;;  %v18044_v8 = vld [vmem:[%s21654_s12 + $0xc] ss:$16 sps:$4 sm:$0xff]   ;;  %12005 = vmatprep.subr.bf16.mxu1 %v18041_v49 }
 0x93e   : > { %v15984_v11 = vpop.f32.mrf.mxu1  ;;  %v16025_v13 = vadd.f32 %v16024_v50, %v16023_v32  ;;  %12198 = vmatprep.subr.bf16.mxu0 %v18044_v8 }
 0x93f   : > { %v15985_v9 = vadd.f32 %v15984_v11, %v15983_v45  ;;  %v16026_v3 = vpop.f32.mrf.mxu0  ;;  %v9724_v45 = vpop.permute.xlu1 %9723  ;;  %12199 = vmatpush1.bf16.msra.mxu0 %v18042_v2 }
 0x940   : > { %v21128_v18 = vadd.f32 %v16025_v13, %v20829_v63  ;;  %v15986_v30 = vpop.f32.mrf.mxu1  ;;  %v11053_v63 = vadd.f32 %v20995_v40, %v9719_v27  ;;  %v18039_v40 = vld [vmem:[%s21654_s12] ss:$16 sps:$4 sm:$0xff]  }
 0x941   : > { %v21136_v36 = vadd.f32 %v15985_v9, %v11048_v1  ;;  %v16027_v33 = vpop.f32.mrf.mxu0  ;;  %12006 = vmatpush1.bf16.msra.mxu1 %v18039_v40 }
 0x942   : > { %v15987_v55 = vpop.f32.mrf.mxu1  ;;  %v16028_v42 = vadd.f32 %v16027_v33, %v16026_v3  ;;  %v9729_v3 = vpop.permute.xlu0 %9728 }
 0x943   : > { %v15988_v19 = vadd.f32 %v15987_v55, %v15986_v30  ;;  %v16029_v54 = vpop.f32.mrf.mxu0  ;;  %v11061_v30 = vadd.f32 %v21025_v17, %v9729_v3 }
 0x944   : > { %v21148_v32 = vadd.f32 %v16028_v42, %v20837_v61  ;;  %v15989_v7 = vpop.f32.mrf.mxu1  ;;  %v11056_v61 = vadd.f32 %v15879_v16, %v9724_v45  ;;  %v15891_v45 = vadd.f32 %v21084_v44, %v21068_v20 }
 0x945   : > { %v21156_v25 = vadd.f32 %v15988_v19, %v11053_v63  ;;  %v16030_v56 = vpop.f32.mrf.mxu0  ;;  %v9734_v63 = vpop.permute.xlu1 %9733 }
 0x946   : > { %v15990_v53 = vpop.f32.mrf.mxu1  ;;  %v16031_v5 = vadd.f32 %v16030_v56, %v16029_v54  ;;  %v11064_v54 = vadd.f32 %v15885_v0, %v9734_v63  ;;  %v9739_v40 = vpop.permute.xlu0 %9738 }
 0x947   : > { %v15991_v50 = vadd.f32 %v15990_v53, %v15989_v7  ;;  %v16032_v12 = vpop.f32.mrf.mxu0  ;;  %v11069_v56 = vadd.f32 %v21065_v38, %v9739_v40 }
 0x948   : > { %v21159_v11 = vadd.f32 %v16031_v5, %v20851_v59  ;;  %v15992_v13 = vpop.f32.mrf.mxu1 }
 0x949   : > { %v21161_v1 = vadd.f32 %v15991_v50, %v11056_v61  ;;  %v16033_v9 = vpop.f32.mrf.mxu0 }
 0x94a   : > { %v15993_v10 = vpop.f32.mrf.mxu1  ;;  %v16034_v57 = vadd.f32 %v16033_v9, %v16032_v12 }
 0x94b   : > { %v15994_v35 = vadd.f32 %v15993_v10, %v15992_v13  ;;  %v16035_v33 = vpop.f32.mrf.mxu0  ;;  %v9744_v13 = vpop.permute.xlu1 %9743 }
 0x94c   : > { %v21167_v27 = vadd.f32 %v16034_v57, %v20859_v47  ;;  %v15995_v55 = vpop.f32.mrf.mxu1  ;;  %v11072_v10 = vadd.f32 %v15891_v45, %v9744_v13 }
 0x94d   : > { %v21169_v59 = vadd.f32 %v15994_v35, %v11061_v30  ;;  %v16036_v42 = vpop.f32.mrf.mxu0 }
 0x94e   : > { %v15996_v16 = vpop.f32.mrf.mxu1  ;;  %v16037_v19 = vadd.f32 %v16036_v42, %v16035_v33 }
 0x94f   : > { %v15997_v49 = vadd.f32 %v15996_v16, %v15995_v55  ;;  %v16038_v8 = vpop.f32.mrf.mxu0 }
 0x950   : > { %v21172_v17 = vadd.f32 %v16037_v19, %v20873_v46  ;;  %v15998_v7 = vpop.f32.mrf.mxu1 }
 0x951   : > { %v21174_v37 = vadd.f32 %v15997_v49, %v11064_v54  ;;  %v16039_v26 = vpop.f32.mrf.mxu0 }
 0x952   : > { %v15999_v47 = vpop.f32.mrf.mxu1  ;;  %v16040_v2 = vadd.f32 %v16039_v26, %v16038_v8 }
 0x953   : > { %v16000_v53 = vadd.f32 %v15999_v47, %v15998_v7  ;;  %v16041_v5 = vpop.f32.mrf.mxu0 }
 0x954   : > { %v21180_v61 = vadd.f32 %v16040_v2, %v20881_v41  ;;  %v16001_v50 = vpop.f32.mrf.mxu1 }
 0x955   : > { %v21182_v46 = vadd.f32 %v16000_v53, %v11069_v56  ;;  %v16042_v12 = vpop.f32.mrf.mxu0 }
 0x956   : > { %v16002_v9 = vpop.f32.mrf.mxu1  ;;  %v16043_v3 = vadd.f32 %v16042_v12, %v16041_v5 }
 0x957   : > { %v16003_v57 = vadd.f32 %v16002_v9, %v16001_v50  ;;  %v16044_v30 = vpop.f32.mrf.mxu0 }
 0x958   : > { %v21185_v38 = vadd.f32 %v16043_v3, %v20895_v60  ;;  %v21187_v0 = vpop.f32.mrf.mxu1 }
 0x959   : > { %v21189_v20 = vadd.f32 %v16003_v57, %v11072_v10  ;;  %v16045_v44 = vpop.f32.mrf.mxu0 }
 0x95a   : > { %v16046_v41 = vadd.f32 %v16045_v44, %v16044_v30  ;;  %v21191_v35 = vpop.f32.mrf.mxu1 }
 0x95b   : > { %v16047_v33 = vpop.f32.mrf.mxu0 }
 0x95c   : > { %v21194_v55 = vadd.f32 %v16046_v41, %v20903_v39  ;;  %v21196_v42 = vpop.f32.mrf.mxu1 }
 0x95d   : > { %v16048_v63 = vpop.f32.mrf.mxu0 }
 0x95e   : > { %v16049_v16 = vadd.f32 %v16048_v63, %v16047_v33  ;;  %v21198_v19 = vpop.f32.mrf.mxu1 }
 0x95f   : > { %v16050_v60 = vpop.f32.mrf.mxu0 }
 0x960   : > { %v21201_v54 = vadd.f32 %v16049_v16, %v20917_v62  ;;  %v21203_v49 = vpop.f32.mrf.mxu1 }
 0x961   : > { %v16051_v8 = vpop.f32.mrf.mxu0 }
 0x962   : > { %v16052_v7 = vadd.f32 %v16051_v8, %v16050_v60  ;;  %v21205_v26 = vpop.f32.mrf.mxu1 }
 0x963   : > { %v16053_v40 = vpop.f32.mrf.mxu0 }
 0x964   : > { %v21208_v39 = vadd.f32 %v16052_v7, %v20931_v51  ;;  %v21210_v47 = vpop.f32.mrf.mxu1 }
 0x965   : > { %v16054_v2 = vpop.f32.mrf.mxu0 }
 0x966   : > { %v16055_v56 = vadd.f32 %v16054_v2, %v16053_v40  ;;  %v21212_v45 = vpop.f32.mrf.mxu1 }
 0x967   : > { %v16056_v53 = vpop.f32.mrf.mxu0 }
 0x968   : > { %v21215_v62 = vadd.f32 %v16055_v56, %v20939_v6  ;;  %v21217_v5 = vpop.f32.mrf.mxu1 }
 0x969   : > { %v16057_v50 = vpop.f32.mrf.mxu0 }
 0x96a   : > { %v16058_v12 = vadd.f32 %v16057_v50, %v16056_v53  ;;  %v21219_v13 = vpop.f32.mrf.mxu1 }
 0x96b   : > { %v16059_v9 = vpop.f32.mrf.mxu0 }
 0x96c   : > { %v21222_v51 = vadd.f32 %v16058_v12, %v20953_v58  ;;  %v21224_v3 = vpop.f32.mrf.mxu1 }
 0x96d   : > { %v16060_v10 = vpop.f32.mrf.mxu0 }
 0x96e   : > { %21660 = vst [vmem:[#allocation5_spill] sm:$0xff] %v21222_v51  ;;  %v16061_v57 = vadd.f32 %v16060_v10, %v16059_v9  ;;  %v21226_v30 = vpop.f32.mrf.mxu1 }
 0x96f   : > { %v16062_v44 = vpop.f32.mrf.mxu0 }
 0x970   : > { %v21229_v6 = vadd.f32 %v16061_v57, %v20958_v43  ;;  %v21231_v41 = vpop.f32.mrf.mxu1 }
 0x971   : > { %v16063_v33 = vpop.f32.mrf.mxu0 }
 0x972   : > { %21661 = vst [vmem:[#allocation6_spill] sm:$0xff] %v21229_v6  ;;  %v16064_v63 = vadd.f32 %v16063_v33, %v16062_v44  ;;  %v21233_v16 = vpop.f32.mrf.mxu1 }
 0x973   : > { %v16065_v60 = vpop.f32.mrf.mxu0 }
 0x974   : > { %v21236_v58 = vadd.f32 %v16064_v63, %v20970_v31  ;;  %v21238_v8 = vpop.f32.mrf.mxu1 }
 0x975   : > { %v16066_v7 = vpop.f32.mrf.mxu0 }
 0x976   : > { %21662 = vst [vmem:[#allocation7_spill] sm:$0xff] %v21236_v58  ;;  %v16067_v40 = vadd.f32 %v16066_v7, %v16065_v60  ;;  %v21240_v2 = vpop.f32.mrf.mxu1 }
 0x977   : > { %v16068_v56 = vpop.f32.mrf.mxu0 }
 0x978   : > { %v21243_v43 = vadd.f32 %v16067_v40, %v20975_v15  ;;  %v21245_v53 = vpop.f32.mrf.mxu1 }
 0x979   : > { %v16069_v50 = vpop.f32.mrf.mxu0 }
 0x97a   : > { %21663 = vst [vmem:[#allocation8_spill] sm:$0xff] %v21243_v43  ;;  %v16070_v12 = vadd.f32 %v16069_v50, %v16068_v56  ;;  %v21247_v9 = vpop.f32.mrf.mxu1 }
 0x97b   : > { %v16071_v10 = vpop.f32.mrf.mxu0 }
 0x97c   : > { %v21250_v31 = vadd.f32 %v16070_v12, %v20988_v52  ;;  %v21252_v57 = vpop.f32.mrf.mxu1 }
 0x97d   : > { %v16072_v44 = vpop.f32.mrf.mxu0 }
 0x97e   : > { %21664 = vst [vmem:[#allocation9_spill] sm:$0xff] %v21250_v31  ;;  %v16073_v33 = vadd.f32 %v16072_v44, %v16071_v10  ;;  %v21254_v63 = vpop.f32.mrf.mxu1 }
 0x97f   : > { %v16074_v60 = vpop.f32.mrf.mxu0 }
 0x980   : > { %v21257_v15 = vadd.f32 %v16073_v33, %v20993_v24  ;;  %v21259_v7 = vpop.f32.mrf.mxu1 }
 0x981   : > { %v16075_v40 = vpop.f32.mrf.mxu0 }
 0x982   : > { %21665 = vst [vmem:[#allocation10_spill] sm:$0xff] %v21257_v15  ;;  %v16076_v56 = vadd.f32 %v16075_v40, %v16074_v60  ;;  %v21261_v50 = vpop.f32.mrf.mxu1 }
 0x983   : > { %v16077_v29 = vpop.f32.mrf.mxu0 }
 0x984   : > { %v21264_v52 = vadd.f32 %v16076_v56, %v21012_v28  ;;  %v21266_v12 = vpop.f32.mrf.mxu1 }
 0x985   : > { %v16078_v31 = vpop.f32.mrf.mxu0 }
 0x986   : > { %21666 = vst [vmem:[#allocation11_spill] sm:$0xff] %v21264_v52  ;;  %v16079_v10 = vadd.f32 %v16078_v31, %v16077_v29  ;;  %v21268_v44 = vpop.f32.mrf.mxu1 }
 0x987   : > { %v16080_v6 = vpop.f32.mrf.mxu0 }
 0x988   : > { %v21271_v24 = vadd.f32 %v16079_v10, %v21023_v4  ;;  %v21273_v33 = vpop.f32.mrf.mxu1 }
 0x989   : > { %v16081_v15 = vpop.f32.mrf.mxu0 }
 0x98a   : > { %21667 = vst [vmem:[#allocation12_spill] sm:$0xff] %v21271_v24  ;;  %v16082_v60 = vadd.f32 %v16081_v15, %v16080_v6  ;;  %v21275_v40 = vpop.f32.mrf.mxu1 }
 0x98b   : > { %v16083_v43 = vpop.f32.mrf.mxu0 }
 0x98c   : > { %v21278_v28 = vadd.f32 %v16082_v60, %v21045_v23  ;;  %v21280_v56 = vpop.f32.mrf.mxu1 }
 0x98d   : > { %21669 = vst [vmem:[#allocation14_spill] sm:$0xff] %v21280_v56  ;;  %v16084_v52 = vpop.f32.mrf.mxu0 }
 0x98e   : > { %21668 = vst [vmem:[#allocation13_spill] sm:$0xff] %v21278_v28  ;;  %v16085_v29 = vadd.f32 %v16084_v52, %v16083_v43  ;;  %v21282_v31 = vpop.f32.mrf.mxu1 }
 0x98f   : > { %21670 = vst [vmem:[#allocation15_spill] sm:$0xff] %v21282_v31  ;;  %v16086_v51 = vpop.f32.mrf.mxu0 }
 0x990   : > { %v21285_v4 = vadd.f32 %v16085_v29, %v21063_v34  ;;  %v21287_v10 = vpop.f32.mrf.mxu1 }
 0x991   : > { %v16087_v24 = vpop.f32.mrf.mxu0 }
 0x992   : > { %21671 = vst [vmem:[#allocation16_spill] sm:$0xff] %v21285_v4  ;;  %v16088_v6 = vadd.f32 %v16087_v24, %v16086_v51  ;;  %v21289_v15 = vpop.f32.mrf.mxu1 }
 0x993   : > { %v16089_v58 = vpop.f32.mrf.mxu0 }
 0x994   : > { %v21292_v23 = vadd.f32 %v16088_v6, %v21082_v48  ;;  %v21294_v60 = vpop.f32.mrf.mxu1 }
 0x995   : > { %v16090_v28 = vpop.f32.mrf.mxu0 }
 0x996   : > { %21672 = vst [vmem:[#allocation17_spill] sm:$0xff] %v21292_v23  ;;  %v16091_v43 = vadd.f32 %v16090_v28, %v16089_v58  ;;  %v21296_v52 = vpop.f32.mrf.mxu1 }
 0x997   : > { %21673 = vst [vmem:[#allocation18_spill] sm:$0xff] %v21296_v52  ;;  %v16092_v31 = vpop.f32.mrf.mxu0 }
 0x998   : > { %v21299_v34 = vadd.f32 %v16091_v43, %v21099_v22  ;;  %v21301_v29 = vpop.f32.mrf.mxu1 }
 0x999   : > { %v16093_v4 = vpop.f32.mrf.mxu0 }
 0x99a   : > { %21674 = vst [vmem:[#allocation19_spill] sm:$0xff] %v21299_v34  ;;  %v16094_v51 = vadd.f32 %v16093_v4, %v16092_v31  ;;  %v21303_v24 = vpop.f32.mrf.mxu1 }
 0x99b   : > { %21675 = vst [vmem:[#allocation20_spill] sm:$0xff] %v21303_v24  ;;  %v16095_v56 = vpop.f32.mrf.mxu0 }
 0x99c   : > { %v21306_v48 = vadd.f32 %v16094_v51, %v21119_v14  ;;  %v21308_v6 = vpop.f32.mrf.mxu1 }
 0x99d   : > { %21677 = vst [vmem:[#allocation22_spill] sm:$0xff] %v21308_v6  ;;  %v16096_v23 = vpop.f32.mrf.mxu0 }
 0x99e   : > { %21676 = vst [vmem:[#allocation21_spill] sm:$0xff] %v21306_v48  ;;  %v16097_v58 = vadd.f32 %v16096_v23, %v16095_v56  ;;  %v21310_v28 = vpop.f32.mrf.mxu1 }
 0x99f   : > { %21678 = vst [vmem:[#allocation23_spill] sm:$0xff] %v21310_v28  ;;  %v16098_v52 = vpop.f32.mrf.mxu0 }
 0x9a0   : > { %v21313_v22 = vadd.f32 %v16097_v58, %v21136_v36  ;;  %v21315_v43 = vpop.f32.mrf.mxu1 }
 0x9a1   : > { %v16099_v34 = vpop.f32.mrf.mxu0 }
 0x9a2   : > { %21679 = vst [vmem:[#allocation24_spill] sm:$0xff] %v21313_v22  ;;  %v16100_v31 = vadd.f32 %v16099_v34, %v16098_v52  ;;  %v21317_v4 = vpop.f32.mrf.mxu1 }
 0x9a3   : > { %v16101_v24 = vpop.f32.mrf.mxu0 }
 0x9a4   : > { %v21320_v14 = vadd.f32 %v16100_v31, %v21156_v25  ;;  %v21322_v51 = vpop.f32.mrf.mxu1 }
 0x9a5   : > { %v16102_v48 = vpop.f32.mrf.mxu0 }
 0x9a6   : > { %21680 = vst [vmem:[#allocation25_spill] sm:$0xff] %v21320_v14  ;;  %v16103_v56 = vadd.f32 %v16102_v48, %v16101_v24  ;;  %v21324_v23 = vpop.f32.mrf.mxu1 }
 0x9a7   : > { %21681 = vst [vmem:[#allocation26_spill] sm:$0xff] %v21324_v23  ;;  %v16104_v28 = vpop.f32.mrf.mxu0 }
 0x9a8   : > { %v21327_v36 = vadd.f32 %v16103_v56, %v21161_v1  ;;  %v21329_v58 = vpop.f32.mrf.mxu1 }
 0x9a9   : > { %v16105_v22 = vpop.f32.mrf.mxu0 }
 0x9aa   : > { %21682 = vst [vmem:[#allocation27_spill] sm:$0xff] %v21327_v36  ;;  %v16106_v52 = vadd.f32 %v16105_v22, %v16104_v28  ;;  %v21331_v34 = vpop.f32.mrf.mxu1  ;;  %v16140_v28 = vadd.f32 %v21205_v26, %v21203_v49 }
 0x9ab   : > { %21683 = vst [vmem:[#allocation28_spill] sm:$0xff] %v21331_v34  ;;  %v16107_v6 = vpop.f32.mrf.mxu0 }
 0x9ac   : > { %v21334_v25 = vadd.f32 %v16106_v52, %v21169_v59  ;;  %v21336_v31 = vpop.f32.mrf.mxu1  ;;  %v16134_v52 = vadd.f32 %v21191_v35, %v21187_v0  ;;  %v11440_v49 = vadd.f32 %v16140_v28, %v21148_v32 }
 0x9ad   : > { %v16108_v14 = vpop.f32.mrf.mxu0 }
 0x9ae   : > { %21684 = vst [vmem:[#allocation29_spill] sm:$0xff] %v21334_v25  ;;  %v16109_v24 = vadd.f32 %v16108_v14, %v16107_v6  ;;  %v21338_v48 = vpop.f32.mrf.mxu1 }
 0x9af   : > { %v16110_v23 = vpop.f32.mrf.mxu0 }
 0x9b0   : > { %v21341_v1 = vadd.f32 %v16109_v24, %v21174_v37  ;;  %v21343_v56 = vpop.f32.mrf.mxu1  ;;  %v16143_v24 = vadd.f32 %v21212_v45, %v21210_v47  ;;  %v16152_v47 = vadd.f32 %v21233_v16, %v21231_v41 }
 0x9b1   : > { %v16111_v36 = vpop.f32.mrf.mxu0 }
 0x9b2   : > { %21685 = vst [vmem:[#allocation30_spill] sm:$0xff] %v21341_v1  ;;  %v16112_v22 = vadd.f32 %v16111_v36, %v16110_v23  ;;  %v21347_v34 = vpop.f32.mrf.mxu1  ;;  %v16137_v23 = vadd.f32 %v21198_v19, %v21196_v42  ;;  %v11432_v36 = vadd.f32 %v16134_v52, %v21111_v21  ;;  %v11443_v32 = vadd.f32 %v16143_v24, %v21159_v11 }
 0x9b3   : > { %v16113_v59 = vpop.f32.mrf.mxu0  ;;  %v16146_v42 = vadd.f32 %v21219_v13, %v21217_v5  ;;  %v16155_v21 = vadd.f32 %v21240_v2, %v21238_v8  ;;  %v11456_v11 = vadd.f32 %v16152_v47, %v21180_v61  ;;  %v16149_v5 = vadd.f32 %v21226_v30, %v21224_v3 }
 0x9b4   : > { %v21352_v6 = vadd.f32 %v16112_v22, %v21182_v46  ;;  %v21354_v14 = vpop.f32.mrf.mxu1  ;;  %v16164_v2 = vadd.f32 %v21261_v50, %v21259_v7  ;;  %v16167_v7 = vadd.f32 %v21268_v44, %v21266_v12 }
 0x9b5   : > { %v16114_v37 = vpop.f32.mrf.mxu0  ;;  %v11448_v24 = vadd.f32 %v16146_v42, %v21167_v27  ;;  %v16158_v27 = vadd.f32 %v21247_v9, %v21245_v53  ;;  %v16161_v53 = vadd.f32 %v21254_v63, %v21252_v57 }
 0x9b6   : > { %v16115_v1 = vadd.f32 %v16114_v37, %v16113_v59  ;;  %v21358_v25 = vpop.f32.mrf.mxu1  ;;  %v11435_v37 = vadd.f32 %v16137_v23, %v21128_v18 }
 0x9b7   : > { %v16842_v26 = vpop.f32.mrf.mxu0 }
 0x9b8   : > { %v21364_v0 = vadd.f32 %v16115_v1, %v21189_v20  ;;  %v21366_v46 = vpop.f32.mrf.mxu1  ;;  %v11601_v35 = vadd.f32 %v16842_v26, %v11440_v49 }
 0x9b9   : > { %v11592_v22 = vpop.f32.mrf.mxu0 }
 0x9ba   : > { %v21371_v45 = vpop.f32.mrf.mxu1  ;;  %v11593_v59 = vadd.f32 %v11592_v22, %v11432_v36  ;;  %v11721_v20 = vmul.f32 0.01, %v11601_v35 }
 0x9bb   : > { %v16843_v19 = vpop.f32.mrf.mxu0 }
 0x9bc   : > { %v21376_v1 = vpop.f32.mrf.mxu1  ;;  %v11604_v28 = vadd.f32 %v16843_v19, %v11443_v32  ;;  %v11719_v41 = vmul.f32 0.01, %v11593_v59  ;;  %v11753_v36 = vmax.f32 %v11601_v35, %v11721_v20  ;;  %v11459_v19 = vadd.f32 %v16155_v21, %v21185_v38 }
 0x9bd   : > { %v11595_v52 = vpop.f32.mrf.mxu0 }
 0x9be   : > { %v11722_v16 = vmul.f32 0.01, %v11604_v28  ;;  %v21381_v49 = vpop.f32.mrf.mxu1  ;;  %v11596_v26 = vadd.f32 %v11595_v52, %v11435_v37  ;;  %v11751_v37 = vmax.f32 %v11593_v59, %v11719_v41 }
 0x9bf   : > { %v16846_v13 = vpop.f32.mrf.mxu0 }
 0x9c0   : > { %v11754_v22 = vmax.f32 %v11604_v28, %v11722_v16  ;;  %v11720_v18 = vmul.f32 0.01, %v11596_v26  ;;  %v21387_v23 = vpop.f32.mrf.mxu1  ;;  %v11617_v8 = vadd.f32 %v16846_v13, %v11456_v11  ;;  %v11451_v28 = vadd.f32 %v16149_v5, %v21172_v17 }
 0x9c1   : > { %v11608_v32 = vpop.f32.mrf.mxu0  ;;  %v11472_v16 = vadd.f32 %v16164_v2, %v21208_v39  ;;  %v21686_v17 = vmov 0   ;;  %v16176_v13 = vadd.f32 %v21289_v15, %v21287_v10  ;;  %v11475_v39 = vadd.f32 %v16167_v7, %v21215_v62  ;;  %v21687_v10 = vld [vmem:[#allocation18_spill] sm:$0xff]  ;;  %v21691_v7 = vld [vmem:[#allocation5_spill] sm:$0xff] }
 0x9c2   : > { %v11784_v61 = vpack.c.bf16 %v11754_v22, %v11753_v36  ;;  %v11752_v47 = vmax.f32 %v11596_v26, %v11720_v18  ;;  %v21392_v52 = vpop.f32.mrf.mxu1  ;;  %v11609_v3 = vadd.f32 %v11608_v32, %v11448_v24  ;;  %v11725_v42 = vmul.f32 0.01, %v11617_v8 }
 0x9c3   : > { %v16847_v30 = vpop.f32.mrf.mxu0  ;;  %v11464_v26 = vadd.f32 %v16158_v27, %v21194_v55  ;;  %v16170_v18 = vadd.f32 %v21275_v40, %v21273_v33  ;;  %v16179_v15 = vadd.f32 %v21687_v10, %v21294_v60  ;;  %v21689_v33 = vld [vmem:[#allocation14_spill] sm:$0xff]  ;;  %v21690_v40 = vld [vmem:[#allocation15_spill] sm:$0xff] }
 0x9c4   : > { %v11783_v35 = vpack.c.bf16 %v11752_v47, %v11751_v37  ;;  %v11620_v20 = vadd.f32 %v16847_v30, %v11459_v19  ;;  %v11723_v38 = vmul.f32 0.01, %v11609_v3  ;;  %v21399_v59 = vpop.f32.mrf.mxu1  ;;  %v11757_v12 = vmax.f32 %v11617_v8, %v11725_v42 }
 0x9c5   : > { %v11611_v50 = vpop.f32.mrf.mxu0  ;;  %v11467_v37 = vadd.f32 %v16161_v53, %v21201_v54 }
 0x9c6   : > { %v11726_v21 = vmul.f32 0.01, %v11620_v20  ;;  %v11612_v41 = vadd.f32 %v11611_v50, %v11451_v28  ;;  %12024 = vmatmul.mubr.bf16.vlgmr.msra.gmra.mxu1 %v11783_v35  ;;  %12217 = vmatmul.mubr.bf16.vlgmr.msra.gmra.mxu0 %v11783_v35  ;;  %v11755_v36 = vmax.f32 %v11609_v3, %v11723_v38  ;;  %v21412_v57 = vpop.f32.mrf.mxu1  ;;  %v21688_v35 = vld [vmem:[#allocation7_spill] sm:$0xff]  ;;  %v11480_v50 = vadd.f32 %v16170_v18, %v21691_v7  ;;  %v21694_v18 = vld [vmem:[#allocation6_spill] sm:$0xff]  ;;  %v21700_v7 = vld [vmem:[#allocation12_spill] sm:$0xff] }
 0x9c7   : > { %v16850_v9 = vpop.f32.mrf.mxu0  ;;  %12033 = vmatprep.mubr.bf16.mxu1 %v21686_v17  ;;  %12226 = vmatprep.mubr.bf16.mxu0 %v21686_v17  ;;  %v11488_v42 = vadd.f32 %v16176_v13, %v21688_v35  ;;  %v21693_v13 = vld [vmem:[#allocation20_spill] sm:$0xff]  ;;  %v21699_v35 = vld [vmem:[#allocation9_spill] sm:$0xff] }
 0x9c8   : > { %v11758_v44 = vmax.f32 %v11620_v20, %v11726_v21  ;;  %v11724_v11 = vmul.f32 0.01, %v11612_v41  ;;  %v11633_v5 = vadd.f32 %v16850_v9, %v11472_v16  ;;  %v21419_v47 = vpop.f32.mrf.mxu1  ;;  %v16173_v20 = vadd.f32 %v21690_v40, %v21689_v33  ;;  %v21692_v16 = vld [vmem:[#allocation8_spill] sm:$0xff] }
 0x9c9   : > { %v11624_v24 = vpop.f32.mrf.mxu0  ;;  %v11491_v53 = vadd.f32 %v16179_v15, %v21692_v16  ;;  %v21696_v15 = vld [vmem:[#allocation11_spill] sm:$0xff]  ;;  %v21701_v16 = vld [vmem:[#allocation28_spill] sm:$0xff] }
 0x9ca   : > { %v21410_v22 = vpack.c.bf16 %v11758_v44, %v11757_v12  ;;  %v11756_v55 = vmax.f32 %v11612_v41, %v11724_v11  ;;  %v11625_v63 = vadd.f32 %v11624_v24, %v11464_v26  ;;  %v11729_v32 = vmul.f32 0.01, %v11633_v5  ;;  %v21430_v9 = vpop.f32.mrf.mxu1 }
 0x9cb   : > { %v16851_v8 = vpop.f32.mrf.mxu0  ;;  %v16188_v41 = vadd.f32 %v21317_v4, %v21315_v43  ;;  %v16182_v24 = vadd.f32 %v21693_v13, %v21301_v29  ;;  %v11483_v43 = vadd.f32 %v16173_v20, %v21694_v18  ;;  %v21695_v4 = vld [vmem:[#allocation26_spill] sm:$0xff] }
 0x9cc   : > { %v11785_v2 = vpack.c.bf16 %v11756_v55, %v11755_v36  ;;  %v11636_v19 = vadd.f32 %v16851_v8, %v11475_v39  ;;  %v11727_v3 = vmul.f32 0.01, %v11625_v63  ;;  %v11761_v54 = vmax.f32 %v11633_v5, %v11729_v32 }
 0x9cd   : > { %v11627_v62 = vpop.f32.mrf.mxu0  ;;  %v16191_v8 = vadd.f32 %v21695_v4, %v21322_v51  ;;  %v11504_v29 = vadd.f32 %v16188_v41, %v21696_v15  ;;  %v16197_v4 = vadd.f32 %v21338_v48, %v21336_v31  ;;  %v16212_v15 = vadd.f32 %v21392_v52, %v21387_v23 }
 0x9ce   : > { %v11730_v27 = vmul.f32 0.01, %v11636_v19  ;;  %v11628_v30 = vadd.f32 %v11627_v62, %v11467_v37  ;;  %12034 = vmatmul.mubr.bf16.gmra.mxu1 %v11784_v61  ;;  %12227 = vmatmul.mubr.bf16.gmra.mxu0 %v11784_v61  ;;  %v11759_v26 = vmax.f32 %v11625_v63, %v11727_v3  ;;  %v21697_v62 = vld [vmem:[#allocation22_spill] sm:$0xff]  ;;  %v21698_v3 = vld [vmem:[#allocation23_spill] sm:$0xff]  ;;  %v16215_v23 = vadd.f32 %v21412_v57, %v21399_v59 }
 0x9cf   : > { %v16854_v28 = vpop.f32.mrf.mxu0  ;;  %12043 = vmatprep.mubr.bf16.mxu1 %v21686_v17  ;;  %12236 = vmatprep.mubr.bf16.mxu0 %v21686_v17 }
 0x9d0   : > { %v11762_v60 = vmax.f32 %v11636_v19, %v11730_v27  ;;  %v11728_v38 = vmul.f32 0.01, %v11628_v30  ;;  %v11649_v21 = vadd.f32 %v16854_v28, %v11488_v42  ;;  %v21441_v19 = vpop.f32.mrf.mxu1  ;;  %v16185_v27 = vadd.f32 %v21698_v3, %v21697_v62 }
 0x9d1   : > { %v11640_v61 = vpop.f32.mrf.mxu0  ;;  %v11496_v42 = vadd.f32 %v16182_v24, %v21699_v35  ;;  %v16200_v28 = vadd.f32 %v21347_v34, %v21343_v56  ;;  %v21702_v24 = vld [vmem:[#allocation10_spill] sm:$0xff]  ;;  %v16203_v56 = vadd.f32 %v21358_v25, %v21354_v14  ;;  %v16206_v35 = vadd.f32 %v21371_v45, %v21366_v46  ;;  %v21707_v46 = vld [vmem:[#allocation25_spill] sm:$0xff] }
 0x9d2   : > { %v21432_v12 = vpack.c.bf16 %v11762_v60, %v11761_v54  ;;  %v11760_v44 = vmax.f32 %v11628_v30, %v11728_v38  ;;  %v11641_v11 = vadd.f32 %v11640_v61, %v11480_v50  ;;  %v11733_v36 = vmul.f32 0.01, %v11649_v21  ;;  %v21452_v54 = vpop.f32.mrf.mxu1 }
 0x9d3   : > { %v16855_v5 = vpop.f32.mrf.mxu0  ;;  %v11507_v50 = vadd.f32 %v16191_v8, %v21700_v7  ;;  %v11499_v34 = vadd.f32 %v16185_v27, %v21702_v24  ;;  %v11536_v45 = vadd.f32 %v16212_v15, %v21707_v46  ;;  %v21711_v15 = vld [vmem:[#allocation29_spill] sm:$0xff] }
 0x9d4   : > { %v21436_v39 = vpack.c.bf16 %v11760_v44, %v11759_v26  ;;  %v11652_v55 = vadd.f32 %v16855_v5, %v11491_v53  ;;  %v11731_v63 = vmul.f32 0.01, %v11641_v11  ;;  %v11765_v51 = vmax.f32 %v11649_v21, %v11733_v36  ;;  %v16222_v36 = vpop.f32.mrf.mxu1 }
 0x9d5   : > { %v11643_v32 = vpop.f32.mrf.mxu0  ;;  %v16194_v53 = vadd.f32 %v21701_v16, %v21329_v58  ;;  %v21703_v58 = vld [vmem:[#allocation17_spill] sm:$0xff] }
 0x9d6   : > { %v11734_v37 = vmul.f32 0.01, %v11652_v55  ;;  %v11644_v10 = vadd.f32 %v11643_v32, %v11483_v43  ;;  %12044 = vmatmul.mubr.bf16.gmra.mxu1 %v11785_v2  ;;  %12237 = vmatmul.mubr.bf16.gmra.mxu0 %v11785_v2  ;;  %v11763_v60 = vmax.f32 %v11641_v11, %v11731_v63  ;;  %v11520_v43 = vadd.f32 %v16200_v28, %v21703_v58  ;;  %v21704_v32 = vld [vmem:[#allocation13_spill] sm:$0xff]  ;;  %v16223_v3 = vpop.f32.mrf.mxu1 }
 0x9d7   : > { %v16858_v30 = vpop.f32.mrf.mxu0  ;;  %12053 = vmatprep.mubr.bf16.mxu1 %v21686_v17  ;;  %12246 = vmatprep.mubr.bf16.mxu0 %v21686_v17  ;;  %v11512_v63 = vadd.f32 %v16194_v53, %v21704_v32  ;;  %v21708_v16 = vld [vmem:[#allocation21_spill] sm:$0xff] }
 0x9d8   : > { %v11766_v33 = vmax.f32 %v11652_v55, %v11734_v37  ;;  %v11732_v40 = vmul.f32 0.01, %v11644_v10  ;;  %v11665_v20 = vadd.f32 %v16858_v30, %v11504_v29  ;;  %v21705_v29 = vld [vmem:[#allocation19_spill] sm:$0xff]  ;;  %v11528_v53 = vadd.f32 %v16206_v35, %v21708_v16 }
 0x9d9   : > { %v11656_v2 = vpop.f32.mrf.mxu0  ;;  %v11523_v62 = vadd.f32 %v16203_v56, %v21705_v29 }
 0x9da   : > { %v21454_v38 = vpack.c.bf16 %v11766_v33, %v11765_v51  ;;  %v11764_v41 = vmax.f32 %v11644_v10, %v11732_v40  ;;  %v11657_v61 = vadd.f32 %v11656_v2, %v11496_v42  ;;  %v11737_v44 = vmul.f32 0.01, %v11665_v20  ;;  %v16225_v2 = vpop.f32.mrf.mxu1 }
 0x9db   : > { %v16859_v21 = vpop.f32.mrf.mxu0 }
 0x9dc   : > { %v21458_v26 = vpack.c.bf16 %v11764_v41, %v11763_v60  ;;  %v11668_v13 = vadd.f32 %v16859_v21, %v11507_v50  ;;  %v11735_v11 = vmul.f32 0.01, %v11657_v61  ;;  %v11769_v25 = vmax.f32 %v11665_v20, %v11737_v44  ;;  %v21706_v20 = vld [vmem:[#allocation16_spill] sm:$0xff]  ;;  %v16226_v56 = vpop.f32.mrf.mxu1 }
 0x9dd   : > { %v11659_v5 = vpop.f32.mrf.mxu0  ;;  %v11515_v28 = vadd.f32 %v16197_v4, %v21706_v20  ;;  %v16209_v41 = vadd.f32 %v21381_v49, %v21376_v1  ;;  %v21712_v20 = vld [vmem:[#allocation30_spill] sm:$0xff] }
 0x9de   : > { %v11738_v55 = vmul.f32 0.01, %v11668_v13  ;;  %v11660_v18 = vadd.f32 %v11659_v5, %v11499_v34  ;;  %12054 = vmatmul.mubr.bf16.gmra.mxu1 %v21410_v22  ;;  %12247 = vmatmul.mubr.bf16.gmra.mxu0 %v21410_v22  ;;  %v11767_v27 = vmax.f32 %v11657_v61, %v11735_v11  ;;  %v21709_v34 = vld [vmem:[#allocation27_spill] sm:$0xff] }
 0x9df   : > { %v16862_v8 = vpop.f32.mrf.mxu0  ;;  %12063 = vmatprep.mubr.bf16.mxu1 %v21686_v17  ;;  %12256 = vmatprep.mubr.bf16.mxu0 %v21686_v17 }
 0x9e0   : > { %v11770_v14 = vmax.f32 %v11668_v13, %v11738_v55  ;;  %v11736_v37 = vmul.f32 0.01, %v11660_v18  ;;  %v11681_v10 = vadd.f32 %v16862_v8, %v11520_v43  ;;  %v16224_v13 = vadd.f32 %v16223_v3, %v16222_v36  ;;  %v21710_v8 = vld [vmem:[#allocation24_spill] sm:$0xff] }
 0x9e1   : > { %v11672_v22 = vpop.f32.mrf.mxu0  ;;  %v16218_v55 = vadd.f32 %v21430_v9, %v21419_v47  ;;  %v11531_v32 = vadd.f32 %v16209_v41, %v21710_v8  ;;  %v16221_v47 = vadd.f32 %v21452_v54, %v21441_v19 }
 0x9e2   : > { %v21474_v31 = vpack.c.bf16 %v11770_v14, %v11769_v25  ;;  %v11768_v48 = vmax.f32 %v11660_v18, %v11736_v37  ;;  %v11673_v30 = vadd.f32 %v11672_v22, %v11512_v63  ;;  %v11741_v33 = vmul.f32 0.01, %v11681_v10 }
 0x9e3   : > { %v16863_v42 = vpop.f32.mrf.mxu0  ;;  %v16227_v63 = vadd.f32 %v16226_v56, %v16225_v2  ;;  %v11544_v22 = vadd.f32 %v16218_v55, %v21711_v15 }
 0x9e4   : > { %v21478_v51 = vpack.c.bf16 %v11768_v48, %v11767_v27  ;;  %v11684_v40 = vadd.f32 %v16863_v42, %v11523_v62  ;;  %v11739_v7 = vmul.f32 0.01, %v11673_v30  ;;  %v11773_v59 = vmax.f32 %v11681_v10, %v11741_v33 }
 0x9e5   : > { %v11675_v52 = vpop.f32.mrf.mxu0  ;;  %v11552_v10 = vadd.f32 %v16224_v13, %v21352_v6 }
 0x9e6   : > { %v11742_v50 = vmul.f32 0.01, %v11684_v40  ;;  %v11676_v60 = vadd.f32 %v11675_v52, %v11515_v28  ;;  %12064 = vmatmul.mubr.bf16.gmra.mxu1 %v21436_v39  ;;  %12257 = vmatmul.mubr.bf16.gmra.mxu0 %v21436_v39  ;;  %v11539_v39 = vadd.f32 %v16215_v23, %v21709_v34  ;;  %v11771_v5 = vmax.f32 %v11673_v30, %v11739_v7 }
 0x9e7   : > { %v16866_v61 = vpop.f32.mrf.mxu0  ;;  %12073 = vmatprep.mubr.bf16.mxu1 %v21686_v17  ;;  %12266 = vmatprep.mubr.bf16.mxu0 %v21686_v17  ;;  %v11555_v30 = vadd.f32 %v16227_v63, %v21364_v0  ;;  %v11547_v28 = vadd.f32 %v16221_v47, %v21712_v20 }
 0x9e8   : > { %v11774_v57 = vmax.f32 %v11684_v40, %v11742_v50  ;;  %v11740_v21 = vmul.f32 0.01, %v11676_v60  ;;  %v11697_v44 = vadd.f32 %v16866_v61, %v11536_v45 }
 0x9e9   : > { %v11688_v24 = vpop.f32.mrf.mxu0 }
 0x9ea   : > { %v21492_v11 = vpack.c.bf16 %v11774_v57, %v11773_v59  ;;  %v11772_v1 = vmax.f32 %v11676_v60, %v11740_v21  ;;  %v11689_v49 = vadd.f32 %v11688_v24, %v11528_v53  ;;  %v11745_v43 = vmul.f32 0.01, %v11697_v44 }
 0x9eb   : > { %v16867_v18 = vpop.f32.mrf.mxu0 }
 0x9ec   : > { %v11793_v58 = vpack.c.bf16 %v11772_v1, %v11771_v5  ;;  %v11700_v4 = vadd.f32 %v16867_v18, %v11539_v39  ;;  %v11743_v25 = vmul.f32 0.01, %v11689_v49  ;;  %v11777_v29 = vmax.f32 %v11697_v44, %v11745_v43 }
 0x9ed   : > { %v11691_v36 = vpop.f32.mrf.mxu0 }
 0x9ee   : > { %v11746_v14 = vmul.f32 0.01, %v11700_v4  ;;  %v11692_v37 = vadd.f32 %v11691_v36, %v11531_v32  ;;  %12074 = vmatmul.mubr.bf16.gmra.mxu1 %v21432_v12  ;;  %12267 = vmatmul.mubr.bf16.gmra.mxu0 %v21432_v12  ;;  %v11775_v12 = vmax.f32 %v11689_v49, %v11743_v25 }
 0x9ef   : > { %v16870_v9 = vpop.f32.mrf.mxu0  ;;  %12083 = vmatprep.mubr.bf16.mxu1 %v21686_v17  ;;  %12276 = vmatprep.mubr.bf16.mxu0 %v21686_v17 }
 0x9f0   : > { %v11778_v62 = vmax.f32 %v11700_v4, %v11746_v14  ;;  %v11744_v3 = vmul.f32 0.01, %v11692_v37  ;;  %v11713_v27 = vadd.f32 %v16870_v9, %v11552_v10 }
 0x9f1   : > { %v11704_v48 = vpop.f32.mrf.mxu0 }
 0x9f2   : > { %v11796_v35 = vpack.c.bf16 %v11778_v62, %v11777_v29  ;;  %v11776_v6 = vmax.f32 %v11692_v37, %v11744_v3  ;;  %v11705_v42 = vadd.f32 %v11704_v48, %v11544_v22  ;;  %v11749_v54 = vmul.f32 0.01, %v11713_v27 }
 0x9f3   : > { %v16871_v33 = vpop.f32.mrf.mxu0 }
 0x9f4   : > { %v11795_v19 = vpack.c.bf16 %v11776_v6, %v11775_v12  ;;  %v11716_v40 = vadd.f32 %v16871_v33, %v11555_v30  ;;  %v11747_v52 = vmul.f32 0.01, %v11705_v42  ;;  %v11781_v0 = vmax.f32 %v11713_v27, %v11749_v54 }
 0x9f5   : > { %v11707_v23 = vpop.f32.mrf.mxu0 }
 0x9f6   : > { %v11750_v2 = vmul.f32 0.01, %v11716_v40  ;;  %v11708_v7 = vadd.f32 %v11707_v23, %v11547_v28  ;;  %12084 = vmatmul.mubr.bf16.gmra.mxu1 %v21458_v26  ;;  %12277 = vmatmul.mubr.bf16.gmra.mxu0 %v21458_v26  ;;  %v11779_v46 = vmax.f32 %v11705_v42, %v11747_v52 }
 0x9f7   : > { %12093 = vmatprep.mubr.bf16.mxu1 %v21686_v17  ;;  %12286 = vmatprep.mubr.bf16.mxu0 %v21686_v17 }
 0x9f8   : > { %v11782_v50 = vmax.f32 %v11716_v40, %v11750_v2  ;;  %v11748_v60 = vmul.f32 0.01, %v11708_v7 }
 0x9fa   : > { %v11798_v45 = vpack.c.bf16 %v11782_v50, %v11781_v0  ;;  %v11780_v41 = vmax.f32 %v11708_v7, %v11748_v60 }
 0x9fc   : > { %v11797_v61 = vpack.c.bf16 %v11780_v41, %v11779_v46 }
 0x9fe   : > { %12094 = vmatmul.mubr.bf16.gmra.mxu1 %v21454_v38  ;;  %12287 = vmatmul.mubr.bf16.gmra.mxu0 %v21454_v38 }
 0x9ff   : > { %12103 = vmatprep.mubr.bf16.mxu1 %v21686_v17  ;;  %12296 = vmatprep.mubr.bf16.mxu0 %v21686_v17 }
 0xa06   : > { %12104 = vmatmul.mubr.bf16.gmra.mxu1 %v21478_v51  ;;  %12297 = vmatmul.mubr.bf16.gmra.mxu0 %v21478_v51 }
 0xa07   : > { %12113 = vmatprep.mubr.bf16.mxu1 %v21686_v17  ;;  %12306 = vmatprep.mubr.bf16.mxu0 %v21686_v17 }
 0xa0e   : > { %12114 = vmatmul.mubr.bf16.gmra.mxu1 %v21474_v31  ;;  %12307 = vmatmul.mubr.bf16.gmra.mxu0 %v21474_v31 }
 0xa0f   : > { %12123 = vmatprep.mubr.bf16.mxu1 %v21686_v17  ;;  %12316 = vmatprep.mubr.bf16.mxu0 %v21686_v17 }
 0xa16   : > { %12124 = vmatmul.mubr.bf16.gmra.mxu1 %v11793_v58  ;;  %12317 = vmatmul.mubr.bf16.gmra.mxu0 %v11793_v58 }
 0xa17   : > { %12133 = vmatprep.mubr.bf16.mxu1 %v21686_v17  ;;  %12326 = vmatprep.mubr.bf16.mxu0 %v21686_v17 }
 0xa1e   : > { %12134 = vmatmul.mubr.bf16.gmra.mxu1 %v21492_v11  ;;  %12327 = vmatmul.mubr.bf16.gmra.mxu0 %v21492_v11 }
 0xa1f   : > { %12143 = vmatprep.mubr.bf16.mxu1 %v21686_v17  ;;  %12336 = vmatprep.mubr.bf16.mxu0 %v21686_v17 }
 0xa26   : > { %12144 = vmatmul.mubr.bf16.gmra.mxu1 %v11795_v19  ;;  %12337 = vmatmul.mubr.bf16.gmra.mxu0 %v11795_v19 }
 0xa27   : > { %12153 = vmatprep.mubr.bf16.mxu1 %v21686_v17  ;;  %12346 = vmatprep.mubr.bf16.mxu0 %v21686_v17 }
 0xa2e   : > { %12154 = vmatmul.mubr.bf16.gmra.mxu1 %v11796_v35  ;;  %12347 = vmatmul.mubr.bf16.gmra.mxu0 %v11796_v35 }
 0xa2f   : > { %12163 = vmatprep.mubr.bf16.mxu1 %v21686_v17  ;;  %12356 = vmatprep.mubr.bf16.mxu0 %v21686_v17 }
 0xa36   : > { %12164 = vmatmul.mubr.bf16.gmra.mxu1 %v11797_v61  ;;  %12357 = vmatmul.mubr.bf16.gmra.mxu0 %v11797_v61 }
 0xa37   : > { %12173 = vmatprep.mubr.bf16.mxu1 %v21686_v17  ;;  %12366 = vmatprep.mubr.bf16.mxu0 %v21686_v17 }
 0xa3e   : > { %12174 = vmatmul.mubr.bf16.gmra.mxu1 %v11798_v45  ;;  %12367 = vmatmul.mubr.bf16.gmra.mxu0 %v11798_v45 }
 0xa86   : > { %v12025_v38 = vpop.f32.mrf.mxu1  ;;  %v12218_v26 = vpop.f32.mrf.mxu0 }
 0xa88   : > { %v12027_v31 = vpop.f32.mrf.mxu1  ;;  %v12220_v51 = vpop.f32.mrf.mxu0 }
 0xa89   : > { %v12377_v16 = vmax.f32 %v12025_v38, %v12027_v31  ;;  %v12409_v53 = vmax.f32 %v12218_v26, %v12220_v51 }
 0xa8a   : > { %v12029_v59 = vpop.f32.mrf.mxu1  ;;  %v12222_v57 = vpop.f32.mrf.mxu0 }
 0xa8b   : > { %v12441_v21 = vmax.f32 %v12377_v16, %v12409_v53 }
 0xa8c   : > { %v12031_v44 = vpop.f32.mrf.mxu1  ;;  %v12224_v13 = vpop.f32.mrf.mxu0 }
 0xa8d   : > { %v12378_v24 = vmax.f32 %v12029_v59, %v12031_v44  ;;  %v12410_v34 = vmax.f32 %v12222_v57, %v12224_v13 }
 0xa8e   : > { %v12035_v39 = vpop.f32.mrf.mxu1  ;;  %v12228_v56 = vpop.f32.mrf.mxu0 }
 0xa8f   : > { %v12442_v5 = vmax.f32 %v12378_v24, %v12410_v34 }
 0xa90   : > { %v12037_v11 = vpop.f32.mrf.mxu1  ;;  %v12230_v17 = vpop.f32.mrf.mxu0 }
 0xa91   : > { %v12379_v1 = vmax.f32 %v12035_v39, %v12037_v11  ;;  %v12411_v49 = vmax.f32 %v12228_v56, %v12230_v17  ;;  %v21535_v55 = vpack.c.bf16 %v12442_v5, %v12441_v21 }
 0xa92   : > { %v12039_v18 = vpop.f32.mrf.mxu1  ;;  %v12232_v58 = vpop.f32.mrf.mxu0 }
 0xa93   : > { %v12443_v43 = vmax.f32 %v12379_v1, %v12411_v49 }
 0xa94   : > { %v12041_v4 = vpop.f32.mrf.mxu1  ;;  %v12234_v8 = vpop.f32.mrf.mxu0 }
 0xa95   : > { %v12380_v32 = vmax.f32 %v12039_v18, %v12041_v4  ;;  %v12412_v63 = vmax.f32 %v12232_v58, %v12234_v8 }
 0xa96   : > { %v12045_v36 = vpop.f32.mrf.mxu1  ;;  %v12238_v25 = vpop.f32.mrf.mxu0 }
 0xa97   : > { %v12444_v14 = vmax.f32 %v12380_v32, %v12412_v63 }
 0xa98   : > { %v12047_v37 = vpop.f32.mrf.mxu1  ;;  %v12240_v10 = vpop.f32.mrf.mxu0 }
 0xa99   : > { %v12381_v47 = vmax.f32 %v12045_v36, %v12047_v37  ;;  %v12413_v9 = vmax.f32 %v12238_v25, %v12240_v10  ;;  %v21537_v15 = vpack.c.bf16 %v12444_v14, %v12443_v43 }
 0xa9a   : > { %v12049_v22 = vpop.f32.mrf.mxu1  ;;  %v12242_v29 = vpop.f32.mrf.mxu0 }
 0xa9b   : > { %v12445_v62 = vmax.f32 %v12381_v47, %v12413_v9 }
 0xa9c   : > { %v12051_v3 = vpop.f32.mrf.mxu1  ;;  %v12244_v27 = vpop.f32.mrf.mxu0 }
 0xa9d   : > { %v12382_v48 = vmax.f32 %v12049_v22, %v12051_v3  ;;  %v12414_v30 = vmax.f32 %v12242_v29, %v12244_v27 }
 0xa9e   : > { %v12055_v12 = vpop.f32.mrf.mxu1  ;;  %v12248_v35 = vpop.f32.mrf.mxu0 }
 0xa9f   : > { %v12446_v6 = vmax.f32 %v12382_v48, %v12414_v30 }
 0xaa0   : > { %v12057_v42 = vpop.f32.mrf.mxu1  ;;  %v12250_v33 = vpop.f32.mrf.mxu0 }
 0xaa1   : > { %v12383_v19 = vmax.f32 %v12055_v12, %v12057_v42  ;;  %v12415_v54 = vmax.f32 %v12248_v35, %v12250_v33  ;;  %v21539_v40 = vpack.c.bf16 %v12446_v6, %v12445_v62 }
 0xaa2   : > { %v12059_v20 = vpop.f32.mrf.mxu1  ;;  %v12252_v28 = vpop.f32.mrf.mxu0 }
 0xaa3   : > { %v12447_v23 = vmax.f32 %v12383_v19, %v12415_v54 }
 0xaa4   : > { %v12061_v52 = vpop.f32.mrf.mxu1  ;;  %v12254_v2 = vpop.f32.mrf.mxu0 }
 0xaa5   : > { %v12384_v7 = vmax.f32 %v12059_v20, %v12061_v52  ;;  %v12416_v0 = vmax.f32 %v12252_v28, %v12254_v2 }
 0xaa6   : > { %v12065_v50 = vpop.f32.mrf.mxu1  ;;  %v12258_v60 = vpop.f32.mrf.mxu0 }
 0xaa7   : > { %v12448_v46 = vmax.f32 %v12384_v7, %v12416_v0 }
 0xaa8   : > { %v12067_v45 = vpop.f32.mrf.mxu1  ;;  %v12260_v41 = vpop.f32.mrf.mxu0 }
 0xaa9   : > { %v21541_v61 = vpack.c.bf16 %v12448_v46, %v12447_v23  ;;  %v12385_v31 = vmax.f32 %v12065_v50, %v12067_v45  ;;  %v12417_v51 = vmax.f32 %v12258_v60, %v12260_v41 }
 0xaaa   : > { %v12069_v38 = vpop.f32.mrf.mxu1  ;;  %v12262_v26 = vpop.f32.mrf.mxu0 }
 0xaab   : > { %v12449_v13 = vmax.f32 %v12385_v31, %v12417_v51 }
 0xaac   : > { %v12071_v16 = vpop.f32.mrf.mxu1  ;;  %v12264_v53 = vpop.f32.mrf.mxu0 }
 0xaad   : > { %v12386_v59 = vmax.f32 %v12069_v38, %v12071_v16  ;;  %v12418_v57 = vmax.f32 %v12262_v26, %v12264_v53 }
 0xaae   : > { %v12075_v21 = vpop.f32.mrf.mxu1  ;;  %v12268_v44 = vpop.f32.mrf.mxu0 }
 0xaaf   : > { %v12450_v24 = vmax.f32 %v12386_v59, %v12418_v57 }
 0xab0   : > { %v12077_v34 = vpop.f32.mrf.mxu1  ;;  %v12270_v39 = vpop.f32.mrf.mxu0 }
 0xab1   : > { %v12477_v56 = vpack.c.bf16 %v12450_v24, %v12449_v13  ;;  %v12387_v17 = vmax.f32 %v12075_v21, %v12077_v34  ;;  %v12419_v1 = vmax.f32 %v12268_v44, %v12270_v39 }
 0xab2   : > { %v12079_v5 = vpop.f32.mrf.mxu1  ;;  %v12272_v11 = vpop.f32.mrf.mxu0 }
 0xab3   : > { %v12498_v49 = vunpack.c.h.bf16 %v12477_v56  ;;  %v12451_v63 = vmax.f32 %v12387_v17, %v12419_v1  ;;  %v12497_v25 = vunpack.c.l.bf16 %v12477_v56 }
 0xab4   : > { %v12081_v18 = vpop.f32.mrf.mxu1  ;;  %v12274_v58 = vpop.f32.mrf.mxu0 }
 0xab5   : > { %v12388_v43 = vmax.f32 %v12079_v5, %v12081_v18  ;;  %v12420_v4 = vmax.f32 %v12272_v11, %v12274_v58  ;;  %12539 = vadd.xlane.f32.xlu0 %v12498_v49 }
 0xab6   : > { %v12085_v8 = vpop.f32.mrf.mxu1  ;;  %v12278_v32 = vpop.f32.mrf.mxu0 }
 0xab7   : > { %v12452_v36 = vmax.f32 %v12388_v43, %v12420_v4 }
 0xab8   : > { %v12087_v14 = vpop.f32.mrf.mxu1  ;;  %v12280_v37 = vpop.f32.mrf.mxu0 }
 0xab9   : > { %12537 = vadd.xlane.f32.xlu0 %v12497_v25  ;;  %v12478_v10 = vpack.c.bf16 %v12452_v36, %v12451_v63  ;;  %v12389_v22 = vmax.f32 %v12085_v8, %v12087_v14  ;;  %v12421_v29 = vmax.f32 %v12278_v32, %v12280_v37 }
 0xaba   : > { %v12089_v47 = vpop.f32.mrf.mxu1  ;;  %v12282_v9 = vpop.f32.mrf.mxu0 }
 0xabb   : > { %v12500_v62 = vunpack.c.h.bf16 %v12478_v10  ;;  %v12453_v6 = vmax.f32 %v12389_v22, %v12421_v29  ;;  %v12499_v33 = vunpack.c.l.bf16 %v12478_v10 }
 0xabc   : > { %v12091_v3 = vpop.f32.mrf.mxu1  ;;  %v12284_v27 = vpop.f32.mrf.mxu0 }
 0xabd   : > { %v12390_v48 = vmax.f32 %v12089_v47, %v12091_v3  ;;  %v12422_v30 = vmax.f32 %v12282_v9, %v12284_v27  ;;  %12543 = vadd.xlane.f32.xlu0 %v12500_v62 }
 0xabe   : > { %v12095_v12 = vpop.f32.mrf.mxu1  ;;  %v12288_v35 = vpop.f32.mrf.mxu0 }
 0xabf   : > { %v12454_v42 = vmax.f32 %v12390_v48, %v12422_v30 }
 0xac0   : > { %v12097_v19 = vpop.f32.mrf.mxu1  ;;  %v12290_v54 = vpop.f32.mrf.mxu0 }
 0xac1   : > { %12541 = vadd.xlane.f32.xlu0 %v12499_v33  ;;  %v12479_v20 = vpack.c.bf16 %v12454_v42, %v12453_v6  ;;  %v12391_v52 = vmax.f32 %v12095_v12, %v12097_v19  ;;  %v12423_v2 = vmax.f32 %v12288_v35, %v12290_v54 }
 0xac2   : > { %v12099_v28 = vpop.f32.mrf.mxu1  ;;  %v12292_v23 = vpop.f32.mrf.mxu0 }
 0xac3   : > { %v12502_v7 = vunpack.c.h.bf16 %v12479_v20  ;;  %v12455_v38 = vmax.f32 %v12391_v52, %v12423_v2  ;;  %v12501_v31 = vunpack.c.l.bf16 %v12479_v20 }
 0xac4   : > { %v12101_v0 = vpop.f32.mrf.mxu1  ;;  %v12294_v50 = vpop.f32.mrf.mxu0 }
 0xac5   : > { %v12392_v60 = vmax.f32 %v12099_v28, %v12101_v0  ;;  %v12424_v46 = vmax.f32 %v12292_v23, %v12294_v50  ;;  %12547 = vadd.xlane.f32.xlu0 %v12502_v7 }
 0xac6   : > { %v12105_v45 = vpop.f32.mrf.mxu1  ;;  %v12298_v41 = vpop.f32.mrf.mxu0 }
 0xac7   : > { %v12456_v26 = vmax.f32 %v12392_v60, %v12424_v46 }
 0xac8   : > { %v12107_v51 = vpop.f32.mrf.mxu1  ;;  %v12300_v16 = vpop.f32.mrf.mxu0 }
 0xac9   : > { %v12393_v53 = vmax.f32 %v12105_v45, %v12107_v51  ;;  %v12425_v59 = vmax.f32 %v12298_v41, %v12300_v16  ;;  %12545 = vadd.xlane.f32.xlu0 %v12501_v31  ;;  %v12480_v57 = vpack.c.bf16 %v12456_v26, %v12455_v38 }
 0xaca   : > { %v12109_v21 = vpop.f32.mrf.mxu1  ;;  %v12302_v44 = vpop.f32.mrf.mxu0 }
 0xacb   : > { %v12457_v13 = vmax.f32 %v12393_v53, %v12425_v59  ;;  %v12504_v24 = vunpack.c.h.bf16 %v12480_v57  ;;  %v12503_v34 = vunpack.c.l.bf16 %v12480_v57 }
 0xacc   : > { %v12111_v39 = vpop.f32.mrf.mxu1  ;;  %v12304_v56 = vpop.f32.mrf.mxu0 }
 0xacd   : > { %v12394_v5 = vmax.f32 %v12109_v21, %v12111_v39  ;;  %v12426_v11 = vmax.f32 %v12302_v44, %v12304_v56  ;;  %12551 = vadd.xlane.f32.xlu1 %v12504_v24  ;;  %12549 = vadd.xlane.f32.xlu0 %v12503_v34 }
 0xace   : > { %v12115_v17 = vpop.f32.mrf.mxu1  ;;  %v12308_v1 = vpop.f32.mrf.mxu0 }
 0xacf   : > { %v12458_v49 = vmax.f32 %v12394_v5, %v12426_v11 }
 0xad0   : > { %v12117_v18 = vpop.f32.mrf.mxu1  ;;  %v12310_v58 = vpop.f32.mrf.mxu0 }
 0xad1   : > { %v12395_v43 = vmax.f32 %v12115_v17, %v12117_v18  ;;  %v12427_v4 = vmax.f32 %v12308_v1, %v12310_v58  ;;  %v21543_v8 = vpack.c.bf16 %v12458_v49, %v12457_v13 }
 0xad2   : > { %v21545_v32 = vpop.f32.mrf.mxu1  ;;  %v21547_v63 = vpop.f32.mrf.mxu0 }
 0xad3   : > { %v21549_v36 = vmax.f32 %v12395_v43, %v12427_v4 }
 0xad4   : > { %v21551_v25 = vpop.f32.mrf.mxu1  ;;  %v21553_v14 = vpop.f32.mrf.mxu0 }
 0xad6   : > { %v21555_v37 = vpop.f32.mrf.mxu1  ;;  %v21557_v10 = vpop.f32.mrf.mxu0 }
 0xad8   : > { %v21559_v47 = vpop.f32.mrf.mxu1  ;;  %v21561_v9 = vpop.f32.mrf.mxu0 }
 0xada   : > { %v21563_v22 = vpop.f32.mrf.mxu1  ;;  %v21565_v29 = vpop.f32.mrf.mxu0 }
 0xadc   : > { %v21567_v62 = vpop.f32.mrf.mxu1  ;;  %v21569_v3 = vpop.f32.mrf.mxu0 }
 0xade   : > { %v12135_v27 = vpop.f32.mrf.mxu1  ;;  %v12328_v48 = vpop.f32.mrf.mxu0 }
 0xae0   : > { %v12137_v30 = vpop.f32.mrf.mxu1  ;;  %v12330_v12 = vpop.f32.mrf.mxu0 }
 0xae1   : > { %v12399_v42 = vmax.f32 %v12135_v27, %v12137_v30  ;;  %v12431_v33 = vmax.f32 %v12328_v48, %v12330_v12 }
 0xae2   : > { %v12139_v35 = vpop.f32.mrf.mxu1  ;;  %v12332_v6 = vpop.f32.mrf.mxu0 }
 0xae3   : > { %v12463_v2 = vmax.f32 %v12399_v42, %v12431_v33 }
 0xae4   : > { %v12141_v19 = vpop.f32.mrf.mxu1  ;;  %v12334_v54 = vpop.f32.mrf.mxu0 }
 0xae5   : > { %v12400_v20 = vmax.f32 %v12139_v35, %v12141_v19  ;;  %v12432_v28 = vmax.f32 %v12332_v6, %v12334_v54 }
 0xae6   : > { %v12145_v23 = vpop.f32.mrf.mxu1  ;;  %v12338_v52 = vpop.f32.mrf.mxu0 }
 0xae7   : > { %v12464_v7 = vmax.f32 %v12400_v20, %v12432_v28 }
 0xae8   : > { %v12147_v0 = vpop.f32.mrf.mxu1  ;;  %v12340_v50 = vpop.f32.mrf.mxu0 }
 0xae9   : > { %v21571_v60 = vpack.c.bf16 %v12464_v7, %v12463_v2  ;;  %v12401_v41 = vmax.f32 %v12145_v23, %v12147_v0  ;;  %v12433_v38 = vmax.f32 %v12338_v52, %v12340_v50 }
 0xaea   : > { %v12149_v46 = vpop.f32.mrf.mxu1  ;;  %v12342_v45 = vpop.f32.mrf.mxu0 }
 0xaeb   : > { %v12512_v26 = vunpack.c.h.bf16 %v21571_v60  ;;  %v12465_v21 = vmax.f32 %v12401_v41, %v12433_v38 }
 0xaec   : > { %v12151_v31 = vpop.f32.mrf.mxu1  ;;  %v12344_v51 = vpop.f32.mrf.mxu0 }
 0xaed   : > { %v12402_v16 = vmax.f32 %v12149_v46, %v12151_v31  ;;  %v12434_v53 = vmax.f32 %v12342_v45, %v12344_v51  ;;  %12567 = vadd.xlane.f32.xlu1 %v12512_v26  ;;  %v12398_v31 = vmax.f32 %v21563_v22, %v21567_v62 }
 0xaee   : > { %v12155_v59 = vpop.f32.mrf.mxu1  ;;  %v12348_v57 = vpop.f32.mrf.mxu0 }
 0xaef   : > { %v12466_v44 = vmax.f32 %v12402_v16, %v12434_v53  ;;  %v12430_v53 = vmax.f32 %v21565_v29, %v21569_v3  ;;  %v12396_v3 = vmax.f32 %v21545_v32, %v21551_v25 }
 0xaf0   : > { %v12157_v13 = vpop.f32.mrf.mxu1  ;;  %v12350_v24 = vpop.f32.mrf.mxu0 }
 0xaf1   : > { %v12485_v34 = vpack.c.bf16 %v12466_v44, %v12465_v21  ;;  %v12403_v5 = vmax.f32 %v12155_v59, %v12157_v13  ;;  %v12435_v11 = vmax.f32 %v12348_v57, %v12350_v24  ;;  %v12397_v24 = vmax.f32 %v21555_v37, %v21559_v47 }
 0xaf2   : > { %v12159_v39 = vpop.f32.mrf.mxu1  ;;  %v12352_v56 = vpop.f32.mrf.mxu0  ;;  %v12462_v22 = vmax.f32 %v12398_v31, %v12430_v53  ;;  %v12511_v37 = vunpack.c.l.bf16 %v21571_v60  ;;  %v12506_v60 = vunpack.c.h.bf16 %v21543_v8 }
 0xaf3   : > { %v12514_v17 = vunpack.c.h.bf16 %v12485_v34  ;;  %v12467_v27 = vmax.f32 %v12403_v5, %v12435_v11  ;;  %v12513_v30 = vunpack.c.l.bf16 %v12485_v34  ;;  %v12429_v34 = vmax.f32 %v21557_v10, %v21561_v9 }
 0xaf4   : > { %v12161_v1 = vpop.f32.mrf.mxu1  ;;  %v12354_v49 = vpop.f32.mrf.mxu0 }
 0xaf5   : > { %v12404_v18 = vmax.f32 %v12159_v39, %v12161_v1  ;;  %v12436_v58 = vmax.f32 %v12352_v56, %v12354_v49  ;;  %12571 = vadd.xlane.f32.xlu1 %v12514_v17  ;;  %v12461_v17 = vmax.f32 %v12397_v24, %v12429_v34  ;;  %v12428_v1 = vmax.f32 %v21547_v63, %v21553_v14  ;;  %v12585_v24 = vld [vmem:[%s21655_s13] sm:$0xff] }
 0xaf6   : > { %v12165_v43 = vpop.f32.mrf.mxu1  ;;  %v12358_v4 = vpop.f32.mrf.mxu0  ;;  %v12495_v63 = vunpack.c.l.bf16 %v21541_v61  ;;  %v12494_v14 = vunpack.c.h.bf16 %v21539_v40 }
 0xaf7   : > { %v12468_v48 = vmax.f32 %v12404_v18, %v12436_v58  ;;  %v12483_v10 = vpack.c.bf16 %v12462_v22, %v12461_v17  ;;  %v12460_v9 = vmax.f32 %v12396_v3, %v12428_v1  ;;  %v12590_v22 = vld [vmem:[%s21655_s13 + $0x28] sm:$0xff] }
 0xaf8   : > { %v12167_v12 = vpop.f32.mrf.mxu1  ;;  %v12360_v35 = vpop.f32.mrf.mxu0 }
 0xaf9   : > { %12569 = vadd.xlane.f32.xlu1 %v12513_v30  ;;  %v12486_v6 = vpack.c.bf16 %v12468_v48, %v12467_v27  ;;  %v12405_v19 = vmax.f32 %v12165_v43, %v12167_v12  ;;  %v12437_v54 = vmax.f32 %v12358_v4, %v12360_v35  ;;  %v12510_v49 = vunpack.c.h.bf16 %v12483_v10 }
 0xafa   : > { %v12169_v42 = vpop.f32.mrf.mxu1  ;;  %v12362_v33 = vpop.f32.mrf.mxu0  ;;  %v12509_v58 = vunpack.c.l.bf16 %v12483_v10  ;;  %v12496_v43 = vunpack.c.h.bf16 %v21541_v61  ;;  %v12482_v4 = vpack.c.bf16 %v12460_v9, %v21549_v36  ;;  %v12493_v27 = vunpack.c.l.bf16 %v21539_v40  ;;  %v12586_v40 = vld [vmem:[%s21655_s13 + $0x8] sm:$0xff] }
 0xafb   : > { %v12516_v20 = vunpack.c.h.bf16 %v12486_v6  ;;  %v12469_v50 = vmax.f32 %v12405_v19, %v12437_v54  ;;  %v12515_v45 = vunpack.c.l.bf16 %v12486_v6  ;;  %v12505_v36 = vunpack.c.l.bf16 %v21543_v8  ;;  %12661 = vmatprep.mubr.f32.mxu1 %v12586_v40  ;;  %v12594_v10 = vld [vmem:[%s21656_s14 + $0x8] sm:$0xff] }
 0xafc   : > { %v12171_v28 = vpop.f32.mrf.mxu1  ;;  %v12364_v23 = vpop.f32.mrf.mxu0  ;;  %v12508_v32 = vunpack.c.h.bf16 %v12482_v4  ;;  %v12507_v25 = vunpack.c.l.bf16 %v12482_v4  ;;  %v12492_v48 = vunpack.c.h.bf16 %v21537_v15  ;;  %v12491_v61 = vunpack.c.l.bf16 %v21537_v15 }
 0xafd   : > { %v12406_v52 = vmax.f32 %v12169_v42, %v12171_v28  ;;  %v12438_v2 = vmax.f32 %v12362_v33, %v12364_v23  ;;  %12575 = vadd.xlane.f32.xlu1 %v12516_v20  ;;  %v12490_v30 = vunpack.c.h.bf16 %v21535_v55  ;;  %v12489_v12 = vunpack.c.l.bf16 %v21535_v55 }
 0xafe   : > { %v12175_v7 = vpop.f32.mrf.mxu1  ;;  %v12368_v0 = vpop.f32.mrf.mxu0 }
 0xaff   : > { %v12470_v46 = vmax.f32 %v12406_v52, %v12438_v2 }
 0xb00   : > { %v12177_v41 = vpop.f32.mrf.mxu1  ;;  %v12370_v38 = vpop.f32.mrf.mxu0 }
 0xb01   : > { %12573 = vadd.xlane.f32.xlu1 %v12515_v45  ;;  %v12487_v26 = vpack.c.bf16 %v12470_v46, %v12469_v50  ;;  %v12407_v59 = vmax.f32 %v12175_v7, %v12177_v41  ;;  %v12439_v57 = vmax.f32 %v12368_v0, %v12370_v38 }
 0xb02   : > { %v12179_v51 = vpop.f32.mrf.mxu1  ;;  %v12372_v16 = vpop.f32.mrf.mxu0 }
 0xb03   : > { %v12518_v21 = vunpack.c.h.bf16 %v12487_v26  ;;  %v12471_v62 = vmax.f32 %v12407_v59, %v12439_v57  ;;  %v12517_v11 = vunpack.c.l.bf16 %v12487_v26 }
 0xb04   : > { %v12181_v44 = vpop.f32.mrf.mxu1  ;;  %v12374_v13 = vpop.f32.mrf.mxu0 }
 0xb05   : > { %v12408_v39 = vmax.f32 %v12179_v51, %v12181_v44  ;;  %v12440_v56 = vmax.f32 %v12372_v16, %v12374_v13  ;;  %12579 = vadd.xlane.f32.xlu1 %v12518_v21 }
 0xb07   : > { %v12472_v5 = vmax.f32 %v12408_v39, %v12440_v56  ;;  %v12588_v39 = vld [vmem:[%s21655_s13 + $0x18] sm:$0xff]  ;;  %v12587_v56 = vld [vmem:[%s21655_s13 + $0x10] sm:$0xff] }
 0xb09   : > { %12577 = vadd.xlane.f32.xlu1 %v12517_v11  ;;  %v12488_v29 = vpack.c.bf16 %v12472_v5, %v12471_v62  ;;  %v12589_v62 = vld [vmem:[%s21655_s13 + $0x20] sm:$0xff]  ;;  %v12592_v5 = vld [vmem:[%s21655_s13 + $0x38] sm:$0xff]  ;;  %v12591_v11 = vld [vmem:[%s21655_s13 + $0x30] sm:$0xff] }
 0xb0b   : > { %v12520_v47 = vunpack.c.h.bf16 %v12488_v29  ;;  %v12519_v18 = vunpack.c.l.bf16 %v12488_v29  ;;  %v12593_v29 = vld [vmem:[%s21656_s14] sm:$0xff] }
 0xb0d   : > { %12565 = vadd.xlane.f32.xlu1 %v12511_v37  ;;  %12583 = vadd.xlane.f32.xlu0 %v12520_v47 }
 0xb11   : > { %12563 = vadd.xlane.f32.xlu1 %v12510_v49  ;;  %12581 = vadd.xlane.f32.xlu0 %v12519_v18 }
 0xb15   : > { %12561 = vadd.xlane.f32.xlu1 %v12509_v58  ;;  %12535 = vadd.xlane.f32.xlu0 %v12496_v43  ;;  %v12595_v43 = vld [vmem:[%s21656_s14 + $0x10] sm:$0xff] }
 0xb19   : > { %12559 = vadd.xlane.f32.xlu1 %v12508_v32  ;;  %12533 = vadd.xlane.f32.xlu0 %v12495_v63 }
 0xb1d   : > { %12557 = vadd.xlane.f32.xlu1 %v12507_v25  ;;  %12531 = vadd.xlane.f32.xlu0 %v12494_v14  ;;  %v12596_v14 = vld [vmem:[%s21656_s14 + $0x18] sm:$0xff] }
 0xb21   : > { %12555 = vadd.xlane.f32.xlu1 %v12506_v60  ;;  %12529 = vadd.xlane.f32.xlu0 %v12493_v27 }
 0xb25   : > { %12553 = vadd.xlane.f32.xlu1 %v12505_v36  ;;  %12527 = vadd.xlane.f32.xlu0 %v12492_v48 }
 0xb29   : > { %12525 = vadd.xlane.f32.xlu0 %v12491_v61 }
 0xb2d   : > { %12523 = vadd.xlane.f32.xlu0 %v12490_v30 }
 0xb31   : > { %12521 = vadd.xlane.f32.xlu0 %v12489_v12 }
 0xb3e   : > { %v12540_v35 = vpop.xlane.xlu0 %12539 }
 0xb42   : > { %v12538_v8 = vpop.xlane.xlu0 %12537 }
 0xb46   : > { %v12544_v42 = vpop.xlane.xlu0 %12543 }
 0xb4a   : > { %v12542_v54 = vpop.xlane.xlu0 %12541 }
 0xb4e   : > { %v12548_v20 = vpop.xlane.xlu0 %12547 }
 0xb52   : > { %v12546_v52 = vpop.xlane.xlu0 %12545 }
 0xb56   : > { %v12552_v6 = vpop.xlane.xlu1 %12551  ;;  %v12550_v55 = vpop.xlane.xlu0 %12549 }
 0xb76   : > { %v12568_v33 = vpop.xlane.xlu1 %12567 }
 0xb7e   : > { %v12572_v19 = vpop.xlane.xlu1 %12571 }
 0xb82   : > { %v12570_v15 = vpop.xlane.xlu1 %12569 }
 0xb86   : > { %v12576_v28 = vpop.xlane.xlu1 %12575 }
 0xb8a   : > { %v12574_v23 = vpop.xlane.xlu1 %12573 }
 0xb8e   : > { %v12580_v2 = vpop.xlane.xlu1 %12579 }
 0xb92   : > { %v12578_v7 = vpop.xlane.xlu1 %12577 }
 0xb96   : > { %v12566_v0 = vpop.xlane.xlu1 %12565  ;;  %v12584_v50 = vpop.xlane.xlu0 %12583 }
 0xb97   : > { %16252 = vmatprep.subr.mxu1 %v12584_v50 }
 0xb98   : > { %16253 = vmatpush3.msra.mxu1 %v12552_v6 }
 0xb9a   : > { %v12564_v46 = vpop.xlane.xlu1 %12563  ;;  %v12582_v45 = vpop.xlane.xlu0 %12581 }
 0xb9b   : > { %16254 = vmatprep.subr.mxu1 %v12582_v45 }
 0xb9c   : > { %16255 = vmatpush3.msra.mxu1 %v12550_v55 }
 0xb9d   : > { %16256 = vmatprep.subr.mxu1 %v12580_v2 }
 0xb9e   : > { %16257 = vmatpush3.msra.mxu1 %v12548_v20  ;;  %v12536_v41 = vpop.xlane.xlu0 %12535  ;;  %v12562_v38 = vpop.xlane.xlu1 %12561 }
 0xb9f   : > { %16258 = vmatprep.subr.mxu1 %v12578_v7 }
 0xba0   : > { %16259 = vmatpush3.msra.mxu1 %v12546_v52 }
 0xba1   : > { %16260 = vmatprep.subr.mxu1 %v12576_v28 }
 0xba2   : > { %16261 = vmatpush3.msra.mxu1 %v12544_v42  ;;  %v12534_v26 = vpop.xlane.xlu0 %12533  ;;  %v12560_v31 = vpop.xlane.xlu1 %12559 }
 0xba3   : > { %16262 = vmatprep.subr.mxu1 %v12574_v23 }
 0xba4   : > { %16263 = vmatpush3.msra.mxu1 %v12542_v54 }
 0xba5   : > { %16264 = vmatprep.subr.mxu1 %v12572_v19 }
 0xba6   : > { %16265 = vmatpush3.msra.mxu1 %v12540_v35  ;;  %v12532_v51 = vpop.xlane.xlu0 %12531  ;;  %v12558_v53 = vpop.xlane.xlu1 %12557 }
 0xba7   : > { %16266 = vmatprep.subr.mxu1 %v12570_v15 }
 0xba8   : > { %16267 = vmatpush3.msra.mxu1 %v12538_v8 }
 0xba9   : > { %16268 = vmatprep.subr.mxu1 %v12568_v33 }
 0xbaa   : > { %16269 = vmatpush3.msra.mxu1 %v12536_v41  ;;  %v12530_v16 = vpop.xlane.xlu0 %12529  ;;  %v12556_v57 = vpop.xlane.xlu1 %12555 }
 0xbab   : > { %16270 = vmatprep.subr.mxu1 %v12566_v0 }
 0xbac   : > { %16271 = vmatpush3.msra.mxu1 %v12534_v26 }
 0xbad   : > { %16272 = vmatprep.subr.mxu1 %v12564_v46 }
 0xbae   : > { %16273 = vmatpush3.msra.mxu1 %v12532_v51  ;;  %v12528_v59 = vpop.xlane.xlu0 %12527  ;;  %v12554_v13 = vpop.xlane.xlu1 %12553 }
 0xbaf   : > { %16274 = vmatprep.subr.mxu1 %v12562_v38 }
 0xbb0   : > { %16275 = vmatpush3.msra.mxu1 %v12530_v16 }
 0xbb1   : > { %16276 = vmatprep.subr.mxu1 %v12560_v31 }
 0xbb2   : > { %16277 = vmatpush3.msra.mxu1 %v12528_v59  ;;  %v12526_v21 = vpop.xlane.xlu0 %12525 }
 0xbb3   : > { %16278 = vmatprep.subr.mxu1 %v12558_v53 }
 0xbb4   : > { %16279 = vmatpush3.msra.mxu1 %v12526_v21 }
 0xbb5   : > { %16280 = vmatprep.subr.mxu1 %v12556_v57 }
 0xbb6   : > { %v12524_v44 = vpop.xlane.xlu0 %12523 }
 0xbb7   : > { %16281 = vmatpush3.msra.mxu1 %v12524_v44 }
 0xbb8   : > { %16282 = vmatprep.subr.mxu1 %v12554_v13 }
 0xbba   : > { %v12522_v34 = vpop.xlane.xlu0 %12521 }
 0xbbb   : > { %16283 = vmatpush3.msra.mxu1 %v12522_v34 }
 0xbbc   : > { %12662 = vmatmul.mubr.f32.vlgmr.msra.gmra.mxu1 %v12585_v24 }
 0xbbd   : > { %12666 = vmatprep.mubr.f32.mxu1 %v12588_v39 }
 0xbc0   : > { %12667 = vmatmul.mubr.f32.gmra.mxu1 %v12587_v56 }
 0xbc1   : > { %12671 = vmatprep.mubr.f32.mxu1 %v12590_v22 }
 0xbc4   : > { %12672 = vmatmul.mubr.f32.gmra.mxu1 %v12589_v62 }
 0xbc5   : > { %12676 = vmatprep.mubr.f32.mxu1 %v12592_v5 }
 0xbc8   : > { %12677 = vmatmul.mubr.f32.gmra.mxu1 %v12591_v11 }
 0xc7c   : > { %v16284_v17 = vpop.f32.mrf.mxu1 }
 0xc7e   : > { %v16285_v3 = vpop.f32.mrf.mxu1 }
 0xc7f   : > { %v16286_v1 = vadd.f32 %v16285_v3, %v16284_v17 }
 0xc80   : > { %v16287_v37 = vpop.f32.mrf.mxu1 }
 0xc81   : > { %v12664_v47 = vadd.f32 %v16286_v1, %v12593_v29 }
 0xc82   : > { %v16288_v9 = vpop.f32.mrf.mxu1 }
 0xc83   : > { %v16289_v49 = vadd.f32 %v16288_v9, %v16287_v37  ;;  %12684 = vperm.xlu1 %16882, %v12664_v47  }
 0xc84   : > { %v16290_v18 = vpop.f32.mrf.mxu1 }
 0xc85   : > { %v12669_v58 = vadd.f32 %v16289_v49, %v12594_v10 }
 0xc86   : > { %v16291_v4 = vpop.f32.mrf.mxu1 }
 0xc87   : > { %v16292_v32 = vadd.f32 %v16291_v4, %v16290_v18  ;;  %12689 = vperm.xlu0 %16881, %v12669_v58  }
 0xc88   : > { %v16293_v63 = vpop.f32.mrf.mxu1 }
 0xc89   : > { %v12674_v25 = vadd.f32 %v16292_v32, %v12595_v43 }
 0xc8a   : > { %v16294_v60 = vpop.f32.mrf.mxu1 }
 0xc8b   : > { %v16295_v27 = vadd.f32 %v16294_v60, %v16293_v63  ;;  %12694 = vperm.xlu1 %16882, %v12674_v25  }
 0xc8d   : > { %v12679_v36 = vadd.f32 %v16295_v27, %v12596_v14 }
 0xc8f   : > { %12699 = vperm.xlu1 %16882, %v12679_v36  }
 0xcfe   : > { %v12685_v48 = vpop.permute.xlu1 %12684 }
 0xcff   : > { %12702 = vst [vmem:[%s494_s22] sm:$0xff] %v12685_v48 }
 0xd02   : > { %v12690_v61 = vpop.permute.xlu0 %12689 }
 0xd03   : > { %12703 = vst [vmem:[%s494_s22 + $0x8] sm:$0xff] %v12690_v61 }
 0xd06   : > { %v12695_v30 = vpop.permute.xlu1 %12694 }
 0xd07   : > { %12704 = vst [vmem:[%s494_s22 + $0x10] sm:$0xff] %v12695_v30 }
 0xd0a   : > { %v12700_v12 = vpop.permute.xlu1 %12699 }
 0xd0b   : > { %12705 = vst [vmem:[%s494_s22 + $0x18] sm:$0xff] %v12700_v12 }
 0xd0c PF: > { %s25_s18 = sadd.s32 1, %s18055_s18  }
 0xd0d   : > { %p22_p4 = scmp.ge.s32.totalorder %s25_s18, 4  }
 0xd0f   :  { %24 = sbr.rel (!%p22_p4) target bundleno = 1 (0x1), region = 134 }

</bundles_post_ra>
